<compile_context>
chip_gen: v5e
topology: v5e:2x2
jax: 0.10.0
libtpu: 0.0.40
codegen_flags: <defaults>
</compile_context>

<pallas_src>
import functools

import jax
import jax.numpy as jnp
from jax.experimental import pallas as pl
from jax.experimental.pallas import tpu as pltpu


def squeeze_block_kernel(x_ref, w1_ref, b1_ref, w2_ref, b2_ref, o_ref, *, inv_s):
    # x_ref block: (Bt, C, Sp); w1 (Cr, C); b1 (1, Cr); w2 (C, Cr); b2 (1, C)
    x = x_ref[...]
    xf = x.astype(jnp.float32)

    # Global average pool: lane reduce over the (zero-padded) spatial axis,
    # normalized by the TRUE spatial size.  pooled: (Bt, C), C on lanes.
    pooled = jnp.sum(xf, axis=-1) * inv_s

    # FC1 + ReLU on the VPU: contraction axis (C) on lanes.
    # (Bt, 1, C) * (1, Cr, C) -> reduce lanes -> (Bt, Cr)
    hidden = jnp.sum(pooled[:, None, :] * w1_ref[...][None, :, :], axis=-1)
    hidden = jnp.maximum(hidden + b1_ref[...], 0.0)

    # FC2 + h_sigmoid: (Bt, 1, Cr) * (1, C, Cr) -> reduce lanes -> (Bt, C)
    logits = jnp.sum(hidden[:, None, :] * w2_ref[...][None, :, :], axis=-1)
    logits = logits + b2_ref[...]
    scale = jnp.clip(logits + 3.0, 0.0, 6.0) * (1.0 / 6.0)      # h_sigmoid

    # Broadcast per-channel scale over the spatial lanes and modulate x.
    o_ref[...] = (xf * scale[:, :, None]).astype(o_ref.dtype)


def squeeze_block(x_nchw, w1, b1, w2, b2, *, block_bytes_budget=6 * 1024 * 1024):
    """SE block.  w1: (Cr, C), b1: (Cr,), w2: (C, Cr), b2: (C,)  (nn.Linear layout)."""
    B, C, H, W = x_nchw.shape
    Cr = w1.shape[0]
    S = H * W

    # Lane-dense spatial axis: pad flattened H*W up to a multiple of 128 so the
    # x stream and the output store are unmasked full-lane vectors.
    Sp = ((S + 127) // 128) * 128
    x = x_nchw.reshape(B, C, S)
    if Sp != S:
        x = jnp.pad(x, ((0, 0), (0, 0), (0, Sp - S)))

    # Pick the batch-tile Bt: largest divisor of B whose block fits the budget
    # (keeps double-buffered in+out blocks inside scoped VMEM on every chip) while
    # keeping >= 2 grid steps so megacore (v7x) can shard the 'parallel' axis.
    bytes_per_batch = C * Sp * x.dtype.itemsize
    bt = 1
    for cand in range(B, 0, -1):
        if B % cand != 0:
            continue
        if cand * bytes_per_batch > block_bytes_budget:
            continue
        if B >= 2 and (B // cand) < 2:
            continue
        bt = cand
        break

    b1r = b1.reshape(1, Cr)
    b2r = b2.reshape(1, C)

    kernel = functools.partial(squeeze_block_kernel, inv_s=1.0 / S)
    out = pl.pallas_call(
        kernel,
        out_shape=jax.ShapeDtypeStruct((B, C, Sp), x.dtype),
        grid=(B // bt,),
        in_specs=[
            pl.BlockSpec((bt, C, Sp), lambda i: (i, 0, 0)),   # streamed x slab
            pl.BlockSpec((Cr, C), lambda i: (0, 0)),          # W1 (resident)
            pl.BlockSpec((1, Cr), lambda i: (0, 0)),          # b1 row vector
            pl.BlockSpec((C, Cr), lambda i: (0, 0)),          # W2 (resident)
            pl.BlockSpec((1, C), lambda i: (0, 0)),           # b2 row vector
        ],
        out_specs=pl.BlockSpec((bt, C, Sp), lambda i: (i, 0, 0)),
        compiler_params=pltpu.CompilerParams(
            dimension_semantics=("parallel",),
            vmem_limit_bytes=48 * 1024 * 1024,
        ),
    )(x, w1, b1r, w2, b2r)

    if Sp != S:
        out = out[:, :, :S]
    return out.reshape(B, C, H, W)


def _reference(x, w1, b1, w2, b2):
    pooled = jnp.mean(x, axis=(2, 3))                             # (B, C)
    h = jnp.maximum(pooled @ w1.T + b1, 0.0)                      # (B, Cr)
    s = jnp.clip((h @ w2.T + b2) + 3.0, 0.0, 6.0) / 6.0           # (B, C)
    return x * s[:, :, None, None]


if __name__ == "__main__":
    # exp_size = C = 64 (as in the NewNet SE stage), divide = 4 -> hidden = 16.
    # H = W = 16 -> S = 256 (already a multiple of 128, so no padding needed).
    B, C, H, W = 4, 64, 16, 16
    divide = 4
    Cr = C // divide

    key = jax.random.PRNGKey(0)
    kx, k1, k2, k3, k4 = jax.random.split(key, 5)
    x = jax.random.normal(kx, (B, C, H, W), dtype=jnp.float32)
    w1 = jax.random.normal(k1, (Cr, C), dtype=jnp.float32) * 0.1   # Linear(C, Cr).weight
    b1 = jax.random.normal(k2, (Cr,), dtype=jnp.float32) * 0.1     # Linear(C, Cr).bias
    w2 = jax.random.normal(k3, (C, Cr), dtype=jnp.float32) * 0.1   # Linear(Cr, C).weight
    b2 = jax.random.normal(k4, (C,), dtype=jnp.float32) * 0.1      # Linear(Cr, C).bias

    out = squeeze_block(x, w1, b1, w2, b2)
    jax.block_until_ready(out)

    ref = _reference(x, w1, b1, w2, b2)
    assert out.shape == (B, C, H, W)
    assert jnp.allclose(out, ref, atol=1e-4, rtol=1e-4), "mismatch vs reference"

    print("KERNEL_OK")
</pallas_src>

<mosaic_0001>
module attributes {stable_mosaic.version = 11 : i64} {
  func.func @squeeze_block_kernel(%arg0: i32, %arg1: memref<2x64x256xf32, #tpu.memory_space<vmem>>, %arg2: memref<16x64xf32, #tpu.memory_space<vmem>>, %arg3: memref<1x16xf32, #tpu.memory_space<vmem>>, %arg4: memref<64x16xf32, #tpu.memory_space<vmem>>, %arg5: memref<1x64xf32, #tpu.memory_space<vmem>>, %arg6: memref<2x64x256xf32, #tpu.memory_space<vmem>>) attributes {dimension_semantics = [#tpu.dimension_semantics<parallel>], iteration_bounds = array<i64: 2>, scalar_prefetch = 0 : i64, scratch_operands = 0 : i64, tpu.core_type = #tpu.core_type<tc>, window_params = [{transform_indices = @transform_0, window_bounds = array<i64: 2, 64, 256>}, {pipeline_mode = #tpu.pipeline_mode<synchronous>, transform_indices = @transform_1, window_bounds = array<i64: 16, 64>}, {pipeline_mode = #tpu.pipeline_mode<synchronous>, transform_indices = @transform_2, window_bounds = array<i64: 1, 16>}, {pipeline_mode = #tpu.pipeline_mode<synchronous>, transform_indices = @transform_3, window_bounds = array<i64: 64, 16>}, {pipeline_mode = #tpu.pipeline_mode<synchronous>, transform_indices = @transform_4, window_bounds = array<i64: 1, 64>}, {transform_indices = @transform_5, window_bounds = array<i64: 2, 64, 256>}]} {
    %c0 = arith.constant 0 : index
    %c0_0 = arith.constant 0 : index
    %c0_1 = arith.constant 0 : index
    %0 = vector.load %arg1[%c0, %c0_0, %c0_1] : memref<2x64x256xf32, #tpu.memory_space<vmem>>, vector<2x64x256xf32>
    %cst = arith.constant dense<0.000000e+00> : vector<2x64xf32>
    %1 = vector.multi_reduction <add>, %0, %cst [2] : vector<2x64x256xf32> to vector<2x64xf32>
    %cst_2 = arith.constant 3.906250e-03 : f32
    %2 = vector.broadcast %cst_2 : f32 to vector<2x64xf32>
    %3 = arith.mulf %1, %2 : vector<2x64xf32>
    %4 = vector.shape_cast %3 : vector<2x64xf32> to vector<2x1x64xf32>
    %c0_3 = arith.constant 0 : index
    %c0_4 = arith.constant 0 : index
    %5 = vector.load %arg2[%c0_3, %c0_4] : memref<16x64xf32, #tpu.memory_space<vmem>>, vector<16x64xf32>
    %6 = vector.shape_cast %5 : vector<16x64xf32> to vector<1x16x64xf32>
    %7 = vector.broadcast %4 : vector<2x1x64xf32> to vector<2x16x64xf32>
    %8 = vector.broadcast %6 : vector<1x16x64xf32> to vector<2x16x64xf32>
    %9 = arith.mulf %7, %8 : vector<2x16x64xf32>
    %cst_5 = arith.constant dense<0.000000e+00> : vector<2x16xf32>
    %10 = vector.multi_reduction <add>, %9, %cst_5 [2] : vector<2x16x64xf32> to vector<2x16xf32>
    %c0_6 = arith.constant 0 : index
    %c0_7 = arith.constant 0 : index
    %11 = vector.load %arg3[%c0_6, %c0_7] : memref<1x16xf32, #tpu.memory_space<vmem>>, vector<1x16xf32>
    %12 = vector.broadcast %11 : vector<1x16xf32> to vector<2x16xf32>
    %13 = arith.addf %10, %12 : vector<2x16xf32>
    %cst_8 = arith.constant 0.000000e+00 : f32
    %14 = vector.broadcast %cst_8 : f32 to vector<2x16xf32>
    %15 = arith.maximumf %13, %14 : vector<2x16xf32>
    %16 = vector.shape_cast %15 : vector<2x16xf32> to vector<2x1x16xf32>
    %c0_9 = arith.constant 0 : index
    %c0_10 = arith.constant 0 : index
    %17 = vector.load %arg4[%c0_9, %c0_10] : memref<64x16xf32, #tpu.memory_space<vmem>>, vector<64x16xf32>
    %18 = vector.shape_cast %17 : vector<64x16xf32> to vector<1x64x16xf32>
    %19 = vector.broadcast %16 : vector<2x1x16xf32> to vector<2x64x16xf32>
    %20 = vector.broadcast %18 : vector<1x64x16xf32> to vector<2x64x16xf32>
    %21 = arith.mulf %19, %20 : vector<2x64x16xf32>
    %cst_11 = arith.constant dense<0.000000e+00> : vector<2x64xf32>
    %22 = vector.multi_reduction <add>, %21, %cst_11 [2] : vector<2x64x16xf32> to vector<2x64xf32>
    %c0_12 = arith.constant 0 : index
    %c0_13 = arith.constant 0 : index
    %23 = vector.load %arg5[%c0_12, %c0_13] : memref<1x64xf32, #tpu.memory_space<vmem>>, vector<1x64xf32>
    %24 = vector.broadcast %23 : vector<1x64xf32> to vector<2x64xf32>
    %25 = arith.addf %22, %24 : vector<2x64xf32>
    %cst_14 = arith.constant 3.000000e+00 : f32
    %26 = vector.broadcast %cst_14 : f32 to vector<2x64xf32>
    %27 = arith.addf %25, %26 : vector<2x64xf32>
    %cst_15 = arith.constant 0.000000e+00 : f32
    %cst_16 = arith.constant 6.000000e+00 : f32
    %28 = vector.broadcast %cst_15 : f32 to vector<2x64xf32>
    %29 = arith.maximumf %28, %27 : vector<2x64xf32>
    %30 = vector.broadcast %cst_16 : f32 to vector<2x64xf32>
    %31 = arith.minimumf %30, %29 : vector<2x64xf32>
    %cst_17 = arith.constant 0.166666672 : f32
    %32 = vector.broadcast %cst_17 : f32 to vector<2x64xf32>
    %33 = arith.mulf %31, %32 : vector<2x64xf32>
    %34 = vector.shape_cast %33 : vector<2x64xf32> to vector<2x64x1xf32>
    %35 = vector.broadcast %34 : vector<2x64x1xf32> to vector<2x64x256xf32>
    %36 = arith.mulf %0, %35 : vector<2x64x256xf32>
    %c0_18 = arith.constant 0 : index
    %c0_19 = arith.constant 0 : index
    %c0_20 = arith.constant 0 : index
    %37 = vector.load %arg6[%c0_18, %c0_19, %c0_20] : memref<2x64x256xf32, #tpu.memory_space<vmem>>, vector<2x64x256xf32>
    tpu.vector_store %arg6[%c0_18, %c0_19, %c0_20], %36 {strides = array<i32>} : memref<2x64x256xf32, #tpu.memory_space<vmem>>, vector<2x64x256xf32>,
    return
  }
  func.func @transform_0(%arg0: i32) -> (i32, i32, i32) {
    %c0_i32 = arith.constant 0 : i32
    %c0_i32_0 = arith.constant 0 : i32
    %c0_i32_1 = arith.constant 0 : i32
    return %arg0, %c0_i32, %c0_i32_0 : i32, i32, i32
  }
  func.func @transform_1(%arg0: i32) -> (i32, i32) {
    %c0_i32 = arith.constant 0 : i32
    %c0_i32_0 = arith.constant 0 : i32
    %c0_i32_1 = arith.constant 0 : i32
    return %c0_i32, %c0_i32_0 : i32, i32
  }
  func.func @transform_2(%arg0: i32) -> (i32, i32) {
    %c0_i32 = arith.constant 0 : i32
    %c0_i32_0 = arith.constant 0 : i32
    %c0_i32_1 = arith.constant 0 : i32
    return %c0_i32, %c0_i32_0 : i32, i32
  }
  func.func @transform_3(%arg0: i32) -> (i32, i32) {
    %c0_i32 = arith.constant 0 : i32
    %c0_i32_0 = arith.constant 0 : i32
    %c0_i32_1 = arith.constant 0 : i32
    return %c0_i32, %c0_i32_0 : i32, i32
  }
  func.func @transform_4(%arg0: i32) -> (i32, i32) {
    %c0_i32 = arith.constant 0 : i32
    %c0_i32_0 = arith.constant 0 : i32
    %c0_i32_1 = arith.constant 0 : i32
    return %c0_i32, %c0_i32_0 : i32, i32
  }
  func.func @transform_5(%arg0: i32) -> (i32, i32, i32) {
    %c0_i32 = arith.constant 0 : i32
    %c0_i32_0 = arith.constant 0 : i32
    %c0_i32_1 = arith.constant 0 : i32
    return %arg0, %c0_i32, %c0_i32_0 : i32, i32, i32
  }
}

</mosaic_0001>

<bundles_post_ra>
// kernel: tpu_custom_call.1
= control target key start
LH: loop header
LB: loop body
LE: loop exit
PB: predicated region body
PF: predicated region fallthrough
CT: control target
= control target key end

     0   :  { %10 = vsyncpa [#allocation3], 0  ;;  %s11871_s0 = inlined_call_operand.hbm [shape: f32[4,64,256], index: 0, kind: input, shape index: {}]   ;;  %s11872_s1 = inlined_call_operand.vmem [shape: f32[16,64], index: 1, kind: input, shape index: {}]   ;;  %s11873_s2 = inlined_call_operand.vmem [shape: f32[1,16], index: 2, kind: input, shape index: {}]   ;;  %s11874_s3 = inlined_call_operand.vmem [shape: f32[64,16], index: 3, kind: input, shape index: {}]   ;;  %s11875_s4 = inlined_call_operand.vmem [shape: f32[1,64], index: 4, kind: input, shape index: {}]   ;;  %s11876_s5 = inlined_call_operand.hbm [shape: f32[4,64,256], index: 5, kind: output, shape index: {}]  }
   0x1   :  { %12 = vsyncpa [#allocation3 + $0x1], 0 }
   0x2   :  { %13 = vsyncpa [#allocation4], 0 }
   0x3   :  { %15 = vsyncpa [#allocation4 + $0x1], 0  ;;  %s6726_s18 = smov 0   ;;  %s6728_s19 = smov 0  }
   0x4   :  { %s6730_s20 = smov 0   ;;  %s6732_s21 = smov 0  }
   0x5 LB: > { %s6747_s22 = sadd.s32 4294967295, %s6689_s21   ;;  %s6303_s23 = sadd.s32 4294967294, %s6689_s21   ;;  %s6689_s21 = sphi %s6732_s21, %s13304_s21   ;;  %s6685_s20 = sphi %s6730_s20, %s13303_s20   ;;  %s6681_s19 = sphi %s6728_s19, %s13302_s19   ;;  %s6677_s18 = sphi %s6726_s18, %s13301_s18  }
   0x6   : > { %s6751_s24 = sadd.s32 1, %s6689_s21   ;;  %s28_s25 = sadd.s32 1, %s6685_s20 }
   0x7   : > { %s25_s26 = ssub.s32 %s6689_s21, %s6751_s24  ;;  %p35_p0 = scmp.ne.s32.totalorder %s6685_s20, %s6681_s19 }
   0x8   : > { %p26_p1 = scmp.eq.s32.totalorder %s25_s26, 0  ;;  %p36_p2 = scmp.eq.s32.totalorder %s6689_s21, 0 }
   0x9   : > { %p41_p3 = scmp.ne.s32.totalorder %s6681_s19, %s6677_s18  ;;  %p42_p4 = scmp.eq.s32.totalorder %s6747_s22, 0 }
   0xa   : > { %s6763_s27 = scalar_select %p26_p1, %s6685_s20, %s28_s25  }
   0xb   : > { %p6765_p5 = por %p36_p2, %p35_p0  ;;  %p6769_p6 = por %p42_p4, %p41_p3 }
   0xc   : > { %p149_p7 = scmp.eq.s32.totalorder %s6747_s22, 1  ;;  %p155_p8 = scmp.eq.s32.totalorder %s6303_s23, 1 }
   0xd   : > { %p6335_p10 = scmp.lt.s32.totalorder %s6689_s21, 2  ;;  %s187_s7 = sand.u32 1, %s6685_s20  }
   0xe   : > { %p6776_p11 = por %p149_p7, %p35_p0  ;;  %p6780_p12 = por %p155_p8, %p41_p3 }
   0xf   : > { %s6320_s8 = sshll.u32 %s6689_s21, 8  ;;  %s6306_s9 = sshll.u32 %s187_s7, 8 }
  0x10   : > { %s197_s12 = scalar_lea.hbm %s11871_s0, %s6320_s8  ;;  %s191_s14 = scalar_lea.vmem [#allocation2], %s6306_s9 }
  0x11   : > { %s198_s13 = sshll.u32 %s197_s12, 4  ;;  %s200_s15 = sshll.u32 %s191_s14, 4  ;;  %s199_s13 = int_to_ptr.hbm [resolvable:$true] %s198_s13  ;;  %s201_s15 = int_to_ptr.vmem [resolvable:$true] %s200_s15 }
  0x12   : > { %p6791_p13 = pnand %p6335_p10, %p6765_p5  ;;  %p6310_p0 = scmp.ge.s32.totalorder %s6689_s21, 1 }
  0x13   : > { %p208_p1 = scmp.lt.s32.totalorder %s6689_s21, 3  ;;  %s188_s17 = scalar_lea.sflag [#allocation3], %s187_s7 }
  0x14   : > { %s6593_s23 = sshra.s32 %s199_s13, 4  ;;  %p6597_p3 = pneg %p6791_p13  ;;  %s6594_s23 = int_to_ptr.hbm [resolvable:$true] %s6593_s23 }
  0x15   : > { %s6595_s25 = scalar_lea.hbm %s6594_s23, 256  ;;  %s6600_s28 = scalar_lea.hbm %s11871_s0, 512 }
  0x16   : > { %p6596_p2 = scmp.ne.s32.totalorder %s6594_s23, %s6595_s25  ;;  %p6601_p5 = scmp.lt.s32.totalorder %s6594_s23, %s11871_s0 }
  0x17   : > { %p6602_p8 = scmp.lt.s32.totalorder %s6600_s28, %s6595_s25 }
  0x18   : > { %p6598_p4 = pnand %p6597_p3, %p6596_p2 }
  0x19   : > { %p6603_p10 = por %p6602_p8, %p6601_p5 }
  0x1a   : > { %p6599_p7 = pneg %p6598_p4 }
  0x1c   : > { %p6604_p9 = pnand %p6603_p10, %p6599_p7 }
  0x1e   : > { %6607 = shalt.err (!%p6604_p9)
}
  0x1f   : > { %s6691_s7 = smov 256   ;;  %s6692_s11 = smov 16  }
  0x20   : > { %6330 = dma.hbm_to_vmem [thread:$0]  (!%p6791_p13), %s199_s13, 4096, %s201_s15, %s188_s17, %s6691_s7, %s6691_s7, %s6692_s11  }
  0x21   : > { %p209_p2 = pnand %p6310_p0, %p208_p1 }
  0x23   : > { %212 = sbr.rel (%p209_p2) target bundleno = 3463 (0xd87), region = 40 }
  0x28   : > { %s6812_s12 = sand.u32 1, %s6681_s19  }
  0x29   : > { %s6311_s14 = sshll.u32 %s6812_s12, 8  ;;  %s215_s23 = scalar_lea.sflag [#allocation3], %s6812_s12 }
  0x2a   : > { %s6818_s25 = scalar_lea.vmem [#allocation2], %s6311_s14 }
  0x2b   : > { %6668 = dma.done.wait (%p6769_p6), %s215_s23, 4096  }
  0x2c   : > { %6670 = vsyncadd (%p6769_p6), %s215_s23, 4294963200  ;;  %v256_v0 = vld [vmem:[%s6818_s25 + $0x40] sm:$0xff]  ;;  %v257_v1 = vld [vmem:[%s6818_s25 + $0x48] sm:$0xff]  ;;  %v11877_v21 = vlaneseq  ;;  %vm2545_vm0 = vcmask 130112   ;;  %vm2549_vm1 = vcmask 195712   ;;  %vm2553_vm2 = vcmask 261312  }
  0x2d   : > { %v252_v2 = vld [vmem:[%s6818_s25 + $0x20] sm:$0xff]  ;;  %v292_v3 = vadd.f32 %v257_v1, %v256_v0  ;;  %v253_v4 = vld [vmem:[%s6818_s25 + $0x28] sm:$0xff]  ;;  %v258_v9 = vld [vmem:[%s6818_s25 + $0x50] sm:$0xff]  ;;  %vm2557_vm3 = vcmask 326912   ;;  %vm2561_vm4 = vcmask 392512   ;;  %vm2565_vm5 = vcmask 458112  }
  0x2e   : > { %v248_v5 = vld [vmem:[%s6818_s25] sm:$0xff]  ;;  %v249_v6 = vld [vmem:[%s6818_s25 + $0x8] sm:$0xff]  ;;  %v286_v7 = vadd.f32 %v253_v4, %v252_v2  ;;  %v259_v10 = vld [vmem:[%s6818_s25 + $0x58] sm:$0xff]  ;;  %v6843_v25 = vshrl.u32 %v11877_v21, 7  ;;  %vm2569_vm6 = vcmask 523712   ;;  %vm3036_vm7 = vcmask 1041409  }
  0x2f   : > { %v280_v8 = vadd.f32 %v249_v6, %v248_v5  ;;  %293 = vadd.xlane.f32.xlu2 %v292_v3  ;;  %v254_v11 = vld [vmem:[%s6818_s25 + $0x30] sm:$0xff]  ;;  %v255_v12 = vld [vmem:[%s6818_s25 + $0x38] sm:$0xff]  ;;  %v295_v15 = vadd.f32 %v259_v10, %v258_v9  ;;  %v264_v18 = vld [vmem:[%s6818_s25 + $0x80] sm:$0xff]  ;;  %vm3038_vm8 = vcmask 1042434   ;;  %vm3040_vm9 = vcmask 1043459   ;;  %s11773_s17 = scalar_lea.vmem [#allocation5], %s6311_s14 }
  0x30   : > { %287 = vadd.xlane.f32.xlu1 %v286_v7  ;;  %v250_v13 = vld [vmem:[%s6818_s25 + $0x10] sm:$0xff]  ;;  %v251_v14 = vld [vmem:[%s6818_s25 + $0x18] sm:$0xff]  ;;  %v289_v16 = vadd.f32 %v255_v12, %v254_v11  ;;  %v265_v19 = vld [vmem:[%s6818_s25 + $0x88] sm:$0xff]  ;;  %12171 = vst [vmem:[#allocation8_spill] sm:$0xff] %v6843_v25  ;;  %v6846_v29 = vadd.s32 8, %v6843_v25  ;;  %v6877_v54 = vadd.s32 24, %v6843_v25 }
  0x31   : > { %281 = vadd.xlane.f32.xlu0 %v280_v8  ;;  %v283_v17 = vadd.f32 %v251_v14, %v250_v13  ;;  %v262_v20 = vld [vmem:[%s6818_s25 + $0x70] sm:$0xff]  ;;  %v263_v22 = vld [vmem:[%s6818_s25 + $0x78] sm:$0xff]  ;;  %v260_v23 = vld [vmem:[%s6818_s25 + $0x60] sm:$0xff]  ;;  %v304_v26 = vadd.f32 %v265_v19, %v264_v18  ;;  %6374 = vset.pattern.permute.xlu1 %v6843_v25  ;;  %v6880_v55 = vadd.s32 32, %v6843_v25  ;;  %v6899_v59 = vadd.s32 40, %v6843_v25  ;;  %s6322_s14 = sshll.u32 %s6747_s22, 8 }
  0x32   : > { %v261_v24 = vld [vmem:[%s6818_s25 + $0x68] sm:$0xff]  ;;  %v301_v27 = vadd.f32 %v263_v22, %v262_v20  ;;  %12172 = vst [vmem:[#allocation9_spill] sm:$0xff] %v6846_v29  ;;  %6375 = vset.pattern.permute.xlu2 %v6846_v29  ;;  %6382 = vset.pattern.permute.xlu0 %v6846_v29  ;;  %v270_v30 = vld [vmem:[%s6818_s25 + $0xb0] sm:$0xff]  ;;  %v271_v31 = vld [vmem:[%s6818_s25 + $0xb8] sm:$0xff]  ;;  %v6903_v60 = vadd.s32 48, %v6843_v25  ;;  %v6911_v61 = vadd.s32 56, %v6843_v25  ;;  %s6226_s28 = scalar_lea.hbm %s11876_s5, %s6322_s14 }
  0x33   : > { %v298_v28 = vadd.f32 %v261_v24, %v260_v23  ;;  %v268_v32 = vld [vmem:[%s6818_s25 + $0xa0] sm:$0xff]  ;;  %v269_v33 = vld [vmem:[%s6818_s25 + $0xa8] sm:$0xff]  ;;  %v266_v34 = vld [vmem:[%s6818_s25 + $0x90] sm:$0xff]  ;;  %v313_v36 = vadd.f32 %v271_v31, %v270_v30  ;;  %12173 = vst [vmem:[#allocation10_spill] sm:$0xff] %v6877_v54  ;;  %v6918_v62 = vadd.s32 16, %v6843_v25  ;;  %vm3042_vm10 = vcmask 1044484  }
  0x34   : > { %v267_v35 = vld [vmem:[%s6818_s25 + $0x98] sm:$0xff]  ;;  %v310_v37 = vadd.f32 %v269_v33, %v268_v32  ;;  %v276_v39 = vld [vmem:[%s6818_s25 + $0xe0] sm:$0xff]  ;;  %v277_v40 = vld [vmem:[%s6818_s25 + $0xe8] sm:$0xff]  ;;  %12174 = vst [vmem:[#allocation11_spill] sm:$0xff] %v6880_v55  ;;  %vm3044_vm11 = vcmask 1045509   ;;  %vm3046_vm12 = vcmask 1046534  }
  0x35   : > { %v307_v38 = vadd.f32 %v267_v35, %v266_v34  ;;  %v274_v41 = vld [vmem:[%s6818_s25 + $0xd0] sm:$0xff]  ;;  %v275_v42 = vld [vmem:[%s6818_s25 + $0xd8] sm:$0xff]  ;;  %v272_v43 = vld [vmem:[%s6818_s25 + $0xc0] sm:$0xff]  ;;  %v322_v45 = vadd.f32 %v277_v40, %v276_v39  ;;  %12175 = vst [vmem:[#allocation12_spill] sm:$0xff] %v6899_v59  ;;  %vm3048_vm13 = vcmask 1047559   ;;  %vm3075_vm14 = vcmask 523264  }
  0x36   : > { %v273_v44 = vld [vmem:[%s6818_s25 + $0xc8] sm:$0xff]  ;;  %v319_v46 = vadd.f32 %v275_v42, %v274_v41  ;;  %v278_v48 = vld [vmem:[%s6818_s25 + $0xf0] sm:$0xff]  ;;  %v279_v49 = vld [vmem:[%s6818_s25 + $0xf8] sm:$0xff]  ;;  %12176 = vst [vmem:[#allocation13_spill] sm:$0xff] %v6903_v60  ;;  %vm5881_vm15 = vcmask 130048   ;;  %s6227_s9 = sshll.u32 %s11773_s17, 4  ;;  %s6228_s9 = int_to_ptr.vmem [resolvable:$true] %s6227_s9 }
  0x37   : > { %296 = vadd.xlane.f32.xlu2 %v295_v15  ;;  %v316_v47 = vadd.f32 %v273_v44, %v272_v43  ;;  %v325_v50 = vadd.f32 %v279_v49, %v278_v48  ;;  %v6868_v51 = vld [vmem:[%s11872_s1] sm:$0xff]  ;;  %v6891_v57 = vld [vmem:[%s11872_s1 + $0x8] sm:$0xff]  ;;  %12177 = vst [vmem:[#allocation14_spill] sm:$0xff] %v6911_v61  ;;  %s6229_s10 = sshll.u32 %s6226_s28, 4  ;;  %s6214_s22 = scalar_lea.sflag [#allocation4], %s6812_s12  ;;  %s6230_s10 = int_to_ptr.hbm [resolvable:$true] %s6229_s10 }
  0x38   : > { %290 = vadd.xlane.f32.xlu1 %v289_v16  ;;  %v6871_v52 = vperm.slane %v6868_v51, 0  ;;  %v397_v53 = vperm.slane %v6868_v51, 1  ;;  %v6884_v56 = vperm.slane %v6868_v51, 6  ;;  %v6895_v58 = vperm.slane %v6891_v57, 3  ;;  %12178 = vst [vmem:[#allocation15_spill] sm:$0xff] %v6918_v62  ;;  %s6637_s7 = sshra.s32 %s6230_s10, 4  ;;  %s6638_s7 = int_to_ptr.hbm [resolvable:$true] %s6637_s7 }
  0x39   : > { %284 = vadd.xlane.f32.xlu0 %v283_v17  ;;  %v446_v63 = vperm.slane %v6868_v51, 2  ;;  %v6927_v0 = vperm.slane %v6868_v51, 7  ;;  %v6932_v1 = vperm.slane %v6891_v57, 4  ;;  %v495_v2 = vperm.slane %v6868_v51, 3  ;;  %s6639_s11 = scalar_lea.hbm %s6638_s7, 256  ;;  %s6643_s13 = scalar_lea.hbm %s11876_s5, 512 }
  0x3a   : > { %v6941_v3 = vperm.slane %v6891_v57, 0  ;;  %v6948_v5 = vperm.slane %v6891_v57, 5  ;;  %v544_v11 = vperm.slane %v6868_v51, 4  ;;  %v6980_v14 = vperm.slane %v6891_v57, 1  ;;  %p6640_p6 = scmp.ne.s32.totalorder %s6638_s7, %s6639_s11  ;;  %p6644_p0 = scmp.lt.s32.totalorder %s6638_s7, %s11876_s5 }
  0x3b   : > { %v6991_v18 = vperm.slane %v6891_v57, 6  ;;  %v7046_v41 = vperm.slane %v6891_v57, 2  ;;  %v7055_v44 = vperm.slane %v6891_v57, 7  ;;  %p6645_p1 = scmp.lt.s32.totalorder %s6643_s13, %s6639_s11 }
  0x3c   : > { %p6641_p9 = pnand %p6640_p6, %p6776_p11 }
  0x3d   : > { %p6646_p3 = por %p6645_p1, %p6644_p0 }
  0x3e   : > { %p6642_p13 = pneg %p6641_p9 }
  0x3f   : > { %305 = vadd.xlane.f32.xlu2 %v304_v26 }
  0x40   : > { %302 = vadd.xlane.f32.xlu1 %v301_v27  ;;  %p6647_p4 = pnand %p6646_p3, %p6642_p13 }
  0x41   : > { %299 = vadd.xlane.f32.xlu0 %v298_v28 }
  0x47   : > { %314 = vadd.xlane.f32.xlu2 %v313_v36 }
  0x48   : > { %311 = vadd.xlane.f32.xlu1 %v310_v37  ;;  %v7035_v37 = vperm.slane %v6868_v51, 5  ;;  %v11878_v51 = vmov 0  }
  0x49   : > { %308 = vadd.xlane.f32.xlu0 %v307_v38 }
  0x4f   : > { %323 = vadd.xlane.f32.xlu2 %v322_v45 }
  0x50   : > { %320 = vadd.xlane.f32.xlu1 %v319_v46 }
  0x51   : > { %317 = vadd.xlane.f32.xlu0 %v316_v47 }
  0x59   : > { %326 = vadd.xlane.f32.xlu0 %v325_v50 }
  0x67   : > { %359 = vperm.xlu2 %6375, %v6871_v52  }
  0x69   : > { %353 = vperm.xlu1 %6374, %v6871_v52  }
  0x6d   : > { %408 = vperm.xlu0 %6382, %v397_v53  }
  0x6f   : > { %6376 = vset.pattern.permute.xlu2 %v6877_v54 }
  0x71   : > { %6377 = vset.pattern.permute.xlu1 %v6880_v55 }
  0x75   : > { %653 = vperm.xlu0 %6382, %v6884_v56  }
  0x77   : > { %371 = vperm.xlu2 %6376, %v6871_v52  }
  0x79   : > { %377 = vperm.xlu1 %6377, %v6871_v52  }
  0x7d   : > { %898 = vperm.xlu0 %6382, %v6895_v58  }
  0x7f   : > { %6378 = vset.pattern.permute.xlu2 %v6899_v59 }
  0x81   : > { %6379 = vset.pattern.permute.xlu1 %v6903_v60 }
  0x85   : > { %6447 = vset.pattern.permute.xlu0 %v6903_v60 }
  0x87   : > { %383 = vperm.xlu2 %6378, %v6871_v52  }
  0x89   : > { %389 = vperm.xlu1 %6379, %v6871_v52  }
  0x8d   : > { %438 = vperm.xlu0 %6447, %v397_v53  }
  0x8f   : > { %6380 = vset.pattern.permute.xlu2 %v6911_v61 }
  0x91   : > { %6381 = vset.pattern.permute.xlu1 %v6843_v25 }
  0x95   : > { %683 = vperm.xlu0 %6447, %v6884_v56  }
  0x97   : > { %395 = vperm.xlu2 %6380, %v6871_v52  }
  0x99   : > { %402 = vperm.xlu1 %6381, %v397_v53  }
  0x9d   : > { %928 = vperm.xlu0 %6447, %v6895_v58  }
  0x9f   : > { %6383 = vset.pattern.permute.xlu2 %v6918_v62 }
  0xa1   : > { %6384 = vset.pattern.permute.xlu1 %v6877_v54 }
  0xa2   : > { %v6974_v12 = vpop.xlane.xlu2 %293 }
  0xa3   : > { %v6988_v17 = vpop.xlane.xlu1 %287 }
  0xa4   : > { %v6945_v4 = vpop.xlane.xlu0 %281 }
  0xa5   : > { %6452 = vset.pattern.permute.xlu0 %v6877_v54 }
  0xa7   : > { %414 = vperm.xlu2 %6383, %v397_v53  }
  0xa9   : > { %420 = vperm.xlu1 %6384, %v397_v53  }
  0xaa   : > { %v6982_v15 = vpop.xlane.xlu2 %296 }
  0xab   : > { %v6999_v22 = vpop.xlane.xlu1 %290 }
  0xac   : > { %v6953_v6 = vpop.xlane.xlu0 %284 }
  0xad   : > { %469 = vperm.xlu0 %6452, %v446_v63   ;;  %v7064_v47 = vmul.f32 0.00390625, %v6953_v6 }
  0xaf   : > { %6385 = vset.pattern.permute.xlu2 %v6880_v55 }
  0xb1   : > { %6386 = vset.pattern.permute.xlu1 %v6899_v59 }
  0xb2   : > { %v6995_v19 = vpop.xlane.xlu2 %305 }
  0xb3   : > { %12183 = vst [vmem:[#allocation20_spill] sm:$0xff] %v6995_v19  ;;  %v7008_v26 = vpop.xlane.xlu1 %302 }
  0xb4   : > { %v6956_v7 = vpop.xlane.xlu0 %299 }
  0xb5   : > { %714 = vperm.xlu0 %6452, %v6927_v0  }
  0xb7   : > { %426 = vperm.xlu2 %6385, %v397_v53  }
  0xb9   : > { %432 = vperm.xlu1 %6386, %v397_v53  }
  0xba   : > { %v7002_v23 = vpop.xlane.xlu2 %314 }
  0xbb   : > { %12185 = vst [vmem:[#allocation22_spill] sm:$0xff] %v7002_v23  ;;  %v7015_v30 = vpop.xlane.xlu1 %311 }
  0xbc   : > { %v6961_v8 = vpop.xlane.xlu0 %308  ;;  %12189 = vst [vmem:[#allocation26_spill] sm:$0xff] %v7015_v30 }
  0xbd   : > { %959 = vperm.xlu0 %6452, %v6932_v1  }
  0xbf   : > { %6387 = vset.pattern.permute.xlu2 %v6911_v61 }
  0xc1   : > { %6388 = vset.pattern.permute.xlu1 %v6843_v25 }
  0xc2   : > { %v7010_v27 = vpop.xlane.xlu2 %323 }
  0xc3   : > { %12187 = vst [vmem:[#allocation24_spill] sm:$0xff] %v7010_v27  ;;  %v7024_v33 = vpop.xlane.xlu1 %320 }
  0xc4   : > { %v6965_v9 = vpop.xlane.xlu0 %317  ;;  %12191 = vst [vmem:[#allocation28_spill] sm:$0xff] %v7024_v33 }
  0xc5   : > { %6457 = vset.pattern.permute.xlu0 %v6843_v25  ;;  %12179 = vst [vmem:[#allocation16_spill] sm:$0xff] %v6965_v9 }
  0xc7   : > { %444 = vperm.xlu2 %6387, %v397_v53   ;;  %v7078_v53 = vmul.f32 0.00390625, %v6956_v7 }
  0xc9   : > { %451 = vperm.xlu1 %6388, %v446_v63  }
  0xca   : > { %v7019_v31 = vpop.permute.xlu2 %359 }
  0xcb   : > { %v1261_v50 = vmul.f32 %v7019_v31, %v7064_v47 }
  0xcc   : > { %v6969_v10 = vpop.xlane.xlu0 %326 }
  0xcd   : > { %500 = vperm.xlu0 %6457, %v495_v2   ;;  %12180 = vst [vmem:[#allocation17_spill] sm:$0xff] %v6969_v10 }
  0xcf   : > { %6389 = vset.pattern.permute.xlu2 %v6846_v29 }
  0xd1   : > { %6390 = vset.pattern.permute.xlu1 %v6918_v62 }
  0xd2   : > { %v7027_v34 = vpop.permute.xlu2 %371 }
  0xd5   : > { %745 = vperm.xlu0 %6457, %v6941_v3  }
  0xd7   : > { %457 = vperm.xlu2 %6389, %v446_v63  }
  0xd9   : > { %463 = vperm.xlu1 %6390, %v446_v63  }
  0xdb   : > { %v7032_v36 = vpop.permute.xlu1 %353 }
  0xdd   : > { %990 = vperm.xlu0 %6457, %v6948_v5  }
  0xdf   : > { %6391 = vset.pattern.permute.xlu2 %v6880_v55  ;;  %v6977_v13 = vpop.permute.xlu0 %408 }
  0xe0   : > { %12181 = vst [vmem:[#allocation18_spill] sm:$0xff] %v6977_v13  ;;  %v1269_v7 = vmul.f32 %v6977_v13, %v7064_v47 }
  0xe1   : > { %6392 = vset.pattern.permute.xlu1 %v6899_v59  ;;  %v7039_v38 = vpop.permute.xlu2 %383 }
  0xe2   : > { %12192 = vst [vmem:[#allocation29_spill] sm:$0xff] %v7039_v38 }
  0xe5   : > { %6462 = vset.pattern.permute.xlu0 %v6899_v59 }
  0xe7   : > { %475 = vperm.xlu2 %6391, %v446_v63   ;;  %v6985_v16 = vpop.permute.xlu0 %653 }
  0xe8   : > { %12182 = vst [vmem:[#allocation19_spill] sm:$0xff] %v6985_v16 }
  0xe9   : > { %481 = vperm.xlu1 %6392, %v446_v63  }
  0xeb   : > { %v7041_v39 = vpop.permute.xlu1 %377 }
  0xed   : > { %530 = vperm.xlu0 %6462, %v495_v2  }
  0xef   : > { %6393 = vset.pattern.permute.xlu2 %v6903_v60  ;;  %v6997_v20 = vpop.permute.xlu0 %898 }
  0xf0   : > { %12184 = vst [vmem:[#allocation21_spill] sm:$0xff] %v6997_v20 }
  0xf1   : > { %6394 = vset.pattern.permute.xlu1 %v6911_v61  ;;  %v7049_v42 = vpop.permute.xlu2 %395 }
  0xf5   : > { %775 = vperm.xlu0 %6462, %v6941_v3  }
  0xf7   : > { %487 = vperm.xlu2 %6393, %v446_v63  }
  0xf9   : > { %493 = vperm.xlu1 %6394, %v446_v63  }
  0xfb   : > { %v7052_v43 = vpop.permute.xlu1 %389 }
  0xfc   : > { %12194 = vst [vmem:[#allocation31_spill] sm:$0xff] %v7052_v43  ;;  %v1266_v63 = vmul.f32 %v7052_v43, %v7078_v53 }
  0xfd   : > { %1020 = vperm.xlu0 %6462, %v6948_v5  }
  0xff   : > { %6395 = vset.pattern.permute.xlu2 %v6846_v29  ;;  %v7006_v24 = vpop.permute.xlu0 %438 }
 0x100   : > { %12186 = vst [vmem:[#allocation23_spill] sm:$0xff] %v7006_v24 }
 0x101   : > { %6396 = vset.pattern.permute.xlu1 %v6918_v62  ;;  %v7061_v46 = vpop.permute.xlu2 %414 }
 0x105   : > { %6467 = vset.pattern.permute.xlu0 %v6918_v62 }
 0x107   : > { %506 = vperm.xlu2 %6395, %v495_v2   ;;  %v7012_v28 = vpop.permute.xlu0 %683 }
 0x108   : > { %12188 = vst [vmem:[#allocation25_spill] sm:$0xff] %v7012_v28 }
 0x109   : > { %512 = vperm.xlu1 %6396, %v495_v2  }
 0x10b   : > { %v7067_v48 = vpop.permute.xlu1 %402 }
 0x10c   : > { %12196 = vst [vmem:[#allocation33_spill] sm:$0xff] %v7067_v48 }
 0x10d   : > { %365 = vperm.xlu0 %6467, %v6871_v52  }
 0x10f   : > { %6397 = vset.pattern.permute.xlu2 %v6877_v54  ;;  %v7022_v32 = vpop.permute.xlu0 %928 }
 0x110   : > { %12190 = vst [vmem:[#allocation27_spill] sm:$0xff] %v7022_v32 }
 0x111   : > { %6398 = vset.pattern.permute.xlu1 %v6880_v55  ;;  %v7075_v52 = vpop.permute.xlu2 %426 }
 0x112   : > { %12198 = vst [vmem:[#allocation35_spill] sm:$0xff] %v7075_v52 }
 0x115   : > { %561 = vperm.xlu0 %6467, %v544_v11  }
 0x117   : > { %518 = vperm.xlu2 %6397, %v495_v2  }
 0x119   : > { %524 = vperm.xlu1 %6398, %v495_v2  }
 0x11b   : > { %v7081_v57 = vpop.permute.xlu1 %420 }
 0x11c   : > { %12199 = vst [vmem:[#allocation36_spill] sm:$0xff] %v7081_v57 }
 0x11d   : > { %806 = vperm.xlu0 %6467, %v6980_v14  }
 0x11f   : > { %6399 = vset.pattern.permute.xlu2 %v6903_v60  ;;  %v7029_v35 = vpop.permute.xlu0 %469 }
 0x121   : > { %6400 = vset.pattern.permute.xlu1 %v6911_v61  ;;  %v7088_v6 = vpop.permute.xlu2 %444 }
 0x122   : > { %12201 = vst [vmem:[#allocation38_spill] sm:$0xff] %v7088_v6 }
 0x125   : > { %1051 = vperm.xlu0 %6467, %v6991_v18  }
 0x127   : > { %536 = vperm.xlu2 %6399, %v495_v2   ;;  %v7043_v40 = vpop.permute.xlu0 %714 }
 0x128   : > { %12193 = vst [vmem:[#allocation30_spill] sm:$0xff] %v7043_v40 }
 0x129   : > { %542 = vperm.xlu1 %6400, %v495_v2  }
 0x12d   : > { %6472 = vset.pattern.permute.xlu0 %v6911_v61 }
 0x12f   : > { %6401 = vset.pattern.permute.xlu2 %v6843_v25  ;;  %v7058_v45 = vpop.permute.xlu0 %959 }
 0x130   : > { %12195 = vst [vmem:[#allocation32_spill] sm:$0xff] %v7058_v45 }
 0x131   : > { %6402 = vset.pattern.permute.xlu1 %v6846_v29 }
 0x135   : > { %591 = vperm.xlu0 %6472, %v544_v11  }
 0x137   : > { %549 = vperm.xlu2 %6401, %v544_v11  }
 0x139   : > { %555 = vperm.xlu1 %6402, %v544_v11  }
 0x13d   : > { %836 = vperm.xlu0 %6472, %v6980_v14  }
 0x13f   : > { %6403 = vset.pattern.permute.xlu2 %v6877_v54  ;;  %v7070_v49 = vpop.permute.xlu0 %500 }
 0x140   : > { %12197 = vst [vmem:[#allocation34_spill] sm:$0xff] %v7070_v49 }
 0x141   : > { %6404 = vset.pattern.permute.xlu1 %v6880_v55 }
 0x145   : > { %1081 = vperm.xlu0 %6472, %v6991_v18  }
 0x147   : > { %567 = vperm.xlu2 %6403, %v544_v11   ;;  %v7086_v2 = vpop.permute.xlu0 %745 }
 0x148   : > { %12200 = vst [vmem:[#allocation37_spill] sm:$0xff] %v7086_v2  ;;  %v7130_v2 = vmul.f32 0.00390625, %v6988_v17 }
 0x149   : > { %573 = vperm.xlu1 %6404, %v544_v11  }
 0x14d   : > { %6477 = vset.pattern.permute.xlu0 %v6880_v55 }
 0x14f   : > { %6405 = vset.pattern.permute.xlu2 %v6899_v59  ;;  %v7098_v21 = vpop.permute.xlu0 %990 }
 0x150   : > { %12203 = vst [vmem:[#allocation40_spill] sm:$0xff] %v7098_v21  ;;  %v7117_v21 = vmul.f32 0.00390625, %v7008_v26 }
 0x151   : > { %6406 = vset.pattern.permute.xlu1 %v6903_v60 }
 0x155   : > { %622 = vperm.xlu0 %6477, %v7035_v37  }
 0x157   : > { %579 = vperm.xlu2 %6405, %v544_v11  }
 0x159   : > { %585 = vperm.xlu1 %6406, %v544_v11   ;;  %v7091_v11 = vpop.permute.xlu1 %432 }
 0x15d   : > { %867 = vperm.xlu0 %6477, %v7046_v41  }
 0x15f   : > { %6407 = vset.pattern.permute.xlu2 %v6843_v25  ;;  %v7109_v13 = vpop.permute.xlu0 %530 }
 0x160   : > { %12204 = vst [vmem:[#allocation41_spill] sm:$0xff] %v7109_v13 }
 0x161   : > { %6408 = vset.pattern.permute.xlu1 %v6846_v29 }
 0x165   : > { %1112 = vperm.xlu0 %6477, %v7055_v44  }
 0x167   : > { %598 = vperm.xlu2 %6407, %v7035_v37  }
 0x169   : > { %604 = vperm.xlu1 %6408, %v7035_v37  }
 0x16d   : > { %6486 = vset.pattern.permute.xlu0 %v11878_v51  ;;  %v7101_v51 = vpop.permute.xlu1 %451 }
 0x16e   : > { %1776 = vperm.xlu0 %6486, %v1261_v50   ;;  %v7096_v50 = vpop.permute.xlu2 %457 }
 0x16f   : > { %6409 = vset.pattern.permute.xlu2 %v6918_v62  ;;  %12202 = vst [vmem:[#allocation39_spill] sm:$0xff] %v7096_v50 }
 0x171   : > { %6410 = vset.pattern.permute.xlu1 %v6877_v54 }
 0x176   : > { %1791 = vperm.xlu0 %6486, %v1266_v63   ;;  %v7104_v63 = vmul.f32 0.00390625, %v6974_v12  ;;  %v7111_v32 = vpop.permute.xlu2 %475  ;;  %v1275_v12 = vmul.f32 %v7088_v6, %v7117_v21  ;;  %v7141_v6 = vmul.f32 0.00390625, %v6982_v15 }
 0x177   : > { %610 = vperm.xlu2 %6409, %v7035_v37   ;;  %12205 = vst [vmem:[#allocation42_spill] sm:$0xff] %v7111_v32 }
 0x178   : > { %v1272_v43 = vmul.f32 %v7075_v52, %v7104_v63  ;;  %v7127_v52 = vpop.permute.xlu0 %775 }
 0x179   : > { %616 = vperm.xlu1 %6410, %v7035_v37   ;;  %12208 = vst [vmem:[#allocation45_spill] sm:$0xff] %v7127_v52 }
 0x17e   : > { %1800 = vperm.xlu0 %6486, %v1269_v7   ;;  %v7114_v7 = vpop.permute.xlu1 %463  ;;  %v7122_v20 = vpop.permute.xlu2 %487 }
 0x17f   : > { %6411 = vset.pattern.permute.xlu2 %v6899_v59  ;;  %12206 = vst [vmem:[#allocation43_spill] sm:$0xff] %v7114_v7  ;;  %v1278_v26 = vmul.f32 %v7114_v7, %v7130_v2  ;;  %v7149_v7 = vmul.f32 0.00390625, %v6945_v4  ;;  %v7165_v4 = vmul.f32 0.00390625, %v6999_v22 }
 0x180   : > { %v7144_v23 = vpop.permute.xlu0 %1020 }
 0x181   : > { %6412 = vset.pattern.permute.xlu1 %v6903_v60  ;;  %12210 = vst [vmem:[#allocation47_spill] sm:$0xff] %v7144_v23 }
 0x186   : > { %1809 = vperm.xlu0 %6486, %v1272_v43   ;;  %v7125_v43 = vpop.permute.xlu1 %481  ;;  %v7135_v27 = vpop.permute.xlu2 %506 }
 0x187   : > { %628 = vperm.xlu2 %6411, %v7035_v37   ;;  %12207 = vst [vmem:[#allocation44_spill] sm:$0xff] %v7125_v43  ;;  %v1281_v17 = vmul.f32 %v7125_v43, %v7141_v6 }
 0x188   : > { %v7159_v40 = vpop.permute.xlu0 %365 }
 0x189   : > { %634 = vperm.xlu1 %6412, %v7035_v37  }
 0x18e   : > { %1818 = vperm.xlu0 %6486, %v1275_v12   ;;  %v7138_v12 = vpop.permute.xlu1 %493  ;;  %v7156_v15 = vpop.permute.xlu2 %518 }
 0x18f   : > { %6413 = vset.pattern.permute.xlu2 %v6911_v61  ;;  %12209 = vst [vmem:[#allocation46_spill] sm:$0xff] %v7138_v12 }
 0x190   : > { %12212 = vst [vmem:[#allocation49_spill] sm:$0xff] %v7156_v15  ;;  %v7172_v23 = vpop.permute.xlu0 %561 }
 0x191   : > { %6414 = vset.pattern.permute.xlu1 %v6843_v25 }
 0x196   : > { %1827 = vperm.xlu0 %6486, %v1278_v26   ;;  %v7152_v26 = vpop.permute.xlu1 %512  ;;  %v7167_v43 = vpop.permute.xlu2 %536 }
 0x197   : > { %640 = vperm.xlu2 %6413, %v7035_v37   ;;  %12211 = vst [vmem:[#allocation48_spill] sm:$0xff] %v7152_v26  ;;  %v1284_v37 = vmul.f32 %v7070_v49, %v7149_v7  ;;  %v1287_v49 = vmul.f32 %v7156_v15, %v7165_v4  ;;  %v1290_v22 = vmul.f32 %v7167_v43, %v7078_v53 }
 0x198   : > { %12213 = vst [vmem:[#allocation50_spill] sm:$0xff] %v7167_v43  ;;  %v7182_v33 = vpop.permute.xlu0 %806 }
 0x199   : > { %647 = vperm.xlu1 %6414, %v6884_v56   ;;  %12215 = vst [vmem:[#allocation52_spill] sm:$0xff] %v7182_v33 }
 0x19e   : > { %1836 = vperm.xlu0 %6486, %v1281_v17   ;;  %v7162_v17 = vpop.permute.xlu1 %524  ;;  %v7177_v19 = vpop.permute.xlu2 %549 }
 0x19f   : > { %6415 = vset.pattern.permute.xlu2 %v6918_v62  ;;  %12214 = vst [vmem:[#allocation51_spill] sm:$0xff] %v7177_v19 }
 0x1a0   : > { %v7193_v30 = vpop.permute.xlu0 %1051 }
 0x1a1   : > { %6416 = vset.pattern.permute.xlu1 %v6877_v54  ;;  %12218 = vst [vmem:[#allocation55_spill] sm:$0xff] %v7193_v30 }
 0x1a6   : > { %1845 = vperm.xlu0 %6486, %v1284_v37   ;;  %v7175_v37 = vpop.permute.xlu1 %542  ;;  %v7187_v16 = vpop.permute.xlu2 %567 }
 0x1a7   : > { %659 = vperm.xlu2 %6415, %v6884_v56   ;;  %12217 = vst [vmem:[#allocation54_spill] sm:$0xff] %v7187_v16 }
 0x1a8   : > { %v7203_v10 = vpop.permute.xlu0 %591 }
 0x1a9   : > { %665 = vperm.xlu1 %6416, %v6884_v56   ;;  %12220 = vst [vmem:[#allocation57_spill] sm:$0xff] %v7203_v10 }
 0x1ae   : > { %1854 = vperm.xlu0 %6486, %v1287_v49   ;;  %v7185_v15 = vpop.permute.xlu1 %555 }
 0x1af   : > { %6417 = vset.pattern.permute.xlu2 %v6880_v55  ;;  %12216 = vst [vmem:[#allocation53_spill] sm:$0xff] %v7185_v15  ;;  %v1293_v49 = vmul.f32 %v7185_v15, %v7064_v47 }
 0x1b1   : > { %6418 = vset.pattern.permute.xlu1 %v6899_v59 }
 0x1b6   : > { %1863 = vperm.xlu0 %6486, %v1290_v22   ;;  %v7197_v22 = vpop.permute.xlu2 %579 }
 0x1b7   : > { %671 = vperm.xlu2 %6417, %v6884_v56  }
 0x1b9   : > { %677 = vperm.xlu1 %6418, %v6884_v56  }
 0x1bb   : > { %v7195_v43 = vpop.permute.xlu1 %573 }
 0x1bc   : > { %12219 = vst [vmem:[#allocation56_spill] sm:$0xff] %v7195_v43  ;;  %v1296_v33 = vmul.f32 %v7195_v43, %v7104_v63 }
 0x1be   : > { %1872 = vperm.xlu0 %6486, %v1293_v49   ;;  %v1299_v49 = vmul.f32 %v7203_v10, %v7117_v21 }
 0x1bf   : > { %6419 = vset.pattern.permute.xlu2 %v6911_v61 }
 0x1c1   : > { %6420 = vset.pattern.permute.xlu1 %v6843_v25  ;;  %v7205_v15 = vpop.permute.xlu2 %598 }
 0x1c2   : > { %12221 = vst [vmem:[#allocation58_spill] sm:$0xff] %v7205_v15 }
 0x1c6   : > { %1881 = vperm.xlu0 %6486, %v1296_v33  }
 0x1c7   : > { %689 = vperm.xlu2 %6419, %v6884_v56  }
 0x1c9   : > { %696 = vperm.xlu1 %6420, %v6927_v0  }
 0x1ce   : > { %1890 = vperm.xlu0 %6486, %v1299_v49  }
 0x1cf   : > { %6421 = vset.pattern.permute.xlu2 %v6846_v29 }
 0x1d1   : > { %6422 = vset.pattern.permute.xlu1 %v6918_v62  ;;  %v7212_v9 = vpop.permute.xlu2 %610 }
 0x1d2   : > { %12222 = vst [vmem:[#allocation59_spill] sm:$0xff] %v7212_v9  ;;  %v1302_v33 = vmul.f32 %v7212_v9, %v7130_v2  ;;  %v7226_v9 = vpop.permute.xlu1 %585 }
 0x1d3   : > { %12224 = vst [vmem:[#allocation61_spill] sm:$0xff] %v7226_v9 }
 0x1d6   : > { %1899 = vperm.xlu0 %6486, %v1302_v33  }
 0x1d7   : > { %702 = vperm.xlu2 %6421, %v6927_v0  }
 0x1d9   : > { %708 = vperm.xlu1 %6422, %v6927_v0  }
 0x1db   : > { %v7230_v33 = vpop.permute.xlu1 %604 }
 0x1dc   : > { %12225 = vst [vmem:[#allocation62_spill] sm:$0xff] %v7230_v33 }
 0x1df   : > { %6423 = vset.pattern.permute.xlu2 %v6880_v55 }
 0x1e1   : > { %6424 = vset.pattern.permute.xlu1 %v6899_v59  ;;  %v7220_v56 = vpop.permute.xlu2 %628 }
 0x1e2   : > { %12223 = vst [vmem:[#allocation60_spill] sm:$0xff] %v7220_v56  ;;  %v1305_v49 = vmul.f32 %v7220_v56, %v7141_v6 }
 0x1e4   : > { %1908 = vperm.xlu0 %6486, %v1305_v49  }
 0x1e7   : > { %720 = vperm.xlu2 %6423, %v6927_v0  }
 0x1e9   : > { %726 = vperm.xlu1 %6424, %v6927_v0  }
 0x1eb   : > { %v7234_v10 = vpop.permute.xlu1 %616 }
 0x1ec   : > { %12226 = vst [vmem:[#allocation63_spill] sm:$0xff] %v7234_v10 }
 0x1ef   : > { %6425 = vset.pattern.permute.xlu2 %v6903_v60 }
 0x1f1   : > { %6426 = vset.pattern.permute.xlu1 %v6911_v61 }
 0x1f7   : > { %732 = vperm.xlu2 %6425, %v6927_v0  }
 0x1f9   : > { %738 = vperm.xlu1 %6426, %v6927_v0   ;;  %v7247_v0 = vpop.permute.xlu2 %640 }
 0x1fa   : > { %12229 = vst [vmem:[#allocation66_spill] sm:$0xff] %v7247_v0 }
 0x1fb   : > { %v7238_v49 = vpop.permute.xlu1 %634 }
 0x1fc   : > { %12227 = vst [vmem:[#allocation64_spill] sm:$0xff] %v7238_v49 }
 0x1ff   : > { %6427 = vset.pattern.permute.xlu2 %v6846_v29 }
 0x201   : > { %6428 = vset.pattern.permute.xlu1 %v6918_v62  ;;  %v7251_v10 = vpop.permute.xlu2 %659 }
 0x202   : > { %12230 = vst [vmem:[#allocation67_spill] sm:$0xff] %v7251_v10 }
 0x207   : > { %751 = vperm.xlu2 %6427, %v6941_v3  }
 0x209   : > { %757 = vperm.xlu1 %6428, %v6941_v3  }
 0x20b   : > { %v7242_v56 = vpop.permute.xlu1 %647 }
 0x20c   : > { %12228 = vst [vmem:[#allocation65_spill] sm:$0xff] %v7242_v56  ;;  %v1308_v43 = vmul.f32 %v7242_v56, %v7149_v7  ;;  %v1314_v56 = vmul.f32 %v7012_v28, %v7078_v53 }
 0x20e   : > { %1917 = vperm.xlu0 %6486, %v1308_v43  }
 0x20f   : > { %6429 = vset.pattern.permute.xlu2 %v6877_v54 }
 0x211   : > { %6430 = vset.pattern.permute.xlu1 %v6880_v55  ;;  %v7259_v43 = vpop.permute.xlu2 %671 }
 0x217   : > { %763 = vperm.xlu2 %6429, %v6941_v3  }
 0x219   : > { %769 = vperm.xlu1 %6430, %v6941_v3  }
 0x21b   : > { %v7254_v49 = vpop.permute.xlu1 %665 }
 0x21c   : > { %12231 = vst [vmem:[#allocation68_spill] sm:$0xff] %v7254_v49  ;;  %v1311_v15 = vmul.f32 %v7254_v49, %v7165_v4 }
 0x21e   : > { %1926 = vperm.xlu0 %6486, %v1311_v15  }
 0x21f   : > { %6431 = vset.pattern.permute.xlu2 %v6903_v60 }
 0x221   : > { %6432 = vset.pattern.permute.xlu1 %v6911_v61  ;;  %v7265_v10 = vpop.permute.xlu2 %689 }
 0x222   : > { %12232 = vst [vmem:[#allocation69_spill] sm:$0xff] %v7265_v10 }
 0x226   : > { %1935 = vperm.xlu0 %6486, %v1314_v56  }
 0x227   : > { %781 = vperm.xlu2 %6431, %v6941_v3  }
 0x229   : > { %787 = vperm.xlu1 %6432, %v6941_v3  }
 0x22f   : > { %6433 = vset.pattern.permute.xlu2 %v6843_v25 }
 0x231   : > { %6434 = vset.pattern.permute.xlu1 %v6846_v29  ;;  %v7270_v15 = vpop.permute.xlu2 %702 }
 0x232   : > { %12233 = vst [vmem:[#allocation70_spill] sm:$0xff] %v7270_v15  ;;  %v1317_v49 = vmul.f32 %v7270_v15, %v7064_v47  ;;  %v7284_v15 = vpop.permute.xlu1 %677 }
 0x233   : > { %12235 = vst [vmem:[#allocation72_spill] sm:$0xff] %v7284_v15 }
 0x234   : > { %1944 = vperm.xlu0 %6486, %v1317_v49  }
 0x237   : > { %794 = vperm.xlu2 %6433, %v6980_v14  }
 0x239   : > { %800 = vperm.xlu1 %6434, %v6980_v14  }
 0x23b   : > { %v7288_v49 = vpop.permute.xlu1 %696 }
 0x23c   : > { %12236 = vst [vmem:[#allocation73_spill] sm:$0xff] %v7288_v49 }
 0x23f   : > { %6435 = vset.pattern.permute.xlu2 %v6877_v54 }
 0x241   : > { %6436 = vset.pattern.permute.xlu1 %v6880_v55  ;;  %v7278_v56 = vpop.permute.xlu2 %720 }
 0x242   : > { %12234 = vst [vmem:[#allocation71_spill] sm:$0xff] %v7278_v56  ;;  %v1320_v3 = vmul.f32 %v7278_v56, %v7104_v63 }
 0x244   : > { %1953 = vperm.xlu0 %6486, %v1320_v3  }
 0x247   : > { %812 = vperm.xlu2 %6435, %v6980_v14  }
 0x249   : > { %818 = vperm.xlu1 %6436, %v6980_v14  }
 0x24b   : > { %v7292_v28 = vpop.permute.xlu1 %708 }
 0x24c   : > { %12237 = vst [vmem:[#allocation74_spill] sm:$0xff] %v7292_v28 }
 0x24f   : > { %6437 = vset.pattern.permute.xlu2 %v6899_v59 }
 0x251   : > { %6438 = vset.pattern.permute.xlu1 %v6903_v60  ;;  %v7304_v49 = vpop.permute.xlu2 %732 }
 0x252   : > { %12240 = vst [vmem:[#allocation77_spill] sm:$0xff] %v7304_v49 }
 0x257   : > { %824 = vperm.xlu2 %6437, %v6980_v14  }
 0x259   : > { %830 = vperm.xlu1 %6438, %v6980_v14  }
 0x25b   : > { %v7296_v3 = vpop.permute.xlu1 %726 }
 0x25c   : > { %12238 = vst [vmem:[#allocation75_spill] sm:$0xff] %v7296_v3 }
 0x25f   : > { %6439 = vset.pattern.permute.xlu2 %v6843_v25 }
 0x261   : > { %6440 = vset.pattern.permute.xlu1 %v6846_v29  ;;  %v7308_v14 = vpop.permute.xlu2 %751 }
 0x262   : > { %12241 = vst [vmem:[#allocation78_spill] sm:$0xff] %v7308_v14 }
 0x267   : > { %843 = vperm.xlu2 %6439, %v7046_v41  }
 0x269   : > { %849 = vperm.xlu1 %6440, %v7046_v41  }
 0x26b   : > { %v7300_v56 = vpop.permute.xlu1 %738 }
 0x26c   : > { %12239 = vst [vmem:[#allocation76_spill] sm:$0xff] %v7300_v56  ;;  %v1323_v10 = vmul.f32 %v7300_v56, %v7117_v21  ;;  %v1329_v56 = vmul.f32 %v7127_v52, %v7141_v6 }
 0x26e   : > { %1962 = vperm.xlu0 %6486, %v1323_v10  }
 0x26f   : > { %6441 = vset.pattern.permute.xlu2 %v6918_v62 }
 0x271   : > { %6442 = vset.pattern.permute.xlu1 %v6877_v54  ;;  %v7317_v10 = vpop.permute.xlu2 %763 }
 0x272   : > { %12243 = vst [vmem:[#allocation80_spill] sm:$0xff] %v7317_v10 }
 0x277   : > { %855 = vperm.xlu2 %6441, %v7046_v41  }
 0x279   : > { %861 = vperm.xlu1 %6442, %v7046_v41  }
 0x27b   : > { %v7312_v3 = vpop.permute.xlu1 %757 }
 0x27c   : > { %12242 = vst [vmem:[#allocation79_spill] sm:$0xff] %v7312_v3  ;;  %v1326_v28 = vmul.f32 %v7312_v3, %v7130_v2 }
 0x27e   : > { %1971 = vperm.xlu0 %6486, %v1326_v28  }
 0x27f   : > { %6443 = vset.pattern.permute.xlu2 %v6899_v59 }
 0x281   : > { %6444 = vset.pattern.permute.xlu1 %v6903_v60  ;;  %v7323_v14 = vpop.permute.xlu2 %781 }
 0x282   : > { %12244 = vst [vmem:[#allocation81_spill] sm:$0xff] %v7323_v14 }
 0x286   : > { %1980 = vperm.xlu0 %6486, %v1329_v56  }
 0x287   : > { %873 = vperm.xlu2 %6443, %v7046_v41  }
 0x289   : > { %879 = vperm.xlu1 %6444, %v7046_v41  }
 0x28f   : > { %6445 = vset.pattern.permute.xlu2 %v6911_v61 }
 0x291   : > { %6446 = vset.pattern.permute.xlu1 %v6843_v25  ;;  %v7328_v28 = vpop.permute.xlu2 %794 }
 0x292   : > { %12245 = vst [vmem:[#allocation82_spill] sm:$0xff] %v7328_v28  ;;  %v1332_v3 = vmul.f32 %v7328_v28, %v7149_v7  ;;  %v7342_v28 = vpop.permute.xlu1 %769 }
 0x293   : > { %12247 = vst [vmem:[#allocation84_spill] sm:$0xff] %v7342_v28 }
 0x294   : > { %1989 = vperm.xlu0 %6486, %v1332_v3  }
 0x297   : > { %885 = vperm.xlu2 %6445, %v7046_v41  }
 0x299   : > { %892 = vperm.xlu1 %6446, %v6895_v58  }
 0x29b   : > { %v7346_v41 = vpop.permute.xlu1 %787 }
 0x29c   : > { %12248 = vst [vmem:[#allocation85_spill] sm:$0xff] %v7346_v41 }
 0x29f   : > { %6448 = vset.pattern.permute.xlu2 %v6918_v62 }
 0x2a1   : > { %6449 = vset.pattern.permute.xlu1 %v6877_v54  ;;  %v7336_v56 = vpop.permute.xlu2 %812 }
 0x2a2   : > { %12246 = vst [vmem:[#allocation83_spill] sm:$0xff] %v7336_v56  ;;  %v1335_v52 = vmul.f32 %v7336_v56, %v7165_v4  ;;  %v7356_v56 = vpop.permute.xlu0 %836 }
 0x2a3   : > { %12251 = vst [vmem:[#allocation88_spill] sm:$0xff] %v7356_v56 }
 0x2a4   : > { %1998 = vperm.xlu0 %6486, %v1335_v52  }
 0x2a7   : > { %904 = vperm.xlu2 %6448, %v6895_v58  }
 0x2a9   : > { %910 = vperm.xlu1 %6449, %v6895_v58  }
 0x2aa   : > { %v7364_v10 = vpop.permute.xlu0 %1081 }
 0x2ab   : > { %v7350_v3 = vpop.permute.xlu1 %800  ;;  %12253 = vst [vmem:[#allocation90_spill] sm:$0xff] %v7364_v10 }
 0x2ac   : > { %12249 = vst [vmem:[#allocation86_spill] sm:$0xff] %v7350_v3 }
 0x2af   : > { %6450 = vset.pattern.permute.xlu2 %v6880_v55 }
 0x2b1   : > { %6451 = vset.pattern.permute.xlu1 %v6899_v59  ;;  %v7367_v3 = vpop.permute.xlu2 %824 }
 0x2b2   : > { %12254 = vst [vmem:[#allocation91_spill] sm:$0xff] %v7367_v3 }
 0x2b7   : > { %916 = vperm.xlu2 %6450, %v6895_v58  }
 0x2b9   : > { %922 = vperm.xlu1 %6451, %v6895_v58  }
 0x2bb   : > { %v7354_v52 = vpop.permute.xlu1 %818 }
 0x2bc   : > { %12250 = vst [vmem:[#allocation87_spill] sm:$0xff] %v7354_v52  ;;  %v7370_v52 = vpop.permute.xlu0 %622 }
 0x2bd   : > { %12255 = vst [vmem:[#allocation92_spill] sm:$0xff] %v7370_v52 }
 0x2bf   : > { %6453 = vset.pattern.permute.xlu2 %v6911_v61 }
 0x2c1   : > { %6454 = vset.pattern.permute.xlu1 %v6843_v25 }
 0x2c7   : > { %934 = vperm.xlu2 %6453, %v6895_v58   ;;  %v7373_v58 = vpop.permute.xlu2 %843 }
 0x2c8   : > { %12256 = vst [vmem:[#allocation93_spill] sm:$0xff] %v7373_v58 }
 0x2c9   : > { %941 = vperm.xlu1 %6454, %v6932_v1  }
 0x2cb   : > { %v7360_v14 = vpop.permute.xlu1 %830 }
 0x2cc   : > { %12252 = vst [vmem:[#allocation89_spill] sm:$0xff] %v7360_v14  ;;  %v1338_v41 = vmul.f32 %v7360_v14, %v7078_v53  ;;  %v7381_v14 = vpop.permute.xlu0 %867 }
 0x2cd   : > { %12258 = vst [vmem:[#allocation95_spill] sm:$0xff] %v7381_v14  ;;  %v1344_v3 = vmul.f32 %v7381_v14, %v7104_v63 }
 0x2ce   : > { %2007 = vperm.xlu0 %6486, %v1338_v41  }
 0x2cf   : > { %6455 = vset.pattern.permute.xlu2 %v6846_v29 }
 0x2d1   : > { %6456 = vset.pattern.permute.xlu1 %v6918_v62  ;;  %v7383_v10 = vpop.permute.xlu2 %855 }
 0x2d7   : > { %947 = vperm.xlu2 %6455, %v6932_v1  }
 0x2d9   : > { %953 = vperm.xlu1 %6456, %v6932_v1  }
 0x2db   : > { %v7376_v56 = vpop.permute.xlu1 %849 }
 0x2dc   : > { %12257 = vst [vmem:[#allocation94_spill] sm:$0xff] %v7376_v56  ;;  %v1341_v41 = vmul.f32 %v7376_v56, %v7064_v47 }
 0x2de   : > { %2016 = vperm.xlu0 %6486, %v1341_v41  }
 0x2df   : > { %6458 = vset.pattern.permute.xlu2 %v6880_v55 }
 0x2e1   : > { %6459 = vset.pattern.permute.xlu1 %v6899_v59  ;;  %v7389_v58 = vpop.permute.xlu2 %873 }
 0x2e2   : > { %12259 = vst [vmem:[#allocation96_spill] sm:$0xff] %v7389_v58 }
 0x2e6   : > { %2025 = vperm.xlu0 %6486, %v1344_v3  }
 0x2e7   : > { %965 = vperm.xlu2 %6458, %v6932_v1  }
 0x2e9   : > { %971 = vperm.xlu1 %6459, %v6932_v1  }
 0x2ef   : > { %6460 = vset.pattern.permute.xlu2 %v6903_v60 }
 0x2f1   : > { %6461 = vset.pattern.permute.xlu1 %v6911_v61  ;;  %v7394_v41 = vpop.permute.xlu2 %885 }
 0x2f2   : > { %12260 = vst [vmem:[#allocation97_spill] sm:$0xff] %v7394_v41  ;;  %v1347_v56 = vmul.f32 %v7394_v41, %v7117_v21  ;;  %v7408_v41 = vpop.permute.xlu1 %861 }
 0x2f3   : > { %12262 = vst [vmem:[#allocation99_spill] sm:$0xff] %v7408_v41 }
 0x2f4   : > { %2034 = vperm.xlu0 %6486, %v1347_v56  }
 0x2f7   : > { %977 = vperm.xlu2 %6460, %v6932_v1  }
 0x2f9   : > { %983 = vperm.xlu1 %6461, %v6932_v1  }
 0x2fb   : > { %v7412_v1 = vpop.permute.xlu1 %879 }
 0x2fc   : > { %12263 = vst [vmem:[#allocation100_spill] sm:$0xff] %v7412_v1 }
 0x2ff   : > { %6463 = vset.pattern.permute.xlu2 %v6846_v29 }
 0x301   : > { %6464 = vset.pattern.permute.xlu1 %v6918_v62  ;;  %v7402_v3 = vpop.permute.xlu2 %904 }
 0x302   : > { %12261 = vst [vmem:[#allocation98_spill] sm:$0xff] %v7402_v3  ;;  %v1350_v14 = vmul.f32 %v7402_v3, %v7130_v2 }
 0x304   : > { %2043 = vperm.xlu0 %6486, %v1350_v14  }
 0x307   : > { %996 = vperm.xlu2 %6463, %v6948_v5  }
 0x309   : > { %1002 = vperm.xlu1 %6464, %v6948_v5  }
 0x30b   : > { %v7416_v56 = vpop.permute.xlu1 %892 }
 0x30c   : > { %12264 = vst [vmem:[#allocation101_spill] sm:$0xff] %v7416_v56 }
 0x30f   : > { %6465 = vset.pattern.permute.xlu2 %v6877_v54 }
 0x311   : > { %6466 = vset.pattern.permute.xlu1 %v6880_v55  ;;  %v7429_v1 = vpop.permute.xlu2 %916 }
 0x317   : > { %1008 = vperm.xlu2 %6465, %v6948_v5  }
 0x319   : > { %1014 = vperm.xlu1 %6466, %v6948_v5  }
 0x31b   : > { %v7420_v14 = vpop.permute.xlu1 %910 }
 0x31c   : > { %12265 = vst [vmem:[#allocation102_spill] sm:$0xff] %v7420_v14 }
 0x31f   : > { %6468 = vset.pattern.permute.xlu2 %v6903_v60 }
 0x321   : > { %6469 = vset.pattern.permute.xlu1 %v6911_v61  ;;  %v7433_v56 = vpop.permute.xlu2 %934 }
 0x322   : > { %12267 = vst [vmem:[#allocation104_spill] sm:$0xff] %v7433_v56 }
 0x327   : > { %1026 = vperm.xlu2 %6468, %v6948_v5  }
 0x329   : > { %1032 = vperm.xlu1 %6469, %v6948_v5  }
 0x32b   : > { %v7424_v3 = vpop.permute.xlu1 %922 }
 0x32c   : > { %12266 = vst [vmem:[#allocation103_spill] sm:$0xff] %v7424_v3  ;;  %v1353_v58 = vmul.f32 %v7424_v3, %v7141_v6  ;;  %v1359_v3 = vmul.f32 %v7058_v45, %v7165_v4 }
 0x32e   : > { %2052 = vperm.xlu0 %6486, %v1353_v58  }
 0x32f   : > { %6470 = vset.pattern.permute.xlu2 %v6843_v25 }
 0x331   : > { %6471 = vset.pattern.permute.xlu1 %v6846_v29  ;;  %v7441_v58 = vpop.permute.xlu2 %947 }
 0x337   : > { %1039 = vperm.xlu2 %6470, %v6991_v18  }
 0x339   : > { %1045 = vperm.xlu1 %6471, %v6991_v18  }
 0x33b   : > { %v7436_v14 = vpop.permute.xlu1 %941 }
 0x33c   : > { %12268 = vst [vmem:[#allocation105_spill] sm:$0xff] %v7436_v14  ;;  %v1356_v5 = vmul.f32 %v7436_v14, %v7149_v7 }
 0x33e   : > { %2061 = vperm.xlu0 %6486, %v1356_v5  }
 0x33f   : > { %6473 = vset.pattern.permute.xlu2 %v6877_v54 }
 0x341   : > { %6474 = vset.pattern.permute.xlu1 %v6880_v55  ;;  %v7447_v56 = vpop.permute.xlu2 %965 }
 0x346   : > { %2070 = vperm.xlu0 %6486, %v1359_v3  }
 0x347   : > { %1057 = vperm.xlu2 %6473, %v6991_v18  }
 0x349   : > { %1063 = vperm.xlu1 %6474, %v6991_v18  }
 0x34f   : > { %6475 = vset.pattern.permute.xlu2 %v6899_v59 }
 0x351   : > { %6476 = vset.pattern.permute.xlu1 %v6903_v60  ;;  %v7452_v5 = vpop.permute.xlu2 %977 }
 0x352   : > { %12269 = vst [vmem:[#allocation106_spill] sm:$0xff] %v7452_v5  ;;  %v1362_v14 = vmul.f32 %v7452_v5, %v7078_v53  ;;  %v7466_v5 = vpop.permute.xlu1 %953 }
 0x354   : > { %2079 = vperm.xlu0 %6486, %v1362_v14   ;;  %v7472_v14 = vpop.permute.xlu0 %1112 }
 0x355   : > { %12271 = vst [vmem:[#allocation108_spill] sm:$0xff] %v7472_v14 }
 0x357   : > { %1069 = vperm.xlu2 %6475, %v6991_v18  }
 0x359   : > { %1075 = vperm.xlu1 %6476, %v6991_v18  }
 0x35b   : > { %v7470_v18 = vpop.permute.xlu1 %971 }
 0x35f   : > { %6478 = vset.pattern.permute.xlu2 %v6843_v25 }
 0x361   : > { %6479 = vset.pattern.permute.xlu1 %v6846_v29  ;;  %v7460_v3 = vpop.permute.xlu2 %996 }
 0x362   : > { %12270 = vst [vmem:[#allocation107_spill] sm:$0xff] %v7460_v3  ;;  %v1365_v55 = vmul.f32 %v7460_v3, %v7064_v47 }
 0x364   : > { %2088 = vperm.xlu0 %6486, %v1365_v55   ;;  %v7479_v55 = vpop.permute.xlu0 %1776 }
 0x365   : > { %12272 = vst [vmem:[#allocation109_spill] sm:$0xff] %v7479_v55  ;;  %v12276_v55 = vmov 0  }
 0x367   : > { %1088 = vperm.xlu2 %6478, %v7055_v44  }
 0x369   : > { %1094 = vperm.xlu1 %6479, %v7055_v44  }
 0x36b   : > { %v7476_v29 = vpop.permute.xlu1 %983 }
 0x36f   : > { %6480 = vset.pattern.permute.xlu2 %v6918_v62 }
 0x371   : > { %6481 = vset.pattern.permute.xlu1 %v6877_v54  ;;  %v7486_v54 = vpop.permute.xlu0 %1791 }
 0x372   : > { %12273 = vst [vmem:[#allocation110_spill] sm:$0xff] %v7486_v54  ;;  %v1263_v54 = vmul.f32 %v7027_v34, %v7165_v4 }
 0x377   : > { %1100 = vperm.xlu2 %6480, %v7055_v44  }
 0x379   : > { %1106 = vperm.xlu1 %6481, %v7055_v44   ;;  %v7498_v25 = vpop.permute.xlu0 %1800 }
 0x37a   : > { %12277 = vst [vmem:[#allocation113_spill] sm:$0xff] %v7498_v25 }
 0x37b   : > { %v7482_v3 = vpop.permute.xlu1 %1002 }
 0x37f   : > { %6482 = vset.pattern.permute.xlu2 %v6899_v59  ;;  %v1260_v59 = vmul.f32 %v7032_v36, %v7149_v7 }
 0x381   : > { %6483 = vset.pattern.permute.xlu1 %v6903_v60  ;;  %v7495_v60 = vpop.permute.xlu2 %1008 }
 0x382   : > { %12275 = vst [vmem:[#allocation112_spill] sm:$0xff] %v7495_v60 }
 0x387   : > { %1118 = vperm.xlu2 %6482, %v7055_v44  }
 0x389   : > { %1124 = vperm.xlu1 %6483, %v7055_v44   ;;  %v7503_v14 = vpop.permute.xlu2 %1026 }
 0x38a   : > { %12278 = vst [vmem:[#allocation114_spill] sm:$0xff] %v7503_v14 }
 0x38b   : > { %v7488_v62 = vpop.permute.xlu1 %1014 }
 0x38c   : > { %12274 = vst [vmem:[#allocation111_spill] sm:$0xff] %v7488_v62  ;;  %v1368_v45 = vmul.f32 %v7488_v62, %v7104_v63  ;;  %v1262_v62 = vmul.f32 %v7159_v40, %v7130_v2 }
 0x38e   : > { %2097 = vperm.xlu0 %6486, %v1368_v45  }
 0x38f   : > { %6484 = vset.pattern.permute.xlu2 %v6911_v61 }
 0x391   : > { %6485 = vset.pattern.permute.xlu1 %v12276_v55  ;;  %v7516_v25 = vpop.permute.xlu2 %1039 }
 0x392   : > { %1773 = vperm.xlu1 %6485, %v1260_v59   ;;  %v7511_v59 = vpop.permute.xlu0 %1809 }
 0x393   : > { %12280 = vst [vmem:[#allocation116_spill] sm:$0xff] %v7511_v59 }
 0x397   : > { %1130 = vperm.xlu2 %6484, %v7055_v44   ;;  %v1265_v44 = vmul.f32 %v7039_v38, %v7141_v6 }
 0x39a   : > { %1782 = vperm.xlu1 %6485, %v1263_v54   ;;  %v1374_v54 = vmul.f32 %v7193_v30, %v7130_v2  ;;  %v7524_v59 = vpop.permute.xlu0 %1818 }
 0x39b   : > { %v7505_v45 = vpop.permute.xlu1 %1032  ;;  %12281 = vst [vmem:[#allocation117_spill] sm:$0xff] %v7524_v59 }
 0x39c   : > { %12279 = vst [vmem:[#allocation115_spill] sm:$0xff] %v7505_v45  ;;  %v1371_v61 = vmul.f32 %v7505_v45, %v7117_v21  ;;  %v1264_v45 = vmul.f32 %v7041_v39, %v7104_v63 }
 0x39e   : > { %2106 = vperm.xlu0 %6486, %v1371_v61   ;;  %v1268_v61 = vmul.f32 %v7067_v48, %v7149_v7 }
 0x39f   : > { %6487 = vset.pattern.permute.xlu2 %v12276_v55 }
 0x3a0   : > { %1779 = vperm.xlu2 %6487, %v1262_v62   ;;  %v1267_v62 = vmul.f32 %v7049_v42, %v7117_v21 }
 0x3a1   : > { %v7526_v55 = vpop.permute.xlu2 %1057 }
 0x3a2   : > { %1788 = vperm.xlu1 %6485, %v1265_v44   ;;  %v1271_v44 = vmul.f32 %v7081_v57, %v7165_v4  ;;  %v7536_v48 = vpop.permute.xlu0 %1827 }
 0x3a3   : > { %12283 = vst [vmem:[#allocation119_spill] sm:$0xff] %v7536_v48 }
 0x3a6   : > { %2115 = vperm.xlu0 %6486, %v1374_v54  }
 0x3a8   : > { %1785 = vperm.xlu2 %6487, %v1264_v45   ;;  %v1270_v45 = vmul.f32 %v7061_v46, %v7130_v2 }
 0x3aa   : > { %1797 = vperm.xlu1 %6485, %v1268_v61   ;;  %v1274_v61 = vmul.f32 %v7006_v24, %v7078_v53  ;;  %v7542_v59 = vpop.permute.xlu0 %1836 }
 0x3ab   : > { %12284 = vst [vmem:[#allocation120_spill] sm:$0xff] %v7542_v59  ;;  %v1280_v59 = vmul.f32 %v7111_v32, %v7104_v63  ;;  %v7558_v48 = vpop.permute.xlu1 %1045 }
 0x3ac   : > { %12287 = vst [vmem:[#allocation123_spill] sm:$0xff] %v7558_v48 }
 0x3b0   : > { %1794 = vperm.xlu2 %6487, %v1267_v62   ;;  %v1273_v62 = vmul.f32 %v7091_v11, %v7141_v6 }
 0x3b1   : > { %v7532_v30 = vpop.permute.xlu2 %1069 }
 0x3b2   : > { %12282 = vst [vmem:[#allocation118_spill] sm:$0xff] %v7532_v30  ;;  %v1377_v54 = vmul.f32 %v7532_v30, %v7141_v6  ;;  %1806 = vperm.xlu1 %6485, %v1271_v44   ;;  %v1277_v30 = vmul.f32 %v7096_v50, %v7064_v47 }
 0x3b4   : > { %2124 = vperm.xlu0 %6486, %v1377_v54  }
 0x3b8   : > { %1803 = vperm.xlu2 %6487, %v1270_v45   ;;  %v1276_v45 = vmul.f32 %v7101_v51, %v7149_v7 }
 0x3ba   : > { %1815 = vperm.xlu1 %6485, %v1274_v61   ;;  %v7554_v61 = vpop.permute.xlu0 %1845 }
 0x3bb   : > { %12286 = vst [vmem:[#allocation122_spill] sm:$0xff] %v7554_v61  ;;  %v1282_v61 = vmul.f32 %v7122_v20, %v7078_v53 }
 0x3c0   : > { %1812 = vperm.xlu2 %6487, %v1273_v62   ;;  %v1279_v62 = vmul.f32 %v7029_v35, %v7165_v4 }
 0x3c1   : > { %v7548_v44 = vpop.permute.xlu2 %1088 }
 0x3c2   : > { %12285 = vst [vmem:[#allocation121_spill] sm:$0xff] %v7548_v44  ;;  %v1380_v54 = vmul.f32 %v7548_v44, %v7149_v7  ;;  %1824 = vperm.xlu1 %6485, %v1277_v30   ;;  %v1283_v44 = vmul.f32 %v7138_v12, %v7117_v21  ;;  %v7564_v30 = vpop.permute.xlu0 %1854 }
 0x3c3   : > { %12288 = vst [vmem:[#allocation124_spill] sm:$0xff] %v7564_v30 }
 0x3c4   : > { %2133 = vperm.xlu0 %6486, %v1380_v54   ;;  %v7566_v54 = vpop.permute.xlu1 %1063 }
 0x3c5   : > { %12289 = vst [vmem:[#allocation125_spill] sm:$0xff] %v7566_v54 }
 0x3c8   : > { %1821 = vperm.xlu2 %6487, %v1276_v45  }
 0x3ca   : > { %1833 = vperm.xlu1 %6485, %v1280_v59   ;;  %v1286_v59 = vmul.f32 %v7152_v26, %v7130_v2  ;;  %v7572_v45 = vpop.permute.xlu0 %1863 }
 0x3cb   : > { %12290 = vst [vmem:[#allocation126_spill] sm:$0xff] %v7572_v45 }
 0x3cc   : > { %v7574_v32 = vpop.permute.xlu1 %1075 }
 0x3d0   : > { %1830 = vperm.xlu2 %6487, %v1279_v62   ;;  %v1285_v62 = vmul.f32 %v7135_v27, %v7064_v47 }
 0x3d1   : > { %v7580_v30 = vpop.permute.xlu2 %1100 }
 0x3d2   : > { %1842 = vperm.xlu1 %6485, %v1283_v44   ;;  %v1289_v44 = vmul.f32 %v7109_v13, %v7141_v6  ;;  %12291 = vst [vmem:[#allocation127_spill] sm:$0xff] %v7580_v30  ;;  %v7584_v50 = vpop.permute.xlu0 %1872  ;;  %v1295_v13 = vmul.f32 %v7187_v16, %v7165_v4  ;;  %v7619_v16 = vmul.f32 0.00390625, %v6961_v8  ;;  %v12304_v8 = vld [vmem:[#allocation16_spill] sm:$0xff] }
 0x3d3   : > { %12292 = vst [vmem:[#allocation128_spill] sm:$0xff] %v7584_v50  ;;  %v7634_v24 = vmul.f32 0.00390625, %v12304_v8  ;;  %v12309_v8 = vld [vmem:[#allocation17_spill] sm:$0xff] }
 0x3d4   : > { %12299 = vst [vmem:[#allocation135_spill] sm:$0xff] %v7619_v16 }
 0x3d8   : > { %1839 = vperm.xlu2 %6487, %v1282_v61   ;;  %v1288_v61 = vmul.f32 %v7162_v17, %v7104_v63 }
 0x3da   : > { %1851 = vperm.xlu1 %6485, %v1286_v59   ;;  %v1292_v59 = vmul.f32 %v7177_v19, %v7149_v7  ;;  %v7598_v50 = vpop.permute.xlu0 %1881 }
 0x3db   : > { %v7582_v12 = vpop.permute.xlu1 %1094  ;;  %12295 = vst [vmem:[#allocation131_spill] sm:$0xff] %v7598_v50 }
 0x3e0   : > { %1848 = vperm.xlu2 %6487, %v1285_v62  }
 0x3e1   : > { %v7590_v45 = vpop.permute.xlu2 %1118 }
 0x3e2   : > { %1860 = vperm.xlu1 %6485, %v1289_v44   ;;  %12293 = vst [vmem:[#allocation129_spill] sm:$0xff] %v7590_v45  ;;  %v1291_v44 = vmul.f32 %v7175_v37, %v7117_v21 }
 0x3e8   : > { %1857 = vperm.xlu2 %6487, %v1288_v61   ;;  %v1294_v61 = vmul.f32 %v7172_v23, %v7130_v2 }
 0x3ea   : > { %1869 = vperm.xlu1 %6485, %v1292_v59   ;;  %v1298_v59 = vmul.f32 %v7226_v9, %v7078_v53  ;;  %v12303_v9 = vld [vmem:[#allocation58_spill] sm:$0xff] }
 0x3eb   : > { %v7592_v26 = vpop.permute.xlu1 %1106 }
 0x3ec   : > { %12294 = vst [vmem:[#allocation130_spill] sm:$0xff] %v7592_v26  ;;  %v1383_v62 = vmul.f32 %v7592_v26, %v7165_v4  ;;  %v7608_v26 = vpop.permute.xlu0 %1890 }
 0x3ed   : > { %12296 = vst [vmem:[#allocation132_spill] sm:$0xff] %v7608_v26 }
 0x3ee   : > { %2142 = vperm.xlu0 %6486, %v1383_v62  }
 0x3f0   : > { %1866 = vperm.xlu2 %6487, %v1291_v44  }
 0x3f1   : > { %v7602_v19 = vpop.permute.xlu2 %1130 }
 0x3f2   : > { %1878 = vperm.xlu1 %6485, %v1295_v13   ;;  %v1297_v13 = vmul.f32 %v7197_v22, %v7141_v6 }
 0x3f8   : > { %1875 = vperm.xlu2 %6487, %v1294_v61   ;;  %v1301_v61 = vmul.f32 %v7230_v33, %v7064_v47  ;;  %v7649_v33 = vmul.f32 0.00390625, %v12309_v8  ;;  %v12314_v8 = vld [vmem:[#allocation67_spill] sm:$0xff] }
 0x3fa   : > { %1887 = vperm.xlu1 %6485, %v1298_v59   ;;  %v7610_v62 = vpop.permute.xlu2 %1779 }
 0x3fb   : > { %12297 = vst [vmem:[#allocation133_spill] sm:$0xff] %v7610_v62  ;;  %v7612_v50 = vpop.permute.xlu1 %1124  ;;  %v7625_v62 = vpop.permute.xlu0 %1899 }
 0x3fc   : > { %12298 = vst [vmem:[#allocation134_spill] sm:$0xff] %v7612_v50  ;;  %v1386_v44 = vmul.f32 %v7612_v50, %v7078_v53  ;;  %v1389_v50 = vmul.f32 %v7019_v31, %v7619_v16 }
 0x3fd   : > { %12301 = vst [vmem:[#allocation137_spill] sm:$0xff] %v7625_v62  ;;  %v1392_v62 = vmul.f32 %v7041_v39, %v7634_v24  ;;  %v1395_v39 = vmul.f32 %v7049_v42, %v7649_v33 }
 0x3fe   : > { %2151 = vperm.xlu0 %6486, %v1386_v44   ;;  %v1300_v44 = vmul.f32 %v12303_v9, %v7149_v7 }
 0x400   : > { %1884 = vperm.xlu2 %6487, %v1297_v13   ;;  %v1304_v13 = vmul.f32 %v7370_v52, %v7104_v63  ;;  %v1310_v52 = vmul.f32 %v12314_v8, %v7130_v2 }
 0x402   : > { %1896 = vperm.xlu1 %6485, %v1301_v61   ;;  %v7623_v59 = vpop.permute.xlu2 %1785 }
 0x403   : > { %12300 = vst [vmem:[#allocation136_spill] sm:$0xff] %v7623_v59  ;;  %v7640_v59 = vpop.permute.xlu0 %1908 }
 0x404   : > { %v7627_v26 = vpop.permute.xlu1 %1773  ;;  %12306 = vst [vmem:[#allocation16_spill] sm:$0xff] %v7640_v59  ;;  %v12313_v59 = vld [vmem:[#allocation64_spill] sm:$0xff] }
 0x405   : > { %12302 = vst [vmem:[#allocation138_spill] sm:$0xff] %v7627_v26  ;;  %v12308_v26 = vld [vmem:[#allocation63_spill] sm:$0xff] }
 0x406   : > { %2160 = vperm.xlu0 %6486, %v1389_v50   ;;  %v1303_v50 = vmul.f32 %v12308_v26, %v7165_v4 }
 0x408   : > { %1893 = vperm.xlu2 %6487, %v1300_v44   ;;  %v1307_v44 = vmul.f32 %v7247_v0, %v7117_v21  ;;  %v12315_v0 = vld [vmem:[#allocation26_spill] sm:$0xff] }
 0x40a   : > { %1905 = vperm.xlu1 %6485, %v1304_v13   ;;  %v7638_v61 = vpop.permute.xlu2 %1794 }
 0x40b   : > { %12305 = vst [vmem:[#allocation58_spill] sm:$0xff] %v7638_v61  ;;  %v7655_v61 = vpop.permute.xlu0 %1917 }
 0x40c   : > { %v7644_v31 = vpop.permute.xlu1 %1782  ;;  %12311 = vst [vmem:[#allocation17_spill] sm:$0xff] %v7655_v61  ;;  %v12319_v61 = vld [vmem:[#allocation19_spill] sm:$0xff] }
 0x40d   : > { %12307 = vst [vmem:[#allocation139_spill] sm:$0xff] %v7644_v31 }
 0x40e   : > { %2169 = vperm.xlu0 %6486, %v1392_v62   ;;  %v1306_v62 = vmul.f32 %v12313_v59, %v7078_v53 }
 0x410   : > { %1902 = vperm.xlu2 %6487, %v1303_v50   ;;  %v7666_v50 = vmul.f32 0.00390625, %v12315_v0  ;;  %v12320_v0 = vld [vmem:[#allocation28_spill] sm:$0xff] }
 0x411   : > { %v7681_v8 = vmul.f32 0.00390625, %v12320_v0  ;;  %v12326_v0 = vld [vmem:[#allocation20_spill] sm:$0xff] }
 0x412   : > { %1914 = vperm.xlu1 %6485, %v1307_v44   ;;  %v7653_v13 = vpop.permute.xlu2 %1803  ;;  %v1398_v42 = vmul.f32 %v7061_v46, %v7666_v50 }
 0x413   : > { %12310 = vst [vmem:[#allocation63_spill] sm:$0xff] %v7653_v13  ;;  %v7670_v13 = vpop.permute.xlu0 %1926  ;;  %v1401_v46 = vmul.f32 %v7091_v11, %v7681_v8 }
 0x414   : > { %v7659_v31 = vpop.permute.xlu1 %1788  ;;  %12317 = vst [vmem:[#allocation26_spill] sm:$0xff] %v7670_v13 }
 0x415   : > { %12312 = vst [vmem:[#allocation140_spill] sm:$0xff] %v7659_v31 }
 0x416   : > { %2178 = vperm.xlu0 %6486, %v1395_v39   ;;  %v1309_v39 = vmul.f32 %v12319_v61, %v7064_v47  ;;  %12321 = vst [vmem:[#allocation19_spill] sm:$0xff] %v7681_v8 }
 0x418   : > { %1911 = vperm.xlu2 %6487, %v1306_v62   ;;  %v1313_v62 = vmul.f32 %v7284_v15, %v7141_v6  ;;  %v7696_v15 = vmul.f32 0.00390625, %v12326_v0  ;;  %v12332_v0 = vld [vmem:[#allocation22_spill] sm:$0xff] }
 0x419   : > { %v7711_v57 = vmul.f32 0.00390625, %v12332_v0  ;;  %v12338_v0 = vld [vmem:[#allocation24_spill] sm:$0xff] }
 0x41a   : > { %1923 = vperm.xlu1 %6485, %v1310_v52   ;;  %v7668_v44 = vpop.permute.xlu2 %1812 }
 0x41b   : > { %12316 = vst [vmem:[#allocation64_spill] sm:$0xff] %v7668_v44  ;;  %v7685_v44 = vpop.permute.xlu0 %1935 }
 0x41c   : > { %v7674_v31 = vpop.permute.xlu1 %1797  ;;  %12323 = vst [vmem:[#allocation142_spill] sm:$0xff] %v7685_v44  ;;  %v12330_v44 = vld [vmem:[#allocation69_spill] sm:$0xff] }
 0x41d   : > { %12318 = vst [vmem:[#allocation141_spill] sm:$0xff] %v7674_v31  ;;  %v12325_v31 = vld [vmem:[#allocation73_spill] sm:$0xff] }
 0x41e   : > { %2187 = vperm.xlu0 %6486, %v1398_v42   ;;  %v1312_v42 = vmul.f32 %v7259_v43, %v7104_v63  ;;  %12333 = vst [vmem:[#allocation69_spill] sm:$0xff] %v7711_v57 }
 0x420   : > { %1920 = vperm.xlu2 %6487, %v1309_v39   ;;  %v1316_v39 = vmul.f32 %v12325_v31, %v7149_v7  ;;  %v12331_v31 = vld [vmem:[#allocation30_spill] sm:$0xff] }
 0x422   : > { %1932 = vperm.xlu1 %6485, %v1313_v62   ;;  %v7683_v52 = vpop.permute.xlu2 %1821 }
 0x423   : > { %12322 = vst [vmem:[#allocation28_spill] sm:$0xff] %v7683_v52  ;;  %v1404_v52 = vmul.f32 %v7101_v51, %v7696_v15  ;;  %v1407_v51 = vmul.f32 %v7029_v35, %v7711_v57 }
 0x424   : > { %v7689_v13 = vpop.permute.xlu1 %1806 }
 0x425   : > { %12324 = vst [vmem:[#allocation143_spill] sm:$0xff] %v7689_v13  ;;  %v7704_v13 = vpop.permute.xlu0 %1944 }
 0x426   : > { %2196 = vperm.xlu0 %6486, %v1401_v46   ;;  %12329 = vst [vmem:[#allocation145_spill] sm:$0xff] %v7704_v13  ;;  %v1315_v46 = vmul.f32 %v12330_v44, %v7117_v21 }
 0x428   : > { %1929 = vperm.xlu2 %6487, %v1312_v42   ;;  %v1319_v42 = vmul.f32 %v12331_v31, %v7165_v4  ;;  %v7726_v31 = vmul.f32 0.00390625, %v12338_v0 }
 0x42a   : > { %1941 = vperm.xlu1 %6485, %v1316_v39   ;;  %v7698_v62 = vpop.permute.xlu2 %1830  ;;  %v1410_v35 = vmul.f32 %v7122_v20, %v7726_v31  ;;  %v12346_v20 = vld [vmem:[#allocation37_spill] sm:$0xff] }
 0x42b   : > { %12327 = vst [vmem:[#allocation20_spill] sm:$0xff] %v7698_v62 }
 0x42c   : > { %v7702_v11 = vpop.permute.xlu1 %1815 }
 0x42d   : > { %12328 = vst [vmem:[#allocation144_spill] sm:$0xff] %v7702_v11  ;;  %v12336_v11 = vld [vmem:[#allocation74_spill] sm:$0xff] }
 0x42e   : > { %2205 = vperm.xlu0 %6486, %v1404_v52   ;;  %v1318_v13 = vmul.f32 %v12336_v11, %v7130_v2  ;;  %v7721_v52 = vpop.permute.xlu0 %1953 }
 0x42f   : > { %12337 = vst [vmem:[#allocation74_spill] sm:$0xff] %v7721_v52 }
 0x430   : > { %1938 = vperm.xlu2 %6487, %v1315_v46   ;;  %v1322_v46 = vmul.f32 %v7304_v49, %v7078_v53  ;;  %v12343_v49 = vld [vmem:[#allocation78_spill] sm:$0xff] }
 0x432   : > { %1950 = vperm.xlu1 %6485, %v1319_v42   ;;  %v7713_v39 = vpop.permute.xlu2 %1839 }
 0x433   : > { %12334 = vst [vmem:[#allocation22_spill] sm:$0xff] %v7713_v39 }
 0x434   : > { %v7717_v62 = vpop.permute.xlu1 %1824 }
 0x435   : > { %12335 = vst [vmem:[#allocation146_spill] sm:$0xff] %v7717_v62  ;;  %v12341_v62 = vld [vmem:[#allocation75_spill] sm:$0xff] }
 0x436   : > { %2214 = vperm.xlu0 %6486, %v1407_v51   ;;  %v1321_v51 = vmul.f32 %v12341_v62, %v7141_v6  ;;  %v7736_v52 = vpop.permute.xlu0 %1962 }
 0x437   : > { %12342 = vst [vmem:[#allocation75_spill] sm:$0xff] %v7736_v52 }
 0x438   : > { %1947 = vperm.xlu2 %6487, %v1318_v13   ;;  %v1325_v13 = vmul.f32 %v12343_v49, %v7064_v47 }
 0x43a   : > { %1959 = vperm.xlu1 %6485, %v1322_v46   ;;  %v7728_v42 = vpop.permute.xlu2 %1848  ;;  %v1413_v46 = vmul.f32 %v7135_v27, %v7619_v16  ;;  %v12350_v27 = vld [vmem:[#allocation80_spill] sm:$0xff] }
 0x43b   : > { %12339 = vst [vmem:[#allocation24_spill] sm:$0xff] %v7728_v42 }
 0x43c   : > { %v7732_v39 = vpop.permute.xlu1 %1833 }
 0x43d   : > { %12340 = vst [vmem:[#allocation147_spill] sm:$0xff] %v7732_v39  ;;  %v1324_v39 = vmul.f32 %v12346_v20, %v7149_v7 }
 0x43e   : > { %2223 = vperm.xlu0 %6486, %v1410_v35   ;;  %v7748_v38 = vpop.permute.xlu0 %1971  ;;  %v1328_v35 = vmul.f32 %v7342_v28, %v7104_v63 }
 0x43f   : > { %12347 = vst [vmem:[#allocation37_spill] sm:$0xff] %v7748_v38 }
 0x440   : > { %1956 = vperm.xlu2 %6487, %v1321_v51  }
 0x442   : > { %1968 = vperm.xlu1 %6485, %v1325_v13   ;;  %v7740_v0 = vpop.permute.xlu2 %1857  ;;  %v1416_v13 = vmul.f32 %v7162_v17, %v7634_v24  ;;  %v12355_v17 = vld [vmem:[#allocation81_spill] sm:$0xff] }
 0x443   : > { %12344 = vst [vmem:[#allocation78_spill] sm:$0xff] %v7740_v0 }
 0x444   : > { %v7744_v42 = vpop.permute.xlu1 %1842 }
 0x445   : > { %12345 = vst [vmem:[#allocation148_spill] sm:$0xff] %v7744_v42  ;;  %v1327_v42 = vmul.f32 %v12350_v27, %v7165_v4 }
 0x446   : > { %2232 = vperm.xlu0 %6486, %v1413_v46   ;;  %v12351_v46 = vld [vmem:[#allocation85_spill] sm:$0xff]  ;;  %v7762_v38 = vpop.permute.xlu0 %1980 }
 0x447   : > { %v1331_v0 = vmul.f32 %v12351_v46, %v7117_v21  ;;  %12352 = vst [vmem:[#allocation80_spill] sm:$0xff] %v7762_v38 }
 0x448   : > { %1965 = vperm.xlu2 %6487, %v1324_v39  }
 0x44a   : > { %1977 = vperm.xlu1 %6485, %v1328_v35   ;;  %v7752_v51 = vpop.permute.xlu2 %1866  ;;  %v1419_v35 = vmul.f32 %v7175_v37, %v7649_v33  ;;  %v12360_v37 = vld [vmem:[#allocation86_spill] sm:$0xff] }
 0x44b   : > { %12348 = vst [vmem:[#allocation149_spill] sm:$0xff] %v7752_v51 }
 0x44c   : > { %v7756_v52 = vpop.permute.xlu1 %1851 }
 0x44d   : > { %12349 = vst [vmem:[#allocation150_spill] sm:$0xff] %v7756_v52  ;;  %v1330_v52 = vmul.f32 %v12355_v17, %v7078_v53 }
 0x44e   : > { %2241 = vperm.xlu0 %6486, %v1416_v13   ;;  %v12356_v13 = vld [vmem:[#allocation52_spill] sm:$0xff]  ;;  %v7774_v46 = vpop.permute.xlu0 %1989 }
 0x44f   : > { %v1334_v28 = vmul.f32 %v12356_v13, %v7130_v2  ;;  %12357 = vst [vmem:[#allocation81_spill] sm:$0xff] %v7774_v46 }
 0x450   : > { %1974 = vperm.xlu2 %6487, %v1327_v42  }
 0x452   : > { %1986 = vperm.xlu1 %6485, %v1331_v0   ;;  %v7764_v39 = vpop.permute.xlu2 %1875  ;;  %v1422_v0 = vmul.f32 %v7172_v23, %v7666_v50  ;;  %v12365_v23 = vld [vmem:[#allocation87_spill] sm:$0xff] }
 0x453   : > { %12353 = vst [vmem:[#allocation151_spill] sm:$0xff] %v7764_v39 }
 0x454   : > { %v7768_v51 = vpop.permute.xlu1 %1860 }
 0x455   : > { %12354 = vst [vmem:[#allocation152_spill] sm:$0xff] %v7768_v51  ;;  %v1333_v51 = vmul.f32 %v12360_v37, %v7064_v47 }
 0x456   : > { %2250 = vperm.xlu0 %6486, %v1419_v35   ;;  %v12361_v35 = vld [vmem:[#allocation91_spill] sm:$0xff]  ;;  %v7788_v46 = vpop.permute.xlu0 %1998 }
 0x457   : > { %v1337_v38 = vmul.f32 %v12361_v35, %v7141_v6  ;;  %12363 = vst [vmem:[#allocation91_spill] sm:$0xff] %v7788_v46 }
 0x458   : > { %1983 = vperm.xlu2 %6487, %v1330_v52  }
 0x45a   : > { %1995 = vperm.xlu1 %6485, %v1334_v28   ;;  %v7776_v42 = vpop.permute.xlu2 %1884  ;;  %v1425_v28 = vmul.f32 %v7197_v22, %v7681_v8  ;;  %v12370_v22 = vld [vmem:[#allocation88_spill] sm:$0xff] }
 0x45b   : > { %12358 = vst [vmem:[#allocation153_spill] sm:$0xff] %v7776_v42 }
 0x45c   : > { %v7780_v39 = vpop.permute.xlu1 %1869 }
 0x45d   : > { %12359 = vst [vmem:[#allocation154_spill] sm:$0xff] %v7780_v39  ;;  %v1336_v39 = vmul.f32 %v12365_v23, %v7104_v63 }
 0x45e   : > { %2259 = vperm.xlu0 %6486, %v1422_v0   ;;  %v12366_v0 = vld [vmem:[#allocation93_spill] sm:$0xff] }
 0x45f   : > { %v1340_v13 = vmul.f32 %v12366_v0, %v7149_v7 }
 0x460   : > { %1992 = vperm.xlu2 %6487, %v1333_v51  }
 0x462   : > { %2004 = vperm.xlu1 %6485, %v1337_v38   ;;  %v7786_v52 = vpop.permute.xlu2 %1893  ;;  %v7800_v38 = vpop.permute.xlu0 %2007 }
 0x463   : > { %12362 = vst [vmem:[#allocation86_spill] sm:$0xff] %v7786_v52  ;;  %v1428_v52 = vmul.f32 %v12303_v9, %v7696_v15  ;;  %v1342_v9 = vmul.f32 %v7383_v10, %v7130_v2 }
 0x464   : > { %v7792_v42 = vpop.permute.xlu1 %1878  ;;  %12368 = vst [vmem:[#allocation93_spill] sm:$0xff] %v7800_v38 }
 0x465   : > { %12364 = vst [vmem:[#allocation155_spill] sm:$0xff] %v7792_v42  ;;  %v1339_v42 = vmul.f32 %v12370_v22, %v7117_v21 }
 0x466   : > { %2268 = vperm.xlu0 %6486, %v1425_v28   ;;  %v1343_v28 = vmul.f32 %v7408_v41, %v7165_v4 }
 0x468   : > { %2001 = vperm.xlu2 %6487, %v1336_v39  }
 0x46a   : > { %2013 = vperm.xlu1 %6485, %v1340_v13   ;;  %v7798_v51 = vpop.permute.xlu2 %1902  ;;  %v7812_v13 = vpop.permute.xlu0 %2016 }
 0x46b   : > { %12367 = vst [vmem:[#allocation87_spill] sm:$0xff] %v7798_v51  ;;  %v1431_v51 = vmul.f32 %v12308_v26, %v7711_v57  ;;  %v12378_v26 = vld [vmem:[#allocation96_spill] sm:$0xff] }
 0x46c   : > { %v7804_v46 = vpop.permute.xlu1 %1887  ;;  %12372 = vst [vmem:[#allocation157_spill] sm:$0xff] %v7812_v13 }
 0x46d   : > { %12369 = vst [vmem:[#allocation156_spill] sm:$0xff] %v7804_v46 }
 0x46e   : > { %2277 = vperm.xlu0 %6486, %v1428_v52   ;;  %v12374_v52 = vld [vmem:[#allocation100_spill] sm:$0xff] }
 0x46f   : > { %v1346_v46 = vmul.f32 %v12374_v52, %v7078_v53 }
 0x470   : > { %2010 = vperm.xlu2 %6487, %v1339_v42  }
 0x472   : > { %2022 = vperm.xlu1 %6485, %v1343_v28   ;;  %v7810_v39 = vpop.permute.xlu2 %1911  ;;  %v1434_v28 = vmul.f32 %v12313_v59, %v7726_v31  ;;  %v7828_v13 = vpop.permute.xlu0 %2025 }
 0x473   : > { %12371 = vst [vmem:[#allocation88_spill] sm:$0xff] %v7810_v39 }
 0x474   : > { %v7816_v38 = vpop.permute.xlu1 %1896  ;;  %12377 = vst [vmem:[#allocation160_spill] sm:$0xff] %v7828_v13 }
 0x475   : > { %12373 = vst [vmem:[#allocation158_spill] sm:$0xff] %v7816_v38  ;;  %v1345_v38 = vmul.f32 %v12378_v26, %v7141_v6 }
 0x476   : > { %2286 = vperm.xlu0 %6486, %v1431_v51   ;;  %v12379_v51 = vld [vmem:[#allocation21_spill] sm:$0xff] }
 0x477   : > { %v1349_v41 = vmul.f32 %v12379_v51, %v7064_v47 }
 0x478   : > { %2019 = vperm.xlu2 %6487, %v1342_v9  }
 0x47a   : > { %2031 = vperm.xlu1 %6485, %v1346_v46   ;;  %v7822_v42 = vpop.permute.xlu2 %1920  ;;  %v1437_v46 = vmul.f32 %v12319_v61, %v7619_v16  ;;  %v7840_v59 = vpop.permute.xlu0 %2034 }
 0x47b   : > { %12375 = vst [vmem:[#allocation100_spill] sm:$0xff] %v7822_v42 }
 0x47c   : > { %v7826_v39 = vpop.permute.xlu1 %1905  ;;  %12382 = vst [vmem:[#allocation162_spill] sm:$0xff] %v7840_v59 }
 0x47d   : > { %12376 = vst [vmem:[#allocation159_spill] sm:$0xff] %v7826_v39  ;;  %v12383_v39 = vld [vmem:[#allocation101_spill] sm:$0xff] }
 0x47e   : > { %2295 = vperm.xlu0 %6486, %v1434_v28   ;;  %v1348_v13 = vmul.f32 %v12383_v39, %v7149_v7  ;;  %v1352_v28 = vmul.f32 %v7429_v1, %v7104_v63 }
 0x480   : > { %2028 = vperm.xlu2 %6487, %v1345_v38  }
 0x482   : > { %2040 = vperm.xlu1 %6485, %v1349_v41   ;;  %v7834_v9 = vpop.permute.xlu2 %1929  ;;  %v1440_v41 = vmul.f32 %v7259_v43, %v7634_v24  ;;  %v7852_v61 = vpop.permute.xlu0 %2043 }
 0x483   : > { %12380 = vst [vmem:[#allocation96_spill] sm:$0xff] %v7834_v9 }
 0x484   : > { %v7838_v42 = vpop.permute.xlu1 %1914  ;;  %12386 = vst [vmem:[#allocation164_spill] sm:$0xff] %v7852_v61 }
 0x485   : > { %12381 = vst [vmem:[#allocation161_spill] sm:$0xff] %v7838_v42  ;;  %v12387_v42 = vld [vmem:[#allocation102_spill] sm:$0xff] }
 0x486   : > { %2304 = vperm.xlu0 %6486, %v1437_v46   ;;  %v1351_v59 = vmul.f32 %v12387_v42, %v7165_v4  ;;  %v12388_v46 = vld [vmem:[#allocation104_spill] sm:$0xff] }
 0x487   : > { %v1355_v51 = vmul.f32 %v12388_v46, %v7117_v21 }
 0x488   : > { %2037 = vperm.xlu2 %6487, %v1348_v13  }
 0x48a   : > { %2049 = vperm.xlu1 %6485, %v1352_v28   ;;  %v7846_v38 = vpop.permute.xlu2 %1938  ;;  %v1443_v28 = vmul.f32 %v12330_v44, %v7649_v33  ;;  %v7864_v43 = vpop.permute.xlu0 %2052 }
 0x48b   : > { %12384 = vst [vmem:[#allocation101_spill] sm:$0xff] %v7846_v38 }
 0x48c   : > { %v7850_v9 = vpop.permute.xlu1 %1923  ;;  %12391 = vst [vmem:[#allocation165_spill] sm:$0xff] %v7864_v43 }
 0x48d   : > { %12385 = vst [vmem:[#allocation163_spill] sm:$0xff] %v7850_v9  ;;  %v12392_v9 = vld [vmem:[#allocation27_spill] sm:$0xff] }
 0x48e   : > { %2313 = vperm.xlu0 %6486, %v1440_v41   ;;  %v1354_v61 = vmul.f32 %v12392_v9, %v7078_v53  ;;  %v1358_v41 = vmul.f32 %v7466_v5, %v7130_v2 }
 0x490   : > { %2046 = vperm.xlu2 %6487, %v1351_v59  }
 0x492   : > { %2058 = vperm.xlu1 %6485, %v1355_v51   ;;  %v7858_v13 = vpop.permute.xlu2 %1947  ;;  %v1446_v51 = vmul.f32 %v12336_v11, %v7666_v50  ;;  %v7876_v44 = vpop.permute.xlu0 %2061  ;;  %v1360_v11 = vmul.f32 %v7447_v56, %v7104_v63 }
 0x493   : > { %12389 = vst [vmem:[#allocation102_spill] sm:$0xff] %v7858_v13 }
 0x494   : > { %v7862_v38 = vpop.permute.xlu1 %1932  ;;  %12395 = vst [vmem:[#allocation167_spill] sm:$0xff] %v7876_v44 }
 0x495   : > { %12390 = vst [vmem:[#allocation104_spill] sm:$0xff] %v7862_v38  ;;  %v1357_v38 = vmul.f32 %v7441_v58, %v7064_v47 }
 0x496   : > { %2322 = vperm.xlu0 %6486, %v1443_v28   ;;  %v1361_v28 = vmul.f32 %v7470_v18, %v7141_v6 }
 0x498   : > { %2055 = vperm.xlu2 %6487, %v1354_v61  }
 0x49a   : > { %2067 = vperm.xlu1 %6485, %v1358_v41   ;;  %v7870_v59 = vpop.permute.xlu2 %1956  ;;  %v1449_v41 = vmul.f32 %v12341_v62, %v7681_v8  ;;  %v1363_v62 = vmul.f32 %v7476_v29, %v7117_v21 }
 0x49b   : > { %12393 = vst [vmem:[#allocation27_spill] sm:$0xff] %v7870_v59 }
 0x49c   : > { %v7874_v13 = vpop.permute.xlu1 %1941 }
 0x49d   : > { %12394 = vst [vmem:[#allocation166_spill] sm:$0xff] %v7874_v13  ;;  %v7890_v13 = vpop.permute.xlu0 %2070 }
 0x49e   : > { %2331 = vperm.xlu0 %6486, %v1446_v51   ;;  %12398 = vst [vmem:[#allocation170_spill] sm:$0xff] %v7890_v13  ;;  %v12399_v51 = vld [vmem:[#allocation40_spill] sm:$0xff] }
 0x49f   : > { %v1364_v44 = vmul.f32 %v12399_v51, %v7149_v7  ;;  %v12512_v51 = vld [vmem:[#allocation83_spill] sm:$0xff] }
 0x4a0   : > { %2064 = vperm.xlu2 %6487, %v1357_v38  }
 0x4a2   : > { %2076 = vperm.xlu1 %6485, %v1361_v28   ;;  %v7882_v61 = vpop.permute.xlu2 %1965  ;;  %v1452_v28 = vmul.f32 %v12346_v20, %v7696_v15  ;;  %v1366_v20 = vmul.f32 %v7482_v3, %v7130_v2 }
 0x4a3   : > { %12396 = vst [vmem:[#allocation168_spill] sm:$0xff] %v7882_v61 }
 0x4a4   : > { %v7886_v59 = vpop.permute.xlu1 %1950 }
 0x4a5   : > { %12397 = vst [vmem:[#allocation169_spill] sm:$0xff] %v7886_v59  ;;  %v7902_v59 = vpop.permute.xlu0 %2079 }
 0x4a6   : > { %2340 = vperm.xlu0 %6486, %v1449_v41   ;;  %12402 = vst [vmem:[#allocation173_spill] sm:$0xff] %v7902_v59  ;;  %v1367_v41 = vmul.f32 %v7495_v60, %v7165_v4 }
 0x4a8   : > { %2073 = vperm.xlu2 %6487, %v1360_v11  }
 0x4aa   : > { %2085 = vperm.xlu1 %6485, %v1364_v44   ;;  %v7894_v38 = vpop.permute.xlu2 %1974  ;;  %v1455_v44 = vmul.f32 %v12350_v27, %v7711_v57  ;;  %v12408_v27 = vld [vmem:[#allocation47_spill] sm:$0xff] }
 0x4ab   : > { %12400 = vst [vmem:[#allocation171_spill] sm:$0xff] %v7894_v38 }
 0x4ac   : > { %v7898_v61 = vpop.permute.xlu1 %1959 }
 0x4ad   : > { %12401 = vst [vmem:[#allocation172_spill] sm:$0xff] %v7898_v61  ;;  %v7914_v61 = vpop.permute.xlu0 %2088 }
 0x4ae   : > { %2349 = vperm.xlu0 %6486, %v1452_v28   ;;  %12405 = vst [vmem:[#allocation176_spill] sm:$0xff] %v7914_v61  ;;  %v1370_v28 = vmul.f32 %v7503_v14, %v7078_v53 }
 0x4b0   : > { %2082 = vperm.xlu2 %6487, %v1363_v62  }
 0x4b2   : > { %2094 = vperm.xlu1 %6485, %v1367_v41   ;;  %v7906_v11 = vpop.permute.xlu2 %1983  ;;  %v1458_v41 = vmul.f32 %v12355_v17, %v7726_v31  ;;  %v1372_v17 = vmul.f32 %v7516_v25, %v7149_v7  ;;  %v12415_v7 = vld [vmem:[#allocation90_spill] sm:$0xff] }
 0x4b3   : > { %12403 = vst [vmem:[#allocation174_spill] sm:$0xff] %v7906_v11 }
 0x4b4   : > { %v7910_v38 = vpop.permute.xlu1 %1968 }
 0x4b5   : > { %12404 = vst [vmem:[#allocation175_spill] sm:$0xff] %v7910_v38  ;;  %v1369_v38 = vmul.f32 %v12408_v27, %v7141_v6  ;;  %v7926_v59 = vpop.permute.xlu0 %2097 }
 0x4b6   : > { %2358 = vperm.xlu0 %6486, %v1455_v44   ;;  %12409 = vst [vmem:[#allocation47_spill] sm:$0xff] %v7926_v59  ;;  %v1373_v44 = vmul.f32 %v7558_v48, %v7064_v47  ;;  %v12507_v48 = vld [vmem:[#allocation82_spill] sm:$0xff] }
 0x4b7   : > { %v1460_v14 = vmul.f32 %v12507_v48, %v7696_v15  ;;  %v12514_v48 = vld [vmem:[#allocation52_spill] sm:$0xff] }
 0x4b8   : > { %2091 = vperm.xlu2 %6487, %v1366_v20  }
 0x4ba   : > { %2103 = vperm.xlu1 %6485, %v1370_v28   ;;  %v7918_v62 = vpop.permute.xlu2 %1992  ;;  %v1461_v28 = vmul.f32 %v12360_v37, %v7619_v16  ;;  %v1375_v37 = vmul.f32 %v7526_v55, %v7165_v4  ;;  %v1382_v4 = vmul.f32 %v7580_v30, %v7130_v2 }
 0x4bb   : > { %12406 = vst [vmem:[#allocation177_spill] sm:$0xff] %v7918_v62 }
 0x4bc   : > { %v7922_v11 = vpop.permute.xlu1 %1977 }
 0x4bd   : > { %12407 = vst [vmem:[#allocation178_spill] sm:$0xff] %v7922_v11  ;;  %v7938_v11 = vpop.permute.xlu0 %2106 }
 0x4be   : > { %2367 = vperm.xlu0 %6486, %v1458_v41   ;;  %12412 = vst [vmem:[#allocation181_spill] sm:$0xff] %v7938_v11  ;;  %v1376_v41 = vmul.f32 %v7566_v54, %v7104_v63 }
 0x4c0   : > { %2100 = vperm.xlu2 %6487, %v1369_v38  }
 0x4c2   : > { %2112 = vperm.xlu1 %6485, %v1373_v44   ;;  %v7930_v20 = vpop.permute.xlu2 %2001  ;;  %v1464_v44 = vmul.f32 %v12365_v23, %v7634_v24  ;;  %v1378_v23 = vmul.f32 %v7574_v32, %v7078_v53  ;;  %v1385_v53 = vmul.f32 %v7590_v45, %v7141_v6 }
 0x4c3   : > { %12410 = vst [vmem:[#allocation179_spill] sm:$0xff] %v7930_v20 }
 0x4c4   : > { %v7934_v62 = vpop.permute.xlu1 %1986 }
 0x4c5   : > { %12411 = vst [vmem:[#allocation180_spill] sm:$0xff] %v7934_v62  ;;  %v7952_v62 = vpop.permute.xlu0 %2115 }
 0x4c6   : > { %2376 = vperm.xlu0 %6486, %v1461_v28   ;;  %v1379_v28 = vmul.f32 %v12415_v7, %v7117_v21  ;;  %12416 = vst [vmem:[#allocation184_spill] sm:$0xff] %v7952_v62  ;;  %v12495_v62 = vld [vmem:[#allocation71_spill] sm:$0xff] }
 0x4c7   : > { %v1448_v11 = vmul.f32 %v12495_v62, %v7634_v24 }
 0x4c8   : > { %2109 = vperm.xlu2 %6487, %v1372_v17  }
 0x4ca   : > { %2121 = vperm.xlu1 %6485, %v1376_v41   ;;  %v7942_v38 = vpop.permute.xlu2 %2010  ;;  %v1467_v41 = vmul.f32 %v12370_v22, %v7649_v33  ;;  %v1381_v22 = vmul.f32 %v7582_v12, %v7064_v47  ;;  %v1388_v47 = vmul.f32 %v7032_v36, %v7696_v15 }
 0x4cb   : > { %12413 = vst [vmem:[#allocation182_spill] sm:$0xff] %v7942_v38 }
 0x4cc   : > { %v7946_v20 = vpop.permute.xlu1 %1995 }
 0x4cd   : > { %12414 = vst [vmem:[#allocation183_spill] sm:$0xff] %v7946_v20  ;;  %v12491_v20 = vld [vmem:[#allocation70_spill] sm:$0xff] }
 0x4ce   : > { %2385 = vperm.xlu0 %6486, %v1464_v44   ;;  %v7964_v44 = vpop.permute.xlu0 %2124 }
 0x4cf   : > { %12419 = vst [vmem:[#allocation187_spill] sm:$0xff] %v7964_v44 }
 0x4d0   : > { %2118 = vperm.xlu2 %6487, %v1375_v37  }
 0x4d2   : > { %2130 = vperm.xlu1 %6485, %v1379_v28   ;;  %v7954_v17 = vpop.permute.xlu2 %2019  ;;  %v1470_v28 = vmul.f32 %v7383_v10, %v7666_v50  ;;  %v12425_v10 = vld [vmem:[#allocation108_spill] sm:$0xff] }
 0x4d3   : > { %12417 = vst [vmem:[#allocation185_spill] sm:$0xff] %v7954_v17 }
 0x4d4   : > { %v7958_v38 = vpop.permute.xlu1 %2004 }
 0x4d5   : > { %12418 = vst [vmem:[#allocation186_spill] sm:$0xff] %v7958_v38  ;;  %v12489_v38 = vld [vmem:[#allocation25_spill] sm:$0xff] }
 0x4d6   : > { %2394 = vperm.xlu0 %6486, %v1467_v41   ;;  %v7976_v2 = vpop.permute.xlu0 %2133 }
 0x4d7   : > { %12422 = vst [vmem:[#allocation190_spill] sm:$0xff] %v7976_v2  ;;  %v1445_v2 = vmul.f32 %v12491_v20, %v7619_v16  ;;  %v12497_v20 = vld [vmem:[#allocation30_spill] sm:$0xff] }
 0x4d8   : > { %2127 = vperm.xlu2 %6487, %v1378_v23   ;;  %v1473_v23 = vmul.f32 %v12378_v26, %v7681_v8  ;;  %v1387_v26 = vmul.f32 %v7602_v19, %v7117_v21  ;;  %v12432_v21 = vld [vmem:[#allocation31_spill] sm:$0xff] }
 0x4da   : > { %2139 = vperm.xlu1 %6485, %v1382_v4   ;;  %v7966_v37 = vpop.permute.xlu2 %2028 }
 0x4db   : > { %12420 = vst [vmem:[#allocation188_spill] sm:$0xff] %v7966_v37  ;;  %v1384_v37 = vmul.f32 %v12425_v10, %v7104_v63  ;;  %v1391_v63 = vmul.f32 %v7027_v34, %v7711_v57 }
 0x4dc   : > { %v7970_v17 = vpop.permute.xlu1 %2013 }
 0x4dd   : > { %12421 = vst [vmem:[#allocation189_spill] sm:$0xff] %v7970_v17 }
 0x4de   : > { %2403 = vperm.xlu0 %6486, %v1470_v28   ;;  %v7988_v6 = vpop.permute.xlu0 %2142 }
 0x4df   : > { %12426 = vst [vmem:[#allocation108_spill] sm:$0xff] %v7988_v6 }
 0x4e0   : > { %2136 = vperm.xlu2 %6487, %v1381_v22   ;;  %v1476_v22 = vmul.f32 %v12383_v39, %v7696_v15  ;;  %v1390_v39 = vmul.f32 %v7159_v40, %v7666_v50  ;;  %v12436_v40 = vld [vmem:[#allocation18_spill] sm:$0xff] }
 0x4e2   : > { %2148 = vperm.xlu1 %6485, %v1385_v53   ;;  %v7978_v41 = vpop.permute.xlu2 %2037 }
 0x4e3   : > { %12423 = vst [vmem:[#allocation191_spill] sm:$0xff] %v7978_v41 }
 0x4e4   : > { %v7982_v4 = vpop.permute.xlu1 %2022 }
 0x4e5   : > { %12424 = vst [vmem:[#allocation192_spill] sm:$0xff] %v7982_v4 }
 0x4e6   : > { %2412 = vperm.xlu0 %6486, %v1473_v23   ;;  %v8000_v36 = vpop.permute.xlu0 %2151  ;;  %v1479_v23 = vmul.f32 %v12387_v42, %v7711_v57  ;;  %v12435_v42 = vld [vmem:[#allocation29_spill] sm:$0xff] }
 0x4e7   : > { %12429 = vst [vmem:[#allocation195_spill] sm:$0xff] %v8000_v36 }
 0x4e8   : > { %2145 = vperm.xlu2 %6487, %v1384_v37  }
 0x4ea   : > { %2157 = vperm.xlu1 %6485, %v1388_v47   ;;  %v7990_v28 = vpop.permute.xlu2 %2046 }
 0x4eb   : > { %12427 = vst [vmem:[#allocation193_spill] sm:$0xff] %v7990_v28 }
 0x4ec   : > { %v7994_v53 = vpop.permute.xlu1 %2031 }
 0x4ed   : > { %12428 = vst [vmem:[#allocation194_spill] sm:$0xff] %v7994_v53  ;;  %v1393_v53 = vmul.f32 %v12435_v42, %v7681_v8 }
 0x4ee   : > { %2421 = vperm.xlu0 %6486, %v1476_v22   ;;  %v1394_v22 = vmul.f32 %v12432_v21, %v7726_v31  ;;  %v1485_v21 = vmul.f32 %v7441_v58, %v7619_v16  ;;  %v12443_v58 = vld [vmem:[#allocation36_spill] sm:$0xff] }
 0x4f0   : > { %2154 = vperm.xlu2 %6487, %v1387_v26   ;;  %v8014_v26 = vpop.permute.xlu0 %2160 }
 0x4f2   : > { %2166 = vperm.xlu1 %6485, %v1391_v63   ;;  %v8002_v37 = vpop.permute.xlu2 %2055  ;;  %v1482_v63 = vmul.f32 %v12392_v9, %v7726_v31  ;;  %v12439_v9 = vld [vmem:[#allocation33_spill] sm:$0xff] }
 0x4f3   : > { %12430 = vst [vmem:[#allocation196_spill] sm:$0xff] %v8002_v37 }
 0x4f4   : > { %v8006_v47 = vpop.permute.xlu1 %2040 }
 0x4f5   : > { %12431 = vst [vmem:[#allocation197_spill] sm:$0xff] %v8006_v47 }
 0x4f6   : > { %2430 = vperm.xlu0 %6486, %v1479_v23   ;;  %v1397_v23 = vmul.f32 %v12436_v40, %v7619_v16  ;;  %v1488_v40 = vmul.f32 %v7447_v56, %v7634_v24  ;;  %v12447_v56 = vld [vmem:[#allocation23_spill] sm:$0xff] }
 0x4f8   : > { %2163 = vperm.xlu2 %6487, %v1390_v39   ;;  %v8030_v28 = vpop.permute.xlu0 %2169 }
 0x4fa   : > { %2175 = vperm.xlu1 %6485, %v1394_v22   ;;  %v8012_v34 = vpop.permute.xlu2 %2064 }
 0x4fb   : > { %12433 = vst [vmem:[#allocation31_spill] sm:$0xff] %v8012_v34  ;;  %v12484_v34 = vld [vmem:[#allocation65_spill] sm:$0xff] }
 0x4fc   : > { %v8018_v37 = vpop.permute.xlu1 %2049  ;;  %v1436_v4 = vmul.f32 %v12484_v34, %v7696_v15 }
 0x4fd   : > { %12434 = vst [vmem:[#allocation198_spill] sm:$0xff] %v8018_v37  ;;  %v1396_v37 = vmul.f32 %v12439_v9, %v7696_v15 }
 0x4fe   : > { %2439 = vperm.xlu0 %6486, %v1482_v63   ;;  %v12440_v63 = vld [vmem:[#allocation35_spill] sm:$0xff] }
 0x4ff   : > { %v1400_v42 = vmul.f32 %v12440_v63, %v7634_v24  ;;  %v1491_v63 = vmul.f32 %v7476_v29, %v7649_v33  ;;  %v12451_v29 = vld [vmem:[#allocation39_spill] sm:$0xff] }
 0x500   : > { %2172 = vperm.xlu2 %6487, %v1393_v53  }
 0x502   : > { %2184 = vperm.xlu1 %6485, %v1397_v23   ;;  %v8024_v39 = vpop.permute.xlu2 %2073 }
 0x503   : > { %12437 = vst [vmem:[#allocation29_spill] sm:$0xff] %v8024_v39  ;;  %v8044_v39 = vpop.permute.xlu0 %2178 }
 0x504   : > { %v8028_v22 = vpop.permute.xlu1 %2058 }
 0x505   : > { %12438 = vst [vmem:[#allocation18_spill] sm:$0xff] %v8028_v22  ;;  %v1399_v22 = vmul.f32 %v12443_v58, %v7711_v57 }
 0x506   : > { %2448 = vperm.xlu0 %6486, %v1485_v21   ;;  %v12444_v21 = vld [vmem:[#allocation38_spill] sm:$0xff] }
 0x507   : > { %v1403_v9 = vmul.f32 %v12444_v21, %v7649_v33  ;;  %v1494_v21 = vmul.f32 %v7482_v3, %v7666_v50  ;;  %v12455_v3 = vld [vmem:[#allocation42_spill] sm:$0xff] }
 0x508   : > { %2181 = vperm.xlu2 %6487, %v1396_v37  }
 0x50a   : > { %2193 = vperm.xlu1 %6485, %v1400_v42   ;;  %v8036_v53 = vpop.permute.xlu2 %2082 }
 0x50b   : > { %12441 = vst [vmem:[#allocation33_spill] sm:$0xff] %v8036_v53  ;;  %v1402_v53 = vmul.f32 %v12447_v56, %v7726_v31 }
 0x50c   : > { %v8040_v23 = vpop.permute.xlu1 %2067 }
 0x50d   : > { %12442 = vst [vmem:[#allocation35_spill] sm:$0xff] %v8040_v23  ;;  %v8058_v23 = vpop.permute.xlu0 %2187 }
 0x50e   : > { %2457 = vperm.xlu0 %6486, %v1488_v40   ;;  %v12448_v40 = vld [vmem:[#allocation43_spill] sm:$0xff] }
 0x50f   : > { %v1406_v58 = vmul.f32 %v12448_v40, %v7666_v50 }
 0x510   : > { %2190 = vperm.xlu2 %6487, %v1399_v22  }
 0x512   : > { %2202 = vperm.xlu1 %6485, %v1403_v9   ;;  %v8048_v37 = vpop.permute.xlu2 %2091 }
 0x513   : > { %12445 = vst [vmem:[#allocation36_spill] sm:$0xff] %v8048_v37  ;;  %v1408_v37 = vmul.f32 %v12455_v3, %v7634_v24 }
 0x514   : > { %v8052_v42 = vpop.permute.xlu1 %2076 }
 0x515   : > { %12446 = vst [vmem:[#allocation38_spill] sm:$0xff] %v8052_v42  ;;  %v1405_v42 = vmul.f32 %v12451_v29, %v7619_v16  ;;  %v8072_v40 = vpop.permute.xlu0 %2196 }
 0x516   : > { %2466 = vperm.xlu0 %6486, %v1491_v63   ;;  %v12452_v63 = vld [vmem:[#allocation44_spill] sm:$0xff] }
 0x517   : > { %v1409_v56 = vmul.f32 %v12452_v63, %v7681_v8  ;;  %v1500_v63 = vmul.f32 %v7516_v25, %v7696_v15  ;;  %v12463_v25 = vld [vmem:[#allocation48_spill] sm:$0xff] }
 0x518   : > { %2199 = vperm.xlu2 %6487, %v1402_v53  }
 0x51a   : > { %2211 = vperm.xlu1 %6485, %v1406_v58   ;;  %v8060_v22 = vpop.permute.xlu2 %2100  ;;  %v1497_v58 = vmul.f32 %v12408_v27, %v7681_v8  ;;  %v12459_v27 = vld [vmem:[#allocation46_spill] sm:$0xff] }
 0x51b   : > { %12449 = vst [vmem:[#allocation23_spill] sm:$0xff] %v8060_v22 }
 0x51c   : > { %v8064_v9 = vpop.permute.xlu1 %2085 }
 0x51d   : > { %12450 = vst [vmem:[#allocation43_spill] sm:$0xff] %v8064_v9  ;;  %v12482_v9 = vld [vmem:[#allocation60_spill] sm:$0xff] }
 0x51e   : > { %2475 = vperm.xlu0 %6486, %v1494_v21   ;;  %v12456_v21 = vld [vmem:[#allocation34_spill] sm:$0xff] }
 0x51f   : > { %v1412_v29 = vmul.f32 %v12456_v21, %v7696_v15  ;;  %v1503_v21 = vmul.f32 %v7526_v55, %v7711_v57  ;;  %v12467_v55 = vld [vmem:[#allocation41_spill] sm:$0xff] }
 0x520   : > { %2208 = vperm.xlu2 %6487, %v1405_v42  }
 0x522   : > { %2220 = vperm.xlu1 %6485, %v1409_v56   ;;  %v8070_v53 = vpop.permute.xlu2 %2109 }
 0x523   : > { %12453 = vst [vmem:[#allocation39_spill] sm:$0xff] %v8070_v53  ;;  %v8088_v53 = vpop.permute.xlu0 %2205 }
 0x524   : > { %v8076_v22 = vpop.permute.xlu1 %2094 }
 0x525   : > { %12454 = vst [vmem:[#allocation44_spill] sm:$0xff] %v8076_v22  ;;  %v1411_v22 = vmul.f32 %v12459_v27, %v7649_v33 }
 0x526   : > { %2484 = vperm.xlu0 %6486, %v1497_v58   ;;  %v12460_v58 = vld [vmem:[#allocation49_spill] sm:$0xff] }
 0x527   : > { %v1415_v3 = vmul.f32 %v12460_v58, %v7711_v57  ;;  %v1506_v58 = vmul.f32 %v7574_v32, %v7726_v31  ;;  %v12471_v32 = vld [vmem:[#allocation51_spill] sm:$0xff] }
 0x528   : > { %2217 = vperm.xlu2 %6487, %v1408_v37  }
 0x52a   : > { %2229 = vperm.xlu1 %6485, %v1412_v29   ;;  %v8082_v42 = vpop.permute.xlu2 %2118 }
 0x52b   : > { %12457 = vst [vmem:[#allocation42_spill] sm:$0xff] %v8082_v42  ;;  %v8102_v42 = vpop.permute.xlu0 %2214 }
 0x52c   : > { %v8086_v56 = vpop.permute.xlu1 %2103 }
 0x52d   : > { %12458 = vst [vmem:[#allocation34_spill] sm:$0xff] %v8086_v56  ;;  %v1414_v56 = vmul.f32 %v12463_v25, %v7666_v50 }
 0x52e   : > { %2493 = vperm.xlu0 %6486, %v1500_v63   ;;  %v12464_v63 = vld [vmem:[#allocation50_spill] sm:$0xff] }
 0x52f   : > { %v1418_v27 = vmul.f32 %v12464_v63, %v7726_v31  ;;  %v1509_v63 = vmul.f32 %v7582_v12, %v7619_v16  ;;  %v12475_v12 = vld [vmem:[#allocation54_spill] sm:$0xff] }
 0x530   : > { %2226 = vperm.xlu2 %6487, %v1411_v22  }
 0x532   : > { %2238 = vperm.xlu1 %6485, %v1415_v3   ;;  %v8094_v37 = vpop.permute.xlu2 %2127 }
 0x533   : > { %12461 = vst [vmem:[#allocation46_spill] sm:$0xff] %v8094_v37  ;;  %v1417_v37 = vmul.f32 %v12467_v55, %v7681_v8 }
 0x534   : > { %v8098_v29 = vpop.permute.xlu1 %2112 }
 0x535   : > { %12462 = vst [vmem:[#allocation49_spill] sm:$0xff] %v8098_v29  ;;  %v8116_v29 = vpop.permute.xlu0 %2223 }
 0x536   : > { %2502 = vperm.xlu0 %6486, %v1503_v21   ;;  %v12468_v21 = vld [vmem:[#allocation53_spill] sm:$0xff] }
 0x537   : > { %v1421_v25 = vmul.f32 %v12468_v21, %v7619_v16 }
 0x538   : > { %2235 = vperm.xlu2 %6487, %v1414_v56  }
 0x53a   : > { %2247 = vperm.xlu1 %6485, %v1418_v27   ;;  %v8106_v22 = vpop.permute.xlu2 %2136 }
 0x53b   : > { %12465 = vst [vmem:[#allocation48_spill] sm:$0xff] %v8106_v22  ;;  %v12481_v22 = vld [vmem:[#allocation8_spill] sm:$0xff] }
 0x53c   : > { %v8110_v3 = vpop.permute.xlu1 %2121 }
 0x53d   : > { %12466 = vst [vmem:[#allocation50_spill] sm:$0xff] %v8110_v3  ;;  %v1420_v3 = vmul.f32 %v12471_v32, %v7696_v15  ;;  %v8130_v21 = vpop.permute.xlu0 %2232 }
 0x53e   : > { %2511 = vperm.xlu0 %6486, %v1506_v58   ;;  %v12472_v58 = vld [vmem:[#allocation56_spill] sm:$0xff] }
 0x53f   : > { %v1424_v55 = vmul.f32 %v12472_v58, %v7634_v24  ;;  %v1515_v58 = vmul.f32 %v7602_v19, %v7649_v33 }
 0x540   : > { %2244 = vperm.xlu2 %6487, %v1417_v37  }
 0x542   : > { %2256 = vperm.xlu1 %6485, %v1421_v25   ;;  %v8118_v56 = vpop.permute.xlu2 %2145  ;;  %v1512_v25 = vmul.f32 %v12425_v10, %v7634_v24  ;;  %v12478_v10 = vld [vmem:[#allocation61_spill] sm:$0xff] }
 0x543   : > { %12469 = vst [vmem:[#allocation41_spill] sm:$0xff] %v8118_v56 }
 0x544   : > { %v8122_v27 = vpop.permute.xlu1 %2130 }
 0x545   : > { %12470 = vst [vmem:[#allocation53_spill] sm:$0xff] %v8122_v27  ;;  %v1423_v27 = vmul.f32 %v12475_v12, %v7711_v57 }
 0x546   : > { %2520 = vperm.xlu0 %6486, %v1509_v63   ;;  %v12476_v63 = vld [vmem:[#allocation57_spill] sm:$0xff] }
 0x547   : > { %v1427_v32 = vmul.f32 %v12476_v63, %v7649_v33 }
 0x548   : > { %2253 = vperm.xlu2 %6487, %v1420_v3  }
 0x54a   : > { %2265 = vperm.xlu1 %6485, %v1424_v55   ;;  %v8128_v37 = vpop.permute.xlu2 %2154 }
 0x54b   : > { %12473 = vst [vmem:[#allocation51_spill] sm:$0xff] %v8128_v37  ;;  %v8146_v37 = vpop.permute.xlu0 %2241 }
 0x54c   : > { %v8134_v56 = vpop.permute.xlu1 %2139 }
 0x54d   : > { %12474 = vst [vmem:[#allocation56_spill] sm:$0xff] %v8134_v56  ;;  %v1426_v56 = vmul.f32 %v12478_v10, %v7726_v31  ;;  %v1433_v10 = vmul.f32 %v12482_v9, %v7681_v8  ;;  %v12485_v9 = vld [vmem:[#allocation66_spill] sm:$0xff] }
 0x54e   : > { %2529 = vperm.xlu0 %6486, %v1512_v25   ;;  %v12479_v25 = vld [vmem:[#allocation59_spill] sm:$0xff] }
 0x54f   : > { %v1430_v12 = vmul.f32 %v12479_v25, %v7666_v50  ;;  %v12483_v25 = vld [vmem:[#allocation92_spill] sm:$0xff] }
 0x550   : > { %2262 = vperm.xlu2 %6487, %v1423_v27  }
 0x552   : > { %2274 = vperm.xlu1 %6485, %v1427_v32   ;;  %v8140_v3 = vpop.permute.xlu2 %2163  ;;  %v12480_v32 = vld [vmem:[#allocation62_spill] sm:$0xff] }
 0x553   : > { %v1429_v19 = vmul.f32 %v12480_v32, %v7619_v16 }
 0x554   : > { %v8144_v55 = vpop.permute.xlu1 %2148 }
 0x555   : > { %12477 = vst [vmem:[#allocation54_spill] sm:$0xff] %v8144_v55  ;;  %v8159_v55 = vpop.permute.xlu0 %2250 }
 0x556   : > { %2538 = vperm.xlu0 %6486, %v1515_v58  }
 0x558   : > { %2271 = vperm.xlu2 %6487, %v1426_v56  }
 0x55a   : > { %2283 = vperm.xlu1 %6485, %v1430_v12   ;;  %v8152_v27 = vpop.permute.xlu2 %2172  ;;  %v1432_v12 = vmul.f32 %v12483_v25, %v7634_v24 }
 0x55c   : > { %v8154_v63 = vpop.permute.xlu1 %2157 }
 0x55d   : > { %v8171_v32 = vpop.permute.xlu0 %2259 }
 0x55e   : > { %6490 = vset.pattern.permute.xlu0 %v12481_v22  ;;  %v1442_v22 = vmul.f32 %v12489_v38, %v7726_v31  ;;  %v12494_v38 = vld [vmem:[#allocation73_spill] sm:$0xff] }
 0x560   : > { %2280 = vperm.xlu2 %6487, %v1429_v19   ;;  %v1435_v19 = vmul.f32 %v12485_v9, %v7649_v33 }
 0x562   : > { %2292 = vperm.xlu1 %6485, %v1433_v10   ;;  %v8163_v58 = vpop.permute.xlu2 %2181  ;;  %v12486_v10 = vld [vmem:[#allocation68_spill] sm:$0xff] }
 0x563   : > { %v1439_v47 = vmul.f32 %v12486_v10, %v7711_v57 }
 0x564   : > { %v8165_v56 = vpop.permute.xlu1 %2166 }
 0x565   : > { %v8183_v17 = vpop.permute.xlu0 %2268 }
 0x568   : > { %2289 = vperm.xlu2 %6487, %v1432_v12  }
 0x56a   : > { %2301 = vperm.xlu1 %6485, %v1436_v4   ;;  %v8173_v41 = vpop.permute.xlu2 %2190  ;;  %v12488_v4 = vld [vmem:[#allocation67_spill] sm:$0xff] }
 0x56b   : > { %v1438_v12 = vmul.f32 %v12488_v4, %v7666_v50 }
 0x56c   : > { %v8175_v36 = vpop.permute.xlu1 %2175 }
 0x570   : > { %2298 = vperm.xlu2 %6487, %v1435_v19   ;;  %v8195_v19 = vpop.permute.xlu0 %2277 }
 0x572   : > { %2310 = vperm.xlu1 %6485, %v1439_v47   ;;  %v8181_v25 = vpop.permute.xlu2 %2199  ;;  %v12490_v47 = vld [vmem:[#allocation72_spill] sm:$0xff] }
 0x573   : > { %12487 = vst [vmem:[#allocation57_spill] sm:$0xff] %v8181_v25  ;;  %v1441_v10 = vmul.f32 %v12490_v47, %v7681_v8 }
 0x574   : > { %v8185_v34 = vpop.permute.xlu1 %2184 }
 0x578   : > { %2307 = vperm.xlu2 %6487, %v1438_v12   ;;  %v8207_v12 = vpop.permute.xlu0 %2286 }
 0x57a   : > { %2319 = vperm.xlu1 %6485, %v1442_v22   ;;  %v8191_v9 = vpop.permute.xlu2 %2208  ;;  %v1444_v22 = vmul.f32 %v12494_v38, %v7696_v15 }
 0x57c   : > { %v8193_v6 = vpop.permute.xlu1 %2193 }
 0x580   : > { %2316 = vperm.xlu2 %6487, %v1441_v10   ;;  %v12498_v10 = vld [vmem:[#allocation76_spill] sm:$0xff]  ;;  %v8219_v61 = vpop.permute.xlu0 %2295 }
 0x581   : > { %v1451_v45 = vmul.f32 %v12498_v10, %v7649_v33  ;;  %v12504_v10 = vld [vmem:[#allocation45_spill] sm:$0xff] }
 0x582   : > { %2328 = vperm.xlu1 %6485, %v1445_v2   ;;  %v8201_v4 = vpop.permute.xlu2 %2217  ;;  %v1447_v2 = vmul.f32 %v12497_v20, %v7711_v57  ;;  %v1457_v54 = vmul.f32 %v12504_v10, %v7681_v8 }
 0x583   : > { %12492 = vst [vmem:[#allocation61_spill] sm:$0xff] %v8201_v4 }
 0x584   : > { %v8203_v44 = vpop.permute.xlu1 %2202 }
 0x585   : > { %12493 = vst [vmem:[#allocation59_spill] sm:$0xff] %v8203_v44 }
 0x588   : > { %2325 = vperm.xlu2 %6487, %v1444_v22   ;;  %v12502_v22 = vld [vmem:[#allocation79_spill] sm:$0xff]  ;;  %v8231_v43 = vpop.permute.xlu0 %2304 }
 0x589   : > { %v1454_v13 = vmul.f32 %v12502_v22, %v7666_v50 }
 0x58a   : > { %2337 = vperm.xlu1 %6485, %v1448_v11   ;;  %v8211_v47 = vpop.permute.xlu2 %2226  ;;  %v12501_v11 = vld [vmem:[#allocation77_spill] sm:$0xff] }
 0x58b   : > { %12496 = vst [vmem:[#allocation62_spill] sm:$0xff] %v8211_v47  ;;  %v1450_v62 = vmul.f32 %v12501_v11, %v7726_v31  ;;  %v1463_v47 = vmul.f32 %v12512_v51, %v7711_v57  ;;  %v1465_v51 = vmul.f32 %v12361_v35, %v7681_v8 }
 0x58c   : > { %v8213_v59 = vpop.permute.xlu1 %2211 }
 0x590   : > { %2334 = vperm.xlu2 %6487, %v1447_v2  }
 0x592   : > { %2346 = vperm.xlu1 %6485, %v1451_v45   ;;  %v8221_v38 = vpop.permute.xlu2 %2235  ;;  %v1453_v45 = vmul.f32 %v12343_v49, %v7619_v16 }
 0x593   : > { %12499 = vst [vmem:[#allocation60_spill] sm:$0xff] %v8221_v38  ;;  %v1480_v38 = vmul.f32 %v7429_v1, %v7634_v24 }
 0x594   : > { %v8223_v30 = vpop.permute.xlu1 %2220 }
 0x595   : > { %12500 = vst [vmem:[#allocation92_spill] sm:$0xff] %v8223_v30 }
 0x598   : > { %2343 = vperm.xlu2 %6487, %v1450_v62   ;;  %v8243_v62 = vpop.permute.xlu0 %2313 }
 0x59a   : > { %2355 = vperm.xlu1 %6485, %v1454_v13   ;;  %v8229_v20 = vpop.permute.xlu2 %2244  ;;  %v12506_v13 = vld [vmem:[#allocation84_spill] sm:$0xff] }
 0x59b   : > { %12503 = vst [vmem:[#allocation65_spill] sm:$0xff] %v8229_v20  ;;  %v1456_v22 = vmul.f32 %v12506_v13, %v7634_v24 }
 0x59c   : > { %v8233_v2 = vpop.permute.xlu1 %2229 }
 0x5a0   : > { %2352 = vperm.xlu2 %6487, %v1453_v45   ;;  %v8255_v10 = vpop.permute.xlu0 %2322 }
 0x5a1   : > { %12511 = vst [vmem:[#allocation25_spill] sm:$0xff] %v8255_v10 }
 0x5a2   : > { %2364 = vperm.xlu1 %6485, %v1457_v54   ;;  %v8239_v11 = vpop.permute.xlu2 %2253  ;;  %v12510_v54 = vld [vmem:[#allocation85_spill] sm:$0xff] }
 0x5a3   : > { %v1459_v45 = vmul.f32 %v12510_v54, %v7649_v33 }
 0x5a4   : > { %v8241_v7 = vpop.permute.xlu1 %2238 }
 0x5a5   : > { %12505 = vst [vmem:[#allocation66_spill] sm:$0xff] %v8241_v7 }
 0x5a8   : > { %2361 = vperm.xlu2 %6487, %v1456_v22   ;;  %v12515_v22 = vld [vmem:[#allocation89_spill] sm:$0xff]  ;;  %v8267_v20 = vpop.permute.xlu0 %2331 }
 0x5aa   : > { %2373 = vperm.xlu1 %6485, %v1460_v14   ;;  %v8249_v49 = vpop.permute.xlu2 %2262  ;;  %v1462_v14 = vmul.f32 %v12514_v48, %v7666_v50 }
 0x5ab   : > { %12508 = vst [vmem:[#allocation68_spill] sm:$0xff] %v8249_v49 }
 0x5ac   : > { %v8251_v60 = vpop.permute.xlu1 %2247 }
 0x5ad   : > { %12509 = vst [vmem:[#allocation67_spill] sm:$0xff] %v8251_v60  ;;  %v1466_v60 = vmul.f32 %v12515_v22, %v7726_v31  ;;  %v12520_v22 = vld [vmem:[#allocation95_spill] sm:$0xff] }
 0x5ae   : > { %v1472_v49 = vmul.f32 %v12520_v22, %v7634_v24  ;;  %v12528_v22 = vld [vmem:[#allocation98_spill] sm:$0xff] }
 0x5b0   : > { %2370 = vperm.xlu2 %6487, %v1459_v45  }
 0x5b2   : > { %2382 = vperm.xlu1 %6485, %v1463_v47   ;;  %v8259_v13 = vpop.permute.xlu2 %2271  ;;  %v12517_v47 = vld [vmem:[#allocation94_spill] sm:$0xff] }
 0x5b3   : > { %12513 = vst [vmem:[#allocation72_spill] sm:$0xff] %v8259_v13  ;;  %v1469_v45 = vmul.f32 %v12517_v47, %v7619_v16  ;;  %v8279_v13 = vpop.permute.xlu0 %2340  ;;  %v12523_v47 = vld [vmem:[#allocation99_spill] sm:$0xff] }
 0x5b4   : > { %v8261_v44 = vpop.permute.xlu1 %2256 }
 0x5b8   : > { %2379 = vperm.xlu2 %6487, %v1462_v14  }
 0x5ba   : > { %2391 = vperm.xlu1 %6485, %v1466_v60   ;;  %v8269_v54 = vpop.permute.xlu2 %2280  ;;  %v1468_v60 = vmul.f32 %v12366_v0, %v7696_v15 }
 0x5bc   : > { %v8271_v10 = vpop.permute.xlu1 %2265 }
 0x5bd   : > { %12516 = vst [vmem:[#allocation70_spill] sm:$0xff] %v8271_v10 }
 0x5c0   : > { %2388 = vperm.xlu2 %6487, %v1465_v51   ;;  %v8291_v51 = vpop.permute.xlu0 %2349 }
 0x5c1   : > { %12522 = vst [vmem:[#allocation76_spill] sm:$0xff] %v8291_v51  ;;  %v1478_v51 = vmul.f32 %v12528_v22, %v7666_v50 }
 0x5c2   : > { %2400 = vperm.xlu1 %6485, %v1469_v45   ;;  %v8277_v48 = vpop.permute.xlu2 %2289  ;;  %v1471_v45 = vmul.f32 %v12523_v47, %v7711_v57 }
 0x5c3   : > { %12518 = vst [vmem:[#allocation73_spill] sm:$0xff] %v8277_v48  ;;  %v12524_v48 = vld [vmem:[#allocation97_spill] sm:$0xff] }
 0x5c4   : > { %v8281_v14 = vpop.permute.xlu1 %2274 }
 0x5c5   : > { %12519 = vst [vmem:[#allocation71_spill] sm:$0xff] %v8281_v14  ;;  %v1475_v14 = vmul.f32 %v12524_v48, %v7649_v33  ;;  %v12531_v48 = vlaneseq }
 0x5c8   : > { %2397 = vperm.xlu2 %6487, %v1468_v60   ;;  %v8303_v60 = vpop.permute.xlu0 %2358 }
 0x5c9   : > { %12527 = vst [vmem:[#allocation45_spill] sm:$0xff] %v8303_v60  ;;  %v12535_v60 = vld [vmem:[#allocation32_spill] sm:$0xff] }
 0x5ca   : > { %2409 = vperm.xlu1 %6485, %v1472_v49   ;;  %v8287_v35 = vpop.permute.xlu2 %2298  ;;  %v1474_v49 = vmul.f32 %v12374_v52, %v7726_v31  ;;  %v8320_v4 = vmul.f32 %v12535_v60, %v7711_v57 }
 0x5cb   : > { %12521 = vst [vmem:[#allocation30_spill] sm:$0xff] %v8287_v35 }
 0x5cc   : > { %v8289_v10 = vpop.permute.xlu1 %2283  ;;  %12536 = vst [vmem:[#allocation83_spill] sm:$0xff] %v8320_v4  ;;  %v8359_v4 = vmul.f32 %v7466_v5, %v7666_v50 }
 0x5d0   : > { %2406 = vperm.xlu2 %6487, %v1471_v45   ;;  %v12533_v45 = vld [vmem:[#allocation21_spill] sm:$0xff] }
 0x5d2   : > { %2418 = vperm.xlu1 %6485, %v1475_v14   ;;  %v8297_v0 = vpop.permute.xlu2 %2307  ;;  %v8312_v14 = vand.u32 127, %v12531_v48 }
 0x5d3   : > { %12525 = vst [vmem:[#allocation77_spill] sm:$0xff] %v8297_v0  ;;  %v12534_v0 = vld [vmem:[#allocation103_spill] sm:$0xff] }
 0x5d4   : > { %v8299_v30 = vpop.permute.xlu1 %2292  ;;  %12532 = vst [vmem:[#allocation85_spill] sm:$0xff] %v8312_v14  ;;  %v1481_v52 = vmul.f32 %v12534_v0, %v7681_v8  ;;  %v8328_v22 = vadd.s32 4294967248, %v8312_v14  ;;  %v8331_v48 = vadd.s32 4294967264, %v8312_v14  ;;  %v8342_v60 = vadd.s32 4294967256, %v8312_v14 }
 0x5d5   : > { %12526 = vst [vmem:[#allocation79_spill] sm:$0xff] %v8299_v30  ;;  %v1477_v30 = vmul.f32 %v12533_v45, %v7619_v16  ;;  %v8334_v45 = vadd.s32 4294967240, %v8312_v14  ;;  %v2796_v57 = vperm.slane %v8154_v63, %v8312_v14  ;;  %v12541_v63 = vld [vmem:[#allocation106_spill] sm:$0xff] }
 0x5d6   : > { %v8365_v7 = vmul.f32 %v12541_v63, %v7726_v31 }
 0x5d8   : > { %2415 = vperm.xlu2 %6487, %v1474_v49   ;;  %v8325_v49 = vpop.permute.xlu0 %2367 }
 0x5d9   : > { %12538 = vst [vmem:[#allocation89_spill] sm:$0xff] %v8325_v49  ;;  %v8345_v49 = vadd.s32 4294967272, %v8312_v14 }
 0x5da   : > { %2427 = vperm.xlu1 %6485, %v1478_v51   ;;  %v8307_v47 = vpop.permute.xlu2 %2316  ;;  %v8323_v51 = vadd.s32 4294967288, %v8312_v14 }
 0x5db   : > { %12529 = vst [vmem:[#allocation84_spill] sm:$0xff] %v8307_v47 }
 0x5dc   : > { %v8309_v35 = vpop.permute.xlu1 %2301  ;;  %12537 = vst [vmem:[#allocation52_spill] sm:$0xff] %v8323_v51  ;;  %v2812_v47 = vperm.slane %v8185_v34, %v8323_v51  ;;  %v8369_v34 = vmul.f32 %v7470_v18, %v7681_v8  ;;  %v2797_v1 = vperm.slane %v8014_v26, %v8323_v51  ;;  %v2801_v18 = vperm.slane %v8165_v56, %v8345_v49 }
 0x5dd   : > { %12530 = vst [vmem:[#allocation82_spill] sm:$0xff] %v8309_v35  ;;  %v2803_v26 = vperm.slane %v8030_v28, %v8331_v48  ;;  %v2826_v56 = vperm.slane %v8088_v53, %v8312_v14  ;;  %v2837_v28 = vperm.slane %v8116_v29, %v8328_v22  ;;  %v2848_v53 = vperm.slane %v8146_v37, %v8331_v48 }
 0x5de   : > { %v2798_v63 = vsel %vm2545_vm0, %v2797_v1, %v2796_v57  ;;  %v2820_v57 = vperm.slane %v8072_v40, %v8342_v60  ;;  %v2818_v40 = vperm.slane %v8193_v6, %v8331_v48 }
 0x5e0   : > { %2424 = vperm.xlu2 %6487, %v1477_v30   ;;  %v8337_v30 = vadd.s32 4294967280, %v8312_v14 }
 0x5e2   : > { %2436 = vperm.xlu1 %6485, %v1481_v52   ;;  %v8339_v0 = vpop.permute.xlu2 %2325  ;;  %v1483_v52 = vmul.f32 %v12388_v46, %v7649_v33  ;;  %v2811_v46 = vperm.slane %v8163_v58, %v8312_v14  ;;  %v2859_v6 = vperm.slane %v8171_v32, %v8337_v30  ;;  %v2887_v32 = vperm.slane %v8231_v43, %v8323_v51 }
 0x5e3   : > { %12539 = vst [vmem:[#allocation94_spill] sm:$0xff] %v8339_v0  ;;  %v12540_v0 = vld [vmem:[#allocation105_spill] sm:$0xff]  ;;  %v2841_v58 = vperm.slane %v8233_v2, %v8312_v14  ;;  %v2904_v43 = vperm.slane %v8267_v20, %v8337_v30  ;;  %v2872_v2 = vperm.slane %v8269_v54, %v8323_v51 }
 0x5e4   : > { %v1484_v25 = vmul.f32 %v12540_v0, %v7696_v15  ;;  %v8361_v35 = vpop.permute.xlu1 %2310  ;;  %v12542_v0 = vld [vmem:[#allocation107_spill] sm:$0xff]  ;;  %v2813_v8 = vsel %vm2545_vm0, %v2812_v47, %v2811_v46  ;;  %v2831_v47 = vperm.slane %v8102_v42, %v8345_v49  ;;  %v8409_v42 = vpop.permute.xlu0 %2376  ;;  %v12545_v54 = vld [vmem:[#allocation82_spill] sm:$0xff] }
 0x5e5   : > { %v8377_v5 = vmul.f32 %v12542_v0, %v7619_v16  ;;  %v2814_v0 = vperm.slane %v8058_v23, %v8337_v30  ;;  %v2799_v16 = vperm.slane %v8140_v3, %v8337_v30  ;;  %v2842_v23 = vperm.slane %v8130_v21, %v8323_v51  ;;  %12543 = vst [vmem:[#allocation95_spill] sm:$0xff] %v8409_v42  ;;  %v12648_v42 = vld [vmem:[#allocation64_spill] sm:$0xff] }
 0x5e6   : > { %v2816_v21 = vperm.slane %v8173_v41, %v8345_v49  ;;  %v2871_v41 = vperm.slane %v8195_v19, %v8312_v14  ;;  %v2893_v19 = vperm.slane %v8243_v62, %v8331_v48 }
 0x5e7   : > { %v2800_v1 = vsel %vm2549_vm1, %v2799_v16, %v2798_v63  ;;  %v2815_v3 = vsel %vm2549_vm1, %v2814_v0, %v2813_v8  ;;  %v2827_v16 = vperm.slane %v8191_v9, %v8323_v51  ;;  %v2829_v63 = vperm.slane %v8213_v59, %v8337_v30 }
 0x5e8   : > { %2433 = vperm.xlu2 %6487, %v1480_v38   ;;  %v2802_v46 = vsel %vm2553_vm2, %v2801_v18, %v2800_v1  ;;  %v2876_v9 = vperm.slane %v8207_v12, %v8345_v49  ;;  %v2817_v1 = vsel %vm2553_vm2, %v2816_v21, %v2815_v3  ;;  %v2805_v12 = vperm.slane %v8152_v27, %v8342_v60 }
 0x5e9   : > { %v2804_v8 = vsel %vm2557_vm3, %v2803_v26, %v2802_v46  ;;  %v2819_v59 = vsel %vm2557_vm3, %v2818_v40, %v2817_v1  ;;  %v2807_v18 = vperm.slane %v8175_v36, %v8328_v22  ;;  %v2828_v3 = vsel %vm2545_vm0, %v2827_v16, %v2826_v56 }
 0x5ea   : > { %2445 = vperm.xlu1 %6485, %v1484_v25   ;;  %v8405_v38 = vpop.permute.xlu2 %2334  ;;  %v2865_v25 = vperm.slane %v8183_v17, %v8342_v60  ;;  %v2830_v26 = vsel %vm2549_vm1, %v2829_v63, %v2828_v3  ;;  %v2857_v40 = vperm.slane %v8261_v44, %v8323_v51  ;;  %v2806_v46 = vsel %vm2561_vm4, %v2805_v12, %v2804_v8  ;;  %v12544_v44 = vld [vmem:[#allocation66_spill] sm:$0xff]  ;;  %v12546_v63 = vld [vmem:[#allocation83_spill] sm:$0xff]  ;;  %v12547_v8 = vld [vmem:[#allocation57_spill] sm:$0xff] }
 0x5eb   : > { %v2821_v36 = vsel %vm2561_vm4, %v2820_v57, %v2819_v59  ;;  %v2874_v56 = vperm.slane %v8289_v10, %v8337_v30  ;;  %v2843_v20 = vsel %vm2545_vm0, %v2842_v23, %v2841_v58  ;;  %v2856_v21 = vperm.slane %v8239_v11, %v8312_v14  ;;  %v12548_v23 = vld [vmem:[#allocation60_spill] sm:$0xff]  ;;  %v12549_v59 = vld [vmem:[#allocation61_spill] sm:$0xff] }
 0x5ec   : > { %v8424_v0 = vpop.permute.xlu1 %2319  ;;  %v2846_v16 = vperm.slane %v12544_v44, %v8345_v49  ;;  %v2808_v57 = vsel %vm2565_vm5, %v2807_v18, %v2806_v46  ;;  %v2822_v10 = vperm.slane %v12547_v8, %v8328_v22  ;;  %v2832_v58 = vsel %vm2553_vm2, %v2831_v47, %v2830_v26  ;;  %v12550_v3 = vld [vmem:[#allocation92_spill] sm:$0xff]  ;;  %v8481_v18 = vpop.permute.xlu0 %2385 }
 0x5ed   : > { %v2844_v11 = vperm.slane %v12548_v23, %v8337_v30  ;;  %v2833_v12 = vperm.slane %v12549_v59, %v8331_v48  ;;  %v2835_v44 = vperm.slane %v12550_v3, %v8342_v60  ;;  %12551 = vst [vmem:[#allocation99_spill] sm:$0xff] %v8481_v18  ;;  %v2897_v29 = vperm.slane %v8424_v0, %v8328_v22 }
 0x5ee   : > { %v2823_v46 = vsel %vm2565_vm5, %v2822_v10, %v2821_v36  ;;  %v12552_v36 = vld [vmem:[#allocation70_spill] sm:$0xff] }
 0x5ef   : > { %v2845_v47 = vsel %vm2549_vm1, %v2844_v11, %v2843_v20  ;;  %v2834_v23 = vsel %vm2557_vm3, %v2833_v12, %v2832_v58  ;;  %v12553_v20 = vld [vmem:[#allocation77_spill] sm:$0xff] }
 0x5f0   : > { %2442 = vperm.xlu2 %6487, %v1483_v52   ;;  %v2886_v52 = vperm.slane %v12545_v54, %v8312_v14  ;;  %v2858_v54 = vsel %vm2545_vm0, %v2857_v40, %v2856_v21  ;;  %v2847_v59 = vsel %vm2553_vm2, %v2846_v16, %v2845_v47  ;;  %v2863_v21 = vperm.slane %v12552_v36, %v8331_v48  ;;  %v12555_v16 = vld [vmem:[#allocation68_spill] sm:$0xff]  ;;  %v12557_v12 = vld [vmem:[#allocation73_spill] sm:$0xff]  ;;  %v12559_v47 = vld [vmem:[#allocation67_spill] sm:$0xff] }
 0x5f1   : > { %v2836_v58 = vsel %vm2561_vm4, %v2835_v44, %v2834_v23  ;;  %v2861_v11 = vperm.slane %v12555_v16, %v8345_v49  ;;  %v2878_v3 = vperm.slane %v12557_v12, %v8331_v48  ;;  %v12562_v16 = vld [vmem:[#allocation71_spill] sm:$0xff]  ;;  %v12567_v12 = vperm.slane %v8219_v61, %v8328_v22 }
 0x5f2   : > { %2454 = vperm.xlu1 %6485, %v12546_v63   ;;  %v8467_v1 = vpop.permute.xlu2 %2343  ;;  %v2873_v63 = vsel %vm2545_vm0, %v2872_v2, %v2871_v41  ;;  %v2888_v40 = vsel %vm2545_vm0, %v2887_v32, %v2886_v52  ;;  %v2891_v41 = vperm.slane %v8361_v35, %v8345_v49  ;;  %v2860_v2 = vsel %vm2549_vm1, %v2859_v6, %v2858_v54  ;;  %v12556_v35 = vld [vmem:[#allocation79_spill] sm:$0xff] }
 0x5f3   : > { %v2875_v26 = vsel %vm2549_vm1, %v2874_v56, %v2873_v63  ;;  %v2889_v56 = vperm.slane %v12553_v20, %v8337_v30  ;;  %v2880_v52 = vperm.slane %v12556_v35, %v8342_v60  ;;  %v2849_v6 = vsel %vm2557_vm3, %v2848_v53, %v2847_v59  ;;  %v12560_v53 = vld [vmem:[#allocation59_spill] sm:$0xff] }
 0x5f4   : > { %v2329_v27 = vpop.permute.xlu1 %2328  ;;  %v2877_v32 = vsel %vm2553_vm2, %v2876_v9, %v2875_v26  ;;  %v12558_v9 = vld [vmem:[#allocation65_spill] sm:$0xff]  ;;  %v2852_v26 = vperm.slane %v12559_v47, %v8328_v22  ;;  %v2824_v59 = vperm.slane %v12560_v53, %v8334_v45  ;;  %v2869_v62 = vperm.slane %v12562_v16, %v8334_v45 }
 0x5f5   : > { %v2902_v8 = vperm.slane %v2329_v27, %v8323_v51  ;;  %v12554_v27 = vld [vmem:[#allocation94_spill] sm:$0xff]  ;;  %v2890_v44 = vsel %vm2549_vm1, %v2889_v56, %v2888_v40  ;;  %v2850_v63 = vperm.slane %v12558_v9, %v8342_v60  ;;  %v2879_v20 = vsel %vm2557_vm3, %v2878_v3, %v2877_v32  ;;  %v8554_v32 = vpop.permute.xlu0 %2394  ;;  %v12570_v47 = vld [vmem:[#allocation25_spill] sm:$0xff] }
 0x5f6   : > { %v2901_v10 = vperm.slane %v12554_v27, %v8312_v14  ;;  %v2892_v23 = vsel %vm2553_vm2, %v2891_v41, %v2890_v44  ;;  %v12561_v40 = vld [vmem:[#allocation62_spill] sm:$0xff]  ;;  %12564 = vst [vmem:[#allocation97_spill] sm:$0xff] %v8554_v32  ;;  %v2825_v35 = vsel %vm2569_vm6, %v2824_v59, %v2823_v46  ;;  %v12572_v53 = vperm.slane %v8279_v13, %v8342_v60  ;;  %v12573_v13 = vld [vmem:[#allocation40_spill] sm:$0xff] }
 0x5f7   : > { %v2851_v41 = vsel %vm2561_vm4, %v2850_v63, %v2849_v6  ;;  %v12569_v9 = vld [vmem:[#allocation30_spill] sm:$0xff] }
 0x5f8   : > { %2451 = vperm.xlu2 %6487, %v8359_v4   ;;  %v2903_v54 = vsel %vm2545_vm0, %v2902_v8, %v2901_v10  ;;  %v2862_v4 = vsel %vm2553_vm2, %v2861_v11, %v2860_v2  ;;  %v2839_v8 = vperm.slane %v12561_v40, %v8334_v45  ;;  %v2838_v2 = vsel %vm2565_vm5, %v2837_v28, %v2836_v58 }
 0x5f9   : > { %v2864_v36 = vsel %vm2557_vm3, %v2863_v21, %v2862_v4  ;;  %v2905_v56 = vsel %vm2549_vm1, %v2904_v43, %v2903_v54  ;;  %v2894_v10 = vsel %vm2557_vm3, %v2893_v19, %v2892_v23  ;;  %v2906_v21 = vperm.slane %v8405_v38, %v8345_v49  ;;  %v12563_v19 = vld [vmem:[#allocation84_spill] sm:$0xff] }
 0x5fa   : > { %2463 = vperm.xlu1 %6485, %v8365_v7   ;;  %v8521_v37 = vpop.permute.xlu2 %2352  ;;  %v2881_v7 = vsel %vm2561_vm4, %v2880_v52, %v2879_v20  ;;  %v2853_v58 = vsel %vm2565_vm5, %v2852_v26, %v2851_v41  ;;  %v2866_v43 = vsel %vm2561_vm4, %v2865_v25, %v2864_v36  ;;  %v2895_v11 = vperm.slane %v12563_v19, %v8342_v60  ;;  %v12566_v52 = vld [vmem:[#allocation72_spill] sm:$0xff]  ;;  %v12578_v19 = vld [vmem:[#allocation69_spill] sm:$0xff] }
 0x5fb   : > { %v12565_v38 = vperm.slane %v8044_v39, %v8334_v45  ;;  %v2867_v17 = vperm.slane %v12566_v52, %v8328_v22  ;;  %v2907_v25 = vsel %vm2553_vm2, %v2906_v21, %v2905_v56  ;;  %v2840_v6 = vsel %vm2569_vm6, %v2839_v8, %v2838_v2  ;;  %v12574_v21 = vld [vmem:[#allocation111_spill] sm:$0xff] }
 0x5fc   : > { %v2338_v27 = vpop.permute.xlu1 %2337  ;;  %v2883_v3 = vsel %vm2565_vm5, %v12567_v12, %v2881_v7  ;;  %v2896_v44 = vsel %vm2561_vm4, %v2895_v11, %v2894_v10  ;;  %v2884_v63 = vperm.slane %v12569_v9, %v8334_v45  ;;  %v2899_v26 = vperm.slane %v12570_v47, %v8334_v45  ;;  %v12579_v11 = vld [vmem:[#allocation112_spill] sm:$0xff] }
 0x5fd   : > { %v2908_v28 = vperm.slane %v2338_v27, %v8331_v48  ;;  %v2810_v0 = vsel %vm2569_vm6, %v12565_v38, %v2808_v57  ;;  %v12568_v57 = vperm.slane %v8159_v55, %v8334_v45  ;;  %v2868_v54 = vsel %vm2565_vm5, %v2867_v17, %v2866_v43 }
 0x5fe   : > { %v2898_v61 = vsel %vm2565_vm5, %v2897_v29, %v2896_v44  ;;  %v3057_v4 = vsel %vm3036_vm7, %v2825_v35, %v2810_v0  ;;  %v2885_v40 = vsel %vm2569_vm6, %v2884_v63, %v2883_v3  ;;  %v2912_v36 = vperm.slane %v8467_v1, %v8328_v22  ;;  %v12580_v0 = vld [vmem:[#allocation115_spill] sm:$0xff]  ;;  %v8630_v3 = vld [vmem:[%s11874_s3] sm:$0xff] }
 0x5ff   : > { %v2909_v39 = vsel %vm2557_vm3, %v2908_v28, %v2907_v25  ;;  %v2855_v46 = vsel %vm2569_vm6, %v12568_v57, %v2853_v58  ;;  %v3058_v23 = vsel %vm3038_vm8, %v2840_v6, %v3057_v4  ;;  %v1492_v7 = vmul.f32 %v12573_v13, %v7696_v15  ;;  %v8608_v58 = vpop.permute.xlu0 %2403  ;;  %v12584_v6 = vld [vmem:[#allocation114_spill] sm:$0xff]  ;;  %v12585_v44 = vld [vmem:[#allocation55_spill] sm:$0xff] }
 0x600   : > { %2460 = vperm.xlu2 %6487, %v8369_v34   ;;  %v2870_v34 = vsel %vm2569_vm6, %v2869_v62, %v2868_v54  ;;  %v2911_v59 = vsel %vm2561_vm4, %v12572_v53, %v2909_v39  ;;  %v3059_v8 = vsel %vm3040_vm9, %v2855_v46, %v3058_v23  ;;  %v1496_v29 = vmul.f32 %v12574_v21, %v7634_v24  ;;  %v12589_v63 = vld [vmem:[#allocation135_spill] sm:$0xff]  ;;  %v12593_v53 = vld [vmem:[#allocation110_spill] sm:$0xff]  ;;  %v12618_v21 = vld [vmem:[#allocation37_spill] sm:$0xff] }
 0x601   : > { %v3060_v2 = vsel %vm3042_vm10, %v2870_v34, %v3059_v8  ;;  %v2913_v56 = vsel %vm2565_vm5, %v2912_v36, %v2911_v59  ;;  %12575 = vst [vmem:[#allocation21_spill] sm:$0xff] %v8608_v58  ;;  %v1495_v38 = vmul.f32 %v12579_v11, %v12578_v19  ;;  %v1499_v35 = vmul.f32 %v12580_v0, %v7649_v33  ;;  %v12592_v34 = vld [vmem:[#allocation109_spill] sm:$0xff]  ;;  %v12595_v36 = vld [vmem:[#allocation116_spill] sm:$0xff]  ;;  %v12598_v13 = vld [vmem:[#allocation118_spill] sm:$0xff] }
 0x602   : > { %2472 = vperm.xlu1 %6485, %v8377_v5   ;;  %v8585_v55 = vpop.permute.xlu2 %2361  ;;  %v2900_v5 = vsel %vm2569_vm6, %v2899_v26, %v2898_v61  ;;  %v3061_v27 = vsel %vm3044_vm11, %v2885_v40, %v3060_v2  ;;  %v1498_v12 = vmul.f32 %v12584_v6, %v7726_v31  ;;  %v1502_v39 = vmul.f32 %v12585_v44, %v7666_v50  ;;  %v12590_v61 = vld [vmem:[#allocation123_spill] sm:$0xff]  ;;  %v12591_v26 = vld [vmem:[#allocation90_spill] sm:$0xff]  ;;  %v12594_v40 = vld [vmem:[#allocation113_spill] sm:$0xff] }
 0x603   : > { %12571 = vst [vmem:[#allocation98_spill] sm:$0xff] %v8585_v55  ;;  %v3062_v1 = vsel %vm3046_vm12, %v2900_v5, %v3061_v27  ;;  %v12037_v46 = vperm.slane %v8630_v3, 0  ;;  %v1501_v47 = vmul.f32 %v12590_v61, %v12589_v63  ;;  %v8647_v4 = vmul.f32 %v12591_v26, %v7649_v33  ;;  %v12596_v5 = vld [vmem:[#allocation117_spill] sm:$0xff]  ;;  %v12599_v33 = vld [vmem:[#allocation119_spill] sm:$0xff]  ;;  %v12600_v27 = vld [vmem:[#allocation120_spill] sm:$0xff] }
 0x604   : > { %v2347_v20 = vpop.permute.xlu1 %2346  ;;  %v2544_v23 = vperm.slane %v12592_v34, %v8323_v51  ;;  %v2572_v8 = vperm.slane %v12594_v40, %v8323_v51  ;;  %v12608_v61 = vld [vmem:[#allocation131_spill] sm:$0xff]  ;;  %v12609_v26 = vld [vmem:[#allocation132_spill] sm:$0xff]  ;;  %v12610_v40 = vld [vmem:[#allocation137_spill] sm:$0xff]  ;;  %v12622_v34 = vperm.slane %v8630_v3, 6 }
 0x605   : > { %v2914_v41 = vperm.slane %v2347_v20, %v8334_v45  ;;  %v12613_v11 = vld [vmem:[#allocation26_spill] sm:$0xff]  ;;  %v12635_v55 = vld [vmem:[#allocation140_spill] sm:$0xff] }
 0x606   : > { %v12614_v63 = vld [vmem:[#allocation142_spill] sm:$0xff]  ;;  %v2560_v32 = vperm.slane %v12635_v55, %v8342_v60  ;;  %v12640_v55 = vld [vmem:[#allocation164_spill] sm:$0xff] }
 0x607   : > { %v2915_v10 = vsel %vm2569_vm6, %v2914_v41, %v2913_v56  ;;  %v8621_v17 = vpop.permute.xlu0 %2412  ;;  %v12597_v41 = vld [vmem:[#allocation19_spill] sm:$0xff]  ;;  %v12617_v59 = vld [vmem:[#allocation74_spill] sm:$0xff]  ;;  %v12619_v56 = vld [vmem:[#allocation125_spill] sm:$0xff] }
 0x608   : > { %2469 = vperm.xlu2 %6487, %v1492_v7   ;;  %v3063_v28 = vsel %vm3048_vm13, %v2915_v10, %v3062_v1  ;;  %12582 = vst [vmem:[#allocation106_spill] sm:$0xff] %v8621_v17  ;;  %v1505_v7 = vmul.f32 %v12598_v13, %v12597_v41  ;;  %v12601_v1 = vld [vmem:[#allocation122_spill] sm:$0xff]  ;;  %v12620_v10 = vld [vmem:[#allocation139_spill] sm:$0xff]  ;;  %v12623_v13 = vld [vmem:[#allocation80_spill] sm:$0xff] }
 0x609   : > { %v3082_v43 = vsel %vm3075_vm14, %v3063_v28, 0.0  ;;  %v2552_v44 = vperm.slane %v12620_v10, %v8345_v49 }
 0x60a   : > { %2481 = vperm.xlu1 %6485, %v1496_v29   ;;  %3083 = vadd.xlane.f32.xlu0 %v3082_v43  ;;  %v8611_v16 = vpop.permute.xlu2 %2370  ;;  %v12602_v29 = vld [vmem:[#allocation124_spill] sm:$0xff]  ;;  %v12603_v43 = vld [vmem:[#allocation126_spill] sm:$0xff] }
 0x60b   : > { %12576 = vst [vmem:[#allocation103_spill] sm:$0xff] %v8611_v16  ;;  %v12621_v16 = vld [vmem:[#allocation143_spill] sm:$0xff] }
 0x60c   : > { %v8613_v62 = vpop.permute.xlu1 %2355 }
 0x60d   : > { %12577 = vst [vmem:[#allocation32_spill] sm:$0xff] %v8613_v62 }
 0x60f   : > { %v8639_v9 = vpop.permute.xlu0 %2421 }
 0x610   : > { %2478 = vperm.xlu2 %6487, %v1495_v38   ;;  %12588 = vst [vmem:[#allocation83_spill] sm:$0xff] %v8639_v9  ;;  %v12604_v38 = vld [vmem:[#allocation138_spill] sm:$0xff]  ;;  %v12634_v9 = vld [vmem:[#allocation28_spill] sm:$0xff] }
 0x611   : > { %v2542_v0 = vperm.slane %v12604_v38, %v8312_v14  ;;  %v12611_v38 = vld [vmem:[#allocation16_spill] sm:$0xff]  ;;  %v2586_v17 = vperm.slane %v12634_v9, %v8312_v14 }
 0x612   : > { %2490 = vperm.xlu1 %6485, %v1499_v35   ;;  %v8619_v52 = vpop.permute.xlu2 %2379  ;;  %v12605_v35 = vld [vmem:[#allocation141_spill] sm:$0xff] }
 0x613   : > { %12581 = vst [vmem:[#allocation105_spill] sm:$0xff] %v8619_v52  ;;  %v2571_v6 = vperm.slane %v12605_v35, %v8312_v14  ;;  %v2546_v20 = vsel %vm2545_vm0, %v2544_v23, %v2542_v0  ;;  %v12624_v35 = vld [vmem:[#allocation133_spill] sm:$0xff] }
 0x614   : > { %v8623_v25 = vpop.permute.xlu1 %2364 }
 0x615   : > { %12583 = vst [vmem:[#allocation107_spill] sm:$0xff] %v8623_v25  ;;  %v2573_v28 = vsel %vm2545_vm0, %v2572_v8, %v2571_v6  ;;  %v12629_v8 = vld [vmem:[#allocation81_spill] sm:$0xff] }
 0x617   : > { %v8720_v0 = vpop.permute.xlu0 %2430 }
 0x618   : > { %2487 = vperm.xlu2 %6487, %v1498_v12   ;;  %12627 = vst [vmem:[#allocation61_spill] sm:$0xff] %v8720_v0 }
 0x61a   : > { %2499 = vperm.xlu1 %6485, %v1502_v39   ;;  %v8634_v57 = vpop.permute.xlu2 %2388  ;;  %v12607_v39 = vld [vmem:[#allocation128_spill] sm:$0xff] }
 0x61b   : > { %12586 = vst [vmem:[#allocation66_spill] sm:$0xff] %v8634_v57  ;;  %v2576_v57 = vperm.slane %v12621_v16, %v8345_v49  ;;  %v8725_v16 = vld [vmem:[%s11874_s3 + $0x8] sm:$0xff] }
 0x61c   : > { %v8637_v54 = vpop.permute.xlu1 %2373  ;;  %12628 = vst [vmem:[#allocation92_spill] sm:$0xff] %v8725_v16 }
 0x61d   : > { %12587 = vst [vmem:[#allocation82_spill] sm:$0xff] %v8637_v54  ;;  %v12655_v54 = vld [vmem:[#allocation20_spill] sm:$0xff] }
 0x61e   : > { %3134 = vperm.xlu0 %6490, %v12037_v46   ;;  %v1504_v46 = vmul.f32 %v12619_v56, %v7634_v24  ;;  %v12625_v24 = vld [vmem:[#allocation63_spill] sm:$0xff]  ;;  %v12626_v56 = vld [vmem:[#allocation146_spill] sm:$0xff] }
 0x61f   : > { %v2574_v23 = vperm.slane %v12625_v24, %v8337_v30  ;;  %v2587_v10 = vperm.slane %v12626_v56, %v8323_v51  ;;  %v12632_v24 = vld [vmem:[#allocation121_spill] sm:$0xff] }
 0x620   : > { %2496 = vperm.xlu2 %6487, %v1501_v47   ;;  %v12616_v47 = vld [vmem:[#allocation145_spill] sm:$0xff]  ;;  %v1508_v52 = vmul.f32 %v12632_v24, %v7696_v15  ;;  %v12637_v24 = vld [vmem:[#allocation160_spill] sm:$0xff] }
 0x621   : > { %v12633_v56 = vld [vmem:[#allocation157_spill] sm:$0xff]  ;;  %v2575_v6 = vsel %vm2549_vm1, %v2574_v23, %v2573_v28  ;;  %v12639_v28 = vld [vmem:[#allocation136_spill] sm:$0xff] }
 0x622   : > { %2508 = vperm.xlu1 %6485, %v1505_v7   ;;  %v8675_v12 = vpop.permute.xlu2 %2397  ;;  %v12612_v7 = vld [vmem:[#allocation17_spill] sm:$0xff]  ;;  %v2577_v25 = vsel %vm2553_vm2, %v2576_v57, %v2575_v6  ;;  %v2556_v23 = vperm.slane %v12639_v28, %v8331_v48  ;;  %v12642_v6 = vld [vmem:[#allocation167_spill] sm:$0xff]  ;;  %v12645_v28 = vperm.slane %v12595_v36, %v8331_v48  ;;  %v12647_v57 = vld [vmem:[#allocation150_spill] sm:$0xff] }
 0x623   : > { %12606 = vst [vmem:[#allocation57_spill] sm:$0xff] %v8675_v12  ;;  %v2548_v12 = vperm.slane %v12624_v35, %v8337_v30  ;;  %v12631_v35 = vld [vmem:[#allocation93_spill] sm:$0xff]  ;;  %v2604_v18 = vperm.slane %v12647_v57, %v8337_v30  ;;  %v12650_v36 = vld [vmem:[#allocation147_spill] sm:$0xff] }
 0x624   : > { %v8694_v2 = vpop.permute.xlu1 %2382  ;;  %v12653_v57 = vld [vmem:[#allocation173_spill] sm:$0xff] }
 0x625   : > { %12615 = vst [vmem:[#allocation60_spill] sm:$0xff] %v8694_v2  ;;  %v2550_v0 = vsel %vm2549_vm1, %v2548_v12, %v2546_v20  ;;  %v12638_v12 = vld [vmem:[#allocation162_spill] sm:$0xff] }
 0x626   : > { %3212 = vperm.xlu0 %6490, %v12622_v34   ;;  %v12630_v34 = vld [vmem:[#allocation91_spill] sm:$0xff]  ;;  %v2554_v58 = vsel %vm2553_vm2, %v2552_v44, %v2550_v0  ;;  %v2588_v44 = vsel %vm2545_vm0, %v2587_v10, %v2586_v17  ;;  %v2579_v17 = vsel %vm2557_vm3, %v12645_v28, %v2577_v25  ;;  %v12646_v10 = vld [vmem:[#allocation144_spill] sm:$0xff]  ;;  %v12651_v25 = vperm.slane %v8725_v16, 3  ;;  %v12652_v28 = vld [vmem:[#allocation170_spill] sm:$0xff] }
 0x627   : > { %v2558_v9 = vsel %vm2557_vm3, %v2556_v23, %v2554_v58  ;;  %v2582_v0 = vperm.slane %v12646_v10, %v8328_v22  ;;  %v2593_v23 = vperm.slane %v12650_v36, %v8331_v48 }
 0x628   : > { %2505 = vperm.xlu2 %6487, %v1504_v46   ;;  %v12643_v46 = vld [vmem:[#allocation24_spill] sm:$0xff]  ;;  %v2562_v2 = vsel %vm2561_vm4, %v2560_v32, %v2558_v9  ;;  %v12654_v9 = vld [vmem:[#allocation127_spill] sm:$0xff]  ;;  %v12659_v32 = vperm.slane %v12601_v1, %v8312_v14 }
 0x629   : > { %v2602_v20 = vperm.slane %v12643_v46, %v8323_v51  ;;  %v2580_v46 = vperm.slane %v12648_v42, %v8342_v60  ;;  %v1510_v42 = vmul.f32 %v12654_v9, %v7666_v50 }
 0x62a   : > { %2517 = vperm.xlu1 %6485, %v1508_v52   ;;  %v8745_v15 = vpop.permute.xlu2 %2406  ;;  %v12641_v52 = vld [vmem:[#allocation165_spill] sm:$0xff] }
 0x62b   : > { %12636 = vst [vmem:[#allocation70_spill] sm:$0xff] %v8745_v15  ;;  %v2581_v16 = vsel %vm2561_vm4, %v2580_v46, %v2579_v17  ;;  %v2603_v50 = vsel %vm2545_vm0, %v2602_v20, %v12659_v32  ;;  %v12662_v17 = vld [vmem:[#allocation58_spill] sm:$0xff]  ;;  %v12667_v32 = vld [vmem:[#allocation47_spill] sm:$0xff] }
 0x62c   : > { %v8763_v15 = vpop.permute.xlu1 %2391  ;;  %v2583_v62 = vsel %vm2565_vm5, %v2582_v0, %v2581_v16  ;;  %v2568_v1 = vperm.slane %v12662_v17, %v8334_v45  ;;  %v12665_v16 = vld [vmem:[#allocation129_spill] sm:$0xff] }
 0x62d   : > { %12644 = vst [vmem:[#allocation77_spill] sm:$0xff] %v8763_v15  ;;  %v12649_v15 = vperm.slane %v12599_v33, %v8337_v30  ;;  %v2591_v33 = vperm.slane %v12655_v54, %v8345_v49  ;;  %v12660_v54 = vperm.slane %v12593_v53, %v8328_v22  ;;  %v8827_v0 = vmul.f32 %v12665_v16, %v12597_v41 }
 0x62e   : > { %3277 = vperm.xlu0 %6490, %v12651_v25   ;;  %v12658_v25 = vld [vmem:[#allocation130_spill] sm:$0xff]  ;;  %v12670_v41 = vperm.slane %v12602_v29, %v8345_v49 }
 0x62f   : > { %v2590_v58 = vsel %vm2549_vm1, %v12649_v15, %v2588_v44  ;;  %v8796_v15 = vld [vmem:[%s11874_s3 + $0x10] sm:$0xff]  ;;  %v12657_v44 = vld [vmem:[#allocation176_spill] sm:$0xff]  ;;  %v1511_v10 = vmul.f32 %v12658_v25, %v12578_v19  ;;  %v2566_v9 = vsel %vm2565_vm5, %v12660_v54, %v2562_v2  ;;  %v2605_v19 = vsel %vm2549_vm1, %v2604_v18, %v2603_v50  ;;  %v8815_v25 = vpop.permute.xlu0 %2439 }
 0x630   : > { %12656 = vst [vmem:[#allocation94_spill] sm:$0xff] %v8796_v15  ;;  %2514 = vperm.xlu2 %6487, %v8647_v4   ;;  %v2592_v36 = vsel %vm2553_vm2, %v2591_v33, %v2590_v58  ;;  %v12663_v4 = vld [vmem:[#allocation154_spill] sm:$0xff]  ;;  %v12044_v2 = vperm.slane %v8796_v15, 0  ;;  %v2570_v50 = vsel %vm2569_vm6, %v2568_v1, %v2566_v9  ;;  %v2607_v17 = vsel %vm2553_vm2, %v12670_v41, %v2605_v19  ;;  %v12677_v19 = vld [vmem:[#allocation184_spill] sm:$0xff] }
 0x631   : > { %12661 = vst [vmem:[#allocation68_spill] sm:$0xff] %v8815_v25  ;;  %v2594_v20 = vsel %vm2557_vm3, %v2593_v23, %v2592_v36  ;;  %v2616_v46 = vperm.slane %v12663_v4, %v8312_v14  ;;  %v12666_v18 = vld [vmem:[#allocation134_spill] sm:$0xff]  ;;  %v12668_v23 = vld [vmem:[#allocation181_spill] sm:$0xff] }
 0x632   : > { %2526 = vperm.xlu1 %6485, %v1511_v10   ;;  %v8822_v53 = vpop.permute.xlu2 %2415  ;;  %v1514_v58 = vmul.f32 %v12666_v18, %v7726_v31  ;;  %v12669_v10 = vperm.slane %v12596_v5, %v8334_v45  ;;  %v12671_v31 = vld [vmem:[#allocation152_spill] sm:$0xff]  ;;  %v12673_v18 = vperm.slane %v12600_v27, %v8342_v60  ;;  %v12674_v1 = vld [vmem:[#allocation78_spill] sm:$0xff]  ;;  %v12679_v27 = vperm.slane %v12607_v39, %v8323_v51 }
 0x633   : > { %12664 = vst [vmem:[#allocation79_spill] sm:$0xff] %v8822_v53  ;;  %v2610_v4 = vperm.slane %v12671_v31, %v8342_v60  ;;  %v2608_v5 = vperm.slane %v12674_v1, %v8331_v48  ;;  %v12676_v29 = vld [vmem:[#allocation158_spill] sm:$0xff]  ;;  %v12682_v53 = vld [vmem:[#allocation151_spill] sm:$0xff] }
 0x634   : > { %v2585_v54 = vsel %vm2569_vm6, %v12669_v10, %v2583_v62  ;;  %v8846_v16 = vpop.permute.xlu1 %2400  ;;  %v2596_v9 = vsel %vm2561_vm4, %v12673_v18, %v2594_v20  ;;  %v12675_v62 = vld [vmem:[#allocation148_spill] sm:$0xff]  ;;  %v2632_v36 = vperm.slane %v12676_v29, %v8323_v51  ;;  %v12678_v31 = vld [vmem:[#allocation22_spill] sm:$0xff]  ;;  %v2618_v20 = vsel %vm2545_vm0, %v12679_v27, %v2616_v46  ;;  %v12680_v18 = vld [vmem:[#allocation155_spill] sm:$0xff] }
 0x635   : > { %12672 = vst [vmem:[#allocation73_spill] sm:$0xff] %v8846_v16  ;;  %v2599_v10 = vperm.slane %v12675_v62, %v8334_v45  ;;  %v2597_v33 = vperm.slane %v12678_v31, %v8328_v22  ;;  %v2621_v1 = vperm.slane %v12680_v18, %v8345_v49  ;;  %v12681_v62 = vld [vmem:[#allocation187_spill] sm:$0xff]  ;;  %v2619_v41 = vperm.slane %v12682_v53, %v8337_v30  ;;  %v12683_v31 = vld [vmem:[#allocation86_spill] sm:$0xff] }
 0x636   : > { %3342 = vperm.xlu0 %6490, %v12044_v2   ;;  %v2609_v25 = vsel %vm2557_vm3, %v2608_v5, %v2607_v17  ;;  %v2631_v16 = vperm.slane %v12683_v31, %v8312_v14  ;;  %v12684_v39 = vld [vmem:[#allocation190_spill] sm:$0xff]  ;;  %v8881_v18 = vsel %vm3036_vm7, %v2585_v54, %v2570_v50  ;;  %v12685_v5 = vld [vmem:[#allocation100_spill] sm:$0xff] }
 0x637   : > { %v2598_v27 = vsel %vm2565_vm5, %v2597_v33, %v2596_v9  ;;  %v2611_v2 = vsel %vm2561_vm4, %v2610_v4, %v2609_v25  ;;  %v2620_v53 = vsel %vm2549_vm1, %v2619_v41, %v2618_v20  ;;  %v2647_v31 = vperm.slane %v12685_v5, %v8323_v51  ;;  %v12686_v33 = vld [vmem:[#allocation163_spill] sm:$0xff]  ;;  %v12687_v50 = vld [vmem:[#allocation166_spill] sm:$0xff]  ;;  %v12689_v4 = vld [vmem:[#allocation149_spill] sm:$0xff] }
 0x638   : > { %2523 = vperm.xlu2 %6487, %v1510_v42   ;;  %v8885_v29 = vsel %vm2569_vm6, %v2599_v10, %v2598_v27  ;;  %v2633_v17 = vsel %vm2545_vm0, %v2632_v36, %v2631_v16  ;;  %v2622_v46 = vsel %vm2553_vm2, %v2621_v1, %v2620_v53  ;;  %v2649_v9 = vperm.slane %v12686_v33, %v8337_v30  ;;  %v12691_v41 = vld [vmem:[#allocation175_spill] sm:$0xff]  ;;  %v12692_v1 = vld [vmem:[#allocation177_spill] sm:$0xff] }
 0x639   : > { %v2661_v54 = vperm.slane %v12687_v50, %v8312_v14  ;;  %v12690_v36 = vperm.slane %v12603_v43, %v8328_v22  ;;  %v2677_v20 = vperm.slane %v12691_v41, %v8323_v51  ;;  %v2692_v27 = vperm.slane %v12692_v1, %v8323_v51  ;;  %v12694_v53 = vld [vmem:[#allocation153_spill] sm:$0xff]  ;;  %v12696_v43 = vld [vmem:[#allocation159_spill] sm:$0xff] }
 0x63a   : > { %2535 = vperm.xlu1 %6485, %v1514_v58   ;;  %v8896_v42 = vpop.permute.xlu2 %2424  ;;  %v8911_v58 = vpop.permute.xlu0 %2448  ;;  %v2625_v5 = vperm.slane %v12694_v53, %v8342_v60  ;;  %v12695_v33 = vperm.slane %v12610_v40, %v8337_v30  ;;  %v12699_v1 = vperm.slane %v12608_v61, %v8331_v48  ;;  %v12700_v53 = vld [vmem:[#allocation87_spill] sm:$0xff]  ;;  %v12701_v40 = vperm.slane %v12612_v7, %v8312_v14 }
 0x63b   : > { %12688 = vst [vmem:[#allocation65_spill] sm:$0xff] %v8896_v42  ;;  %v8905_v16 = vsel %vm2565_vm5, %v12690_v36, %v2611_v2  ;;  %v2638_v2 = vperm.slane %v12696_v43, %v8331_v48  ;;  %v12697_v36 = vld [vmem:[#allocation183_spill] sm:$0xff]  ;;  %v2636_v42 = vperm.slane %v12700_v53, %v8345_v49  ;;  %v12704_v61 = vperm.slane %v12616_v47, %v8323_v51 }
 0x63c   : > { %12693 = vst [vmem:[#allocation67_spill] sm:$0xff] %v8911_v58  ;;  %v2635_v50 = vsel %vm2549_vm1, %v12695_v33, %v2633_v17  ;;  %v2694_v10 = vperm.slane %v12697_v36, %v8337_v30  ;;  %v8923_v41 = vpop.permute.xlu1 %2409  ;;  %v2624_v25 = vsel %vm2557_vm3, %v12699_v1, %v2622_v46  ;;  %v2648_v17 = vsel %vm2545_vm0, %v2647_v31, %v12701_v40  ;;  %v12702_v33 = vld [vmem:[#allocation168_spill] sm:$0xff]  ;;  %v12705_v1 = vld [vmem:[#allocation169_spill] sm:$0xff]  ;;  %v12707_v40 = vld [vmem:[#allocation102_spill] sm:$0xff] }
 0x63d   : > { %12698 = vst [vmem:[#allocation59_spill] sm:$0xff] %v8923_v41  ;;  %v2676_v43 = vperm.slane %v12702_v33, %v8312_v14  ;;  %v12703_v36 = vld [vmem:[#allocation108_spill] sm:$0xff]  ;;  %v2650_v41 = vsel %vm2549_vm1, %v2649_v9, %v2648_v17  ;;  %v2663_v46 = vsel %vm2545_vm0, %v12704_v61, %v2661_v54  ;;  %v2666_v53 = vperm.slane %v12705_v1, %v8345_v49  ;;  %v8959_v54 = vld [vmem:[%s11874_s3 + $0x18] sm:$0xff] }
 0x63e   : > { %v12706_v7 = vperm.slane %v8796_v15, 5  ;;  %v2637_v31 = vsel %vm2553_vm2, %v2636_v42, %v2635_v50  ;;  %v2664_v33 = vperm.slane %v12707_v40, %v8337_v30  ;;  %v12708_v9 = vperm.slane %v12629_v8, %v8312_v14  ;;  %v12709_v61 = vld [vmem:[#allocation156_spill] sm:$0xff]  ;;  %v12753_v15 = vld [vmem:[#allocation194_spill] sm:$0xff] }
 0x63f   : > { %v2678_v58 = vsel %vm2545_vm0, %v2677_v20, %v2676_v43  ;;  %v2626_v17 = vsel %vm2561_vm4, %v2625_v5, %v2624_v25  ;;  %v2627_v42 = vperm.slane %v12709_v61, %v8328_v22  ;;  %v2639_v50 = vsel %vm2557_vm3, %v2638_v2, %v2637_v31  ;;  %v12710_v8 = vld [vmem:[#allocation96_spill] sm:$0xff]  ;;  %v12714_v2 = vld [vmem:[#allocation178_spill] sm:$0xff] }
 0x640   : > { %3407 = vperm.xlu0 %6490, %v12706_v7   ;;  %v2693_v47 = vsel %vm2545_vm0, %v2692_v27, %v12708_v9  ;;  %2532 = vperm.xlu2 %6487, %v8827_v0   ;;  %v2653_v20 = vperm.slane %v12710_v8, %v8331_v48  ;;  %v12711_v27 = vperm.slane %v12613_v11, %v8345_v49  ;;  %v12712_v7 = vld [vmem:[#allocation104_spill] sm:$0xff]  ;;  %v12045_v11 = vperm.slane %v8959_v54, 2 }
 0x641   : > { %v2695_v1 = vsel %vm2549_vm1, %v2694_v10, %v2693_v47  ;;  %v2655_v25 = vperm.slane %v12712_v7, %v8342_v60  ;;  %v2665_v5 = vsel %vm2549_vm1, %v2664_v33, %v2663_v46  ;;  %v12713_v10 = vperm.slane %v12618_v21, %v8337_v30  ;;  %v12717_v47 = vld [vmem:[#allocation171_spill] sm:$0xff]  ;;  %v12719_v21 = vld [vmem:[#allocation186_spill] sm:$0xff]  ;;  %v12720_v33 = vld [vmem:[#allocation189_spill] sm:$0xff] }
 0x642   : > { %v2652_v43 = vsel %vm2553_vm2, %v12711_v27, %v2650_v41  ;;  %v2667_v40 = vsel %vm2553_vm2, %v2666_v53, %v2665_v5  ;;  %v2683_v31 = vperm.slane %v12714_v2, %v8331_v48  ;;  %v8983_v9 = vpop.permute.xlu2 %2433  ;;  %v12716_v41 = vld [vmem:[#allocation8_spill] sm:$0xff]  ;;  %v2681_v61 = vperm.slane %v12717_v47, %v8345_v49  ;;  %v12721_v5 = vld [vmem:[#allocation179_spill] sm:$0xff]  ;;  %v12722_v2 = vld [vmem:[#allocation197_spill] sm:$0xff] }
 0x643   : > { %v2680_v0 = vsel %vm2549_vm1, %v12713_v10, %v2678_v58  ;;  %12715 = vst [vmem:[#allocation62_spill] sm:$0xff] %v8983_v9  ;;  %6488 = vset.pattern.permute.xlu1 %v12716_v41  ;;  %v12718_v46 = vperm.slane %v12630_v34, %v8345_v49  ;;  %v2700_v58 = vperm.slane %v12719_v21, %v8342_v60 }
 0x644   : > { %v2706_v8 = vperm.slane %v12720_v33, %v8312_v14  ;;  %v8998_v27 = vsel %vm2565_vm5, %v2627_v42, %v2626_v17  ;;  %v2654_v7 = vsel %vm2557_vm3, %v2653_v20, %v2652_v43  ;;  %v2698_v10 = vperm.slane %v12721_v5, %v8331_v48  ;;  %v9005_v34 = vpop.permute.xlu1 %2418  ;;  %v9019_v20 = vpop.permute.xlu0 %2457 }
 0x645   : > { %v2697_v53 = vsel %vm2553_vm2, %v12718_v46, %v2695_v1  ;;  %v2722_v47 = vperm.slane %v12722_v2, %v8323_v51  ;;  %12723 = vst [vmem:[#allocation71_spill] sm:$0xff] %v9005_v34  ;;  %v12724_v1 = vld [vmem:[#allocation195_spill] sm:$0xff]  ;;  %v12725_v21 = vperm.slane %v12611_v38, %v8342_v60  ;;  %v9016_v17 = vsel %vm2561_vm4, %v2655_v25, %v2654_v7 }
 0x646   : > { %v2682_v42 = vsel %vm2553_vm2, %v2681_v61, %v2680_v0  ;;  %v12726_v43 = vperm.slane %v12617_v59, %v8331_v48  ;;  %v2699_v38 = vsel %vm2557_vm3, %v2698_v10, %v2697_v53  ;;  %v12728_v0 = vperm.slane %v12633_v56, %v8323_v51  ;;  %v12731_v53 = vld [vmem:[#allocation174_spill] sm:$0xff]  ;;  %v12734_v56 = vld [vmem:[#allocation9_spill] sm:$0xff] }
 0x647   : > { %v9013_v33 = vsel %vm2561_vm4, %v12725_v21, %v2639_v50  ;;  %v2684_v2 = vsel %vm2557_vm3, %v2683_v31, %v2682_v42  ;;  %v12727_v50 = vld [vmem:[#allocation191_spill] sm:$0xff]  ;;  %v2701_v25 = vsel %vm2561_vm4, %v2700_v58, %v2699_v38  ;;  %v12732_v42 = vld [vmem:[#allocation185_spill] sm:$0xff]  ;;  %v2717_v34 = vperm.slane %v12753_v15, %v8328_v22 }
 0x648   : > { %v9025_v5 = vsel %vm2557_vm3, %v12726_v43, %v2667_v40  ;;  %v2721_v21 = vperm.slane %v12727_v50, %v8312_v14  ;;  %3472 = vperm.xlu0 %6490, %v12045_v11   ;;  %v2708_v59 = vsel %vm2545_vm0, %v12728_v0, %v2706_v8  ;;  %v12729_v40 = vld [vmem:[#allocation192_spill] sm:$0xff]  ;;  %v12730_v31 = vld [vmem:[#allocation31_spill] sm:$0xff]  ;;  %v2709_v43 = vperm.slane %v12732_v42, %v8337_v30  ;;  %v12737_v11 = vld [vmem:[#allocation182_spill] sm:$0xff] }
 0x649   : > { %v2711_v61 = vperm.slane %v12729_v40, %v8345_v49  ;;  %v2737_v7 = vperm.slane %v12730_v31, %v8323_v51  ;;  %v12733_v58 = vld [vmem:[#allocation35_spill] sm:$0xff]  ;;  %6489 = vset.pattern.permute.xlu2 %v12734_v56  ;;  %v12735_v8 = vperm.slane %v12623_v13, %v8342_v60  ;;  %v12736_v40 = vld [vmem:[#allocation180_spill] sm:$0xff]  ;;  %v2704_v46 = vperm.slane %v12737_v11, %v8334_v45  ;;  %v12740_v13 = vld [vmem:[#allocation49_spill] sm:$0xff] }
 0x64a   : > { %v2723_v50 = vsel %vm2545_vm0, %v2722_v47, %v2721_v21  ;;  %v2739_v38 = vperm.slane %v12733_v58, %v8337_v30  ;;  %v12738_v42 = vld [vmem:[#allocation43_spill] sm:$0xff]  ;;  %v12739_v47 = vperm.slane %v12631_v35, %v8328_v22  ;;  %v2710_v58 = vsel %vm2549_vm1, %v2709_v43, %v2708_v59  ;;  %v12744_v59 = vld [vmem:[#allocation48_spill] sm:$0xff] }
 0x64b   : > { %v2686_v0 = vsel %vm2561_vm4, %v12735_v8, %v2684_v2  ;;  %v2751_v10 = vperm.slane %v12738_v42, %v8312_v14  ;;  %v2767_v41 = vperm.slane %v12740_v13, %v8323_v51  ;;  %v9067_v2 = vpop.permute.xlu2 %2442  ;;  %v2712_v31 = vsel %vm2553_vm2, %v2711_v61, %v2710_v58  ;;  %v12746_v61 = vld [vmem:[#allocation39_spill] sm:$0xff] }
 0x64c   : > { %v2703_v21 = vsel %vm2565_vm5, %v12739_v47, %v2701_v25  ;;  %12741 = vst [vmem:[#allocation84_spill] sm:$0xff] %v9067_v2  ;;  %v12742_v11 = vperm.slane %v12640_v55, %v8337_v30  ;;  %v12743_v35 = vperm.slane %v12642_v6, %v8312_v14  ;;  %v2782_v43 = vperm.slane %v12744_v59, %v8323_v51  ;;  %v12745_v47 = vld [vmem:[#allocation198_spill] sm:$0xff]  ;;  %v12747_v55 = vld [vmem:[#allocation56_spill] sm:$0xff] }
 0x64d   : > { %v2728_v13 = vperm.slane %v12745_v47, %v8331_v48  ;;  %v2766_v58 = vperm.slane %v12746_v61, %v8312_v14  ;;  %v2784_v2 = vperm.slane %v12747_v55, %v8337_v30  ;;  %v12748_v6 = vld [vmem:[#allocation188_spill] sm:$0xff]  ;;  %v12750_v59 = vperm.slane %v12657_v44, %v8323_v51 }
 0x64e   : > { %v2725_v42 = vsel %vm2549_vm1, %v12742_v11, %v2723_v50  ;;  %v2738_v25 = vsel %vm2545_vm0, %v2737_v7, %v12743_v35  ;;  %v9088_v50 = vpop.permute.xlu1 %2427  ;;  %v2715_v11 = vperm.slane %v12748_v6, %v8342_v60  ;;  %v12749_v7 = vld [vmem:[#allocation193_spill] sm:$0xff]  ;;  %v12752_v61 = vperm.slane %v12637_v24, %v8331_v48  ;;  %v12754_v6 = vld [vmem:[#allocation36_spill] sm:$0xff] }
 0x64f   : > { %v2740_v8 = vsel %vm2549_vm1, %v2739_v38, %v2738_v25  ;;  %v2726_v35 = vperm.slane %v12749_v7, %v8345_v49  ;;  %v2753_v47 = vsel %vm2545_vm0, %v12750_v59, %v2751_v10  ;;  %v12751_v38 = vld [vmem:[#allocation44_spill] sm:$0xff]  ;;  %v2754_v9 = vperm.slane %v12754_v6, %v8337_v30  ;;  %v9122_v6 = vpop.permute.xlu0 %2466 }
 0x650   : > { %v2756_v25 = vperm.slane %v12751_v38, %v8345_v49  ;;  %v2714_v55 = vsel %vm2557_vm3, %v12752_v61, %v2712_v31  ;;  %v2768_v7 = vsel %vm2545_vm0, %v2767_v41, %v2766_v58  ;;  %v12755_v44 = vperm.slane %v8959_v54, 7  ;;  %v12757_v31 = vld [vmem:[#allocation38_spill] sm:$0xff]  ;;  %v9127_v41 = vld [vmem:[%s11874_s3 + $0x20] sm:$0xff] }
 0x651   : > { %v2727_v10 = vsel %vm2553_vm2, %v2726_v35, %v2725_v42  ;;  %v12756_v59 = vperm.slane %v12652_v28, %v8345_v49  ;;  %v2745_v38 = vperm.slane %v12757_v31, %v8342_v60  ;;  %v12758_v15 = vperm.slane %v12684_v39, %v8312_v14  ;;  %12759 = vst [vmem:[#allocation72_spill] sm:$0xff] %v9127_v41  ;;  %v12760_v28 = vld [vmem:[#allocation29_spill] sm:$0xff]  ;;  %v12762_v31 = vld [vmem:[#allocation50_spill] sm:$0xff] }
 0x652   : > { %3537 = vperm.xlu0 %6490, %v12755_v44   ;;  %v2729_v42 = vsel %vm2557_vm3, %v2728_v13, %v2727_v10  ;;  %v2755_v58 = vsel %vm2549_vm1, %v2754_v9, %v2753_v47  ;;  %v2716_v39 = vsel %vm2561_vm4, %v2715_v11, %v2714_v55  ;;  %v12761_v44 = vperm.slane %v12677_v19, %v8337_v30  ;;  %v12763_v9 = vld [vmem:[#allocation42_spill] sm:$0xff] }
 0x653   : > { %v2742_v24 = vsel %vm2553_vm2, %v12756_v59, %v2740_v8  ;;  %v2783_v61 = vsel %vm2545_vm0, %v2782_v43, %v12758_v15  ;;  %v2743_v8 = vperm.slane %v12760_v28, %v8331_v48  ;;  %v2757_v43 = vsel %vm2553_vm2, %v2756_v25, %v2755_v58  ;;  %v12768_v58 = vld [vmem:[#allocation34_spill] sm:$0xff] }
 0x654   : > { %v2785_v35 = vsel %vm2549_vm1, %v2784_v2, %v2783_v61  ;;  %v2770_v59 = vsel %vm2549_vm1, %v12761_v44, %v2768_v7  ;;  %v2773_v15 = vperm.slane %v12762_v31, %v8331_v48  ;;  %v2718_v13 = vsel %vm2565_vm5, %v2717_v34, %v2716_v39  ;;  %v9146_v2 = vpop.permute.xlu2 %2451  ;;  %v12771_v31 = vld [vmem:[#allocation18_spill] sm:$0xff] }
 0x655   : > { %v2744_v10 = vsel %vm2557_vm3, %v2743_v8, %v2742_v24  ;;  %v2771_v47 = vperm.slane %v12763_v9, %v8345_v49  ;;  %v12053_v11 = vperm.slane %v9127_v41, 4  ;;  %v12764_v25 = vperm.slane %v12641_v52, %v8342_v60  ;;  %v12766_v24 = vld [vmem:[#allocation54_spill] sm:$0xff] }
 0x656   : > { %v2746_v55 = vsel %vm2561_vm4, %v2745_v38, %v2744_v10  ;;  %v12765_v7 = vperm.slane %v12703_v36, %v8345_v49  ;;  %v2790_v61 = vperm.slane %v12766_v24, %v8342_v60  ;;  %v12767_v28 = vperm.slane %v12667_v32, %v8331_v48  ;;  %v12769_v38 = vld [vmem:[#allocation41_spill] sm:$0xff]  ;;  %v9169_v44 = vpop.permute.xlu1 %2436  ;;  %v12770_v36 = vld [vmem:[#allocation196_spill] sm:$0xff]  ;;  %v12772_v32 = vld [vmem:[#allocation23_spill] sm:$0xff] }
 0x657   : > { %v2731_v19 = vsel %vm2561_vm4, %v12764_v25, %v2729_v42  ;;  %v2762_v52 = vperm.slane %v12768_v58, %v8328_v22  ;;  %v2772_v42 = vsel %vm2553_vm2, %v2771_v47, %v2770_v59  ;;  %v2788_v39 = vperm.slane %v12769_v38, %v8331_v48 }
 0x658   : > { %v2787_v34 = vsel %vm2553_vm2, %v12765_v7, %v2785_v35  ;;  %v2759_v8 = vsel %vm2557_vm3, %v12767_v28, %v2757_v43  ;;  %v2732_v35 = vperm.slane %v12770_v36, %v8328_v22  ;;  %v2734_v10 = vperm.slane %v12771_v31, %v8334_v45  ;;  %v9220_v31 = vpop.permute.xlu0 %2475 }
 0x659   : > { %v2760_v9 = vperm.slane %v12772_v32, %v8342_v60  ;;  %v2774_v43 = vsel %vm2557_vm3, %v2773_v15, %v2772_v42  ;;  %v12773_v25 = vperm.slane %v12731_v53, %v8328_v22  ;;  %v2705_v47 = vsel %vm2569_vm6, %v2704_v46, %v2703_v21  ;;  %v12777_v21 = vld [vmem:[#allocation33_spill] sm:$0xff] }
 0x65a   : > { %v12774_v7 = vperm.slane %v12638_v12, %v8334_v45  ;;  %v2789_v28 = vsel %vm2557_vm3, %v2788_v39, %v2787_v34  ;;  %3602 = vperm.xlu0 %6490, %v12053_v11   ;;  %v2733_v58 = vsel %vm2565_vm5, %v2732_v35, %v2731_v19  ;;  %v12775_v15 = vperm.slane %v12653_v57, %v8328_v22  ;;  %v9200_v12 = vld [vmem:[%s11874_s3 + $0x28] sm:$0xff] }
 0x65b   : > { %v2688_v59 = vsel %vm2565_vm5, %v12773_v25, %v2686_v0  ;;  %v2761_v0 = vsel %vm2561_vm4, %v2760_v9, %v2759_v8  ;;  %v2791_v46 = vsel %vm2561_vm4, %v2790_v61, %v2789_v28  ;;  %12776 = vst [vmem:[#allocation30_spill] sm:$0xff] %v9200_v12  ;;  %v12778_v19 = vperm.slane %v12681_v62, %v8342_v60  ;;  %v12780_v61 = vld [vmem:[#allocation172_spill] sm:$0xff]  ;;  %v12785_v28 = vld [vmem:[#allocation51_spill] sm:$0xff] }
 0x65c   : > { %v2720_v24 = vsel %vm2569_vm6, %v12774_v7, %v2718_v13  ;;  %v2748_v53 = vsel %vm2565_vm5, %v12775_v15, %v2746_v55  ;;  %v2749_v13 = vperm.slane %v12777_v21, %v8334_v45  ;;  %v2763_v34 = vsel %vm2565_vm5, %v2762_v52, %v2761_v0  ;;  %v12779_v55 = vld [vmem:[#allocation53_spill] sm:$0xff]  ;;  %v12782_v52 = vld [vmem:[#allocation46_spill] sm:$0xff]  ;;  %v9224_v9 = vpop.permute.xlu2 %2460  ;;  %v12787_v0 = vld [vmem:[#allocation27_spill] sm:$0xff] }
 0x65d   : > { %v2776_v57 = vsel %vm2561_vm4, %v12778_v19, %v2774_v43  ;;  %v2779_v8 = vperm.slane %v12779_v55, %v8334_v45  ;;  %v2672_v42 = vperm.slane %v12780_v61, %v8328_v22  ;;  %v12781_v38 = vperm.slane %v12736_v40, %v8334_v45  ;;  %v12786_v15 = vld [vmem:[#allocation161_spill] sm:$0xff] }
 0x65e   : > { %v2735_v36 = vsel %vm2569_vm6, %v2734_v10, %v2733_v58  ;;  %v2777_v35 = vperm.slane %v12782_v52, %v8328_v22  ;;  %v2750_v32 = vsel %vm2569_vm6, %v2749_v13, %v2748_v53  ;;  %v12052_v43 = vperm.slane %v9200_v12, 1  ;;  %v9245_v21 = vpop.permute.xlu1 %2445 }
 0x65f   : > { %v2690_v39 = vsel %vm2569_vm6, %v12781_v38, %v2688_v59  ;;  %v12783_v40 = vperm.slane %v12724_v1, %v8328_v22  ;;  %v12784_v59 = vperm.slane %v12668_v23, %v8334_v45  ;;  %v2794_v58 = vperm.slane %v12785_v28, %v8334_v45 }
 0x660   : > { %v3050_v62 = vsel %vm3036_vm7, %v2705_v47, %v2690_v39  ;;  %v2778_v47 = vsel %vm2565_vm5, %v2777_v35, %v2776_v57  ;;  %v2644_v53 = vperm.slane %v12786_v15, %v8334_v45  ;;  %v2670_v1 = vperm.slane %v12787_v0, %v8342_v60  ;;  %v9304_v15 = vld [vmem:[%s11874_s3 + $0x30] sm:$0xff] }
 0x661   : > { %v2793_v25 = vsel %vm2565_vm5, %v12783_v40, %v2791_v46  ;;  %v3051_v10 = vsel %vm3038_vm8, %v2720_v24, %v3050_v62  ;;  %v2765_v7 = vsel %vm2569_vm6, %v12784_v59, %v2763_v34  ;;  %v2780_v24 = vsel %vm2569_vm6, %v2779_v8, %v2778_v47  ;;  %v12789_v34 = vld [vmem:[#allocation88_spill] sm:$0xff]  ;;  %v9289_v59 = vpop.permute.xlu0 %2484  ;;  %12794 = vst [vmem:[#allocation25_spill] sm:$0xff] %v9304_v15 }
 0x662   : > { %v3052_v46 = vsel %vm3040_vm9, %v2735_v36, %v3051_v10  ;;  %v12788_v23 = vperm.slane %v12689_v4, %v8334_v45  ;;  %v2642_v19 = vperm.slane %v12789_v34, %v8328_v22  ;;  %v2795_v57 = vsel %vm2569_vm6, %v2794_v58, %v2793_v25  ;;  %3667 = vperm.xlu0 %6490, %v12052_v43  }
 0x663   : > { %v3053_v55 = vsel %vm3042_vm10, %v2750_v32, %v3052_v46  ;;  %v12790_v61 = vperm.slane %v12609_v26, %v8334_v45  ;;  %v12791_v38 = vperm.slane %v12614_v63, %v8328_v22  ;;  %v12792_v26 = vld [vmem:[#allocation101_spill] sm:$0xff]  ;;  %v12051_v25 = vperm.slane %v9200_v12, 6 }
 0x664   : > { %v2615_v13 = vsel %vm2569_vm6, %v12788_v23, %v8905_v16  ;;  %v2671_v16 = vsel %vm2561_vm4, %v2670_v1, %v9025_v5  ;;  %v3054_v39 = vsel %vm3044_vm11, %v2765_v7, %v3053_v55  ;;  %v2643_v36 = vsel %vm2565_vm5, %v2642_v19, %v9013_v33  ;;  %v9291_v7 = vpop.permute.xlu2 %2469  ;;  %v9319_v23 = vld [vmem:[%s11874_s3 + $0x38] sm:$0xff]  ;;  %v9333_v55 = vld [vmem:[%s11873_s2] ss:$0 sm:$0xff] }
 0x665   : > { %v2630_v8 = vsel %vm2569_vm6, %v12790_v61, %v8998_v27  ;;  %v2658_v4 = vsel %vm2565_vm5, %v12791_v38, %v9016_v17  ;;  %v2659_v27 = vperm.slane %v12792_v26, %v8334_v45  ;;  %v2673_v52 = vsel %vm2565_vm5, %v2672_v42, %v2671_v16  ;;  %v12793_v17 = vld [vmem:[#allocation75_spill] sm:$0xff]  ;;  %12795 = vst [vmem:[#allocation40_spill] sm:$0xff] %v9319_v23 }
 0x666   : > { %v3055_v63 = vsel %vm3046_vm12, %v2780_v24, %v3054_v39  ;;  %v2674_v35 = vperm.slane %v12793_v17, %v8334_v45  ;;  %v3039_v5 = vsel %vm3038_vm8, %v8885_v29, %v8881_v18  ;;  %v2645_v62 = vsel %vm2569_vm6, %v2644_v53, %v2643_v36  ;;  %v9295_v47 = vpop.permute.xlu1 %2454  ;;  %12796 = vst [vmem:[#allocation111_spill] sm:$0xff] %v9333_v55 }
 0x667   : > { %v3056_v32 = vsel %vm3048_vm13, %v2795_v57, %v3055_v63  ;;  %v2660_v33 = vsel %vm2569_vm6, %v2659_v27, %v2658_v4  ;;  %v3041_v40 = vsel %vm3040_vm9, %v2615_v13, %v3039_v5  ;;  %v12050_v0 = vperm.slane %v9304_v15, 3  ;;  %v12797_v63 = vld [vmem:[#allocation32_spill] sm:$0xff] }
 0x668   : > { %v2675_v42 = vsel %vm2569_vm6, %v2674_v35, %v2673_v52  ;;  %v3043_v10 = vsel %vm3042_vm10, %v2630_v8, %v3041_v40  ;;  %v3079_v29 = vsel %vm3075_vm14, %v3056_v32, 0.0  ;;  %v12049_v13 = vperm.slane %v9319_v23, 0  ;;  %v12799_v5 = vld [vmem:[#allocation76_spill] sm:$0xff]  ;;  %v12800_v32 = vld [vmem:[#allocation82_spill] sm:$0xff]  ;;  %v12801_v40 = vld [vmem:[#allocation45_spill] sm:$0xff] }
 0x669   : > { %v3045_v18 = vsel %vm3044_vm11, %v2645_v62, %v3043_v10  ;;  %3080 = vadd.xlane.f32.xlu1 %v3079_v29  ;;  %v9310_v46 = vpop.permute.xlu0 %2493  ;;  %v12048_v61 = vperm.slane %v9319_v23, 5  ;;  %v12054_v39 = vperm.slane %v8630_v3, 3  ;;  %v2917_v27 = vperm.slane %v8521_v37, %v8323_v51  ;;  %v12803_v29 = vld [vmem:[#allocation95_spill] sm:$0xff]  ;;  %v12812_v10 = vld [vmem:[#allocation92_spill] sm:$0xff] }
 0x66a   : > { %v3047_v28 = vsel %vm3046_vm12, %v2660_v33, %v3045_v18  ;;  %3732 = vperm.xlu0 %6490, %v12051_v25   ;;  %v2919_v17 = vperm.slane %v12797_v63, %v8337_v30  ;;  %v12798_v35 = vperm.slane %v8630_v3, 0  ;;  %v2916_v62 = vperm.slane %v12799_v5, %v8312_v14  ;;  %v12809_v25 = vld [vmem:[#allocation61_spill] sm:$0xff]  ;;  %v12814_v23 = vld [vmem:[#allocation67_spill] sm:$0xff] }
 0x66b   : > { %v3049_v58 = vsel %vm3048_vm13, %v2675_v42, %v3047_v28  ;;  %v2931_v33 = vperm.slane %v12800_v32, %v8312_v14  ;;  %v2921_v37 = vperm.slane %v12801_v40, %v8345_v49  ;;  %v12802_v42 = vld [vmem:[#allocation89_spill] sm:$0xff]  ;;  %v2932_v18 = vperm.slane %v12803_v29, %v8323_v51  ;;  %v12804_v28 = vld [vmem:[#allocation99_spill] sm:$0xff]  ;;  %v12807_v32 = vld [vmem:[#allocation106_spill] sm:$0xff] }
 0x66c   : > { %v3076_v53 = vsel %vm3075_vm14, %v3049_v58, 0.0  ;;  %v9312_v24 = vpop.permute.xlu2 %2478  ;;  %v2938_v58 = vperm.slane %v12804_v28, %v8331_v48  ;;  %v2918_v40 = vsel %vm2545_vm0, %v2917_v27, %v2916_v62  ;;  %v12811_v63 = vld [vmem:[#allocation73_spill] sm:$0xff]  ;;  %v12813_v62 = vld [vmem:[#allocation68_spill] sm:$0xff]  ;;  %v2977_v29 = vperm.slane %v12814_v23, %v8323_v51 }
 0x66d   : > { %3077 = vadd.xlane.f32.xlu2 %v3076_v53  ;;  %v12805_v53 = vld [vmem:[#allocation97_spill] sm:$0xff]  ;;  %v2920_v43 = vsel %vm2549_vm1, %v2919_v17, %v2918_v40  ;;  %v2933_v11 = vsel %vm2545_vm0, %v2932_v18, %v2931_v33  ;;  %v2994_v23 = vperm.slane %v9220_v31, %v8337_v30  ;;  %v12821_v41 = vperm.slane %v12812_v10, 0 }
 0x66e   : > { %v9308_v1 = vpop.permute.xlu1 %2463  ;;  %v12815_v40 = vld [vmem:[#allocation105_spill] sm:$0xff]  ;;  %v2922_v18 = vsel %vm2553_vm2, %v2921_v37, %v2920_v43 }
 0x66f   : > { %v2934_v33 = vperm.slane %v12815_v40, %v8337_v30  ;;  %v12817_v28 = vld [vmem:[#allocation57_spill] sm:$0xff] }
 0x670   : > { %v12820_v17 = vld [vmem:[#allocation65_spill] sm:$0xff] }
 0x671   : > { %v9326_v19 = vpop.permute.xlu0 %2502  ;;  %v2935_v43 = vsel %vm2549_vm1, %v2934_v33, %v2933_v11 }
 0x672   : > { %3797 = vperm.xlu0 %6490, %v12050_v0   ;;  %v3011_v11 = vperm.slane %v9326_v19, %v8345_v49 }
 0x674   : > { %v9328_v57 = vpop.permute.xlu2 %2487 }
 0x676   : > { %v9322_v34 = vpop.permute.xlu1 %2472 }
 0x679   : > { %v9341_v38 = vpop.permute.xlu0 %2511 }
 0x67a   : > { %3862 = vperm.xlu0 %6490, %v12049_v13   ;;  %v12808_v13 = vld [vmem:[#allocation83_spill] sm:$0xff]  ;;  %v3017_v33 = vperm.slane %v9341_v38, %v8328_v22 }
 0x67b   : > { %v2961_v0 = vperm.slane %v12808_v13, %v8312_v14  ;;  %v2946_v13 = vperm.slane %v12817_v28, %v8312_v14  ;;  %v3006_v28 = vperm.slane %v9310_v46, %v8312_v14  ;;  %v2964_v46 = vperm.slane %v9088_v50, %v8337_v30 }
 0x67c   : > { %v9343_v4 = vpop.permute.xlu2 %2496  ;;  %v3155_v50 = vperm.slane %v8630_v3, 2 }
 0x67e   : > { %v9336_v8 = vpop.permute.xlu1 %2481 }
 0x681   : > { %v9350_v36 = vpop.permute.xlu0 %2520 }
 0x682   : > { %3095 = vperm.xlu1 %6488, %v9333_v55   ;;  %3927 = vperm.xlu0 %6490, %v12048_v61   ;;  %v2947_v61 = vperm.slane %v12811_v63, %v8323_v51  ;;  %v12816_v63 = vld [vmem:[#allocation107_spill] sm:$0xff] }
 0x683   : > { %v2925_v27 = vperm.slane %v12816_v63, %v8342_v60  ;;  %v12819_v63 = vperm.slane %v8630_v3, 1 }
 0x684   : > { %v9352_v26 = vpop.permute.xlu2 %2505  ;;  %v2948_v12 = vsel %vm2545_vm0, %v2947_v61, %v2946_v13  ;;  %v3022_v61 = vperm.slane %v9350_v36, %v8323_v51  ;;  %v12823_v36 = vld [vmem:[#allocation59_spill] sm:$0xff] }
 0x686   : > { %v9345_v16 = vpop.permute.xlu1 %2490 }
 0x689   : > { %v9416_v40 = vpop.permute.xlu0 %2529 }
 0x68a   : > { %6491 = vset.pattern.permute.xlu1 %v12734_v56  ;;  %6539 = vset.pattern.permute.xlu0 %v12734_v56  ;;  %v2962_v56 = vperm.slane %v12820_v17, %v8323_v51  ;;  %v12822_v17 = vld [vmem:[#allocation77_spill] sm:$0xff] }
 0x68c   : > { %v9421_v37 = vpop.permute.xlu2 %2514 }
 0x68e   : > { %v9356_v52 = vpop.permute.xlu1 %2499 }
 0x692   : > { %3140 = vperm.xlu1 %6491, %v12798_v35   ;;  %3179 = vperm.xlu0 %6539, %v12054_v39   ;;  %v12806_v35 = vld [vmem:[#allocation21_spill] sm:$0xff]  ;;  %v12810_v39 = vld [vmem:[#allocation60_spill] sm:$0xff] }
 0x693   : > { %v2949_v5 = vperm.slane %v12806_v35, %v8337_v30  ;;  %v2936_v35 = vperm.slane %v12810_v39, %v8345_v49  ;;  %v12818_v39 = vld [vmem:[#allocation98_spill] sm:$0xff] }
 0x694   : > { %v2923_v55 = vperm.slane %v12818_v39, %v8331_v48 }
 0x695   : > { %v2937_v31 = vsel %vm2553_vm2, %v2936_v35, %v2935_v43  ;;  %v2942_v43 = vperm.slane %v12822_v17, %v8328_v22  ;;  %v12826_v35 = vld [vmem:[#allocation103_spill] sm:$0xff] }
 0x696   : > { %v9410_v15 = vpop.permute.xlu1 %2508  ;;  %v2924_v39 = vsel %vm2557_vm3, %v2923_v55, %v2922_v18  ;;  %v2939_v19 = vsel %vm2557_vm3, %v2938_v58, %v2937_v31  ;;  %v2950_v55 = vsel %vm2549_vm1, %v2949_v5, %v2948_v12  ;;  %v2963_v18 = vsel %vm2545_vm0, %v2962_v56, %v2961_v0  ;;  %v12825_v31 = vld [vmem:[#allocation70_spill] sm:$0xff] }
 0x697   : > { %v2926_v13 = vsel %vm2561_vm4, %v2925_v27, %v2924_v39  ;;  %v2992_v27 = vperm.slane %v9322_v34, %v8323_v51  ;;  %v3298_v39 = vperm.slane %v12812_v10, 5  ;;  %v2951_v17 = vperm.slane %v12825_v31, %v8345_v49 }
 0x698   : > { %v2965_v12 = vsel %vm2549_vm1, %v2964_v46, %v2963_v18  ;;  %v3007_v5 = vperm.slane %v9343_v4, %v8323_v51  ;;  %v2991_v0 = vperm.slane %v9291_v7, %v8312_v14  ;;  %v2981_v34 = vperm.slane %v9295_v47, %v8345_v49 }
 0x699   : > { %v2929_v31 = vperm.slane %v12826_v35, %v8334_v45  ;;  %v2952_v18 = vsel %vm2553_vm2, %v2951_v17, %v2950_v55  ;;  %v2979_v4 = vperm.slane %v9146_v2, %v8337_v30  ;;  %v12827_v7 = vperm.slane %v12802_v42, %v8328_v22  ;;  %v12829_v55 = vld [vmem:[#allocation62_spill] sm:$0xff] }
 0x69a   : > { %3153 = vperm.xlu1 %6491, %v12819_v63   ;;  %3244 = vperm.xlu0 %6539, %v12821_v41   ;;  %v2976_v41 = vperm.slane %v9245_v21, %v8312_v14  ;;  %v2953_v63 = vperm.slane %v12823_v36, %v8331_v48  ;;  %v12824_v21 = vld [vmem:[#allocation66_spill] sm:$0xff]  ;;  %v3009_v36 = vperm.slane %v9356_v52, %v8337_v30 }
 0x69b   : > { %v2940_v58 = vperm.slane %v12824_v21, %v8342_v60  ;;  %v2928_v47 = vsel %vm2565_vm5, %v12827_v7, %v2926_v13  ;;  %v2993_v35 = vsel %vm2545_vm0, %v2992_v27, %v2991_v0  ;;  %v12828_v2 = vperm.slane %v12809_v25, %v8345_v49  ;;  %v12830_v25 = vld [vmem:[#allocation79_spill] sm:$0xff] }
 0x69c   : > { %v2978_v56 = vsel %vm2545_vm0, %v2977_v29, %v2976_v41  ;;  %v2954_v29 = vsel %vm2557_vm3, %v2953_v63, %v2952_v18  ;;  %v3008_v13 = vsel %vm2545_vm0, %v3007_v5, %v3006_v28  ;;  %v2968_v63 = vperm.slane %v12829_v55, %v8331_v48  ;;  %v12832_v0 = vld [vmem:[#allocation71_spill] sm:$0xff] }
 0x69d   : > { %v2941_v46 = vsel %vm2561_vm4, %v2940_v58, %v2939_v19  ;;  %v2967_v41 = vsel %vm2553_vm2, %v12828_v2, %v2965_v12  ;;  %v2970_v19 = vperm.slane %v9169_v44, %v8342_v60  ;;  %v2980_v42 = vsel %vm2549_vm1, %v2979_v4, %v2978_v56 }
 0x69e   : > { %v2518_v21 = vpop.permute.xlu1 %2517  ;;  %v2943_v52 = vsel %vm2565_vm5, %v2942_v43, %v2941_v46  ;;  %v2524_v43 = vpop.permute.xlu2 %2523  ;;  %v2982_v27 = vsel %vm2553_vm2, %v2981_v34, %v2980_v42  ;;  %v3010_v58 = vsel %vm2549_vm1, %v3009_v36, %v3008_v13  ;;  %v2957_v12 = vperm.slane %v12830_v25, %v8328_v22  ;;  %v12833_v46 = vld [vmem:[#allocation94_spill] sm:$0xff]  ;;  %v12835_v42 = vld [vmem:[#allocation8_spill] sm:$0xff] }
 0x69f   : > { %v3021_v17 = vperm.slane %v2518_v21, %v8312_v14  ;;  %v12831_v44 = vperm.slane %v12807_v32, %v8342_v60  ;;  %v2995_v28 = vsel %vm2549_vm1, %v2994_v23, %v2993_v35  ;;  %v2998_v5 = vperm.slane %v9336_v8, %v8331_v48 }
 0x6a0   : > { %v2959_v34 = vperm.slane %v12832_v0, %v8334_v45  ;;  %v2969_v36 = vsel %vm2557_vm3, %v2968_v63, %v2967_v41  ;;  %v2996_v21 = vperm.slane %v9312_v24, %v8345_v49  ;;  %v3363_v18 = vperm.slane %v12833_v46, 2 }
 0x6a1   : > { %v2956_v56 = vsel %vm2561_vm4, %v12831_v44, %v2954_v29  ;;  %v2971_v4 = vsel %vm2561_vm4, %v2970_v19, %v2969_v36  ;;  %v12834_v32 = vperm.slane %v9019_v20, %v8331_v48  ;;  %v3012_v7 = vsel %vm2553_vm2, %v3011_v11, %v3010_v58 }
 0x6a2   : > { %3166 = vperm.xlu1 %6491, %v3155_v50   ;;  %3309 = vperm.xlu0 %6539, %v3298_v39   ;;  %v3015_v8 = vperm.slane %v9410_v15, %v8342_v60  ;;  %v2987_v29 = vperm.slane %v9308_v1, %v8328_v22  ;;  %v2997_v35 = vsel %vm2553_vm2, %v2996_v21, %v2995_v28  ;;  %v3181_v28 = vperm.slane %v8630_v3, 4 }
 0x6a3   : > { %v2984_v23 = vsel %vm2557_vm3, %v12834_v32, %v2982_v27  ;;  %v3013_v24 = vperm.slane %v9352_v26, %v8331_v48  ;;  %v3023_v2 = vsel %vm2545_vm0, %v3022_v61, %v3021_v17  ;;  %v2985_v20 = vperm.slane %v9224_v9, %v8342_v60  ;;  %v12837_v61 = vld [vmem:[#allocation84_spill] sm:$0xff] }
 0x6a4   : > { %v2999_v19 = vsel %vm2557_vm3, %v2998_v5, %v2997_v35  ;;  %v3024_v11 = vperm.slane %v2524_v43, %v8337_v30  ;;  %v12836_v1 = vperm.slane %v12805_v53, %v8334_v45  ;;  %v2958_v26 = vsel %vm2565_vm5, %v2957_v12, %v2956_v56 }
 0x6a5   : > { %v2974_v55 = vperm.slane %v12837_v61, %v8334_v45  ;;  %v3014_v9 = vsel %vm2557_vm3, %v3013_v24, %v3012_v7  ;;  %v2986_v43 = vsel %vm2561_vm4, %v2985_v20, %v2984_v23  ;;  %v12839_v27 = vperm.slane %v9289_v59, %v8342_v60  ;;  %v12845_v61 = vld [vmem:[#allocation30_spill] sm:$0xff] }
 0x6a6   : > { %v2527_v41 = vpop.permute.xlu1 %2526  ;;  %v2945_v13 = vsel %vm2569_vm6, %v12836_v1, %v2943_v52  ;;  %v3016_v53 = vsel %vm2561_vm4, %v3015_v8, %v3014_v9  ;;  %v3025_v52 = vsel %vm2549_vm1, %v3024_v11, %v3023_v2  ;;  %v2988_v63 = vsel %vm2565_vm5, %v2987_v29, %v2986_v43  ;;  %v2533_v56 = vpop.permute.xlu2 %2532  ;;  %v12846_v9 = vld [vmem:[#allocation111_spill] sm:$0xff] }
 0x6a7   : > { %v3026_v15 = vperm.slane %v2527_v41, %v8345_v49  ;;  %v12838_v49 = vperm.slane %v12813_v62, %v8328_v22  ;;  %v3001_v58 = vsel %vm2561_vm4, %v12839_v27, %v2999_v19  ;;  %v3004_v17 = vperm.slane %v9345_v16, %v8334_v45  ;;  %v12842_v19 = vld [vmem:[#allocation72_spill] sm:$0xff] }
 0x6a8   : > { %v2930_v25 = vsel %vm2569_vm6, %v2929_v31, %v2928_v47  ;;  %v2960_v12 = vsel %vm2569_vm6, %v2959_v34, %v2958_v26  ;;  %v3002_v44 = vperm.slane %v9328_v57, %v8328_v22  ;;  %v3018_v16 = vsel %vm2565_vm5, %v3017_v33, %v3016_v53  ;;  %v2539_v31 = vpop.permute.xlu0 %2538  ;;  %v12849_v27 = vld [vmem:[#allocation40_spill] sm:$0xff] }
 0x6a9   : > { %v2973_v30 = vsel %vm2565_vm5, %v12838_v49, %v2971_v4  ;;  %v3027_v62 = vsel %vm2553_vm2, %v3026_v15, %v3025_v52  ;;  %v3064_v5 = vsel %vm3036_vm7, %v2945_v13, %v2930_v25  ;;  %v12073_v0 = vperm.slane %v12833_v46, 7  ;;  %v12843_v15 = vld [vmem:[#allocation9_spill] sm:$0xff] }
 0x6aa   : > { %6493 = vset.pattern.permute.xlu1 %v12835_v42  ;;  %3374 = vperm.xlu0 %6539, %v3363_v18   ;;  %v2975_v59 = vsel %vm2569_vm6, %v2974_v55, %v2973_v30  ;;  %v12840_v47 = vperm.slane %v9122_v6, %v8334_v45  ;;  %v3003_v34 = vsel %vm2565_vm5, %v3002_v44, %v3001_v58  ;;  %v12072_v20 = vperm.slane %v8959_v54, 4  ;;  %v12847_v49 = vld [vmem:[#allocation25_spill] sm:$0xff] }
 0x6ab   : > { %v3019_v36 = vperm.slane %v9421_v37, %v8334_v45  ;;  %v12841_v21 = vperm.slane %v9416_v40, %v8331_v48  ;;  %v3065_v33 = vsel %vm3038_vm8, %v2960_v12, %v3064_v5  ;;  %v3005_v4 = vsel %vm2569_vm6, %v3004_v17, %v3003_v34 }
 0x6ac   : > { %v2990_v57 = vsel %vm2569_vm6, %v12840_v47, %v2988_v63  ;;  %v3030_v32 = vperm.slane %v2533_v56, %v8342_v60  ;;  %v3066_v37 = vsel %vm3040_vm9, %v2975_v59, %v3065_v33  ;;  %v3034_v48 = vperm.slane %v2539_v31, %v8334_v45  ;;  %v6558_v45 = vld [vmem:[%s11874_s3] sm:$0xff] }
 0x6ad   : > { %v3029_v38 = vsel %vm2557_vm3, %v12841_v21, %v3027_v62  ;;  %v3020_v7 = vsel %vm2569_vm6, %v3019_v36, %v3018_v16  ;;  %v3067_v8 = vsel %vm3042_vm10, %v2990_v57, %v3066_v37  ;;  %v3194_v2 = vperm.slane %v6558_v45, 5 }
 0x6ae   : > { %v2536_v23 = vpop.permute.xlu1 %2535  ;;  %v3031_v40 = vsel %vm2561_vm4, %v3030_v32, %v3029_v38  ;;  %v12071_v11 = vperm.slane %v12842_v19, 1  ;;  %v12070_v1 = vperm.slane %v12842_v19, 6  ;;  %v12844_v13 = vperm.slane %v8630_v3, 6 }
 0x6af   : > { %v3032_v6 = vperm.slane %v2536_v23, %v8328_v22  ;;  %v3068_v22 = vsel %vm3044_vm11, %v3005_v4, %v3067_v8  ;;  %v3220_v26 = vperm.slane %v6558_v45, 7  ;;  %v12069_v55 = vperm.slane %v12845_v61, 3 }
 0x6b0   : > { %v3069_v35 = vsel %vm3046_vm12, %v3020_v7, %v3068_v22  ;;  %v12068_v30 = vperm.slane %v12847_v49, 0  ;;  %v3246_v43 = vperm.slane %v12812_v10, 1  ;;  %v12067_v53 = vperm.slane %v12847_v49, 5  ;;  %v9654_v44 = vpop.xlane.xlu0 %3083 }
 0x6b1   : > { %v3033_v60 = vsel %vm2565_vm5, %v3032_v6, %v3031_v40  ;;  %v12848_v52 = vperm.slane %v8630_v3, 1  ;;  %v3259_v63 = vperm.slane %v12812_v10, 2  ;;  %v12066_v58 = vperm.slane %v12849_v27, 2 }
 0x6b2   : > { %3186 = vperm.xlu1 %6493, %v3181_v28   ;;  %3439 = vperm.xlu0 %6539, %v12073_v0   ;;  %v3035_v29 = vsel %vm2569_vm6, %v3034_v48, %v3033_v60  ;;  %v12065_v17 = vperm.slane %v12849_v27, 7  ;;  %v12850_v62 = vperm.slane %v8630_v3, 3  ;;  %v12851_v25 = vperm.slane %v12812_v10, 3 }
 0x6b3   : > { %v3070_v24 = vsel %vm3048_vm13, %v3035_v29, %v3069_v35  ;;  %v3285_v12 = vperm.slane %v12812_v10, 4  ;;  %v3311_v56 = vperm.slane %v12812_v10, 6  ;;  %v3324_v59 = vperm.slane %v12812_v10, 7 }
 0x6b4   : > { %v3085_v41 = vsel %vm3075_vm14, %v3070_v24, 0.0  ;;  %v12856_v34 = vperm.slane %v12833_v46, 0  ;;  %v3350_v38 = vperm.slane %v12833_v46, 1  ;;  %v3376_v37 = vperm.slane %v12833_v46, 3 }
 0x6b5   : > { %3086 = vadd.xlane.f32.xlu2 %v3085_v41  ;;  %v3389_v22 = vperm.slane %v12833_v46, 4  ;;  %v12878_v14 = vperm.slane %v12833_v46, 7 }
 0x6b8   : > { %v9658_v5 = vpop.permute.xlu0 %3134 }
 0x6b9   : > { %12853 = vst [vmem:[#allocation69_spill] sm:$0xff] %v9658_v5 }
 0x6ba   : > { %3199 = vperm.xlu1 %6493, %v3194_v2   ;;  %3504 = vperm.xlu0 %6539, %v12072_v20  }
 0x6c0   : > { %v9661_v3 = vpop.permute.xlu0 %3212 }
 0x6c1   : > { %12854 = vst [vmem:[#allocation112_spill] sm:$0xff] %v9661_v3 }
 0x6c2   : > { %6495 = vset.pattern.permute.xlu1 %v12843_v15  ;;  %3569 = vperm.xlu0 %6539, %v12071_v11  }
 0x6c8   : > { %v9669_v57 = vpop.permute.xlu0 %3277 }
 0x6ca   : > { %3218 = vperm.xlu1 %6495, %v12844_v13   ;;  %3634 = vperm.xlu0 %6539, %v12070_v1  }
 0x6cd   : > { %3101 = vperm.xlu2 %6489, %v12846_v9  }
 0x6d0   : > { %v9678_v33 = vpop.permute.xlu0 %3342 }
 0x6d2   : > { %3231 = vperm.xlu1 %6495, %v3220_v26   ;;  %3699 = vperm.xlu0 %6539, %v12069_v55  }
 0x6d5   : > { %6492 = vset.pattern.permute.xlu2 %v12835_v42 }
 0x6d8   : > { %v9687_v6 = vpop.permute.xlu0 %3407 }
 0x6d9   : > { %12859 = vst [vmem:[#allocation55_spill] sm:$0xff] %v9687_v6 }
 0x6da   : > { %6497 = vset.pattern.permute.xlu1 %v12835_v42  ;;  %3764 = vperm.xlu0 %6539, %v12068_v30   ;;  %v3506_v30 = vperm.slane %v8959_v54, 5 }
 0x6dc   : > { %v3081_v16 = vpop.xlane.xlu1 %3080 }
 0x6dd   : > { %3147 = vperm.xlu2 %6492, %v12848_v52   ;;  %v6559_v52 = vld [vmem:[%s11874_s3 + $0x10] sm:$0xff] }
 0x6e0   : > { %v3078_v31 = vpop.xlane.xlu2 %3077  ;;  %v9701_v29 = vpop.permute.xlu0 %3472 }
 0x6e2   : > { %3251 = vperm.xlu1 %6497, %v3246_v43   ;;  %3829 = vperm.xlu0 %6539, %v12067_v53  }
 0x6e5   : > { %3160 = vperm.xlu2 %6492, %v3155_v50   ;;  %v12852_v50 = vmov 0  }
 0x6e8   : > { %v9707_v24 = vpop.permute.xlu0 %3537 }
 0x6e9   : > { %12861 = vst [vmem:[#allocation123_spill] sm:$0xff] %v9707_v24  ;;  %v3701_v24 = vperm.slane %v12845_v61, 4 }
 0x6ea   : > { %3264 = vperm.xlu1 %6497, %v3259_v63   ;;  %3894 = vperm.xlu0 %6539, %v12066_v58  }
 0x6ed   : > { %3173 = vperm.xlu2 %6492, %v12850_v62  }
 0x6f2   : > { %6499 = vset.pattern.permute.xlu1 %v12843_v15  ;;  %3959 = vperm.xlu0 %6539, %v12065_v17  }
 0x6f4   : > { %v9666_v47 = vpop.permute.xlu1 %3095 }
 0x6f5   : > { %6494 = vset.pattern.permute.xlu2 %v12843_v15  ;;  %v3105_v7 = vadd.f32 %v9666_v47, %v3078_v31 }
 0x6f7   : > { %v9692_v48 = vmax.f32 %v3105_v7, 0.0  ;;  %v3454_v7 = vperm.slane %v8959_v54, 1 }
 0x6f9   : > { %v4101_v62 = vmul.f32 %v9661_v3, %v9692_v48 }
 0x6fa   : > { %3283 = vperm.xlu1 %6499, %v12851_v25   ;;  %6544 = vset.pattern.permute.xlu0 %v12852_v50 }
 0x6fd   : > { %3192 = vperm.xlu2 %6494, %v3181_v28   ;;  %v12855_v28 = vperm.slane %v12812_v10, 0  ;;  %v9722_v10 = vpop.permute.xlu0 %3602 }
 0x6fe   : > { %12865 = vst [vmem:[#allocation110_spill] sm:$0xff] %v9722_v10 }
 0x702   : > { %3296 = vperm.xlu1 %6499, %v3285_v12  }
 0x704   : > { %v9675_v21 = vpop.permute.xlu1 %3140 }
 0x705   : > { %3205 = vperm.xlu2 %6494, %v3194_v2   ;;  %v9733_v25 = vpop.permute.xlu0 %3667 }
 0x706   : > { %12866 = vst [vmem:[#allocation113_spill] sm:$0xff] %v9733_v25 }
 0x70a   : > { %6501 = vset.pattern.permute.xlu1 %v12835_v42 }
 0x70c   : > { %v9682_v32 = vpop.permute.xlu1 %3153 }
 0x70d   : > { %6496 = vset.pattern.permute.xlu2 %v12835_v42  ;;  %12857 = vst [vmem:[#allocation115_spill] sm:$0xff] %v9682_v32  ;;  %v9741_v31 = vpop.permute.xlu0 %3732 }
 0x70e   : > { %12868 = vst [vmem:[#allocation117_spill] sm:$0xff] %v9741_v31 }
 0x712   : > { %3316 = vperm.xlu1 %6501, %v3311_v56  }
 0x714   : > { %v9694_v40 = vpop.permute.xlu1 %3166 }
 0x715   : > { %3225 = vperm.xlu2 %6496, %v3220_v26   ;;  %12860 = vst [vmem:[#allocation135_spill] sm:$0xff] %v9694_v40  ;;  %v12863_v26 = vperm.slane %v12833_v46, 5 }
 0x71a   : > { %3329 = vperm.xlu1 %6501, %v3324_v59  }
 0x71d   : > { %3238 = vperm.xlu2 %6496, %v12855_v28   ;;  %v3441_v28 = vperm.slane %v8959_v54, 0 }
 0x722   : > { %6503 = vset.pattern.permute.xlu1 %v12843_v15 }
 0x724   : > { %v9703_v35 = vpop.permute.xlu1 %3186 }
 0x725   : > { %6498 = vset.pattern.permute.xlu2 %v12843_v15 }
 0x728   : > { %v9673_v36 = vpop.xlane.xlu2 %3086 }
 0x72a   : > { %3348 = vperm.xlu1 %6503, %v12856_v34  }
 0x72c   : > { %v9713_v41 = vpop.permute.xlu1 %3199 }
 0x72d   : > { %3257 = vperm.xlu2 %6498, %v3246_v43  }
 0x730   : > { %v9680_v4 = vpop.permute.xlu2 %3101 }
 0x731   : > { %v3106_v2 = vadd.f32 %v9680_v4, %v3081_v16 }
 0x732   : > { %3361 = vperm.xlu1 %6503, %v3350_v38  }
 0x733   : > { %v9716_v13 = vmax.f32 %v3106_v2, 0.0  ;;  %v9753_v2 = vpop.permute.xlu0 %3797 }
 0x734   : > { %12870 = vst [vmem:[#allocation118_spill] sm:$0xff] %v9753_v2 }
 0x735   : > { %3270 = vperm.xlu2 %6498, %v3259_v63   ;;  %v3415_v63 = vperm.slane %v6559_v52, 6  ;;  %v12872_v52 = vperm.slane %v8959_v54, 2 }
 0x738   : > { %v9685_v23 = vpop.permute.xlu2 %3147 }
 0x739   : > { %12858 = vst [vmem:[#allocation114_spill] sm:$0xff] %v9685_v23 }
 0x73a   : > { %6505 = vset.pattern.permute.xlu1 %v12835_v42 }
 0x73c   : > { %v9726_v43 = vpop.permute.xlu1 %3218 }
 0x73d   : > { %6500 = vset.pattern.permute.xlu2 %v12835_v42 }
 0x740   : > { %v9696_v8 = vpop.permute.xlu2 %3160 }
 0x741   : > { %v4093_v60 = vmul.f32 %v9696_v8, %v9692_v48 }
 0x742   : > { %3381 = vperm.xlu1 %6505, %v3376_v37  }
 0x743   : > { %4614 = vperm.xlu0 %6544, %v4093_v60  }
 0x745   : > { %3290 = vperm.xlu2 %6500, %v3285_v12   ;;  %v9735_v12 = vpop.permute.xlu1 %3231 }
 0x746   : > { %12867 = vst [vmem:[#allocation116_spill] sm:$0xff] %v9735_v12  ;;  %v4104_v16 = vmul.f32 %v9735_v12, %v9716_v13 }
 0x748   : > { %v9709_v45 = vpop.permute.xlu2 %3173 }
 0x749   : > { %12862 = vst [vmem:[#allocation90_spill] sm:$0xff] %v9709_v45 }
 0x74a   : > { %3394 = vperm.xlu1 %6505, %v3389_v22  }
 0x74d   : > { %3303 = vperm.xlu2 %6500, %v3298_v39  }
 0x752   : > { %6507 = vset.pattern.permute.xlu1 %v12843_v15 }
 0x755   : > { %6502 = vset.pattern.permute.xlu2 %v12843_v15 }
 0x757   : > { %v9720_v9 = vpop.permute.xlu2 %3192 }
 0x758   : > { %12864 = vst [vmem:[#allocation109_spill] sm:$0xff] %v9720_v9  ;;  %v4098_v39 = vmul.f32 %v9720_v9, %v9716_v13 }
 0x75a   : > { %3413 = vperm.xlu1 %6507, %v12863_v26   ;;  %4629 = vperm.xlu0 %6544, %v4098_v39   ;;  %v9760_v39 = vpop.permute.xlu0 %3862 }
 0x75b   : > { %12871 = vst [vmem:[#allocation119_spill] sm:$0xff] %v9760_v39 }
 0x75d   : > { %3322 = vperm.xlu2 %6502, %v3311_v56   ;;  %v9743_v56 = vpop.permute.xlu1 %3251 }
 0x75e   : > { %12869 = vst [vmem:[#allocation19_spill] sm:$0xff] %v9743_v56 }
 0x75f   : > { %v9745_v34 = vpop.permute.xlu2 %3205 }
 0x762   : > { %3426 = vperm.xlu1 %6507, %v3415_v63   ;;  %4638 = vperm.xlu0 %6544, %v4101_v62  }
 0x765   : > { %3335 = vperm.xlu2 %6502, %v3324_v59   ;;  %v4107_v59 = vmul.f32 %v9743_v56, %v9692_v48 }
 0x76a   : > { %6509 = vset.pattern.permute.xlu1 %v12835_v42  ;;  %4647 = vperm.xlu0 %6544, %v4104_v16   ;;  %v9769_v16 = vpop.permute.xlu0 %3927 }
 0x76b   : > { %12873 = vst [vmem:[#allocation120_spill] sm:$0xff] %v9769_v16  ;;  %v3675_v16 = vperm.slane %v12845_v61, 2 }
 0x76d   : > { %6504 = vset.pattern.permute.xlu2 %v12835_v42 }
 0x76f   : > { %v9751_v60 = vpop.permute.xlu2 %3225 }
 0x772   : > { %3446 = vperm.xlu1 %6509, %v3441_v28   ;;  %4656 = vperm.xlu0 %6544, %v4107_v59   ;;  %v3480_v59 = vperm.slane %v8959_v54, 3  ;;  %v9778_v53 = vpop.permute.xlu0 %3179 }
 0x775   : > { %3355 = vperm.xlu2 %6504, %v3350_v38   ;;  %v9767_v38 = vpop.permute.xlu1 %3264 }
 0x777   : > { %v9757_v26 = vpop.permute.xlu2 %3238 }
 0x77a   : > { %3459 = vperm.xlu1 %6509, %v3454_v7   ;;  %v9784_v55 = vpop.permute.xlu0 %3244 }
 0x77d   : > { %3368 = vperm.xlu2 %6504, %v3363_v18   ;;  %v9776_v58 = vpop.permute.xlu1 %3283 }
 0x782   : > { %6511 = vset.pattern.permute.xlu1 %v12843_v15  ;;  %v9794_v11 = vpop.permute.xlu0 %3309 }
 0x783   : > { %12876 = vst [vmem:[#allocation126_spill] sm:$0xff] %v9794_v11  ;;  %v4116_v20 = vmul.f32 %v9794_v11, %v9716_v13  ;;  %v12881_v11 = vperm.slane %v8959_v54, 7 }
 0x785   : > { %6506 = vset.pattern.permute.xlu2 %v12843_v15 }
 0x787   : > { %v9765_v62 = vpop.permute.xlu2 %3257 }
 0x78a   : > { %3478 = vperm.xlu1 %6511, %v12872_v52   ;;  %v9781_v52 = vpop.permute.xlu1 %3296  ;;  %v9885_v39 = vpop.permute.xlu0 %3374 }
 0x78d   : > { %3387 = vperm.xlu2 %6506, %v3376_v37  }
 0x78f   : > { %v9772_v18 = vpop.permute.xlu2 %3270 }
 0x790   : > { %12874 = vst [vmem:[#allocation122_spill] sm:$0xff] %v9772_v18  ;;  %v4110_v17 = vmul.f32 %v9772_v18, %v9716_v13  ;;  %v12884_v18 = vperm.slane %v8959_v54, 4 }
 0x792   : > { %3491 = vperm.xlu1 %6511, %v3480_v59   ;;  %4665 = vperm.xlu0 %6544, %v4110_v17   ;;  %v9791_v17 = vpop.permute.xlu1 %3316  ;;  %v9891_v25 = vpop.permute.xlu0 %3439 }
 0x793   : > { %12896 = vst [vmem:[#allocation125_spill] sm:$0xff] %v9891_v25 }
 0x795   : > { %3400 = vperm.xlu2 %6506, %v3389_v22   ;;  %v3519_v22 = vperm.slane %v8959_v54, 6  ;;  %v3610_v54 = vperm.slane %v12842_v19, 5 }
 0x79a   : > { %6513 = vset.pattern.permute.xlu1 %v12835_v42  ;;  %v9798_v0 = vpop.permute.xlu1 %3329 }
 0x79b   : > { %12877 = vst [vmem:[#allocation138_spill] sm:$0xff] %v9798_v0 }
 0x79d   : > { %6508 = vset.pattern.permute.xlu2 %v12835_v42 }
 0x79f   : > { %v9787_v37 = vpop.permute.xlu2 %3290 }
 0x7a0   : > { %12875 = vst [vmem:[#allocation124_spill] sm:$0xff] %v9787_v37  ;;  %v4113_v1 = vmul.f32 %v9787_v37, %v9692_v48 }
 0x7a2   : > { %3511 = vperm.xlu1 %6513, %v3506_v30   ;;  %4674 = vperm.xlu0 %6544, %v4113_v1   ;;  %v4119_v1 = vmul.f32 %v9798_v0, %v9692_v48  ;;  %v9805_v51 = vpop.permute.xlu1 %3348  ;;  %v3571_v0 = vperm.slane %v12842_v19, 2 }
 0x7a3   : > { %12879 = vst [vmem:[#allocation141_spill] sm:$0xff] %v9805_v51 }
 0x7a5   : > { %3420 = vperm.xlu2 %6508, %v3415_v63  }
 0x7a7   : > { %v9807_v63 = vpop.permute.xlu2 %3303 }
 0x7a8   : > { %12880 = vst [vmem:[#allocation128_spill] sm:$0xff] %v9807_v63 }
 0x7aa   : > { %3524 = vperm.xlu1 %6513, %v3519_v22   ;;  %4683 = vperm.xlu0 %6544, %v4116_v20   ;;  %v4122_v20 = vmul.f32 %v9805_v51, %v9716_v13  ;;  %v9824_v51 = vpop.permute.xlu1 %3361 }
 0x7ad   : > { %3433 = vperm.xlu2 %6508, %v12878_v14   ;;  %v3545_v14 = vperm.slane %v12842_v19, 0 }
 0x7b2   : > { %6515 = vset.pattern.permute.xlu1 %v12843_v15  ;;  %4692 = vperm.xlu0 %6544, %v4119_v1  }
 0x7b4   : > { %v9831_v37 = vpop.permute.xlu1 %3381 }
 0x7b5   : > { %6510 = vset.pattern.permute.xlu2 %v12843_v15 }
 0x7b7   : > { %v9815_v46 = vpop.permute.xlu2 %3322 }
 0x7b8   : > { %12882 = vst [vmem:[#allocation131_spill] sm:$0xff] %v9815_v46 }
 0x7ba   : > { %3543 = vperm.xlu1 %6515, %v12881_v11   ;;  %4701 = vperm.xlu0 %6544, %v4122_v20   ;;  %v3584_v20 = vperm.slane %v12842_v19, 3 }
 0x7bc   : > { %v9836_v56 = vpop.permute.xlu1 %3394 }
 0x7bd   : > { %3452 = vperm.xlu2 %6510, %v3441_v28  }
 0x7bf   : > { %v9817_v1 = vpop.permute.xlu2 %3335 }
 0x7c2   : > { %3556 = vperm.xlu1 %6515, %v3545_v14  }
 0x7c5   : > { %3465 = vperm.xlu2 %6510, %v3454_v7  }
 0x7ca   : > { %6517 = vset.pattern.permute.xlu1 %v12835_v42 }
 0x7cc   : > { %v9845_v3 = vpop.permute.xlu1 %3413 }
 0x7cd   : > { %6512 = vset.pattern.permute.xlu2 %v12835_v42 }
 0x7cf   : > { %v9822_v11 = vpop.permute.xlu2 %3355 }
 0x7d2   : > { %3576 = vperm.xlu1 %6517, %v3571_v0  }
 0x7d5   : > { %3485 = vperm.xlu2 %6512, %v3480_v59   ;;  %v12885_v59 = vperm.slane %v12842_v19, 4 }
 0x7d7   : > { %v9827_v28 = vpop.permute.xlu2 %3368 }
 0x7d8   : > { %12883 = vst [vmem:[#allocation132_spill] sm:$0xff] %v9827_v28  ;;  %v4125_v7 = vmul.f32 %v9827_v28, %v9692_v48 }
 0x7da   : > { %3589 = vperm.xlu1 %6517, %v3584_v20   ;;  %4710 = vperm.xlu0 %6544, %v4125_v7   ;;  %v9850_v7 = vpop.permute.xlu1 %3426 }
 0x7db   : > { %12887 = vst [vmem:[#allocation16_spill] sm:$0xff] %v9850_v7 }
 0x7dd   : > { %3498 = vperm.xlu2 %6512, %v12884_v18   ;;  %v4131_v18 = vmul.f32 %v9687_v6, %v9692_v48  ;;  %v12892_v6 = vperm.slane %v12845_v61, 1 }
 0x7e2   : > { %6519 = vset.pattern.permute.xlu1 %v12843_v15 }
 0x7e5   : > { %6514 = vset.pattern.permute.xlu2 %v12843_v15 }
 0x7e7   : > { %v9841_v12 = vpop.permute.xlu2 %3387 }
 0x7e8   : > { %12886 = vst [vmem:[#allocation137_spill] sm:$0xff] %v9841_v12  ;;  %v4128_v28 = vmul.f32 %v9841_v12, %v9716_v13  ;;  %v9856_v12 = vpop.permute.xlu1 %3446 }
 0x7e9   : > { %12888 = vst [vmem:[#allocation17_spill] sm:$0xff] %v9856_v12 }
 0x7ea   : > { %3608 = vperm.xlu1 %6519, %v12885_v59   ;;  %4719 = vperm.xlu0 %6544, %v4128_v28   ;;  %v4134_v59 = vmul.f32 %v9850_v7, %v9716_v13  ;;  %v3636_v28 = vperm.slane %v12842_v19, 7 }
 0x7ed   : > { %3517 = vperm.xlu2 %6514, %v3506_v30   ;;  %v4137_v30 = vmul.f32 %v9856_v12, %v9692_v48 }
 0x7ef   : > { %v9858_v9 = vpop.permute.xlu2 %3400 }
 0x7f0   : > { %12889 = vst [vmem:[#allocation26_spill] sm:$0xff] %v9858_v9 }
 0x7f2   : > { %3621 = vperm.xlu1 %6519, %v3610_v54   ;;  %4728 = vperm.xlu0 %6544, %v4131_v18  }
 0x7f5   : > { %3530 = vperm.xlu2 %6514, %v3519_v22   ;;  %v3649_v22 = vperm.slane %v12845_v61, 0 }
 0x7fa   : > { %6521 = vset.pattern.permute.xlu1 %v12835_v42  ;;  %4737 = vperm.xlu0 %6544, %v4134_v59   ;;  %v12891_v59 = vperm.slane %v12842_v19, 1 }
 0x7fd   : > { %6516 = vset.pattern.permute.xlu2 %v12835_v42 }
 0x7ff   : > { %v9864_v18 = vpop.permute.xlu2 %3420 }
 0x800   : > { %12890 = vst [vmem:[#allocation142_spill] sm:$0xff] %v9864_v18  ;;  %v12900_v18 = vperm.slane %v12842_v19, 6  ;;  %v3740_v19 = vperm.slane %v12845_v61, 7 }
 0x802   : > { %3641 = vperm.xlu1 %6521, %v3636_v28   ;;  %4746 = vperm.xlu0 %6544, %v4137_v30   ;;  %v9876_v30 = vpop.permute.xlu1 %3459 }
 0x803   : > { %12893 = vst [vmem:[#allocation145_spill] sm:$0xff] %v9876_v30 }
 0x805   : > { %3550 = vperm.xlu2 %6516, %v3545_v14  }
 0x807   : > { %v9868_v7 = vpop.permute.xlu2 %3433 }
 0x80a   : > { %3654 = vperm.xlu1 %6521, %v3649_v22   ;;  %v9883_v31 = vpop.permute.xlu1 %3478 }
 0x80b   : > { %12895 = vst [vmem:[#allocation37_spill] sm:$0xff] %v9883_v31  ;;  %v9901_v31 = vpop.permute.xlu0 %3504 }
 0x80c   : > { %12898 = vst [vmem:[#allocation143_spill] sm:$0xff] %v9901_v31  ;;  %v4146_v30 = vmul.f32 %v9901_v31, %v9716_v13  ;;  %v12903_v31 = vperm.slane %v12845_v61, 6 }
 0x80d   : > { %3563 = vperm.xlu2 %6516, %v12891_v59  }
 0x812   : > { %6523 = vset.pattern.permute.xlu1 %v12843_v15 }
 0x815   : > { %6518 = vset.pattern.permute.xlu2 %v12843_v15 }
 0x817   : > { %v9874_v12 = vpop.permute.xlu2 %3452 }
 0x81a   : > { %3673 = vperm.xlu1 %6523, %v12892_v6   ;;  %v9888_v6 = vpop.permute.xlu1 %3491 }
 0x81d   : > { %3582 = vperm.xlu2 %6518, %v3571_v0  }
 0x81f   : > { %v9879_v14 = vpop.permute.xlu2 %3465 }
 0x820   : > { %12894 = vst [vmem:[#allocation74_spill] sm:$0xff] %v9879_v14  ;;  %v4140_v59 = vmul.f32 %v9879_v14, %v9716_v13 }
 0x822   : > { %3686 = vperm.xlu1 %6523, %v3675_v16   ;;  %4755 = vperm.xlu0 %6544, %v4140_v59   ;;  %v9898_v59 = vpop.permute.xlu1 %3511 }
 0x825   : > { %3595 = vperm.xlu2 %6518, %v3584_v20   ;;  %v3714_v20 = vperm.slane %v12845_v61, 5 }
 0x82a   : > { %6525 = vset.pattern.permute.xlu1 %v12835_v42  ;;  %v9905_v25 = vpop.permute.xlu1 %3524 }
 0x82b   : > { %12899 = vst [vmem:[#allocation80_spill] sm:$0xff] %v9905_v25 }
 0x82d   : > { %6520 = vset.pattern.permute.xlu2 %v12835_v42 }
 0x82f   : > { %v9894_v0 = vpop.permute.xlu2 %3485 }
 0x830   : > { %12897 = vst [vmem:[#allocation139_spill] sm:$0xff] %v9894_v0  ;;  %v4143_v14 = vmul.f32 %v9894_v0, %v9692_v48 }
 0x832   : > { %3706 = vperm.xlu1 %6525, %v3701_v24   ;;  %4764 = vperm.xlu0 %6544, %v4143_v14   ;;  %v4149_v14 = vmul.f32 %v9905_v25, %v9692_v48  ;;  %v9912_v0 = vpop.permute.xlu1 %3543  ;;  %v3766_v25 = vperm.slane %v12847_v49, 1 }
 0x833   : > { %12901 = vst [vmem:[#allocation133_spill] sm:$0xff] %v9912_v0 }
 0x835   : > { %3615 = vperm.xlu2 %6520, %v3610_v54  }
 0x837   : > { %v9914_v54 = vpop.permute.xlu2 %3498 }
 0x838   : > { %12902 = vst [vmem:[#allocation63_spill] sm:$0xff] %v9914_v54  ;;  %v12908_v54 = vperm.slane %v12845_v61, 3  ;;  %v3805_v61 = vperm.slane %v12847_v49, 4 }
 0x83a   : > { %3719 = vperm.xlu1 %6525, %v3714_v20   ;;  %4773 = vperm.xlu0 %6544, %v4146_v30   ;;  %v4152_v30 = vmul.f32 %v9912_v0, %v9716_v13  ;;  %v9931_v0 = vpop.permute.xlu1 %3556 }
 0x83b   : > { %12905 = vst [vmem:[#allocation81_spill] sm:$0xff] %v9931_v0 }
 0x83d   : > { %3628 = vperm.xlu2 %6520, %v12900_v18  }
 0x842   : > { %6527 = vset.pattern.permute.xlu1 %v12843_v15  ;;  %4782 = vperm.xlu0 %6544, %v4149_v14  }
 0x845   : > { %6522 = vset.pattern.permute.xlu2 %v12843_v15 }
 0x847   : > { %v9922_v18 = vpop.permute.xlu2 %3517 }
 0x848   : > { %12904 = vst [vmem:[#allocation146_spill] sm:$0xff] %v9922_v18  ;;  %v9938_v18 = vpop.permute.xlu1 %3576 }
 0x849   : > { %12907 = vst [vmem:[#allocation93_spill] sm:$0xff] %v9938_v18 }
 0x84a   : > { %3738 = vperm.xlu1 %6527, %v12903_v31   ;;  %4791 = vperm.xlu0 %6544, %v4152_v30   ;;  %v3779_v30 = vperm.slane %v12847_v49, 2 }
 0x84d   : > { %3647 = vperm.xlu2 %6522, %v3636_v28  }
 0x84f   : > { %v9924_v14 = vpop.permute.xlu2 %3530 }
 0x850   : > { %v9943_v9 = vpop.permute.xlu1 %3589 }
 0x852   : > { %3751 = vperm.xlu1 %6527, %v3740_v19  }
 0x855   : > { %3660 = vperm.xlu2 %6522, %v3649_v22  }
 0x85a   : > { %6529 = vset.pattern.permute.xlu1 %v12835_v42 }
 0x85c   : > { %v9952_v18 = vpop.permute.xlu1 %3608 }
 0x85d   : > { %6524 = vset.pattern.permute.xlu2 %v12835_v42  ;;  %12911 = vst [vmem:[#allocation157_spill] sm:$0xff] %v9952_v18 }
 0x85f   : > { %v9929_v31 = vpop.permute.xlu2 %3550 }
 0x862   : > { %3771 = vperm.xlu1 %6529, %v3766_v25  }
 0x865   : > { %3680 = vperm.xlu2 %6524, %v3675_v16   ;;  %v12909_v16 = vperm.slane %v12847_v49, 3 }
 0x867   : > { %v9934_v28 = vpop.permute.xlu2 %3563 }
 0x868   : > { %12906 = vst [vmem:[#allocation91_spill] sm:$0xff] %v9934_v28  ;;  %v4155_v22 = vmul.f32 %v9934_v28, %v9692_v48 }
 0x86a   : > { %3784 = vperm.xlu1 %6529, %v3779_v30   ;;  %4800 = vperm.xlu0 %6544, %v4155_v22   ;;  %v9957_v22 = vpop.permute.xlu1 %3621 }
 0x86b   : > { %12912 = vst [vmem:[#allocation28_spill] sm:$0xff] %v9957_v22 }
 0x86d   : > { %3693 = vperm.xlu2 %6524, %v12908_v54   ;;  %v4161_v54 = vmul.f32 %v9722_v10, %v9692_v48  ;;  %v12918_v10 = vperm.slane %v12849_v27, 0 }
 0x872   : > { %6531 = vset.pattern.permute.xlu1 %v12843_v15 }
 0x875   : > { %6526 = vset.pattern.permute.xlu2 %v12843_v15 }
 0x877   : > { %v9948_v0 = vpop.permute.xlu2 %3582 }
 0x878   : > { %12910 = vst [vmem:[#allocation121_spill] sm:$0xff] %v9948_v0  ;;  %v4158_v28 = vmul.f32 %v9948_v0, %v9716_v13  ;;  %v9963_v0 = vpop.permute.xlu1 %3641 }
 0x879   : > { %12913 = vst [vmem:[#allocation140_spill] sm:$0xff] %v9963_v0 }
 0x87a   : > { %3803 = vperm.xlu1 %6531, %v12909_v16   ;;  %4809 = vperm.xlu0 %6544, %v4158_v28   ;;  %v4164_v16 = vmul.f32 %v9957_v22, %v9716_v13  ;;  %v3831_v28 = vperm.slane %v12847_v49, 6 }
 0x87d   : > { %3712 = vperm.xlu2 %6526, %v3701_v24   ;;  %v4167_v24 = vmul.f32 %v9963_v0, %v9692_v48 }
 0x87f   : > { %v9965_v18 = vpop.permute.xlu2 %3595 }
 0x880   : > { %12914 = vst [vmem:[#allocation160_spill] sm:$0xff] %v9965_v18  ;;  %v9990_v18 = vpop.permute.xlu0 %3569 }
 0x882   : > { %3816 = vperm.xlu1 %6531, %v3805_v61   ;;  %4818 = vperm.xlu0 %6544, %v4161_v54  }
 0x885   : > { %3725 = vperm.xlu2 %6526, %v3714_v20   ;;  %v3844_v20 = vperm.slane %v12847_v49, 7 }
 0x88a   : > { %6533 = vset.pattern.permute.xlu1 %v12835_v42  ;;  %4827 = vperm.xlu0 %6544, %v4164_v16   ;;  %v12916_v16 = vperm.slane %v12847_v49, 0 }
 0x88d   : > { %6528 = vset.pattern.permute.xlu2 %v12835_v42 }
 0x88f   : > { %v9971_v54 = vpop.permute.xlu2 %3615 }
 0x890   : > { %12915 = vst [vmem:[#allocation162_spill] sm:$0xff] %v9971_v54  ;;  %v3870_v54 = vperm.slane %v12849_v27, 1 }
 0x892   : > { %3836 = vperm.xlu1 %6533, %v3831_v28   ;;  %4836 = vperm.xlu0 %6544, %v4167_v24   ;;  %v9983_v24 = vpop.permute.xlu1 %3654 }
 0x893   : > { %12920 = vst [vmem:[#allocation165_spill] sm:$0xff] %v9983_v24 }
 0x895   : > { %3745 = vperm.xlu2 %6528, %v3740_v19  }
 0x897   : > { %v9975_v22 = vpop.permute.xlu2 %3628 }
 0x898   : > { %12917 = vst [vmem:[#allocation136_spill] sm:$0xff] %v9975_v22 }
 0x89a   : > { %3849 = vperm.xlu1 %6533, %v3844_v20   ;;  %v9992_v22 = vpop.permute.xlu1 %3673 }
 0x89b   : > { %12922 = vst [vmem:[#allocation24_spill] sm:$0xff] %v9992_v22 }
 0x89d   : > { %3758 = vperm.xlu2 %6528, %v12916_v16  }
 0x8a2   : > { %6535 = vset.pattern.permute.xlu1 %v12843_v15  ;;  %v9997_v24 = vpop.permute.xlu1 %3686 }
 0x8a3   : > { %12924 = vst [vmem:[#allocation150_spill] sm:$0xff] %v9997_v24 }
 0x8a5   : > { %6530 = vset.pattern.permute.xlu2 %v12843_v15 }
 0x8a7   : > { %v9981_v0 = vpop.permute.xlu2 %3647 }
 0x8a8   : > { %12919 = vst [vmem:[#allocation164_spill] sm:$0xff] %v9981_v0 }
 0x8aa   : > { %3868 = vperm.xlu1 %6535, %v12918_v10   ;;  %v9995_v10 = vpop.permute.xlu0 %3634 }
 0x8ab   : > { %12923 = vst [vmem:[#allocation144_spill] sm:$0xff] %v9995_v10 }
 0x8ad   : > { %3777 = vperm.xlu2 %6530, %v3766_v25   ;;  %v12126_v25 = vperm.slane %v12849_v27, 3 }
 0x8af   : > { %v9986_v19 = vpop.permute.xlu2 %3660 }
 0x8b0   : > { %12921 = vst [vmem:[#allocation167_spill] sm:$0xff] %v9986_v19  ;;  %v4170_v16 = vmul.f32 %v9986_v19, %v9716_v13 }
 0x8b2   : > { %3881 = vperm.xlu1 %6535, %v3870_v54   ;;  %4845 = vperm.xlu0 %6544, %v4170_v16   ;;  %v3909_v16 = vperm.slane %v12849_v27, 4  ;;  %v10010_v10 = vpop.permute.xlu0 %3699 }
 0x8b3   : > { %12927 = vst [vmem:[#allocation170_spill] sm:$0xff] %v10010_v10  ;;  %v4176_v24 = vmul.f32 %v10010_v10, %v9716_v13  ;;  %v4089_v10 = vmul.f32 %v9658_v5, %v9692_v48  ;;  %v4094_v5 = vmul.f32 %v9694_v40, %v9716_v13 }
 0x8b5   : > { %3790 = vperm.xlu2 %6530, %v3779_v30   ;;  %v10007_v30 = vpop.permute.xlu1 %3706 }
 0x8b6   : > { %12926 = vst [vmem:[#allocation147_spill] sm:$0xff] %v10007_v30 }
 0x8ba   : > { %6537 = vset.pattern.permute.xlu1 %v12835_v42 }
 0x8bd   : > { %6532 = vset.pattern.permute.xlu2 %v12835_v42  ;;  %v10014_v0 = vpop.permute.xlu1 %3719 }
 0x8be   : > { %12928 = vst [vmem:[#allocation173_spill] sm:$0xff] %v10014_v0 }
 0x8bf   : > { %v10003_v19 = vpop.permute.xlu2 %3680 }
 0x8c0   : > { %12925 = vst [vmem:[#allocation64_spill] sm:$0xff] %v10003_v19  ;;  %v4173_v22 = vmul.f32 %v10003_v19, %v9692_v48 }
 0x8c2   : > { %3901 = vperm.xlu1 %6537, %v12126_v25   ;;  %4854 = vperm.xlu0 %6544, %v4173_v22   ;;  %v12929_v25 = vperm.slane %v12847_v49, 5  ;;  %v4179_v22 = vmul.f32 %v10014_v0, %v9692_v48  ;;  %v6560_v49 = vld [vmem:[%s11874_s3 + $0x38] sm:$0xff] }
 0x8c5   : > { %3810 = vperm.xlu2 %6532, %v3805_v61   ;;  %v10021_v19 = vpop.permute.xlu1 %3738  ;;  %v12932_v61 = vperm.slane %v12849_v27, 5 }
 0x8c6   : > { %12930 = vst [vmem:[#allocation127_spill] sm:$0xff] %v10021_v19 }
 0x8c7   : > { %v10023_v30 = vpop.permute.xlu2 %3693 }
 0x8c8   : > { %12931 = vst [vmem:[#allocation20_spill] sm:$0xff] %v10023_v30 }
 0x8ca   : > { %3914 = vperm.xlu1 %6537, %v3909_v16   ;;  %4863 = vperm.xlu0 %6544, %v4176_v24   ;;  %v4182_v24 = vmul.f32 %v10021_v19, %v9716_v13 }
 0x8cd   : > { %3823 = vperm.xlu2 %6532, %v12929_v25   ;;  %v3935_v25 = vperm.slane %v6560_v49, 6 }
 0x8d2   : > { %6540 = vset.pattern.permute.xlu1 %v12843_v15  ;;  %4872 = vperm.xlu0 %6544, %v4179_v22   ;;  %v10035_v22 = vpop.permute.xlu0 %3764 }
 0x8d5   : > { %6534 = vset.pattern.permute.xlu2 %v12843_v15 }
 0x8d7   : > { %v10033_v0 = vpop.permute.xlu2 %3712 }
 0x8d8   : > { %12933 = vst [vmem:[#allocation176_spill] sm:$0xff] %v10033_v0 }
 0x8da   : > { %3933 = vperm.xlu1 %6540, %v12932_v61   ;;  %4881 = vperm.xlu0 %6544, %v4182_v24   ;;  %v10039_v61 = vpop.permute.xlu1 %3751  ;;  %v10044_v24 = vpop.permute.xlu0 %3829 }
 0x8db   : > { %12934 = vst [vmem:[#allocation130_spill] sm:$0xff] %v10039_v61 }
 0x8dc   : > { %12935 = vst [vmem:[#allocation58_spill] sm:$0xff] %v10044_v24 }
 0x8dd   : > { %3842 = vperm.xlu2 %6534, %v3831_v28   ;;  %v4091_v28 = vmul.f32 %v9685_v23, %v9692_v48 }
 0x8df   : > { %v10041_v30 = vpop.permute.xlu2 %3725 }
 0x8e2   : > { %3946 = vperm.xlu1 %6540, %v3935_v25   ;;  %v10049_v49 = vpop.permute.xlu1 %3771  ;;  %v10053_v19 = vpop.permute.xlu0 %3894 }
 0x8e3   : > { %12936 = vst [vmem:[#allocation154_spill] sm:$0xff] %v10049_v49  ;;  %v12940_v49 = vperm.slane %v12849_v27, 2 }
 0x8e4   : > { %12937 = vst [vmem:[#allocation129_spill] sm:$0xff] %v10053_v19 }
 0x8e5   : > { %3855 = vperm.xlu2 %6534, %v3844_v20  }
 0x8ea   : > { %6542 = vset.pattern.permute.xlu1 %v12852_v50  ;;  %v10061_v24 = vpop.permute.xlu1 %3784  ;;  %v10063_v23 = vpop.permute.xlu0 %3959 }
 0x8eb   : > { %4602 = vperm.xlu1 %6542, %v4089_v10   ;;  %12939 = vst [vmem:[#allocation47_spill] sm:$0xff] %v10063_v23 }
 0x8ed   : > { %6536 = vset.pattern.permute.xlu2 %v12835_v42 }
 0x8ef   : > { %v10051_v20 = vpop.permute.xlu2 %3745 }
 0x8f2   : > { %v10071_v40 = vpop.permute.xlu0 %4614 }
 0x8f3   : > { %4608 = vperm.xlu1 %6542, %v4091_v28   ;;  %v10069_v28 = vpop.permute.xlu1 %3803  ;;  %12941 = vst [vmem:[#allocation181_spill] sm:$0xff] %v10071_v40  ;;  %v4102_v40 = vmul.f32 %v9726_v43, %v9716_v13 }
 0x8f5   : > { %3875 = vperm.xlu2 %6536, %v3870_v54   ;;  %v4096_v54 = vmul.f32 %v9778_v53, %v9716_v13 }
 0x8f7   : > { %v10057_v61 = vpop.permute.xlu2 %3758 }
 0x8f8   : > { %12938 = vst [vmem:[#allocation134_spill] sm:$0xff] %v10057_v61  ;;  %v4185_v10 = vmul.f32 %v10057_v61, %v9692_v48 }
 0x8fa   : > { %4890 = vperm.xlu0 %6544, %v4185_v10   ;;  %v10082_v23 = vpop.permute.xlu0 %4629 }
 0x8fb   : > { %4617 = vperm.xlu1 %6542, %v4094_v5   ;;  %v4099_v5 = vmul.f32 %v9713_v41, %v9692_v48  ;;  %12944 = vst [vmem:[#allocation148_spill] sm:$0xff] %v10082_v23 }
 0x8fd   : > { %3888 = vperm.xlu2 %6536, %v12940_v49   ;;  %v10080_v49 = vpop.permute.xlu1 %3816 }
 0x8fe   : > { %12943 = vst [vmem:[#allocation78_spill] sm:$0xff] %v10080_v49  ;;  %v4194_v23 = vmul.f32 %v10080_v49, %v9716_v13  ;;  %v12954_v49 = vperm.slane %v12849_v27, 7 }
 0x903   : > { %4623 = vperm.xlu1 %6542, %v4096_v54   ;;  %v12945_v54 = vperm.slane %v12849_v27, 3 }
 0x905   : > { %6538 = vset.pattern.permute.xlu2 %v12843_v15  ;;  %v4191_v15 = vmul.f32 %v9753_v2, %v9692_v48  ;;  %v10090_v0 = vpop.permute.xlu1 %3836 }
 0x906   : > { %12946 = vst [vmem:[#allocation158_spill] sm:$0xff] %v10090_v0 }
 0x907   : > { %v10076_v61 = vpop.permute.xlu2 %3777 }
 0x908   : > { %12942 = vst [vmem:[#allocation152_spill] sm:$0xff] %v10076_v61  ;;  %v4188_v10 = vmul.f32 %v10076_v61, %v9716_v13 }
 0x90a   : > { %4899 = vperm.xlu0 %6544, %v4188_v10   ;;  %v10094_v10 = vpop.permute.xlu0 %4638 }
 0x90b   : > { %4632 = vperm.xlu1 %6542, %v4099_v5   ;;  %v4105_v5 = vmul.f32 %v9757_v26, %v9692_v48  ;;  %12947 = vst [vmem:[#allocation184_spill] sm:$0xff] %v10094_v10 }
 0x90d   : > { %3907 = vperm.xlu2 %6538, %v12945_v54   ;;  %v10098_v54 = vpop.permute.xlu1 %3849 }
 0x90e   : > { %12948 = vst [vmem:[#allocation22_spill] sm:$0xff] %v10098_v54 }
 0x90f   : > { %v10100_v61 = vpop.permute.xlu2 %3790 }
 0x910   : > { %12949 = vst [vmem:[#allocation155_spill] sm:$0xff] %v10100_v61 }
 0x912   : > { %4908 = vperm.xlu0 %6544, %v4191_v15   ;;  %v4108_v15 = vmul.f32 %v9765_v62, %v9716_v13 }
 0x913   : > { %4641 = vperm.xlu1 %6542, %v4102_v40   ;;  %v10105_v40 = vpop.permute.xlu0 %4647 }
 0x914   : > { %12950 = vst [vmem:[#allocation187_spill] sm:$0xff] %v10105_v40  ;;  %v4114_v40 = vmul.f32 %v9781_v52, %v9716_v13 }
 0x915   : > { %3920 = vperm.xlu2 %6538, %v3909_v16   ;;  %v4197_v16 = vmul.f32 %v10090_v0, %v9692_v48 }
 0x91a   : > { %4917 = vperm.xlu0 %6544, %v4194_v23   ;;  %v4111_v23 = vmul.f32 %v9669_v57, %v9692_v48 }
 0x91b   : > { %4650 = vperm.xlu1 %6542, %v4105_v5  }
 0x91c   : > { %v10109_v10 = vpop.permute.xlu1 %3868 }
 0x91d   : > { %6541 = vset.pattern.permute.xlu2 %v12835_v42  ;;  %12951 = vst [vmem:[#allocation151_spill] sm:$0xff] %v10109_v10  ;;  %v10115_v42 = vpop.permute.xlu0 %4656  ;;  %v4097_v10 = vmul.f32 %v9703_v35, %v9692_v48 }
 0x91e   : > { %12953 = vst [vmem:[#allocation190_spill] sm:$0xff] %v10115_v42 }
 0x91f   : > { %v10111_v5 = vpop.permute.xlu2 %3810 }
 0x920   : > { %12952 = vst [vmem:[#allocation86_spill] sm:$0xff] %v10111_v5 }
 0x922   : > { %4926 = vperm.xlu0 %6544, %v4197_v16  }
 0x923   : > { %4659 = vperm.xlu1 %6542, %v4108_v15  }
 0x924   : > { %v10121_v0 = vpop.permute.xlu1 %3881 }
 0x925   : > { %3940 = vperm.xlu2 %6541, %v3935_v25   ;;  %v10125_v16 = vpop.permute.xlu0 %4665  ;;  %v4090_v25 = vmul.f32 %v9675_v21, %v9716_v13 }
 0x926   : > { %12955 = vst [vmem:[#allocation100_spill] sm:$0xff] %v10125_v16  ;;  %v4120_v16 = vmul.f32 %v9817_v1, %v9716_v13 }
 0x927   : > { %v10123_v15 = vpop.permute.xlu2 %3823 }
 0x92b   : > { %4668 = vperm.xlu1 %6542, %v4111_v23   ;;  %v4117_v23 = vmul.f32 %v9791_v17, %v9692_v48 }
 0x92d   : > { %3953 = vperm.xlu2 %6541, %v12954_v49   ;;  %v10136_v42 = vpop.permute.xlu0 %4674 }
 0x92e   : > { %12956 = vst [vmem:[#allocation163_spill] sm:$0xff] %v10136_v42 }
 0x933   : > { %4677 = vperm.xlu1 %6542, %v4114_v40   ;;  %v4092_v40 = vmul.f32 %v9682_v32, %v9716_v13  ;;  %v4123_v32 = vmul.f32 %v9822_v11, %v9692_v48 }
 0x934   : > { %v10132_v27 = vpop.permute.xlu1 %3901 }
 0x935   : > { %6543 = vset.pattern.permute.xlu2 %v12852_v50  ;;  %v10150_v42 = vpop.permute.xlu0 %4683 }
 0x936   : > { %4605 = vperm.xlu2 %6543, %v4090_v25   ;;  %12959 = vst [vmem:[#allocation175_spill] sm:$0xff] %v10150_v42 }
 0x937   : > { %v10134_v49 = vpop.permute.xlu2 %3842 }
 0x93b   : > { %4686 = vperm.xlu1 %6542, %v4117_v23   ;;  %v4095_v23 = vmul.f32 %v9709_v45, %v9692_v48 }
 0x93c   : > { %v10146_v25 = vpop.permute.xlu1 %3914 }
 0x93d   : > { %12958 = vst [vmem:[#allocation149_spill] sm:$0xff] %v10146_v25 }
 0x93e   : > { %4611 = vperm.xlu2 %6543, %v4092_v40  }
 0x93f   : > { %v10142_v2 = vpop.permute.xlu2 %3855 }
 0x940   : > { %12957 = vst [vmem:[#allocation166_spill] sm:$0xff] %v10142_v2  ;;  %v4200_v50 = vmul.f32 %v10142_v2, %v9716_v13  ;;  %v10160_v2 = vpop.permute.xlu0 %4692 }
 0x941   : > { %12961 = vst [vmem:[#allocation153_spill] sm:$0xff] %v10160_v2  ;;  %v4206_v2 = vmul.f32 %v10053_v19, %v9716_v13 }
 0x942   : > { %4935 = vperm.xlu0 %6544, %v4200_v50  }
 0x943   : > { %4695 = vperm.xlu1 %6542, %v4120_v16   ;;  %v4126_v16 = vmul.f32 %v9885_v39, %v9716_v13 }
 0x946   : > { %4620 = vperm.xlu2 %6543, %v4095_v23   ;;  %v4129_v23 = vmul.f32 %v9836_v56, %v9692_v48 }
 0x94b   : > { %4704 = vperm.xlu1 %6542, %v4123_v32   ;;  %v4100_v32 = vmul.f32 %v9745_v34, %v9716_v13 }
 0x94c   : > { %v10154_v40 = vpop.permute.xlu1 %3933 }
 0x94d   : > { %12960 = vst [vmem:[#allocation177_spill] sm:$0xff] %v10154_v40 }
 0x94e   : > { %4626 = vperm.xlu2 %6543, %v4097_v10   ;;  %v10174_v10 = vpop.permute.xlu0 %4701 }
 0x94f   : > { %v10162_v50 = vpop.permute.xlu2 %3875  ;;  %12964 = vst [vmem:[#allocation87_spill] sm:$0xff] %v10174_v10 }
 0x950   : > { %12962 = vst [vmem:[#allocation159_spill] sm:$0xff] %v10162_v50  ;;  %v4203_v42 = vmul.f32 %v10162_v50, %v9692_v48 }
 0x952   : > { %4944 = vperm.xlu0 %6544, %v4203_v42   ;;  %v4132_v42 = vmul.f32 %v9845_v3, %v9716_v13 }
 0x953   : > { %4713 = vperm.xlu1 %6542, %v4126_v16   ;;  %v4103_v16 = vmul.f32 %v9751_v60, %v9692_v48 }
 0x954   : > { %v10166_v45 = vpop.permute.xlu1 %3946 }
 0x955   : > { %12963 = vst [vmem:[#allocation183_spill] sm:$0xff] %v10166_v45 }
 0x956   : > { %4635 = vperm.xlu2 %6543, %v4100_v32   ;;  %v10182_v50 = vpop.permute.xlu0 %4710  ;;  %v4209_v32 = vmul.f32 %v10146_v25, %v9692_v48 }
 0x957   : > { %12966 = vst [vmem:[#allocation108_spill] sm:$0xff] %v10182_v50 }
 0x95a   : > { %4953 = vperm.xlu0 %6544, %v4206_v2   ;;  %v10190_v2 = vpop.permute.xlu2 %3888 }
 0x95b   : > { %4722 = vperm.xlu1 %6542, %v4129_v23   ;;  %v4106_v23 = vmul.f32 %v9784_v55, %v9716_v13  ;;  %12968 = vst [vmem:[#allocation102_spill] sm:$0xff] %v10190_v2 }
 0x95d   : > { %v10176_v54 = vpop.permute.xlu1 %4602 }
 0x95e   : > { %12965 = vst [vmem:[#allocation168_spill] sm:$0xff] %v10176_v54  ;;  %4644 = vperm.xlu2 %6543, %v4103_v16   ;;  %v4135_v54 = vmul.f32 %v9868_v7, %v9692_v48  ;;  %v10194_v10 = vpop.permute.xlu0 %4719  ;;  %v4212_v16 = vmul.f32 %v10154_v40, %v9716_v13 }
 0x95f   : > { %12969 = vst [vmem:[#allocation156_spill] sm:$0xff] %v10194_v10 }
 0x962   : > { %4962 = vperm.xlu0 %6544, %v4209_v32  }
 0x963   : > { %4731 = vperm.xlu1 %6542, %v4132_v42   ;;  %v4109_v42 = vmul.f32 %v9767_v38, %v9692_v48 }
 0x965   : > { %v10186_v19 = vpop.permute.xlu1 %4608 }
 0x966   : > { %12967 = vst [vmem:[#allocation169_spill] sm:$0xff] %v10186_v19  ;;  %4653 = vperm.xlu2 %6543, %v4106_v23   ;;  %v4138_v19 = vmul.f32 %v9874_v12, %v9716_v13  ;;  %v10206_v23 = vpop.permute.xlu0 %4728 }
 0x967   : > { %v10202_v32 = vpop.permute.xlu2 %3907  ;;  %12972 = vst [vmem:[#allocation178_spill] sm:$0xff] %v10206_v23 }
 0x968   : > { %12971 = vst [vmem:[#allocation104_spill] sm:$0xff] %v10202_v32 }
 0x96a   : > { %4971 = vperm.xlu0 %6544, %v4212_v16   ;;  %v4141_v16 = vmul.f32 %v9701_v29, %v9692_v48 }
 0x96b   : > { %4740 = vperm.xlu1 %6542, %v4135_v54   ;;  %v4112_v54 = vmul.f32 %v9776_v58, %v9716_v13 }
 0x96d   : > { %v10198_v25 = vpop.permute.xlu1 %4617 }
 0x96e   : > { %12970 = vst [vmem:[#allocation96_spill] sm:$0xff] %v10198_v25  ;;  %4662 = vperm.xlu2 %6543, %v4109_v42   ;;  %v4115_v42 = vmul.f32 %v9807_v63, %v9692_v48 }
 0x96f   : > { %v10214_v40 = vpop.permute.xlu2 %3920 }
 0x973   : > { %4749 = vperm.xlu1 %6542, %v4138_v19   ;;  %v10220_v19 = vpop.permute.xlu0 %4737 }
 0x974   : > { %12975 = vst [vmem:[#allocation189_spill] sm:$0xff] %v10220_v19  ;;  %v3108_v19 = vadd.f32 %v9680_v4, %v9673_v36 }
 0x975   : > { %v10208_v50 = vpop.permute.xlu1 %4623 }
 0x976   : > { %12973 = vst [vmem:[#allocation171_spill] sm:$0xff] %v10208_v50  ;;  %4671 = vperm.xlu2 %6543, %v4112_v54   ;;  %v4144_v50 = vmul.f32 %v9888_v6, %v9716_v13  ;;  %v4118_v54 = vmul.f32 %v9815_v46, %v9716_v13  ;;  %v10244_v46 = vmax.f32 %v3108_v19, 0.0  ;;  %v4124_v19 = vmul.f32 %v9824_v51, %v9716_v13 }
 0x978   : > { %v4218_v36 = vmul.f32 %v9675_v21, %v10244_v46 }
 0x97b   : > { %4758 = vperm.xlu1 %6542, %v4141_v16   ;;  %v4147_v16 = vmul.f32 %v9898_v59, %v9692_v48 }
 0x97d   : > { %v10216_v25 = vpop.permute.xlu1 %4632 }
 0x97e   : > { %12974 = vst [vmem:[#allocation186_spill] sm:$0xff] %v10216_v25  ;;  %4680 = vperm.xlu2 %6543, %v4115_v42   ;;  %v10232_v25 = vpop.permute.xlu0 %4746 }
 0x97f   : > { %v10224_v23 = vpop.permute.xlu2 %3940  ;;  %12977 = vst [vmem:[#allocation197_spill] sm:$0xff] %v10232_v25 }
 0x983   : > { %4767 = vperm.xlu1 %6542, %v4144_v50  }
 0x985   : > { %v10226_v10 = vpop.permute.xlu1 %4641 }
 0x986   : > { %12976 = vst [vmem:[#allocation179_spill] sm:$0xff] %v10226_v10  ;;  %4689 = vperm.xlu2 %6543, %v4118_v54   ;;  %v4121_v10 = vmul.f32 %v9678_v33, %v9692_v48  ;;  %v4150_v54 = vmul.f32 %v9924_v14, %v9716_v13  ;;  %v10248_v25 = vpop.permute.xlu0 %4755 }
 0x987   : > { %v10234_v63 = vpop.permute.xlu2 %3953  ;;  %12980 = vst [vmem:[#allocation192_spill] sm:$0xff] %v10248_v25 }
 0x988   : > { %12978 = vst [vmem:[#allocation195_spill] sm:$0xff] %v10234_v63  ;;  %v4215_v42 = vmul.f32 %v10234_v63, %v9692_v48 }
 0x98a   : > { %4980 = vperm.xlu0 %6544, %v4215_v42  }
 0x98b   : > { %4776 = vperm.xlu1 %6542, %v4147_v16   ;;  %v3107_v16 = vadd.f32 %v9666_v47, %v9654_v44  ;;  %v4127_v47 = vmul.f32 %v9831_v37, %v9692_v48 }
 0x98d   : > { %v10240_v50 = vpop.permute.xlu1 %4650 }
 0x98e   : > { %12979 = vst [vmem:[#allocation191_spill] sm:$0xff] %v10240_v50  ;;  %4698 = vperm.xlu2 %6543, %v4121_v10   ;;  %v10260_v50 = vmax.f32 %v3107_v16, 0.0  ;;  %v4153_v10 = vmul.f32 %v9929_v31, %v9692_v48  ;;  %v10264_v63 = vpop.permute.xlu0 %4764  ;;  %v4224_v16 = vmul.f32 %v9778_v53, %v10244_v46 }
 0x98f   : > { %12983 = vst [vmem:[#allocation185_spill] sm:$0xff] %v10264_v63 }
 0x990   : > { %v10252_v4 = vpop.permute.xlu2 %4605  ;;  %v4221_v21 = vmul.f32 %v9696_v8, %v10260_v50 }
 0x991   : > { %12981 = vst [vmem:[#allocation31_spill] sm:$0xff] %v10252_v4 }
 0x992   : > { %4989 = vperm.xlu0 %6544, %v4218_v36   ;;  %v4156_v36 = vmul.f32 %v9990_v18, %v9716_v13 }
 0x993   : > { %4785 = vperm.xlu1 %6542, %v4150_v54  }
 0x995   : > { %v10256_v42 = vpop.permute.xlu1 %4659 }
 0x996   : > { %12982 = vst [vmem:[#allocation174_spill] sm:$0xff] %v10256_v42  ;;  %4707 = vperm.xlu2 %6543, %v4124_v19   ;;  %v10278_v19 = vpop.permute.xlu0 %4773 }
 0x997   : > { %12986 = vst [vmem:[#allocation182_spill] sm:$0xff] %v10278_v19 }
 0x998   : > { %v10268_v54 = vpop.permute.xlu2 %4611 }
 0x999   : > { %12984 = vst [vmem:[#allocation35_spill] sm:$0xff] %v10268_v54 }
 0x99a   : > { %4998 = vperm.xlu0 %6544, %v4221_v21  }
 0x99b   : > { %4794 = vperm.xlu1 %6542, %v4153_v10   ;;  %v12989_v10 = vld [vmem:[#allocation26_spill] sm:$0xff] }
 0x99c   : > { %v4130_v21 = vmul.f32 %v12989_v10, %v9716_v13 }
 0x99d   : > { %v10270_v44 = vpop.permute.xlu1 %4668 }
 0x99e   : > { %12985 = vst [vmem:[#allocation180_spill] sm:$0xff] %v10270_v44  ;;  %4716 = vperm.xlu2 %6543, %v4127_v47   ;;  %v4159_v44 = vmul.f32 %v9943_v9, %v9692_v48  ;;  %v4227_v47 = vmul.f32 %v9713_v41, %v10260_v50  ;;  %v10292_v53 = vpop.permute.xlu0 %4782 }
 0x99f   : > { %12991 = vst [vmem:[#allocation198_spill] sm:$0xff] %v10292_v53  ;;  %v12999_v53 = vld [vmem:[#allocation136_spill] sm:$0xff] }
 0x9a0   : > { %v10280_v42 = vpop.permute.xlu2 %4620 }
 0x9a1   : > { %12987 = vst [vmem:[#allocation43_spill] sm:$0xff] %v10280_v42 }
 0x9a2   : > { %5007 = vperm.xlu0 %6544, %v4224_v16  }
 0x9a3   : > { %4803 = vperm.xlu1 %6542, %v4156_v36   ;;  %v12993_v36 = vld [vmem:[#allocation142_spill] sm:$0xff] }
 0x9a4   : > { %v4133_v16 = vmul.f32 %v12993_v36, %v9692_v48 }
 0x9a5   : > { %v10282_v8 = vpop.permute.xlu1 %4677 }
 0x9a6   : > { %12988 = vst [vmem:[#allocation49_spill] sm:$0xff] %v10282_v8  ;;  %4725 = vperm.xlu2 %6543, %v4130_v21   ;;  %v12994_v8 = vld [vmem:[#allocation157_spill] sm:$0xff]  ;;  %v4230_v21 = vmul.f32 %v9726_v43, %v10244_v46 }
 0x9a7   : > { %v4162_v25 = vmul.f32 %v12994_v8, %v9716_v13 }
 0x9a8   : > { %v10290_v63 = vpop.permute.xlu2 %4626 }
 0x9a9   : > { %12990 = vst [vmem:[#allocation48_spill] sm:$0xff] %v10290_v63  ;;  %v4165_v63 = vmul.f32 %v12999_v53, %v9692_v48 }
 0x9aa   : > { %5016 = vperm.xlu0 %6544, %v4227_v47   ;;  %v10308_v47 = vpop.permute.xlu0 %4791 }
 0x9ab   : > { %4812 = vperm.xlu1 %6542, %v4159_v44   ;;  %v12997_v44 = vld [vmem:[#allocation125_spill] sm:$0xff]  ;;  %12998 = vst [vmem:[#allocation193_spill] sm:$0xff] %v10308_v47  ;;  %v13004_v47 = vld [vmem:[#allocation164_spill] sm:$0xff] }
 0x9ad   : > { %v10294_v19 = vpop.permute.xlu1 %4686 }
 0x9ae   : > { %12992 = vst [vmem:[#allocation39_spill] sm:$0xff] %v10294_v19  ;;  %4734 = vperm.xlu2 %6543, %v4133_v16   ;;  %v4136_v19 = vmul.f32 %v12997_v44, %v9716_v13  ;;  %v4233_v16 = vmul.f32 %v9757_v26, %v10260_v50 }
 0x9b0   : > { %v10302_v42 = vpop.permute.xlu2 %4635 }
 0x9b1   : > { %12995 = vst [vmem:[#allocation56_spill] sm:$0xff] %v10302_v42  ;;  %v4168_v42 = vmul.f32 %v13004_v47, %v9716_v13 }
 0x9b2   : > { %5025 = vperm.xlu0 %6544, %v4230_v21  }
 0x9b3   : > { %4821 = vperm.xlu1 %6542, %v4162_v25   ;;  %v13002_v25 = vld [vmem:[#allocation145_spill] sm:$0xff] }
 0x9b4   : > { %v4139_v21 = vmul.f32 %v13002_v25, %v9692_v48 }
 0x9b5   : > { %v10304_v41 = vpop.permute.xlu1 %4695 }
 0x9b6   : > { %12996 = vst [vmem:[#allocation188_spill] sm:$0xff] %v10304_v41  ;;  %4743 = vperm.xlu2 %6543, %v4136_v19   ;;  %v10320_v41 = vpop.permute.xlu0 %4800  ;;  %v4236_v19 = vmul.f32 %v9765_v62, %v10244_v46 }
 0x9b7   : > { %13003 = vst [vmem:[#allocation36_spill] sm:$0xff] %v10320_v41  ;;  %v13009_v41 = vld [vmem:[#allocation113_spill] sm:$0xff] }
 0x9b8   : > { %v10314_v4 = vpop.permute.xlu2 %4644 }
 0x9b9   : > { %13000 = vst [vmem:[#allocation44_spill] sm:$0xff] %v10314_v4 }
 0x9ba   : > { %5034 = vperm.xlu0 %6544, %v4233_v16  }
 0x9bb   : > { %4830 = vperm.xlu1 %6542, %v4165_v63   ;;  %v13007_v63 = vld [vmem:[#allocation37_spill] sm:$0xff] }
 0x9bc   : > { %v4142_v16 = vmul.f32 %v13007_v63, %v9716_v13 }
 0x9bd   : > { %v10316_v43 = vpop.permute.xlu1 %4704 }
 0x9be   : > { %13001 = vst [vmem:[#allocation194_spill] sm:$0xff] %v10316_v43  ;;  %4752 = vperm.xlu2 %6543, %v4139_v21   ;;  %v10332_v4 = vpop.permute.xlu0 %4809  ;;  %v4171_v43 = vmul.f32 %v13009_v41, %v9692_v48  ;;  %v4239_v21 = vmul.f32 %v9669_v57, %v10260_v50 }
 0x9bf   : > { %13008 = vst [vmem:[#allocation50_spill] sm:$0xff] %v10332_v4 }
 0x9c0   : > { %v10326_v54 = vpop.permute.xlu2 %4653 }
 0x9c1   : > { %13005 = vst [vmem:[#allocation38_spill] sm:$0xff] %v10326_v54  ;;  %v13013_v54 = vld [vmem:[#allocation150_spill] sm:$0xff] }
 0x9c2   : > { %5043 = vperm.xlu0 %6544, %v4236_v19  }
 0x9c3   : > { %4839 = vperm.xlu1 %6542, %v4168_v42   ;;  %v13012_v42 = vld [vmem:[#allocation63_spill] sm:$0xff] }
 0x9c4   : > { %v4145_v19 = vmul.f32 %v13012_v42, %v9692_v48 }
 0x9c5   : > { %v10328_v26 = vpop.permute.xlu1 %4713 }
 0x9c6   : > { %13006 = vst [vmem:[#allocation29_spill] sm:$0xff] %v10328_v26  ;;  %4761 = vperm.xlu2 %6543, %v4142_v16   ;;  %v4174_v26 = vmul.f32 %v13013_v54, %v9716_v13  ;;  %v10346_v4 = vpop.permute.xlu0 %4818  ;;  %v4242_v16 = vmul.f32 %v9781_v52, %v10244_v46 }
 0x9c7   : > { %13014 = vst [vmem:[#allocation34_spill] sm:$0xff] %v10346_v4  ;;  %v4245_v4 = vmul.f32 %v9791_v17, %v10260_v50 }
 0x9c8   : > { %v10338_v25 = vpop.permute.xlu2 %4662 }
 0x9c9   : > { %13010 = vst [vmem:[#allocation42_spill] sm:$0xff] %v10338_v25  ;;  %v13018_v25 = vld [vmem:[#allocation147_spill] sm:$0xff] }
 0x9ca   : > { %5052 = vperm.xlu0 %6544, %v4239_v21  }
 0x9cb   : > { %4848 = vperm.xlu1 %6542, %v4171_v43   ;;  %v13017_v43 = vld [vmem:[#allocation146_spill] sm:$0xff] }
 0x9cc   : > { %v4148_v21 = vmul.f32 %v13017_v43, %v9716_v13 }
 0x9cd   : > { %v10340_v62 = vpop.permute.xlu1 %4722 }
 0x9ce   : > { %13011 = vst [vmem:[#allocation54_spill] sm:$0xff] %v10340_v62  ;;  %4770 = vperm.xlu2 %6543, %v4145_v19   ;;  %v4177_v62 = vmul.f32 %v13018_v25, %v9692_v48  ;;  %v10360_v19 = vpop.permute.xlu0 %4827 }
 0x9cf   : > { %13019 = vst [vmem:[#allocation18_spill] sm:$0xff] %v10360_v19 }
 0x9d0   : > { %v10350_v63 = vpop.permute.xlu2 %4671 }
 0x9d1   : > { %13015 = vst [vmem:[#allocation41_spill] sm:$0xff] %v10350_v63  ;;  %v4180_v63 = vmul.f32 %v10041_v30, %v9716_v13 }
 0x9d2   : > { %5061 = vperm.xlu0 %6544, %v4242_v16  }
 0x9d3   : > { %4857 = vperm.xlu1 %6542, %v4174_v26   ;;  %v13022_v26 = vld [vmem:[#allocation123_spill] sm:$0xff] }
 0x9d4   : > { %v4151_v16 = vmul.f32 %v13022_v26, %v9692_v48 }
 0x9d5   : > { %v10352_v57 = vpop.permute.xlu1 %4731 }
 0x9d6   : > { %13016 = vst [vmem:[#allocation196_spill] sm:$0xff] %v10352_v57  ;;  %4779 = vperm.xlu2 %6543, %v4148_v21   ;;  %v4248_v21 = vmul.f32 %v9817_v1, %v10244_v46  ;;  %v10374_v17 = vpop.permute.xlu0 %4836 }
 0x9d7   : > { %13024 = vst [vmem:[#allocation172_spill] sm:$0xff] %v10374_v17 }
 0x9d8   : > { %v10362_v42 = vpop.permute.xlu2 %4680 }
 0x9d9   : > { %13020 = vst [vmem:[#allocation23_spill] sm:$0xff] %v10362_v42  ;;  %v4183_v42 = vmul.f32 %v10051_v20, %v9692_v48 }
 0x9da   : > { %5070 = vperm.xlu0 %6544, %v4245_v4   ;;  %v13026_v4 = vld [vmem:[#allocation81_spill] sm:$0xff] }
 0x9db   : > { %4866 = vperm.xlu1 %6542, %v4177_v62   ;;  %v4154_v62 = vmul.f32 %v13026_v4, %v9716_v13 }
 0x9dd   : > { %v10364_v52 = vpop.permute.xlu1 %4740 }
 0x9de   : > { %13021 = vst [vmem:[#allocation33_spill] sm:$0xff] %v10364_v52  ;;  %4788 = vperm.xlu2 %6543, %v4151_v16   ;;  %v4251_v16 = vmul.f32 %v9822_v11, %v10260_v50  ;;  %v10386_v1 = vpop.permute.xlu0 %4845 }
 0x9df   : > { %13028 = vst [vmem:[#allocation161_spill] sm:$0xff] %v10386_v1  ;;  %v4189_v1 = vmul.f32 %v10061_v24, %v9692_v48 }
 0x9e0   : > { %v10372_v57 = vpop.permute.xlu2 %4689 }
 0x9e1   : > { %13023 = vst [vmem:[#allocation53_spill] sm:$0xff] %v10372_v57  ;;  %v4186_v57 = vmul.f32 %v10035_v22, %v9716_v13 }
 0x9e2   : > { %5079 = vperm.xlu0 %6544, %v4248_v21   ;;  %v13030_v21 = vld [vmem:[#allocation93_spill] sm:$0xff] }
 0x9e3   : > { %4875 = vperm.xlu1 %6542, %v4180_v63   ;;  %v4157_v17 = vmul.f32 %v13030_v21, %v9692_v48 }
 0x9e5   : > { %v10376_v19 = vpop.permute.xlu1 %4749 }
 0x9e6   : > { %13025 = vst [vmem:[#allocation46_spill] sm:$0xff] %v10376_v19  ;;  %4797 = vperm.xlu2 %6543, %v4154_v62   ;;  %v4254_v62 = vmul.f32 %v9885_v39, %v10244_v46  ;;  %v10398_v11 = vpop.permute.xlu0 %4854 }
 0x9e7   : > { %13031 = vst [vmem:[#allocation88_spill] sm:$0xff] %v10398_v11  ;;  %v4192_v11 = vmul.f32 %v10069_v28, %v9716_v13 }
 0x9e8   : > { %v10384_v52 = vpop.permute.xlu2 %4698 }
 0x9e9   : > { %13027 = vst [vmem:[#allocation51_spill] sm:$0xff] %v10384_v52 }
 0x9ea   : > { %5088 = vperm.xlu0 %6544, %v4251_v16   ;;  %v13033_v16 = vld [vmem:[#allocation160_spill] sm:$0xff] }
 0x9eb   : > { %4884 = vperm.xlu1 %6542, %v4183_v42  }
 0x9ed   : > { %v10388_v63 = vpop.permute.xlu1 %4758 }
 0x9ee   : > { %13029 = vst [vmem:[#allocation27_spill] sm:$0xff] %v10388_v63  ;;  %4806 = vperm.xlu2 %6543, %v4157_v17   ;;  %v4160_v63 = vmul.f32 %v13033_v16, %v9716_v13  ;;  %v4257_v17 = vmul.f32 %v9836_v56, %v10260_v50 }
 0x9f0   : > { %v10396_v19 = vpop.permute.xlu2 %4707 }
 0x9f2   : > { %5097 = vperm.xlu0 %6544, %v4254_v62   ;;  %v10414_v62 = vpop.permute.xlu0 %4863 }
 0x9f3   : > { %4893 = vperm.xlu1 %6542, %v4186_v57   ;;  %v13035_v57 = vld [vmem:[#allocation162_spill] sm:$0xff]  ;;  %13036 = vst [vmem:[#allocation32_spill] sm:$0xff] %v10414_v62 }
 0x9f5   : > { %v10400_v42 = vpop.permute.xlu1 %4767 }
 0x9f6   : > { %13032 = vst [vmem:[#allocation101_spill] sm:$0xff] %v10400_v42  ;;  %4815 = vperm.xlu2 %6543, %v4160_v63   ;;  %v4163_v42 = vmul.f32 %v13035_v57, %v9692_v48  ;;  %v4260_v63 = vmul.f32 %v9845_v3, %v10244_v46 }
 0x9f8   : > { %v10408_v52 = vpop.permute.xlu2 %4716 }
 0x9fa   : > { %5106 = vperm.xlu0 %6544, %v4257_v17   ;;  %v10428_v62 = vpop.permute.xlu0 %4872 }
 0x9fb   : > { %4902 = vperm.xlu1 %6542, %v4189_v1   ;;  %v13038_v1 = vld [vmem:[#allocation144_spill] sm:$0xff]  ;;  %13039 = vst [vmem:[#allocation82_spill] sm:$0xff] %v10428_v62  ;;  %v4266_v62 = vmul.f32 %v9874_v12, %v10244_v46 }
 0x9fc   : > { %v4166_v17 = vmul.f32 %v13038_v1, %v9716_v13 }
 0x9fd   : > { %v10410_v39 = vpop.permute.xlu1 %4776 }
 0x9fe   : > { %13034 = vst [vmem:[#allocation75_spill] sm:$0xff] %v10410_v39  ;;  %4824 = vperm.xlu2 %6543, %v4163_v42   ;;  %v4195_v39 = vmul.f32 %v10123_v15, %v9692_v48  ;;  %v4263_v42 = vmul.f32 %v9868_v7, %v10260_v50 }
 0xa00   : > { %v10420_v16 = vpop.permute.xlu2 %4725 }
 0xa02   : > { %5115 = vperm.xlu0 %6544, %v4260_v63  }
 0xa03   : > { %4911 = vperm.xlu1 %6542, %v4192_v11   ;;  %v13042_v11 = vld [vmem:[#allocation165_spill] sm:$0xff] }
 0xa04   : > { %v4169_v63 = vmul.f32 %v13042_v11, %v9692_v48 }
 0xa05   : > { %v10422_v56 = vpop.permute.xlu1 %4785 }
 0xa06   : > { %13037 = vst [vmem:[#allocation76_spill] sm:$0xff] %v10422_v56  ;;  %4833 = vperm.xlu2 %6543, %v4166_v17   ;;  %v4198_v56 = vmul.f32 %v10134_v49, %v9716_v13  ;;  %v10442_v17 = vpop.permute.xlu0 %4881 }
 0xa07   : > { %13043 = vst [vmem:[#allocation95_spill] sm:$0xff] %v10442_v17 }
 0xa08   : > { %v10432_v57 = vpop.permute.xlu2 %4734 }
 0xa09   : > { %13040 = vst [vmem:[#allocation45_spill] sm:$0xff] %v10432_v57 }
 0xa0a   : > { %5124 = vperm.xlu0 %6544, %v4263_v42  }
 0xa0b   : > { %4920 = vperm.xlu1 %6542, %v4195_v39   ;;  %v13045_v39 = vld [vmem:[#allocation24_spill] sm:$0xff] }
 0xa0c   : > { %v4172_v42 = vmul.f32 %v13045_v39, %v9716_v13 }
 0xa0d   : > { %v10434_v3 = vpop.permute.xlu1 %4794 }
 0xa0e   : > { %13041 = vst [vmem:[#allocation89_spill] sm:$0xff] %v10434_v3  ;;  %4842 = vperm.xlu2 %6543, %v4169_v63   ;;  %v13046_v3 = vld [vmem:[#allocation119_spill] sm:$0xff]  ;;  %v4269_v63 = vmul.f32 %v9701_v29, %v10260_v50  ;;  %v10454_v57 = vpop.permute.xlu0 %4890 }
 0xa0f   : > { %v4201_v11 = vmul.f32 %v13046_v3, %v9692_v48  ;;  %13047 = vst [vmem:[#allocation97_spill] sm:$0xff] %v10454_v57 }
 0xa10   : > { %v10444_v1 = vpop.permute.xlu2 %4743 }
 0xa12   : > { %5133 = vperm.xlu0 %6544, %v4266_v62   ;;  %v13050_v62 = vld [vmem:[#allocation20_spill] sm:$0xff] }
 0xa13   : > { %4929 = vperm.xlu1 %6542, %v4198_v56   ;;  %v4175_v56 = vmul.f32 %v13050_v62, %v9692_v48 }
 0xa15   : > { %v10446_v7 = vpop.permute.xlu1 %4803 }
 0xa16   : > { %13044 = vst [vmem:[#allocation99_spill] sm:$0xff] %v10446_v7  ;;  %4851 = vperm.xlu2 %6543, %v4172_v42   ;;  %v4204_v7 = vmul.f32 %v10121_v0, %v9716_v13  ;;  %v4272_v42 = vmul.f32 %v9888_v6, %v10244_v46  ;;  %v10466_v39 = vpop.permute.xlu0 %4899 }
 0xa17   : > { %13051 = vst [vmem:[#allocation83_spill] sm:$0xff] %v10466_v39 }
 0xa18   : > { %v10456_v12 = vpop.permute.xlu2 %4752 }
 0xa19   : > { %13048 = vst [vmem:[#allocation21_spill] sm:$0xff] %v10456_v12 }
 0xa1a   : > { %5142 = vperm.xlu0 %6544, %v4269_v63  }
 0xa1b   : > { %4938 = vperm.xlu1 %6542, %v4201_v11   ;;  %v13054_v11 = vld [vmem:[#allocation176_spill] sm:$0xff] }
 0xa1c   : > { %v4178_v63 = vmul.f32 %v13054_v11, %v9716_v13 }
 0xa1d   : > { %v10458_v17 = vpop.permute.xlu1 %4812 }
 0xa1e   : > { %13049 = vst [vmem:[#allocation106_spill] sm:$0xff] %v10458_v17  ;;  %4860 = vperm.xlu2 %6543, %v4175_v56   ;;  %v4207_v17 = vmul.f32 %v10132_v27, %v9692_v48  ;;  %v4275_v56 = vmul.f32 %v9898_v59, %v10260_v50  ;;  %v10480_v6 = vpop.permute.xlu0 %4908 }
 0xa1f   : > { %13056 = vst [vmem:[#allocation92_spill] sm:$0xff] %v10480_v6  ;;  %v4213_v6 = vmul.f32 %v10224_v23, %v9692_v48 }
 0xa20   : > { %v10468_v29 = vpop.permute.xlu2 %4761 }
 0xa21   : > { %13052 = vst [vmem:[#allocation61_spill] sm:$0xff] %v10468_v29 }
 0xa22   : > { %5151 = vperm.xlu0 %6544, %v4272_v42  }
 0xa23   : > { %4947 = vperm.xlu1 %6542, %v4204_v7   ;;  %v13058_v7 = vld [vmem:[#allocation117_spill] sm:$0xff] }
 0xa24   : > { %v4181_v42 = vmul.f32 %v13058_v7, %v9692_v48 }
 0xa25   : > { %v10470_v57 = vpop.permute.xlu1 %4821 }
 0xa26   : > { %13053 = vst [vmem:[#allocation60_spill] sm:$0xff] %v10470_v57  ;;  %4869 = vperm.xlu2 %6543, %v4178_v63   ;;  %v4210_v57 = vmul.f32 %v10214_v40, %v9716_v13  ;;  %v4278_v63 = vmul.f32 %v9924_v14, %v10244_v46 }
 0xa28   : > { %v10478_v12 = vpop.permute.xlu2 %4770 }
 0xa29   : > { %13055 = vst [vmem:[#allocation73_spill] sm:$0xff] %v10478_v12 }
 0xa2a   : > { %5160 = vperm.xlu0 %6544, %v4275_v56   ;;  %v10496_v56 = vpop.permute.xlu0 %4917 }
 0xa2b   : > { %4956 = vperm.xlu1 %6542, %v4207_v17   ;;  %v13061_v17 = vld [vmem:[#allocation130_spill] sm:$0xff]  ;;  %13062 = vst [vmem:[#allocation107_spill] sm:$0xff] %v10496_v56 }
 0xa2d   : > { %v10482_v39 = vpop.permute.xlu1 %4830 }
 0xa2e   : > { %13057 = vst [vmem:[#allocation68_spill] sm:$0xff] %v10482_v39  ;;  %4878 = vperm.xlu2 %6543, %v4181_v42   ;;  %v4184_v39 = vmul.f32 %v13061_v17, %v9716_v13  ;;  %v4281_v42 = vmul.f32 %v9929_v31, %v10260_v50 }
 0xa30   : > { %v10490_v29 = vpop.permute.xlu2 %4779 }
 0xa31   : > { %13059 = vst [vmem:[#allocation67_spill] sm:$0xff] %v10490_v29 }
 0xa32   : > { %5169 = vperm.xlu0 %6544, %v4278_v63   ;;  %v10510_v56 = vpop.permute.xlu0 %4926 }
 0xa33   : > { %4965 = vperm.xlu1 %6542, %v4210_v57   ;;  %v13064_v57 = vld [vmem:[#allocation154_spill] sm:$0xff]  ;;  %13066 = vst [vmem:[#allocation98_spill] sm:$0xff] %v10510_v56 }
 0xa34   : > { %v4187_v63 = vmul.f32 %v13064_v57, %v9692_v48 }
 0xa35   : > { %v10492_v59 = vpop.permute.xlu1 %4839 }
 0xa36   : > { %13060 = vst [vmem:[#allocation105_spill] sm:$0xff] %v10492_v59  ;;  %4887 = vperm.xlu2 %6543, %v4184_v39   ;;  %v13065_v59 = vld [vmem:[#allocation47_spill] sm:$0xff]  ;;  %v4284_v39 = vmul.f32 %v9990_v18, %v10244_v46 }
 0xa37   : > { %v4216_v29 = vmul.f32 %v13065_v59, %v9716_v13 }
 0xa38   : > { %v10502_v12 = vpop.permute.xlu2 %4788 }
 0xa39   : > { %13063 = vst [vmem:[#allocation57_spill] sm:$0xff] %v10502_v12 }
 0xa3a   : > { %5178 = vperm.xlu0 %6544, %v4281_v42   ;;  %v13068_v42 = vld [vmem:[#allocation114_spill] sm:$0xff]  ;;  %v10522_v57 = vpop.permute.xlu0 %4935 }
 0xa3b   : > { %4974 = vperm.xlu1 %6542, %v4213_v6   ;;  %v4190_v6 = vmul.f32 %v10100_v61, %v9716_v13  ;;  %v4219_v12 = vmul.f32 %v13068_v42, %v10260_v50  ;;  %13069 = vst [vmem:[#allocation77_spill] sm:$0xff] %v10522_v57 }
 0xa3d   : > { %v10504_v14 = vpop.permute.xlu1 %4848 }
 0xa3e   : > { %4896 = vperm.xlu2 %6543, %v4187_v63   ;;  %v4287_v63 = vmul.f32 %v9943_v9, %v10260_v50 }
 0xa40   : > { %v10514_v17 = vpop.permute.xlu2 %4797 }
 0xa41   : > { %13067 = vst [vmem:[#allocation65_spill] sm:$0xff] %v10514_v17 }
 0xa42   : > { %5187 = vperm.xlu0 %6544, %v4284_v39   ;;  %v13071_v39 = vld [vmem:[#allocation135_spill] sm:$0xff]  ;;  %v10534_v61 = vpop.permute.xlu0 %4944 }
 0xa43   : > { %4983 = vperm.xlu1 %6542, %v4216_v29   ;;  %v4193_v29 = vmul.f32 %v10111_v5, %v9692_v48  ;;  %v4222_v17 = vmul.f32 %v13071_v39, %v10244_v46  ;;  %13072 = vst [vmem:[#allocation66_spill] sm:$0xff] %v10534_v61  ;;  %v4293_v39 = vmul.f32 %v12999_v53, %v10260_v50  ;;  %v13140_v5 = vld [vmem:[#allocation178_spill] sm:$0xff] }
 0xa45   : > { %v10516_v31 = vpop.permute.xlu1 %4857 }
 0xa46   : > { %4905 = vperm.xlu2 %6543, %v4190_v6   ;;  %v4290_v6 = vmul.f32 %v12994_v8, %v10244_v46 }
 0xa48   : > { %v10526_v56 = vpop.permute.xlu2 %4806 }
 0xa49   : > { %13070 = vst [vmem:[#allocation59_spill] sm:$0xff] %v10526_v56  ;;  %v4225_v56 = vmul.f32 %v9703_v35, %v10260_v50  ;;  %v4296_v35 = vmul.f32 %v13004_v47, %v10244_v46 }
 0xa4a   : > { %5196 = vperm.xlu0 %6544, %v4287_v63  }
 0xa4b   : > { %4992 = vperm.xlu1 %6542, %v4219_v12   ;;  %v13074_v12 = vld [vmem:[#allocation58_spill] sm:$0xff] }
 0xa4c   : > { %v4196_v63 = vmul.f32 %v13074_v12, %v9716_v13 }
 0xa4d   : > { %v10528_v18 = vpop.permute.xlu1 %4866 }
 0xa4e   : > { %4914 = vperm.xlu2 %6543, %v4193_v29   ;;  %v10548_v29 = vpop.permute.xlu0 %4953 }
 0xa4f   : > { %13075 = vst [vmem:[#allocation103_spill] sm:$0xff] %v10548_v29 }
 0xa50   : > { %v10538_v42 = vpop.permute.xlu2 %4815 }
 0xa51   : > { %13073 = vst [vmem:[#allocation70_spill] sm:$0xff] %v10538_v42  ;;  %v4228_v42 = vmul.f32 %v9745_v34, %v10244_v46  ;;  %v4299_v34 = vmul.f32 %v13009_v41, %v10260_v50 }
 0xa52   : > { %5205 = vperm.xlu0 %6544, %v4290_v6  }
 0xa53   : > { %5001 = vperm.xlu1 %6542, %v4222_v17   ;;  %v13077_v17 = vld [vmem:[#allocation22_spill] sm:$0xff] }
 0xa54   : > { %v4199_v6 = vmul.f32 %v13077_v17, %v9692_v48 }
 0xa55   : > { %v10540_v9 = vpop.permute.xlu1 %4875 }
 0xa56   : > { %4923 = vperm.xlu2 %6543, %v4196_v63   ;;  %v10562_v53 = vpop.permute.xlu0 %4962 }
 0xa57   : > { %13079 = vst [vmem:[#allocation71_spill] sm:$0xff] %v10562_v53  ;;  %v4234_v53 = vmul.f32 %v9784_v55, %v10244_v46  ;;  %v4305_v55 = vmul.f32 %v13018_v25, %v10260_v50 }
 0xa58   : > { %v10550_v61 = vpop.permute.xlu2 %4824 }
 0xa59   : > { %13076 = vst [vmem:[#allocation62_spill] sm:$0xff] %v10550_v61  ;;  %v4231_v61 = vmul.f32 %v9751_v60, %v10260_v50  ;;  %v4302_v60 = vmul.f32 %v13013_v54, %v10244_v46 }
 0xa5a   : > { %5214 = vperm.xlu0 %6544, %v4293_v39  }
 0xa5b   : > { %5010 = vperm.xlu1 %6542, %v4225_v56   ;;  %v13081_v56 = vld [vmem:[#allocation151_spill] sm:$0xff] }
 0xa5c   : > { %v4202_v39 = vmul.f32 %v13081_v56, %v9716_v13 }
 0xa5d   : > { %v10552_v8 = vpop.permute.xlu1 %4884 }
 0xa5e   : > { %4932 = vperm.xlu2 %6543, %v4199_v6  }
 0xa60   : > { %v10560_v63 = vpop.permute.xlu2 %4833 }
 0xa61   : > { %13078 = vst [vmem:[#allocation79_spill] sm:$0xff] %v10560_v63  ;;  %v4240_v63 = vmul.f32 %v9776_v58, %v10244_v46  ;;  %v4311_v58 = vmul.f32 %v10051_v20, %v10260_v50 }
 0xa62   : > { %5223 = vperm.xlu0 %6544, %v4296_v35   ;;  %v10578_v35 = vpop.permute.xlu0 %4971 }
 0xa63   : > { %5019 = vperm.xlu1 %6542, %v4228_v42   ;;  %v4205_v42 = vmul.f32 %v10190_v2, %v9692_v48  ;;  %13083 = vst [vmem:[#allocation72_spill] sm:$0xff] %v10578_v35  ;;  %v4237_v35 = vmul.f32 %v9767_v38, %v10260_v50  ;;  %v4308_v38 = vmul.f32 %v10041_v30, %v10244_v46 }
 0xa65   : > { %v10564_v29 = vpop.permute.xlu1 %4893 }
 0xa66   : > { %13080 = vst [vmem:[#allocation94_spill] sm:$0xff] %v10564_v29  ;;  %4941 = vperm.xlu2 %6543, %v4202_v39   ;;  %v13130_v29 = vld [vmem:[#allocation51_spill] sm:$0xff] }
 0xa68   : > { %v10572_v6 = vpop.permute.xlu2 %4842 }
 0xa6a   : > { %5232 = vperm.xlu0 %6544, %v4299_v34   ;;  %v10590_v34 = vpop.permute.xlu0 %4980 }
 0xa6b   : > { %5028 = vperm.xlu1 %6542, %v4231_v61   ;;  %v4208_v61 = vmul.f32 %v10202_v32, %v9716_v13  ;;  %13085 = vst [vmem:[#allocation111_spill] sm:$0xff] %v10590_v34 }
 0xa6d   : > { %v10574_v47 = vpop.permute.xlu1 %4902 }
 0xa6e   : > { %13082 = vst [vmem:[#allocation84_spill] sm:$0xff] %v10574_v47  ;;  %4950 = vperm.xlu2 %6543, %v4205_v42   ;;  %v13128_v47 = vld [vmem:[#allocation85_spill] sm:$0xff] }
 0xa70   : > { %v10584_v39 = vpop.permute.xlu2 %4851 }
 0xa72   : > { %5241 = vperm.xlu0 %6544, %v4302_v60   ;;  %v10604_v34 = vpop.permute.xlu0 %4989 }
 0xa73   : > { %5037 = vperm.xlu1 %6542, %v4234_v53   ;;  %v13087_v53 = vld [vmem:[#allocation120_spill] sm:$0xff] }
 0xa74   : > { %v4211_v60 = vmul.f32 %v13087_v53, %v9692_v48  ;;  %v13089_v48 = vld [vmem:[#allocation128_spill] sm:$0xff] }
 0xa75   : > { %v10586_v41 = vpop.permute.xlu1 %4911 }
 0xa76   : > { %13084 = vst [vmem:[#allocation30_spill] sm:$0xff] %v10586_v41  ;;  %4959 = vperm.xlu2 %6543, %v4208_v61   ;;  %v13126_v41 = vld [vmem:[#allocation52_spill] sm:$0xff] }
 0xa78   : > { %v10596_v42 = vpop.permute.xlu2 %4860 }
 0xa7a   : > { %5250 = vperm.xlu0 %6544, %v4305_v55   ;;  %v4243_v55 = vmul.f32 %v13089_v48, %v10260_v50 }
 0xa7b   : > { %5046 = vperm.xlu1 %6542, %v4237_v35   ;;  %v4214_v35 = vmul.f32 %v10166_v45, %v9716_v13  ;;  %v13092_v13 = vld [vmem:[#allocation131_spill] sm:$0xff] }
 0xa7d   : > { %v10598_v54 = vpop.permute.xlu1 %4920 }
 0xa7e   : > { %13086 = vst [vmem:[#allocation25_spill] sm:$0xff] %v10598_v54  ;;  %4968 = vperm.xlu2 %6543, %v4211_v60   ;;  %v10618_v60 = vpop.permute.xlu0 %4998 }
 0xa80   : > { %v10608_v61 = vpop.permute.xlu2 %4869 }
 0xa82   : > { %5259 = vperm.xlu0 %6544, %v4308_v38  }
 0xa83   : > { %5055 = vperm.xlu1 %6542, %v4240_v63   ;;  %v13091_v63 = vld [vmem:[#allocation69_spill] sm:$0xff] }
 0xa84   : > { %v4217_v38 = vmul.f32 %v13091_v63, %v10260_v50  ;;  %v4249_v63 = vmul.f32 %v9678_v33, %v10260_v50  ;;  %v4320_v33 = vmul.f32 %v10069_v28, %v10244_v46 }
 0xa85   : > { %v10610_v25 = vpop.permute.xlu1 %4929 }
 0xa86   : > { %13088 = vst [vmem:[#allocation40_spill] sm:$0xff] %v10610_v25  ;;  %4977 = vperm.xlu2 %6543, %v4214_v35   ;;  %v4246_v25 = vmul.f32 %v13092_v13, %v10244_v46  ;;  %v4314_v35 = vmul.f32 %v10035_v22, %v10244_v46  ;;  %v10632_v20 = vpop.permute.xlu0 %5007 }
 0xa88   : > { %v10620_v57 = vpop.permute.xlu2 %4878 }
 0xa8a   : > { %5268 = vperm.xlu0 %6544, %v4311_v58  }
 0xa8b   : > { %5064 = vperm.xlu1 %6542, %v4243_v55   ;;  %v13094_v55 = vld [vmem:[#allocation115_spill] sm:$0xff] }
 0xa8c   : > { %v4220_v58 = vmul.f32 %v13094_v55, %v10244_v46  ;;  %v4252_v55 = vmul.f32 %v9824_v51, %v10244_v46  ;;  %v4323_v51 = vmul.f32 %v10123_v15, %v10260_v50 }
 0xa8d   : > { %v10622_v30 = vpop.permute.xlu1 %4938 }
 0xa8e   : > { %13090 = vst [vmem:[#allocation26_spill] sm:$0xff] %v10622_v30  ;;  %4986 = vperm.xlu2 %6543, %v4217_v38   ;;  %v4317_v38 = vmul.f32 %v10061_v24, %v10260_v50 }
 0xa90   : > { %v10630_v48 = vpop.permute.xlu2 %4887 }
 0xa92   : > { %5277 = vperm.xlu0 %6544, %v4314_v35   ;;  %v10648_v35 = vpop.permute.xlu0 %5016 }
 0xa93   : > { %5073 = vperm.xlu1 %6542, %v4246_v25   ;;  %v13097_v25 = vld [vmem:[#allocation90_spill] sm:$0xff] }
 0xa94   : > { %v4223_v30 = vmul.f32 %v13097_v25, %v10260_v50  ;;  %v4255_v25 = vmul.f32 %v9831_v37, %v10260_v50  ;;  %v4326_v37 = vmul.f32 %v10134_v49, %v10244_v46 }
 0xa95   : > { %v10634_v54 = vpop.permute.xlu1 %4947 }
 0xa96   : > { %13093 = vst [vmem:[#allocation142_spill] sm:$0xff] %v10634_v54  ;;  %4995 = vperm.xlu2 %6543, %v4220_v58  }
 0xa98   : > { %v10642_v13 = vpop.permute.xlu2 %4896 }
 0xa99   : > { %13095 = vst [vmem:[#allocation157_spill] sm:$0xff] %v10642_v13 }
 0xa9a   : > { %5286 = vperm.xlu0 %6544, %v4317_v38  }
 0xa9b   : > { %5082 = vperm.xlu1 %6542, %v4249_v63   ;;  %v13100_v63 = vld [vmem:[#allocation109_spill] sm:$0xff] }
 0xa9c   : > { %v4226_v38 = vmul.f32 %v13100_v63, %v10244_v46  ;;  %v4258_v63 = vmul.f32 %v12989_v10, %v10244_v46  ;;  %v4329_v10 = vmul.f32 %v13046_v3, %v10260_v50 }
 0xa9d   : > { %v10644_v22 = vpop.permute.xlu1 %4956 }
 0xa9e   : > { %13096 = vst [vmem:[#allocation125_spill] sm:$0xff] %v10644_v22  ;;  %5004 = vperm.xlu2 %6543, %v4223_v30   ;;  %v10662_v22 = vpop.permute.xlu0 %5025 }
 0xaa0   : > { %v10654_v58 = vpop.permute.xlu2 %4905 }
 0xaa1   : > { %13098 = vst [vmem:[#allocation136_spill] sm:$0xff] %v10654_v58 }
 0xaa2   : > { %5295 = vperm.xlu0 %6544, %v4320_v33  }
 0xaa3   : > { %5091 = vperm.xlu1 %6542, %v4252_v55   ;;  %v13103_v55 = vld [vmem:[#allocation112_spill] sm:$0xff] }
 0xaa4   : > { %v4229_v33 = vmul.f32 %v13103_v55, %v10260_v50  ;;  %v4261_v55 = vmul.f32 %v12993_v36, %v10260_v50  ;;  %v4332_v36 = vmul.f32 %v10121_v0, %v10244_v46 }
 0xaa5   : > { %v10656_v24 = vpop.permute.xlu1 %4965 }
 0xaa6   : > { %13099 = vst [vmem:[#allocation164_spill] sm:$0xff] %v10656_v24  ;;  %5013 = vperm.xlu2 %6543, %v4226_v38   ;;  %v10676_v38 = vpop.permute.xlu0 %5034 }
 0xaa8   : > { %v10666_v30 = vpop.permute.xlu2 %4914 }
 0xaa9   : > { %13101 = vst [vmem:[#allocation113_spill] sm:$0xff] %v10666_v30 }
 0xaaa   : > { %5304 = vperm.xlu0 %6544, %v4323_v51  }
 0xaab   : > { %5100 = vperm.xlu1 %6542, %v4255_v25   ;;  %v13106_v25 = vld [vmem:[#allocation116_spill] sm:$0xff] }
 0xaac   : > { %v4232_v51 = vmul.f32 %v13106_v25, %v10244_v46  ;;  %v4264_v25 = vmul.f32 %v12997_v44, %v10244_v46  ;;  %v4335_v44 = vmul.f32 %v10132_v27, %v10260_v50 }
 0xaad   : > { %v10668_v28 = vpop.permute.xlu1 %4974 }
 0xaae   : > { %13102 = vst [vmem:[#allocation150_spill] sm:$0xff] %v10668_v28  ;;  %5022 = vperm.xlu2 %6543, %v4229_v33   ;;  %v10690_v49 = vpop.permute.xlu0 %5043 }
 0xab0   : > { %v10678_v24 = vpop.permute.xlu2 %4923 }
 0xab1   : > { %13104 = vst [vmem:[#allocation146_spill] sm:$0xff] %v10678_v24 }
 0xab2   : > { %5313 = vperm.xlu0 %6544, %v4326_v37  }
 0xab3   : > { %5109 = vperm.xlu1 %6542, %v4258_v63   ;;  %v13108_v63 = vld [vmem:[#allocation19_spill] sm:$0xff] }
 0xab4   : > { %v4235_v37 = vmul.f32 %v13108_v63, %v10260_v50  ;;  %v13111_v63 = vld [vmem:[#allocation145_spill] sm:$0xff] }
 0xab5   : > { %v10680_v15 = vpop.permute.xlu1 %4983  ;;  %v4267_v54 = vmul.f32 %v13111_v63, %v10260_v50 }
 0xab6   : > { %13105 = vst [vmem:[#allocation147_spill] sm:$0xff] %v10680_v15  ;;  %5031 = vperm.xlu2 %6543, %v4232_v51  }
 0xab8   : > { %v10688_v33 = vpop.permute.xlu2 %4932 }
 0xab9   : > { %13107 = vst [vmem:[#allocation123_spill] sm:$0xff] %v10688_v33 }
 0xaba   : > { %5322 = vperm.xlu0 %6544, %v4329_v10   ;;  %v10706_v10 = vpop.permute.xlu0 %5052 }
 0xabb   : > { %5118 = vperm.xlu1 %6542, %v4261_v55   ;;  %v13110_v55 = vld [vmem:[#allocation122_spill] sm:$0xff] }
 0xabc   : > { %v4238_v15 = vmul.f32 %v13110_v55, %v10244_v46  ;;  %v13114_v55 = vld [vmem:[#allocation37_spill] sm:$0xff] }
 0xabd   : > { %v10692_v28 = vpop.permute.xlu1 %4992 }
 0xabe   : > { %5040 = vperm.xlu2 %6543, %v4235_v37  }
 0xac0   : > { %v10700_v51 = vpop.permute.xlu2 %4941 }
 0xac1   : > { %13109 = vst [vmem:[#allocation81_spill] sm:$0xff] %v10700_v51  ;;  %v4270_v51 = vmul.f32 %v13114_v55, %v10244_v46  ;;  %v4341_v55 = vmul.f32 %v10224_v23, %v10260_v50 }
 0xac2   : > { %5331 = vperm.xlu0 %6544, %v4332_v36   ;;  %v10720_v33 = vpop.permute.xlu0 %5061 }
 0xac3   : > { %5127 = vperm.xlu1 %6542, %v4264_v25   ;;  %v13113_v25 = vld [vmem:[#allocation124_spill] sm:$0xff] }
 0xac4   : > { %v4241_v36 = vmul.f32 %v13113_v25, %v10260_v50  ;;  %v13117_v25 = vld [vmem:[#allocation63_spill] sm:$0xff] }
 0xac5   : > { %v10702_v3 = vpop.permute.xlu1 %5001 }
 0xac6   : > { %5049 = vperm.xlu2 %6543, %v4238_v15   ;;  %v4338_v15 = vmul.f32 %v10214_v40, %v10244_v46 }
 0xac8   : > { %v10712_v37 = vpop.permute.xlu2 %4950 }
 0xac9   : > { %13112 = vst [vmem:[#allocation93_spill] sm:$0xff] %v10712_v37  ;;  %v4273_v37 = vmul.f32 %v13117_v25, %v10260_v50 }
 0xaca   : > { %5340 = vperm.xlu0 %6544, %v4335_v44  }
 0xacb   : > { %5136 = vperm.xlu1 %6542, %v4267_v54   ;;  %v13116_v54 = vld [vmem:[#allocation126_spill] sm:$0xff] }
 0xacc   : > { %v4244_v44 = vmul.f32 %v13116_v54, %v10244_v46  ;;  %v4276_v54 = vmul.f32 %v13017_v43, %v10244_v46 }
 0xacd   : > { %v10714_v0 = vpop.permute.xlu1 %5010 }
 0xace   : > { %5058 = vperm.xlu2 %6543, %v4241_v36   ;;  %v10734_v36 = vpop.permute.xlu0 %5070 }
 0xad0   : > { %v10724_v63 = vpop.permute.xlu2 %4959 }
 0xad1   : > { %13115 = vst [vmem:[#allocation119_spill] sm:$0xff] %v10724_v63 }
 0xad2   : > { %5349 = vperm.xlu0 %6544, %v4338_v15  }
 0xad3   : > { %5145 = vperm.xlu1 %6542, %v4270_v51   ;;  %v13119_v51 = vld [vmem:[#allocation138_spill] sm:$0xff] }
 0xad4   : > { %v4247_v15 = vmul.f32 %v13119_v51, %v10260_v50  ;;  %v4279_v51 = vmul.f32 %v13022_v26, %v10260_v50 }
 0xad5   : > { %v10726_v27 = vpop.permute.xlu1 %5019 }
 0xad6   : > { %5067 = vperm.xlu2 %6543, %v4244_v44   ;;  %v4344_v44 = vmul.f32 %v13065_v59, %v10244_v46  ;;  %v10748_v23 = vpop.permute.xlu0 %5079  ;;  %v13123_v59 = vld [vmem:[#allocation9_spill] sm:$0xff] }
 0xad7   : > { %13121 = vst [vmem:[#allocation47_spill] sm:$0xff] %v10748_v23 }
 0xad8   : > { %v10736_v24 = vpop.permute.xlu2 %4968 }
 0xad9   : > { %13118 = vst [vmem:[#allocation20_spill] sm:$0xff] %v10736_v24 }
 0xada   : > { %5358 = vperm.xlu0 %6544, %v4341_v55  }
 0xadb   : > { %5154 = vperm.xlu1 %6542, %v4273_v37   ;;  %v13122_v37 = vld [vmem:[#allocation141_spill] sm:$0xff] }
 0xadc   : > { %v4250_v55 = vmul.f32 %v13122_v37, %v10244_v46 }
 0xadd   : > { %v10738_v40 = vpop.permute.xlu1 %5028 }
 0xade   : > { %5076 = vperm.xlu2 %6543, %v4247_v15   ;;  %v10763_v63 = vpop.permute.xlu0 %5088 }
 0xae0   : > { %v10746_v25 = vpop.permute.xlu2 %4977 }
 0xae1   : > { %13120 = vst [vmem:[#allocation176_spill] sm:$0xff] %v10746_v25 }
 0xae2   : > { %5367 = vperm.xlu0 %6544, %v4344_v44   ;;  %v4282_v44 = vmul.f32 %v13026_v4, %v10244_v46  ;;  %v13129_v4 = vld [vmem:[#allocation194_spill] sm:$0xff] }
 0xae3   : > { %5163 = vperm.xlu1 %6542, %v4276_v54   ;;  %v13124_v54 = vld [vmem:[#allocation132_spill] sm:$0xff] }
 0xae4   : > { %v4253_v25 = vmul.f32 %v13124_v54, %v10260_v50  ;;  %v5421_v54 = vperm.slane %v10396_v19, %v13126_v41  ;;  %v5426_v19 = vperm.slane %v10408_v52, %v13128_v47 }
 0xae5   : > { %v10750_v24 = vpop.permute.xlu1 %5037 }
 0xae6   : > { %5085 = vperm.xlu2 %6543, %v4250_v55   ;;  %v13125_v55 = vld [vmem:[#allocation137_spill] sm:$0xff]  ;;  %v10777_v30 = vpop.permute.xlu0 %5097 }
 0xae7   : > { %13127 = vst [vmem:[#allocation114_spill] sm:$0xff] %v10777_v30  ;;  %v13141_v30 = vld [vmem:[#allocation160_spill] sm:$0xff] }
 0xae8   : > { %v10756_v43 = vpop.permute.xlu2 %4986  ;;  %v4288_v23 = vmul.f32 %v13141_v30, %v10244_v46  ;;  %v13145_v30 = vld [vmem:[#allocation196_spill] sm:$0xff] }
 0xaea   : > { %6546 = vset.pattern.permute.xlu0 %v13123_v59  ;;  %v4285_v59 = vmul.f32 %v13030_v21, %v10260_v50 }
 0xaeb   : > { %5172 = vperm.xlu1 %6542, %v4279_v51   ;;  %v4256_v51 = vmul.f32 %v13125_v55, %v10244_v46  ;;  %v13131_v55 = vld [vmem:[#allocation87_spill] sm:$0xff] }
 0xaec   : > { %v5418_v13 = vperm.slane %v13131_v55, %v13126_v41  ;;  %v13137_v55 = vld [vmem:[#allocation16_spill] sm:$0xff] }
 0xaed   : > { %v10758_v15 = vpop.permute.xlu1 %5046  ;;  %v4262_v56 = vmul.f32 %v13137_v55, %v10244_v46  ;;  %v13143_v55 = vld [vmem:[#allocation189_spill] sm:$0xff] }
 0xaee   : > { %5094 = vperm.xlu2 %6543, %v4253_v25   ;;  %v5420_v25 = vperm.slane %v13129_v4, %v13128_v47  ;;  %v5430_v4 = vperm.slane %v10420_v16, %v13126_v41  ;;  %v13139_v16 = vld [vmem:[#allocation54_spill] sm:$0xff] }
 0xaef   : > { %v5429_v12 = vperm.slane %v13139_v16, %v13128_v47 }
 0xaf0   : > { %v10767_v37 = vpop.permute.xlu2 %4995  ;;  %v5422_v21 = vsel %vm2545_vm0, %v5421_v54, %v5420_v25  ;;  %v13136_v54 = vld [vmem:[#allocation156_spill] sm:$0xff] }
 0xaf1   : > { %v5427_v25 = vperm.slane %v13136_v54, %v13126_v41  ;;  %v5431_v16 = vsel %vm2545_vm0, %v5430_v4, %v5429_v12  ;;  %v13146_v12 = vld [vmem:[#allocation161_spill] sm:$0xff]  ;;  %v5489_v4 = vperm.slane %v10572_v6, %v13128_v47 }
 0xaf3   : > { %5181 = vperm.xlu1 %6542, %v4282_v44   ;;  %v5417_v44 = vperm.slane %v13130_v29, %v13128_v47  ;;  %v13134_v29 = vld [vmem:[#allocation55_spill] sm:$0xff]  ;;  %v5428_v54 = vsel %vm2545_vm0, %v5427_v25, %v5426_v19  ;;  %v5433_v19 = vperm.slane %v13145_v30, %v13126_v41 }
 0xaf4   : > { %v4259_v32 = vmul.f32 %v13134_v29, %v10260_v50 }
 0xaf5   : > { %v10769_v26 = vpop.permute.xlu1 %5055  ;;  %v5419_v52 = vsel %vm2545_vm0, %v5418_v13, %v5417_v44  ;;  %v13142_v13 = vld [vmem:[#allocation45_spill] sm:$0xff] }
 0xaf6   : > { %5103 = vperm.xlu2 %6543, %v4256_v51   ;;  %v13133_v51 = vld [vmem:[#allocation29_spill] sm:$0xff]  ;;  %v5767_v29 = vsel %vm3036_vm7, %v5422_v21, %v5419_v52  ;;  %v5435_v44 = vperm.slane %v13142_v13, %v13128_v47  ;;  %v5493_v21 = vperm.slane %v10584_v39, %v13126_v41  ;;  %v10832_v13 = vpop.permute.xlu0 %5106 }
 0xaf7   : > { %v5424_v53 = vperm.slane %v13133_v51, %v13126_v41  ;;  %v13138_v51 = vld [vmem:[#allocation108_spill] sm:$0xff] }
 0xaf8   : > { %v10783_v58 = vpop.permute.xlu2 %5004  ;;  %v5423_v17 = vperm.slane %v13138_v51, %v13128_v47  ;;  %v5436_v51 = vperm.slane %v13143_v55, %v13126_v41 }
 0xafa   : > { %v5425_v7 = vsel %vm2545_vm0, %v5424_v53, %v5423_v17  ;;  %v5490_v17 = vperm.slane %v13146_v12, %v13126_v41  ;;  %v5492_v53 = vperm.slane %v10504_v14, %v13128_v47  ;;  %v5498_v14 = vperm.slane %v10596_v42, %v13128_v47  ;;  %v13150_v42 = vld [vmem:[#allocation82_spill] sm:$0xff] }
 0xafb   : > { %5190 = vperm.xlu1 %6542, %v4285_v59   ;;  %v13135_v59 = vld [vmem:[#allocation144_spill] sm:$0xff]  ;;  %v5768_v25 = vsel %vm3038_vm8, %v5425_v7, %v5767_v29 }
 0xafc   : > { %v10800_v2 = vmul.f32 %v13135_v59, %v10244_v46  ;;  %v5432_v59 = vperm.slane %v13140_v5, %v13128_v47  ;;  %v13144_v5 = vld [vmem:[#allocation162_spill] sm:$0xff]  ;;  %v5769_v39 = vsel %vm3040_vm9, %v5428_v54, %v5768_v25  ;;  %v13147_v7 = vld [vmem:[#allocation88_spill] sm:$0xff]  ;;  %v5603_v54 = vperm.slane %v10734_v36, %v13128_v47 }
 0xafd   : > { %v10790_v45 = vpop.permute.xlu1 %5064  ;;  %v4291_v52 = vmul.f32 %v13144_v5, %v10260_v50  ;;  %v5495_v29 = vperm.slane %v13147_v7, %v13128_v47  ;;  %v5770_v30 = vsel %vm3042_vm10, %v5431_v16, %v5769_v39  ;;  %v5494_v25 = vsel %vm2545_vm0, %v5493_v21, %v5492_v53 }
 0xafe   : > { %13132 = vst [vmem:[#allocation135_spill] sm:$0xff] %v10790_v45  ;;  %5112 = vperm.xlu2 %6543, %v4259_v32   ;;  %v5439_v32 = vperm.slane %v10444_v1, %v13126_v41  ;;  %v13148_v1 = vld [vmem:[#allocation33_spill] sm:$0xff]  ;;  %v5434_v12 = vsel %vm2545_vm0, %v5433_v19, %v5432_v59  ;;  %v5496_v7 = vperm.slane %v10516_v31, %v13126_v41 }
 0xaff   : > { %v5438_v5 = vperm.slane %v13148_v1, %v13128_v47  ;;  %v5502_v16 = vperm.slane %v10608_v61, %v13126_v41  ;;  %v5491_v21 = vsel %vm2545_vm0, %v5490_v17, %v5489_v4  ;;  %v5504_v59 = vperm.slane %v13150_v42, %v13128_v47 }
 0xb00   : > { %v10834_v55 = vpop.permute.xlu2 %5013  ;;  %v5501_v31 = vperm.slane %v10528_v18, %v13128_v47  ;;  %v5788_v61 = vsel %vm3036_vm7, %v5494_v25, %v5491_v21  ;;  %v5565_v17 = vperm.slane %v10767_v37, %v13126_v41  ;;  %v5497_v4 = vsel %vm2545_vm0, %v5496_v7, %v5495_v29 }
 0xb01   : > { %v5505_v1 = vperm.slane %v10540_v9, %v13126_v41  ;;  %v5511_v37 = vperm.slane %v10630_v48, %v13126_v41  ;;  %v5561_v29 = vperm.slane %v10756_v43, %v13128_v47  ;;  %v13151_v9 = vld [vmem:[#allocation95_spill] sm:$0xff]  ;;  %v5562_v25 = vperm.slane %v10604_v34, %v13126_v41  ;;  %v13152_v34 = vld [vmem:[#allocation17_spill] sm:$0xff] }
 0xb02   : > { %v5503_v18 = vsel %vm2545_vm0, %v5502_v16, %v5501_v31  ;;  %v4265_v7 = vmul.f32 %v13152_v34, %v10260_v50  ;;  %v5573_v42 = vperm.slane %v10714_v0, %v13128_v47  ;;  %v5577_v0 = vperm.slane %v10726_v27, %v13126_v41 }
 0xb03   : > { %5199 = vperm.xlu1 %6542, %v4288_v23   ;;  %v5437_v23 = vsel %vm2545_vm0, %v5436_v51, %v5435_v44  ;;  %v5440_v44 = vsel %vm2545_vm0, %v5439_v32, %v5438_v5  ;;  %v13149_v51 = vld [vmem:[#allocation32_spill] sm:$0xff]  ;;  %v5563_v21 = vsel %vm2545_vm0, %v5562_v25, %v5561_v29  ;;  %v5589_v34 = vperm.slane %v10690_v49, %v13126_v41 }
 0xb04   : > { %v5499_v36 = vperm.slane %v13149_v51, %v13126_v41  ;;  %v5574_v51 = vperm.slane %v10834_v55, %v13126_v41 }
 0xb05   : > { %v5074_v45 = vpop.permute.xlu1 %5073 }
 0xb06   : > { %v5604_v6 = vperm.slane %v5074_v45, %v13126_v41  ;;  %v5771_v45 = vsel %vm3044_vm11, %v5434_v12, %v5770_v30  ;;  %5121 = vperm.xlu2 %6543, %v4262_v56   ;;  %v5500_v32 = vsel %vm2545_vm0, %v5499_v36, %v5498_v14  ;;  %v5507_v56 = vperm.slane %v10620_v57, %v13128_v47  ;;  %v10895_v57 = vpop.permute.xlu0 %5115 }
 0xb07   : > { %v5772_v19 = vsel %vm3046_vm12, %v5437_v23, %v5771_v45  ;;  %v5789_v30 = vsel %vm3038_vm8, %v5497_v4, %v5788_v61  ;;  %v5564_v23 = vperm.slane %v10692_v28, %v13128_v47  ;;  %v5510_v28 = vperm.slane %v10552_v8, %v13128_v47 }
 0xb08   : > { %v10865_v39 = vsel %vm2545_vm0, %v5604_v6, %v5603_v54  ;;  %v5773_v53 = vsel %vm3048_vm13, %v5440_v44, %v5772_v19  ;;  %v5023_v5 = vpop.permute.xlu2 %5022  ;;  %v5508_v54 = vperm.slane %v13151_v9, %v13126_v41  ;;  %v5570_v12 = vperm.slane %v10783_v58, %v13128_v47 }
 0xb09   : > { %v5888_v48 = vsel %vm5881_vm15, %v5773_v53, 0.0  ;;  %v5566_v43 = vsel %vm2545_vm0, %v5565_v17, %v5564_v23  ;;  %v5568_v44 = vperm.slane %v10702_v3, %v13126_v41  ;;  %v5571_v8 = vperm.slane %v10632_v20, %v13126_v41 }
 0xb0a   : > { %v5509_v16 = vsel %vm2545_vm0, %v5508_v54, %v5507_v56  ;;  %v5506_v36 = vsel %vm2545_vm0, %v5505_v1, %v5504_v59  ;;  %v5512_v58 = vsel %vm2545_vm0, %v5511_v37, %v5510_v28  ;;  %v5567_v45 = vperm.slane %v10618_v60, %v13128_v47  ;;  %v13154_v54 = vld [vmem:[#allocation165_spill] sm:$0xff] }
 0xb0b   : > { %5208 = vperm.xlu1 %6542, %v4291_v52   ;;  %v5790_v52 = vsel %vm3040_vm9, %v5500_v32, %v5789_v30  ;;  %v5809_v3 = vsel %vm3036_vm7, %v5566_v43, %v5563_v21  ;;  %v5572_v31 = vsel %vm2545_vm0, %v5571_v8, %v5570_v12  ;;  %v5575_v61 = vsel %vm2545_vm0, %v5574_v51, %v5573_v42  ;;  %v13155_v8 = vld [vmem:[#allocation139_spill] sm:$0xff] }
 0xb0c   : > { %v5791_v6 = vsel %vm3042_vm10, %v5503_v18, %v5790_v52  ;;  %5889 = vadd.xlane.f32.xlu0 %v5888_v48  ;;  %v5569_v59 = vsel %vm2545_vm0, %v5568_v44, %v5567_v45  ;;  %v5579_v19 = vperm.slane %v5023_v5, %v13128_v47  ;;  %v5576_v4 = vperm.slane %v10648_v35, %v13128_v47  ;;  %v13153_v35 = vld [vmem:[#allocation74_spill] sm:$0xff] }
 0xb0d   : > { %v10898_v14 = vpop.permute.xlu1 %5082  ;;  %v5792_v55 = vsel %vm3044_vm11, %v5506_v36, %v5791_v6  ;;  %v5810_v17 = vsel %vm3038_vm8, %v5569_v59, %v5809_v3  ;;  %v5580_v1 = vperm.slane %v10662_v22, %v13126_v41  ;;  %v5612_v18 = vperm.slane %v10763_v63, %v13128_v47 }
 0xb0e   : > { %5130 = vperm.xlu2 %6543, %v4265_v7   ;;  %v5793_v20 = vsel %vm3046_vm12, %v5509_v16, %v5792_v55  ;;  %v5582_v5 = vperm.slane %v10738_v40, %v13128_v47  ;;  %v4268_v23 = vmul.f32 %v13153_v35, %v10244_v46  ;;  %v10950_v29 = vpop.permute.xlu0 %5124  ;;  %v5578_v63 = vsel %vm2545_vm0, %v5577_v0, %v5576_v4 }
 0xb0f   : > { %v5794_v60 = vsel %vm3048_vm13, %v5512_v58, %v5793_v20  ;;  %v5581_v22 = vsel %vm2545_vm0, %v5580_v1, %v5579_v19  ;;  %v4297_v25 = vmul.f32 %v13154_v54, %v10260_v50  ;;  %v5586_v48 = vperm.slane %v10750_v24, %v13126_v41 }
 0xb10   : > { %v5032_v32 = vpop.permute.xlu2 %5031  ;;  %v5897_v37 = vsel %vm5881_vm15, %v5794_v60, 0.0  ;;  %v5585_v12 = vperm.slane %v10676_v38, %v13128_v47  ;;  %v4271_v36 = vmul.f32 %v13155_v8, %v10260_v50  ;;  %v13156_v38 = vld [vmem:[#allocation24_spill] sm:$0xff]  ;;  %v5595_v45 = vperm.slane %v10769_v26, %v13126_v41  ;;  %v13157_v26 = vld [vmem:[#allocation143_spill] sm:$0xff] }
 0xb11   : > { %v5583_v53 = vperm.slane %v5032_v32, %v13126_v41  ;;  %v4300_v58 = vmul.f32 %v13156_v38, %v10244_v46  ;;  %v5591_v3 = vperm.slane %v10758_v15, %v13128_v47  ;;  %v5621_v59 = vperm.slane %v10832_v13, %v13128_v47 }
 0xb12   : > { %v5587_v44 = vsel %vm2545_vm0, %v5586_v48, %v5585_v12  ;;  %v4274_v32 = vmul.f32 %v13157_v26, %v10244_v46  ;;  %v5598_v4 = vperm.slane %v10720_v33, %v13126_v41  ;;  %v13162_v12 = vld [vmem:[#allocation47_spill] sm:$0xff] }
 0xb13   : > { %5217 = vperm.xlu1 %6542, %v10800_v2   ;;  %v5811_v2 = vsel %vm3040_vm9, %v5572_v31, %v5810_v17  ;;  %v5584_v40 = vsel %vm2545_vm0, %v5583_v53, %v5582_v5  ;;  %v5594_v31 = vperm.slane %v10706_v10, %v13128_v47  ;;  %v4303_v17 = vmul.f32 %v13050_v62, %v10260_v50 }
 0xb14   : > { %v5812_v27 = vsel %vm3042_vm10, %v5575_v61, %v5811_v2  ;;  %5898 = vadd.xlane.f32.xlu0 %v5897_v37  ;;  %v4306_v62 = vmul.f32 %v13054_v11, %v10244_v46  ;;  %v13159_v37 = vld [vmem:[#allocation135_spill] sm:$0xff]  ;;  %v13160_v11 = vld [vmem:[#allocation133_spill] sm:$0xff] }
 0xb15   : > { %v5092_v56 = vpop.permute.xlu1 %5091  ;;  %v5813_v52 = vsel %vm3044_vm11, %v5578_v63, %v5812_v27  ;;  %v5596_v60 = vsel %vm2545_vm0, %v5595_v45, %v5594_v31  ;;  %v5600_v33 = vperm.slane %v13159_v37, %v13128_v47  ;;  %v5630_v63 = vperm.slane %v10950_v29, %v13128_v47  ;;  %v13165_v31 = vld [vmem:[#allocation121_spill] sm:$0xff] }
 0xb16   : > { %v5613_v30 = vperm.slane %v5092_v56, %v13126_v41  ;;  %5139 = vperm.xlu2 %6543, %v4268_v23   ;;  %v5814_v28 = vsel %vm3046_vm12, %v5581_v22, %v5813_v52  ;;  %v10980_v49 = vpop.permute.xlu0 %5133  ;;  %v13158_v56 = vld [vmem:[#allocation80_spill] sm:$0xff]  ;;  %v5609_v45 = vperm.slane %v10898_v14, %v13128_v47  ;;  %v13167_v14 = vld [vmem:[#allocation114_spill] sm:$0xff] }
 0xb17   : > { %v5815_v43 = vsel %vm3048_vm13, %v5584_v40, %v5814_v28  ;;  %v4277_v5 = vmul.f32 %v13158_v56, %v10260_v50 }
 0xb18   : > { %v10955_v9 = vsel %vm2545_vm0, %v5613_v30, %v5612_v18  ;;  %v5041_v6 = vpop.permute.xlu2 %5040  ;;  %v5906_v51 = vsel %vm5881_vm15, %v5815_v43, 0.0 }
 0xb19   : > { %v5588_v7 = vperm.slane %v5041_v6, %v13128_v47  ;;  %v13161_v6 = vld [vmem:[#allocation117_spill] sm:$0xff] }
 0xb1a   : > { %v4309_v43 = vmul.f32 %v13161_v6, %v10260_v50 }
 0xb1b   : > { %5226 = vperm.xlu1 %6542, %v4297_v25   ;;  %v5590_v24 = vsel %vm2545_vm0, %v5589_v34, %v5588_v7  ;;  %v4280_v25 = vmul.f32 %v13160_v11, %v10244_v46  ;;  %v5607_v34 = vperm.slane %v13162_v12, %v13126_v41  ;;  %v13173_v12 = vld [vmem:[#allocation58_spill] sm:$0xff] }
 0xb1c   : > { %v5816_v21 = vsel %vm3036_vm7, %v5590_v24, %v5587_v44  ;;  %5907 = vadd.xlane.f32.xlu0 %v5906_v51 }
 0xb1d   : > { %v10970_v16 = vpop.permute.xlu1 %5100 }
 0xb1e   : > { %5148 = vperm.xlu2 %6543, %v4271_v36   ;;  %v11003_v13 = vpop.permute.xlu0 %5142 }
 0xb20   : > { %v5050_v42 = vpop.permute.xlu2 %5049 }
 0xb21   : > { %v5592_v55 = vperm.slane %v5050_v42, %v13126_v41 }
 0xb23   : > { %5235 = vperm.xlu1 %6542, %v4300_v58   ;;  %v5593_v61 = vsel %vm2545_vm0, %v5592_v55, %v5591_v3 }
 0xb24   : > { %v5817_v15 = vsel %vm3038_vm8, %v5593_v61, %v5816_v21  ;;  %v13164_v21 = vld [vmem:[#allocation130_spill] sm:$0xff] }
 0xb25   : > { %v5110_v20 = vpop.permute.xlu1 %5109  ;;  %v5818_v10 = vsel %vm3040_vm9, %v5596_v60, %v5817_v15  ;;  %v4312_v38 = vmul.f32 %v13164_v21, %v10244_v46  ;;  %v13166_v61 = vld [vmem:[#allocation154_spill] sm:$0xff]  ;;  %v5616_v60 = vperm.slane %v13167_v14, %v13126_v41  ;;  %v13174_v21 = vld [vmem:[#allocation167_spill] sm:$0xff] }
 0xb26   : > { %v5622_v19 = vperm.slane %v5110_v20, %v13126_v41  ;;  %5157 = vperm.xlu2 %6543, %v4274_v32   ;;  %v11019_v23 = vpop.permute.xlu0 %5151  ;;  %v4286_v20 = vmul.f32 %v13165_v31, %v10244_v46 }
 0xb28   : > { %v10998_v0 = vsel %vm2545_vm0, %v5622_v19, %v5621_v59  ;;  %v5059_v53 = vpop.permute.xlu2 %5058  ;;  %v4315_v19 = vmul.f32 %v13166_v61, %v10260_v50 }
 0xb29   : > { %v5597_v1 = vperm.slane %v5059_v53, %v13128_v47  ;;  %v13168_v53 = vld [vmem:[#allocation110_spill] sm:$0xff] }
 0xb2b   : > { %5244 = vperm.xlu1 %6542, %v4303_v17   ;;  %v5599_v2 = vsel %vm2545_vm0, %v5598_v4, %v5597_v1  ;;  %v13169_v1 = vld [vmem:[#allocation155_spill] sm:$0xff] }
 0xb2c   : > { %v5819_v27 = vsel %vm3042_vm10, %v5599_v2, %v5818_v10  ;;  %v4318_v2 = vmul.f32 %v13169_v1, %v10244_v46 }
 0xb2d   : > { %v11008_v18 = vpop.permute.xlu1 %5118 }
 0xb2e   : > { %5166 = vperm.xlu2 %6543, %v4277_v5   ;;  %v11043_v8 = vpop.permute.xlu0 %5160 }
 0xb30   : > { %v5068_v30 = vpop.permute.xlu2 %5067 }
 0xb31   : > { %v5601_v35 = vperm.slane %v5068_v30, %v13126_v41 }
 0xb33   : > { %5253 = vperm.xlu1 %6542, %v4306_v62   ;;  %v5602_v40 = vsel %vm2545_vm0, %v5601_v35, %v5600_v33  ;;  %v13170_v33 = vld [vmem:[#allocation28_spill] sm:$0xff] }
 0xb34   : > { %v5820_v52 = vsel %vm3044_vm11, %v5602_v40, %v5819_v27  ;;  %v5618_v27 = vperm.slane %v10970_v16, %v13128_v47  ;;  %v4292_v35 = vmul.f32 %v13170_v33, %v10244_v46  ;;  %v13171_v40 = vld [vmem:[#allocation86_spill] sm:$0xff]  ;;  %v5625_v16 = vperm.slane %v10895_v57, %v13126_v41 }
 0xb35   : > { %v5128_v22 = vpop.permute.xlu1 %5127  ;;  %v5821_v48 = vsel %vm3046_vm12, %v10865_v39, %v5820_v52  ;;  %v13163_v39 = vld [vmem:[#allocation91_spill] sm:$0xff]  ;;  %v5627_v57 = vperm.slane %v11008_v18, %v13128_v47 }
 0xb36   : > { %v5631_v54 = vperm.slane %v5128_v22, %v13126_v41  ;;  %5175 = vperm.xlu2 %6543, %v4280_v25   ;;  %v4283_v51 = vmul.f32 %v13163_v39, %v10260_v50  ;;  %v11062_v26 = vpop.permute.xlu0 %5169 }
 0xb38   : > { %v11031_v28 = vsel %vm2545_vm0, %v5631_v54, %v5630_v63  ;;  %v5077_v29 = vpop.permute.xlu2 %5076  ;;  %v4321_v54 = vmul.f32 %v13171_v40, %v10260_v50  ;;  %v13182_v40 = vld [vmem:[#allocation127_spill] sm:$0xff] }
 0xb39   : > { %v5606_v7 = vperm.slane %v5077_v29, %v13128_v47 }
 0xb3b   : > { %5262 = vperm.xlu1 %6542, %v4309_v43   ;;  %v5608_v24 = vsel %vm2545_vm0, %v5607_v34, %v5606_v7  ;;  %v13172_v43 = vld [vmem:[#allocation140_spill] sm:$0xff]  ;;  %v4324_v34 = vmul.f32 %v13173_v12, %v10244_v46 }
 0xb3c   : > { %v11046_v36 = vsel %vm3048_vm13, %v5608_v24, %v5821_v48 }
 0xb3d   : > { %v11038_v44 = vpop.permute.xlu1 %5136 }
 0xb3e   : > { %5184 = vperm.xlu2 %6543, %v4283_v51   ;;  %v11075_v56 = vpop.permute.xlu0 %5178 }
 0xb40   : > { %v5086_v58 = vpop.permute.xlu2 %5085 }
 0xb41   : > { %v5610_v42 = vperm.slane %v5086_v58, %v13126_v41 }
 0xb43   : > { %5271 = vperm.xlu1 %6542, %v4312_v38   ;;  %v5611_v55 = vsel %vm2545_vm0, %v5610_v42, %v5609_v45  ;;  %v4298_v38 = vmul.f32 %v13174_v21, %v10244_v46 }
 0xb44   : > { %v5823_v59 = vsel %vm3036_vm7, %v10955_v9, %v5611_v55  ;;  %v4289_v9 = vmul.f32 %v13168_v53, %v10260_v50  ;;  %v13175_v55 = vld [vmem:[#allocation22_spill] sm:$0xff] }
 0xb45   : > { %v11053_v3 = vpop.permute.xlu1 %5145  ;;  %v4327_v18 = vmul.f32 %v13175_v55, %v10260_v50  ;;  %v13179_v53 = vld [vmem:[#allocation102_spill] sm:$0xff] }
 0xb46   : > { %5193 = vperm.xlu2 %6543, %v4286_v20   ;;  %v11093_v52 = vpop.permute.xlu0 %5187  ;;  %v5640_v12 = vperm.slane %v11053_v3, %v13126_v41 }
 0xb48   : > { %v5095_v32 = vpop.permute.xlu2 %5094 }
 0xb49   : > { %v5615_v15 = vperm.slane %v5095_v32, %v13128_v47 }
 0xb4b   : > { %5280 = vperm.xlu1 %6542, %v4315_v19   ;;  %v5617_v17 = vsel %vm2545_vm0, %v5616_v60, %v5615_v15  ;;  %v13177_v19 = vld [vmem:[#allocation151_spill] sm:$0xff]  ;;  %v13178_v15 = vld [vmem:[#allocation170_spill] sm:$0xff] }
 0xb4c   : > { %v5824_v4 = vsel %vm3038_vm8, %v5617_v17, %v5823_v59  ;;  %v13176_v59 = vld [vmem:[#allocation64_spill] sm:$0xff]  ;;  %v4330_v32 = vmul.f32 %v13177_v19, %v10244_v46  ;;  %v4304_v17 = vmul.f32 %v13178_v15, %v10244_v46  ;;  %v5652_v19 = vperm.slane %v11062_v26, %v13126_v41 }
 0xb4d   : > { %v11067_v10 = vpop.permute.xlu1 %5154  ;;  %v4301_v61 = vmul.f32 %v13176_v59, %v10260_v50  ;;  %v13185_v59 = vld [vmem:[#allocation183_spill] sm:$0xff] }
 0xb4e   : > { %5202 = vperm.xlu2 %6543, %v4289_v9   ;;  %v11111_v58 = vpop.permute.xlu0 %5196  ;;  %v4333_v9 = vmul.f32 %v13179_v53, %v10260_v50 }
 0xb50   : > { %v5104_v5 = vpop.permute.xlu2 %5103 }
 0xb51   : > { %v5619_v62 = vperm.slane %v5104_v5, %v13126_v41  ;;  %v13180_v5 = vld [vmem:[#allocation173_spill] sm:$0xff] }
 0xb53   : > { %5289 = vperm.xlu1 %6542, %v4318_v2   ;;  %v5620_v37 = vsel %vm2545_vm0, %v5619_v62, %v5618_v27  ;;  %v4307_v27 = vmul.f32 %v13180_v5, %v10260_v50  ;;  %v13181_v62 = vld [vmem:[#allocation104_spill] sm:$0xff] }
 0xb54   : > { %v5825_v22 = vsel %vm3040_vm9, %v5620_v37, %v5824_v4  ;;  %v4336_v37 = vmul.f32 %v13181_v62, %v10244_v46 }
 0xb55   : > { %v11080_v30 = vpop.permute.xlu1 %5163  ;;  %v5826_v63 = vsel %vm3042_vm10, %v10998_v0, %v5825_v22  ;;  %v4295_v0 = vmul.f32 %v13172_v43, %v10260_v50  ;;  %v5634_v43 = vperm.slane %v10980_v49, %v13126_v41  ;;  %v5645_v49 = vperm.slane %v11067_v10, %v13128_v47 }
 0xb56   : > { %5211 = vperm.xlu2 %6543, %v4292_v35   ;;  %v11126_v14 = vpop.permute.xlu0 %5205 }
 0xb58   : > { %v5113_v11 = vpop.permute.xlu2 %5112 }
 0xb59   : > { %v5624_v25 = vperm.slane %v5113_v11, %v13128_v47  ;;  %v5636_v11 = vperm.slane %v11038_v44, %v13128_v47  ;;  %v5643_v44 = vperm.slane %v11019_v23, %v13126_v41 }
 0xb5b   : > { %5298 = vperm.xlu1 %6542, %v4321_v54   ;;  %v5626_v6 = vsel %vm2545_vm0, %v5625_v16, %v5624_v25  ;;  %v4310_v54 = vmul.f32 %v13182_v40, %v10244_v46  ;;  %v13183_v25 = vld [vmem:[#allocation120_spill] sm:$0xff] }
 0xb5c   : > { %v5827_v29 = vsel %vm3044_vm11, %v5626_v6, %v5826_v63  ;;  %v4339_v6 = vmul.f32 %v13183_v25, %v10260_v50  ;;  %v13187_v25 = vld [vmem:[#allocation15_spill] sm:$0xff] }
 0xb5d   : > { %v11095_v48 = vpop.permute.xlu1 %5172 }
 0xb5e   : > { %5220 = vperm.xlu2 %6543, %v4295_v0   ;;  %v11134_v4 = vpop.permute.xlu0 %5214 }
 0xb60   : > { %v5122_v7 = vpop.permute.xlu2 %5121 }
 0xb61   : > { %v5628_v24 = vperm.slane %v5122_v7, %v13126_v41 }
 0xb63   : > { %5307 = vperm.xlu1 %6542, %v4324_v34   ;;  %v5629_v51 = vsel %vm2545_vm0, %v5628_v24, %v5627_v57  ;;  %v5639_v24 = vperm.slane %v11003_v13, %v13128_v47  ;;  %v5649_v13 = vperm.slane %v11080_v30, %v13126_v41 }
 0xb64   : > { %v5828_v45 = vsel %vm3046_vm12, %v5629_v51, %v5827_v29 }
 0xb65   : > { %v11106_v39 = vpop.permute.xlu1 %5181  ;;  %v11116_v42 = vsel %vm3048_vm13, %v11031_v28, %v5828_v45  ;;  %v5641_v23 = vsel %vm2545_vm0, %v5640_v12, %v5639_v24 }
 0xb66   : > { %5229 = vperm.xlu2 %6543, %v4298_v38   ;;  %v11142_v35 = vpop.permute.xlu0 %5223  ;;  %v13184_v38 = vld [vmem:[#allocation134_spill] sm:$0xff] }
 0xb67   : > { %v4313_v45 = vmul.f32 %v13184_v38, %v10260_v50  ;;  %v13191_v38 = vld [vmem:[#allocation169_spill] sm:$0xff] }
 0xb68   : > { %v5131_v31 = vpop.permute.xlu2 %5130 }
 0xb69   : > { %v5633_v16 = vperm.slane %v5131_v31, %v13128_v47 }
 0xb6b   : > { %5316 = vperm.xlu1 %6542, %v4327_v18   ;;  %v5635_v57 = vsel %vm2545_vm0, %v5634_v43, %v5633_v16  ;;  %v13188_v43 = vld [vmem:[#allocation118_spill] sm:$0xff] }
 0xb6d   : > { %v11120_v20 = vpop.permute.xlu1 %5190 }
 0xb6e   : > { %5238 = vperm.xlu2 %6543, %v4301_v61   ;;  %v5233_v55 = vpop.permute.xlu0 %5232  ;;  %v4342_v61 = vmul.f32 %v13185_v59, %v10244_v46  ;;  %v13194_v59 = vld [vmem:[#allocation43_spill] sm:$0xff] }
 0xb70   : > { %v5140_v60 = vpop.permute.xlu2 %5139 }
 0xb71   : > { %v5637_v63 = vperm.slane %v5140_v60, %v13126_v41  ;;  %v5648_v60 = vperm.slane %v11043_v8, %v13128_v47 }
 0xb73   : > { %5325 = vperm.xlu1 %6542, %v4330_v32   ;;  %v5638_v0 = vsel %vm2545_vm0, %v5637_v63, %v5636_v11  ;;  %v5650_v30 = vsel %vm2545_vm0, %v5649_v13, %v5648_v60  ;;  %v13196_v60 = vld [vmem:[#allocation48_spill] sm:$0xff] }
 0xb74   : > { %v5830_v51 = vsel %vm3036_vm7, %v5638_v0, %v5635_v57  ;;  %v4319_v0 = vmul.f32 %v13188_v43, %v10260_v50  ;;  %v13189_v57 = vld [vmem:[#allocation78_spill] sm:$0xff] }
 0xb75   : > { %v11128_v28 = vpop.permute.xlu1 %5199  ;;  %v5831_v10 = vsel %vm3038_vm8, %v5641_v23, %v5830_v51  ;;  %v4322_v24 = vmul.f32 %v13189_v57, %v10244_v46 }
 0xb76   : > { %5247 = vperm.xlu2 %6543, %v4304_v17   ;;  %v11205_v11 = vpop.permute.xlu0 %5241 }
 0xb78   : > { %v5149_v1 = vpop.permute.xlu2 %5148 }
 0xb79   : > { %v5642_v29 = vperm.slane %v5149_v1, %v13128_v47 }
 0xb7b   : > { %5334 = vperm.xlu1 %6542, %v4333_v9   ;;  %v5644_v3 = vsel %vm2545_vm0, %v5643_v44, %v5642_v29  ;;  %v5654_v9 = vperm.slane %v11095_v48, %v13128_v47 }
 0xb7c   : > { %v5832_v32 = vsel %vm3040_vm9, %v5644_v3, %v5831_v10 }
 0xb7d   : > { %v11136_v2 = vpop.permute.xlu1 %5208 }
 0xb7e   : > { %5256 = vperm.xlu2 %6543, %v4307_v27   ;;  %v5684_v27 = vperm.slane %v5233_v55, %v13128_v47  ;;  %v5251_v29 = vpop.permute.xlu0 %5250  ;;  %v13192_v55 = vld [vmem:[#allocation31_spill] sm:$0xff] }
 0xb7f   : > { %v5370_v23 = vperm.slane %v13192_v55, %v13126_v41 }
 0xb80   : > { %v5158_v33 = vpop.permute.xlu2 %5157 }
 0xb81   : > { %v5646_v34 = vperm.slane %v5158_v33, %v13126_v41  ;;  %v13186_v33 = vld [vmem:[#allocation152_spill] sm:$0xff] }
 0xb82   : > { %v4316_v63 = vmul.f32 %v13186_v33, %v10244_v46 }
 0xb83   : > { %5343 = vperm.xlu1 %6542, %v4336_v37   ;;  %v5647_v18 = vsel %vm2545_vm0, %v5646_v34, %v5645_v49  ;;  %v13190_v49 = vld [vmem:[#allocation35_spill] sm:$0xff] }
 0xb84   : > { %v5833_v15 = vsel %vm3042_vm10, %v5647_v18, %v5832_v32  ;;  %v5373_v51 = vperm.slane %v13190_v49, %v13126_v41 }
 0xb85   : > { %v11144_v22 = vpop.permute.xlu1 %5217  ;;  %v5834_v5 = vsel %vm3044_vm11, %v5650_v30, %v5833_v15  ;;  %v5381_v15 = vperm.slane %v13196_v60, %v13128_v47  ;;  %v13211_v60 = vld [vmem:[#allocation187_spill] sm:$0xff] }
 0xb86   : > { %5265 = vperm.xlu2 %6543, %v4310_v54  }
 0xb88   : > { %v5167_v7 = vpop.permute.xlu2 %5166 }
 0xb89   : > { %v5651_v31 = vperm.slane %v5167_v7, %v13128_v47  ;;  %v5693_v7 = vperm.slane %v5251_v29, %v13128_v47 }
 0xb8b   : > { %5352 = vperm.xlu1 %6542, %v4339_v6   ;;  %v5653_v17 = vsel %vm2545_vm0, %v5652_v19, %v5651_v31  ;;  %v13193_v31 = vld [vmem:[#allocation168_spill] sm:$0xff] }
 0xb8c   : > { %v5835_v37 = vsel %vm3046_vm12, %v5653_v17, %v5834_v5  ;;  %v5369_v13 = vperm.slane %v13193_v31, %v13128_v47  ;;  %v13195_v19 = vld [vmem:[#allocation96_spill] sm:$0xff]  ;;  %v13197_v17 = vld [vmem:[#allocation171_spill] sm:$0xff] }
 0xb8d   : > { %v11169_v21 = vpop.permute.xlu1 %5226  ;;  %v5376_v32 = vperm.slane %v13195_v19, %v13126_v41 }
 0xb8e   : > { %5274 = vperm.xlu2 %6543, %v4313_v45   ;;  %v5372_v45 = vperm.slane %v13191_v38, %v13128_v47  ;;  %v5371_v30 = vsel %vm2545_vm0, %v5370_v23, %v5369_v13  ;;  %v13208_v23 = vld [vmem:[#allocation184_spill] sm:$0xff]  ;;  %v13209_v13 = vld [vmem:[#allocation179_spill] sm:$0xff] }
 0xb8f   : > { %v5387_v31 = vperm.slane %v13208_v23, %v13128_v47 }
 0xb90   : > { %v5176_v53 = vpop.permute.xlu2 %5175  ;;  %v5374_v10 = vsel %vm2545_vm0, %v5373_v51, %v5372_v45  ;;  %v13206_v51 = vld [vmem:[#allocation44_spill] sm:$0xff]  ;;  %v13207_v45 = vld [vmem:[#allocation46_spill] sm:$0xff] }
 0xb91   : > { %v5655_v1 = vperm.slane %v5176_v53, %v13126_v41  ;;  %v5379_v53 = vperm.slane %v13197_v17, %v13126_v41  ;;  %v5753_v33 = vsel %vm3036_vm7, %v5374_v10, %v5371_v30  ;;  %v5390_v38 = vperm.slane %v13206_v51, %v13128_v47  ;;  %v13212_v17 = vld [vmem:[#allocation197_spill] sm:$0xff] }
 0xb92   : > { %v5442_v55 = vperm.slane %v13207_v45, %v13126_v41  ;;  %v5388_v10 = vperm.slane %v13209_v13, %v13126_v41  ;;  %v13220_v51 = vld [vmem:[#allocation157_spill] sm:$0xff] }
 0xb93   : > { %5361 = vperm.xlu1 %6542, %v4342_v61   ;;  %v5656_v62 = vsel %vm2545_vm0, %v5655_v1, %v5654_v9  ;;  %v5378_v61 = vperm.slane %v13194_v59, %v13128_v47  ;;  %v13198_v9 = vld [vmem:[#allocation56_spill] sm:$0xff]  ;;  %v5516_v45 = vperm.slane %v13220_v51, %v13128_v47 }
 0xb94   : > { %v5836_v40 = vsel %vm3048_vm13, %v5656_v62, %v5835_v37  ;;  %v5385_v1 = vperm.slane %v13198_v9, %v13126_v41  ;;  %v13201_v62 = vld [vmem:[#allocation158_spill] sm:$0xff] }
 0xb95   : > { %v5236_v26 = vpop.permute.xlu1 %5235  ;;  %v5915_v54 = vsel %vm5881_vm15, %v5836_v40, 0.0  ;;  %v4325_v37 = vmul.f32 %v13201_v62, %v10260_v50 }
 0xb96   : > { %v5685_v8 = vperm.slane %v5236_v26, %v13126_v41  ;;  %5283 = vperm.xlu2 %6543, %v4316_v63   ;;  %5916 = vadd.xlane.f32.xlu0 %v5915_v54  ;;  %v13199_v26 = vld [vmem:[#allocation181_spill] sm:$0xff]  ;;  %v13202_v63 = vld [vmem:[#allocation186_spill] sm:$0xff]  ;;  %v5380_v54 = vsel %vm2545_vm0, %v5379_v53, %v5378_v61  ;;  %v13210_v61 = vld [vmem:[#allocation27_spill] sm:$0xff]  ;;  %v5441_v53 = vperm.slane %v13212_v17, %v13128_v47 }
 0xb97   : > { %v5375_v5 = vperm.slane %v13199_v26, %v13128_v47  ;;  %v5384_v40 = vperm.slane %v13202_v63, %v13128_v47  ;;  %v5447_v19 = vperm.slane %v13210_v61, %v13128_v47  ;;  %v13224_v17 = vld [vmem:[#allocation94_spill] sm:$0xff] }
 0xb98   : > { %v11202_v48 = vsel %vm2545_vm0, %v5685_v8, %v5684_v27  ;;  %v11207_v16 = vpop.permute.xlu2 %5184  ;;  %v13200_v27 = vld [vmem:[#allocation148_spill] sm:$0xff] }
 0xb99   : > { %v5382_v8 = vperm.slane %v13200_v27, %v13126_v41  ;;  %v5386_v49 = vsel %vm2545_vm0, %v5385_v1, %v5384_v40  ;;  %v13213_v1 = vld [vmem:[#allocation185_spill] sm:$0xff]  ;;  %v13216_v40 = vld [vmem:[#allocation67_spill] sm:$0xff] }
 0xb9a   : > { %v5450_v26 = vperm.slane %v13213_v1, %v13128_v47  ;;  %v13214_v27 = vld [vmem:[#allocation73_spill] sm:$0xff]  ;;  %v13226_v1 = vld [vmem:[#allocation76_spill] sm:$0xff] }
 0xb9b   : > { %6547 = vset.pattern.permute.xlu1 %v13187_v25  ;;  %v13203_v25 = vld [vmem:[#allocation21_spill] sm:$0xff] }
 0xb9c   : > { %v5444_v43 = vperm.slane %v13203_v25, %v13128_v47 }
 0xb9d   : > { %v11210_v6 = vpop.permute.xlu1 %5244 }
 0xb9e   : > { %5292 = vperm.xlu2 %6543, %v4319_v0   ;;  %v13204_v0 = vld [vmem:[#allocation192_spill] sm:$0xff] }
 0xb9f   : > { %v5445_v29 = vperm.slane %v13204_v0, %v13126_v41 }
 0xba0   : > { %v11214_v12 = vpop.permute.xlu2 %5193 }
 0xba1   : > { %v5446_v9 = vsel %vm2545_vm0, %v5445_v29, %v5444_v43  ;;  %v13217_v43 = vld [vmem:[#allocation182_spill] sm:$0xff] }
 0xba2   : > { %v5454_v0 = vperm.slane %v13217_v43, %v13126_v41  ;;  %v13218_v29 = vld [vmem:[#allocation166_spill] sm:$0xff] }
 0xba5   : > { %v5254_v34 = vpop.permute.xlu1 %5253 }
 0xba6   : > { %v5694_v44 = vperm.slane %v5254_v34, %v13126_v41  ;;  %5301 = vperm.xlu2 %6543, %v4322_v24   ;;  %v5377_v34 = vsel %vm2545_vm0, %v5376_v32, %v5375_v5 }
 0xba7   : > { %v5754_v24 = vsel %vm3038_vm8, %v5377_v34, %v5753_v33  ;;  %v13215_v33 = vld [vmem:[#allocation101_spill] sm:$0xff]  ;;  %v4328_v34 = vmul.f32 %v13218_v29, %v10244_v46 }
 0xba8   : > { %v11223_v3 = vsel %vm2545_vm0, %v5694_v44, %v5693_v7  ;;  %v11229_v18 = vpop.permute.xlu2 %5202  ;;  %v5383_v7 = vsel %vm2545_vm0, %v5382_v8, %v5381_v15  ;;  %v13205_v44 = vld [vmem:[#allocation61_spill] sm:$0xff]  ;;  %v5755_v59 = vsel %vm3040_vm9, %v5380_v54, %v5754_v24  ;;  %v5391_v15 = vperm.slane %v13211_v60, %v13126_v41 }
 0xba9   : > { %v5448_v57 = vperm.slane %v13205_v44, %v13126_v41  ;;  %v5756_v30 = vsel %vm3042_vm10, %v5383_v7, %v5755_v59  ;;  %v5453_v8 = vperm.slane %v13214_v27, %v13128_v47  ;;  %v5451_v63 = vperm.slane %v13215_v33, %v13126_v41  ;;  %v13222_v59 = vld [vmem:[#allocation136_spill] sm:$0xff]  ;;  %v13223_v60 = vld [vmem:[#allocation57_spill] sm:$0xff] }
 0xbaa   : > { %v5757_v62 = vsel %vm3044_vm11, %v5386_v49, %v5756_v30  ;;  %v5457_v54 = vperm.slane %v13216_v40, %v13126_v41  ;;  %v5392_v25 = vsel %vm2545_vm0, %v5391_v15, %v5390_v38  ;;  %v5389_v7 = vsel %vm2545_vm0, %v5388_v10, %v5387_v31  ;;  %v13225_v30 = vld [vmem:[#allocation193_spill] sm:$0xff] }
 0xbab   : > { %v5449_v5 = vsel %vm2545_vm0, %v5448_v57, %v5447_v19  ;;  %v13219_v57 = vld [vmem:[#allocation75_spill] sm:$0xff]  ;;  %v5758_v38 = vsel %vm3046_vm12, %v5389_v7, %v5757_v62  ;;  %v5455_v13 = vsel %vm2545_vm0, %v5454_v0, %v5453_v8  ;;  %v5520_v31 = vperm.slane %v13222_v59, %v13126_v41  ;;  %v13227_v8 = vld [vmem:[#allocation84_spill] sm:$0xff]  ;;  %v13230_v29 = vld [vmem:[#allocation113_spill] sm:$0xff] }
 0xbac   : > { %v5456_v24 = vperm.slane %v13219_v57, %v13128_v47  ;;  %v5759_v10 = vsel %vm3048_vm13, %v5392_v25, %v5758_v38  ;;  %v5452_v61 = vsel %vm2545_vm0, %v5451_v63, %v5450_v26  ;;  %v5462_v15 = vperm.slane %v13223_v60, %v13128_v47  ;;  %v13229_v25 = vld [vmem:[#allocation198_spill] sm:$0xff]  ;;  %v13233_v38 = vld [vmem:[#allocation159_spill] sm:$0xff] }
 0xbad   : > { %v5519_v62 = vperm.slane %v13227_v8, %v13128_v47  ;;  %v5459_v43 = vperm.slane %v13229_v25, %v13128_v47  ;;  %v13231_v57 = vld [vmem:[#allocation30_spill] sm:$0xff] }
 0xbae   : > { %5310 = vperm.xlu2 %6543, %v4325_v37   ;;  %v5443_v37 = vsel %vm2545_vm0, %v5442_v55, %v5441_v53  ;;  %v13221_v55 = vld [vmem:[#allocation83_spill] sm:$0xff]  ;;  %v5458_v19 = vsel %vm2545_vm0, %v5457_v54, %v5456_v24  ;;  %v5514_v53 = vperm.slane %v13224_v17, %v13126_v41  ;;  %v5882_v54 = vsel %vm5881_vm15, %v5759_v10, 0.0  ;;  %v13235_v10 = vld [vmem:[#allocation92_spill] sm:$0xff] }
 0xbaf   : > { %v5774_v44 = vsel %vm3036_vm7, %v5446_v9, %v5443_v37  ;;  %v5517_v23 = vperm.slane %v13221_v55, %v13126_v41  ;;  %v5463_v9 = vperm.slane %v13225_v30, %v13126_v41  ;;  %v13228_v37 = vld [vmem:[#allocation97_spill] sm:$0xff]  ;;  %v5521_v0 = vsel %vm2545_vm0, %v5520_v31, %v5519_v62  ;;  %v11359_v30 = vpop.permute.xlu0 %5259 }
 0xbb0   : > { %v11276_v32 = vpop.permute.xlu2 %5211  ;;  %v5775_v49 = vsel %vm3038_vm8, %v5449_v5, %v5774_v44  ;;  %v5460_v5 = vperm.slane %v13226_v1, %v13126_v41  ;;  %v5513_v33 = vperm.slane %v13228_v37, %v13128_v47  ;;  %v5523_v24 = vperm.slane %v13231_v57, %v13126_v41  ;;  %v13238_v62 = vld [vmem:[#allocation77_spill] sm:$0xff] }
 0xbb1   : > { %v5776_v27 = vsel %vm3040_vm9, %v5452_v61, %v5775_v49  ;;  %v5518_v40 = vsel %vm2545_vm0, %v5517_v23, %v5516_v45  ;;  %v13232_v49 = vld [vmem:[#allocation146_spill] sm:$0xff]  ;;  %v5464_v45 = vsel %vm2545_vm0, %v5463_v9, %v5462_v15  ;;  %v4331_v55 = vmul.f32 %v13233_v38, %v10260_v50  ;;  %v13234_v23 = vld [vmem:[#allocation107_spill] sm:$0xff] }
 0xbb2   : > { %v5777_v63 = vsel %vm3042_vm10, %v5455_v13, %v5776_v27  ;;  %v5515_v44 = vsel %vm2545_vm0, %v5514_v53, %v5513_v33  ;;  %v5529_v51 = vperm.slane %v13232_v49, %v13126_v41  ;;  %v5526_v13 = vperm.slane %v13234_v23, %v13126_v41  ;;  %v13237_v27 = vld [vmem:[#allocation123_spill] sm:$0xff]  ;;  %v13239_v33 = vld [vmem:[#allocation40_spill] sm:$0xff]  ;;  %v13241_v49 = vld [vmem:[#allocation129_spill] sm:$0xff] }
 0xbb3   : > { %v5778_v7 = vsel %vm3044_vm11, %v5458_v19, %v5777_v63  ;;  %v5461_v59 = vsel %vm2545_vm0, %v5460_v5, %v5459_v43  ;;  %v5795_v31 = vsel %vm3036_vm7, %v5518_v40, %v5515_v44  ;;  %v5522_v61 = vperm.slane %v13235_v10, %v13128_v47  ;;  %v13236_v19 = vld [vmem:[#allocation25_spill] sm:$0xff] }
 0xbb4   : > { %v5528_v60 = vperm.slane %v13236_v19, %v13128_v47  ;;  %v5796_v17 = vsel %vm3038_vm8, %v5521_v0, %v5795_v31  ;;  %v5779_v15 = vsel %vm3046_vm12, %v5461_v59, %v5778_v7  ;;  %v5534_v8 = vperm.slane %v13237_v27, %v13128_v47 }
 0xbb5   : > { %v5780_v9 = vsel %vm3048_vm13, %v5464_v45, %v5779_v15  ;;  %v5524_v1 = vsel %vm2545_vm0, %v5523_v24, %v5522_v61  ;;  %v5535_v37 = vperm.slane %v13238_v62, %v13126_v41  ;;  %v5532_v63 = vperm.slane %v13239_v33, %v13126_v41 }
 0xbb6   : > { %5319 = vperm.xlu2 %6543, %v4328_v34   ;;  %v5525_v34 = vperm.slane %v13230_v29, %v13128_v47  ;;  %v5530_v5 = vsel %vm2545_vm0, %v5529_v51, %v5528_v60  ;;  %v5797_v40 = vsel %vm3040_vm9, %v5524_v1, %v5796_v17  ;;  %v5681_v43 = vperm.slane %v11169_v21, %v13128_v47 }
 0xbb7   : > { %v5891_v29 = vsel %vm5881_vm15, %v5780_v9, 0.0  ;;  %v5536_v24 = vsel %vm2545_vm0, %v5535_v37, %v5534_v8  ;;  %v4334_v51 = vmul.f32 %v13241_v49, %v10244_v46  ;;  %v5660_v38 = vperm.slane %v11207_v16, %v13128_v47  ;;  %v11400_v16 = vpop.permute.xlu0 %5268  ;;  %v13242_v9 = vld [vmem:[#allocation149_spill] sm:$0xff] }
 0xbb8   : > { %v11327_v26 = vpop.permute.xlu2 %5220  ;;  %v5527_v53 = vsel %vm2545_vm0, %v5526_v13, %v5525_v34  ;;  %v13240_v34 = vld [vmem:[#allocation98_spill] sm:$0xff]  ;;  %v5664_v13 = vperm.slane %v11214_v12, %v13126_v41  ;;  %v5661_v31 = vperm.slane %v11093_v52, %v13126_v41  ;;  %v5658_v10 = vperm.slane %v11106_v39, %v13126_v41 }
 0xbb9   : > { %v5798_v25 = vsel %vm3042_vm10, %v5527_v53, %v5797_v40  ;;  %v5531_v7 = vperm.slane %v13240_v34, %v13128_v47  ;;  %v5663_v61 = vperm.slane %v11120_v20, %v13128_v47  ;;  %v5688_v12 = vperm.slane %v11205_v11, %v13126_v41 }
 0xbba   : > { %v5799_v44 = vsel %vm3044_vm11, %v5530_v5, %v5798_v25  ;;  %v5662_v60 = vsel %vm2545_vm0, %v5661_v31, %v5660_v38  ;;  %v5667_v20 = vperm.slane %v11128_v28, %v13126_v41  ;;  %v5673_v11 = vperm.slane %v11276_v32, %v13126_v41 }
 0xbbb   : > { %v5533_v45 = vsel %vm2545_vm0, %v5532_v63, %v5531_v7  ;;  %v5665_v39 = vsel %vm2545_vm0, %v5664_v13, %v5663_v61  ;;  %v4337_v1 = vmul.f32 %v13242_v9, %v10260_v50  ;;  %v5670_v5 = vperm.slane %v11126_v14, %v13126_v41  ;;  %v13244_v13 = vld [vmem:[#allocation195_spill] sm:$0xff]  ;;  %v13247_v9 = vld [vmem:[#allocation190_spill] sm:$0xff] }
 0xbbc   : > { %v5800_v23 = vsel %vm3046_vm12, %v5533_v45, %v5799_v44  ;;  %v5666_v8 = vperm.slane %v11111_v58, %v13128_v47  ;;  %v5672_v28 = vperm.slane %v11136_v2, %v13128_v47  ;;  %v5678_v63 = vperm.slane %v11327_v26, %v13128_v47 }
 0xbbd   : > { %5883 = vadd.xlane.f32.xlu1 %v5882_v54  ;;  %v5801_v59 = vsel %vm3048_vm13, %v5536_v24, %v5800_v23  ;;  %v5679_v40 = vperm.slane %v11142_v35, %v13126_v41  ;;  %v5676_v58 = vperm.slane %v11144_v22, %v13126_v41  ;;  %v5690_v25 = vperm.slane %v11210_v6, %v13128_v47  ;;  %v13243_v6 = vld [vmem:[#allocation177_spill] sm:$0xff] }
 0xbbe   : > { %5328 = vperm.xlu2 %6543, %v4331_v55   ;;  %v11388_v55 = vpop.permute.xlu1 %5262  ;;  %v5900_v52 = vsel %vm5881_vm15, %v5801_v59, 0.0  ;;  %v5668_v37 = vsel %vm2545_vm0, %v5667_v20, %v5666_v8  ;;  %v5674_v33 = vsel %vm2545_vm0, %v5673_v11, %v5672_v28  ;;  %v5675_v26 = vperm.slane %v11134_v4, %v13128_v47  ;;  %v13246_v11 = vld [vmem:[#allocation38_spill] sm:$0xff]  ;;  %v13250_v28 = vld [vmem:[#allocation191_spill] sm:$0xff] }
 0xbbf   : > { %v11447_v35 = vpop.permute.xlu0 %5277  ;;  %v5680_v7 = vsel %vm2545_vm0, %v5679_v40, %v5678_v63  ;;  %v4340_v44 = vmul.f32 %v13243_v6, %v10244_v46  ;;  %v5697_v45 = vperm.slane %v11359_v30, %v13126_v41  ;;  %v4343_v59 = vmul.f32 %v13244_v13, %v10260_v50  ;;  %v13253_v63 = vld [vmem:[#allocation163_spill] sm:$0xff] }
 0xbc0   : > { %v5230_v54 = vpop.permute.xlu2 %5229  ;;  %v5405_v40 = vperm.slane %v13253_v63, %v13128_v47  ;;  %v13259_v6 = vld [vmem:[#allocation59_spill] sm:$0xff] }
 0xbc1   : > { %v5682_v0 = vperm.slane %v5230_v54, %v13126_v41 }
 0xbc3   : > { %v5683_v57 = vsel %vm2545_vm0, %v5682_v0, %v5681_v43 }
 0xbc4   : > { %v5844_v21 = vsel %vm3036_vm7, %v11202_v48, %v5683_v57  ;;  %v5657_v48 = vperm.slane %v11075_v56, %v13128_v47  ;;  %v5669_v56 = vperm.slane %v11229_v18, %v13128_v47  ;;  %v5677_v57 = vsel %vm2545_vm0, %v5676_v58, %v5675_v26  ;;  %v13254_v58 = vld [vmem:[#allocation175_spill] sm:$0xff] }
 0xbc5   : > { %5892 = vadd.xlane.f32.xlu1 %v5891_v29  ;;  %v5909_v29 = vsel %vm5881_vm15, %v11046_v36, 0.0 }
 0xbc6   : > { %5337 = vperm.xlu2 %6543, %v4334_v51   ;;  %v5659_v15 = vsel %vm2545_vm0, %v5658_v10, %v5657_v48  ;;  %v5671_v62 = vsel %vm2545_vm0, %v5670_v5, %v5669_v56  ;;  %v5272_v14 = vpop.permute.xlu1 %5271  ;;  %v5699_v48 = vperm.slane %v11388_v55, %v13128_v47  ;;  %v13245_v56 = vld [vmem:[#allocation8_spill] sm:$0xff]  ;;  %v13248_v5 = vld [vmem:[#allocation42_spill] sm:$0xff] }
 0xbc7   : > { %v5837_v27 = vsel %vm3036_vm7, %v5662_v60, %v5659_v15  ;;  %v5703_v10 = vperm.slane %v5272_v14, %v13126_v41 }
 0xbc8   : > { %v5239_v19 = vpop.permute.xlu2 %5238  ;;  %v5838_v32 = vsel %vm3038_vm8, %v5665_v39, %v5837_v27  ;;  %v5399_v27 = vperm.slane %v13248_v5, %v13128_v47 }
 0xbc9   : > { %v5687_v17 = vperm.slane %v5239_v19, %v13128_v47  ;;  %v5839_v2 = vsel %vm3040_vm9, %v5668_v37, %v5838_v32  ;;  %v5702_v19 = vperm.slane %v11400_v16, %v13128_v47  ;;  %v5393_v32 = vperm.slane %v13250_v28, %v13128_v47  ;;  %v13269_v28 = vld [vmem:[#allocation62_spill] sm:$0xff] }
 0xbca   : > { %v5840_v43 = vsel %vm3042_vm10, %v5671_v62, %v5839_v2  ;;  %v13251_v62 = vld [vmem:[#allocation174_spill] sm:$0xff]  ;;  %v5409_v2 = vperm.slane %v13254_v58, %v13126_v41  ;;  %v13271_v58 = vld [vmem:[#allocation79_spill] sm:$0xff] }
 0xbcb   : > { %v5689_v53 = vsel %vm2545_vm0, %v5688_v12, %v5687_v17  ;;  %v5841_v22 = vsel %vm3044_vm11, %v5674_v33, %v5840_v43  ;;  %v5704_v60 = vsel %vm2545_vm0, %v5703_v10, %v5702_v19  ;;  %v5397_v37 = vperm.slane %v13251_v62, %v13126_v41  ;;  %v13252_v33 = vld [vmem:[#allocation41_spill] sm:$0xff]  ;;  %v13266_v19 = vld [vmem:[#allocation106_spill] sm:$0xff] }
 0xbcc   : > { %v5845_v18 = vsel %vm3038_vm8, %v5689_v53, %v5844_v21  ;;  %v5842_v36 = vsel %vm3046_vm12, %v5677_v57, %v5841_v22  ;;  %v5394_v53 = vperm.slane %v13246_v11, %v13126_v41  ;;  %v5403_v14 = vperm.slane %v13252_v33, %v13126_v41  ;;  %v13256_v43 = vld [vmem:[#allocation65_spill] sm:$0xff]  ;;  %v13258_v22 = vld [vmem:[#allocation180_spill] sm:$0xff] }
 0xbcd   : > { %5901 = vadd.xlane.f32.xlu1 %v5900_v52  ;;  %v5843_v49 = vsel %vm3048_vm13, %v5680_v7, %v5842_v36  ;;  %v13270_v33 = vld [vmem:[#allocation60_spill] sm:$0xff] }
 0xbce   : > { %5346 = vperm.xlu2 %6543, %v4337_v1   ;;  %v11462_v21 = vpop.permute.xlu1 %5280  ;;  %v5918_v38 = vsel %vm5881_vm15, %v5843_v49, 0.0  ;;  %v5396_v1 = vperm.slane %v13247_v9, %v13128_v47  ;;  %v5395_v7 = vsel %vm2545_vm0, %v5394_v53, %v5393_v32  ;;  %v13268_v53 = vld [vmem:[#allocation39_spill] sm:$0xff]  ;;  %v5480_v32 = vperm.slane %v13269_v28, %v13128_v47 }
 0xbcf   : > { %v5411_v9 = vperm.slane %v13268_v53, %v13128_v47 }
 0xbd0   : > { %v5248_v54 = vpop.permute.xlu2 %5247 }
 0xbd1   : > { %v5691_v0 = vperm.slane %v5248_v54, %v13126_v41  ;;  %v13255_v54 = vld [vmem:[#allocation36_spill] sm:$0xff] }
 0xbd3   : > { %v5692_v34 = vsel %vm2545_vm0, %v5691_v0, %v5690_v25  ;;  %v5468_v25 = vperm.slane %v13255_v54, %v13128_v47  ;;  %v5466_v0 = vperm.slane %v13256_v43, %v13126_v41  ;;  %v5484_v54 = vperm.slane %v13271_v58, %v13126_v41  ;;  %v13272_v43 = vld [vmem:[#allocation18_spill] sm:$0xff]  ;;  %v13286_v58 = vld [vmem:[#allocation119_spill] sm:$0xff] }
 0xbd4   : > { %v5846_v24 = vsel %vm3040_vm9, %v5692_v34, %v5845_v18  ;;  %v13249_v18 = vld [vmem:[#allocation100_spill] sm:$0xff]  ;;  %v5402_v34 = vperm.slane %v13258_v22, %v13128_v47 }
 0xbd5   : > { %5910 = vadd.xlane.f32.xlu1 %v5909_v29  ;;  %v5847_v4 = vsel %vm3042_vm10, %v11223_v3, %v5846_v24  ;;  %v11469_v3 = vpop.permute.xlu0 %5286  ;;  %v5400_v8 = vperm.slane %v13249_v18, %v13126_v41  ;;  %v13257_v29 = vld [vmem:[#allocation50_spill] sm:$0xff]  ;;  %v13260_v24 = vld [vmem:[#allocation89_spill] sm:$0xff]  ;;  %v13273_v22 = vld [vmem:[#allocation188_spill] sm:$0xff] }
 0xbd6   : > { %5355 = vperm.xlu2 %6543, %v4340_v44   ;;  %v11478_v12 = vpop.permute.xlu1 %5289  ;;  %v5472_v26 = vperm.slane %v13257_v29, %v13126_v41  ;;  %v5471_v44 = vperm.slane %v13259_v6, %v13128_v47  ;;  %v5465_v36 = vperm.slane %v13260_v24, %v13128_v47  ;;  %v5404_v13 = vsel %vm2545_vm0, %v5403_v14, %v5402_v34  ;;  %v13274_v34 = vld [vmem:[#allocation68_spill] sm:$0xff] }
 0xbd7   : > { %v5401_v57 = vsel %vm2545_vm0, %v5400_v8, %v5399_v27  ;;  %v5478_v14 = vperm.slane %v13270_v33, %v13126_v41 }
 0xbd8   : > { %v5257_v51 = vpop.permute.xlu2 %5256  ;;  %v5473_v5 = vsel %vm2545_vm0, %v5472_v26, %v5471_v44 }
 0xbd9   : > { %v5696_v46 = vperm.slane %v5257_v51, %v13128_v47  ;;  %v13262_v51 = vld [vmem:[#allocation70_spill] sm:$0xff] }
 0xbdb   : > { %v5698_v23 = vsel %vm2545_vm0, %v5697_v45, %v5696_v46  ;;  %v5475_v45 = vperm.slane %v13262_v51, %v13126_v41  ;;  %v5398_v46 = vsel %vm2545_vm0, %v5397_v37, %v5396_v1 }
 0xbdc   : > { %v5848_v31 = vsel %vm3044_vm11, %v5698_v23, %v5847_v4  ;;  %v13261_v4 = vld [vmem:[#allocation99_spill] sm:$0xff] }
 0xbdd   : > { %5919 = vadd.xlane.f32.xlu1 %v5918_v38  ;;  %v11486_v39 = vpop.permute.xlu0 %5295  ;;  %v5469_v49 = vperm.slane %v13261_v4, %v13126_v41  ;;  %v13263_v38 = vld [vmem:[#allocation49_spill] sm:$0xff] }
 0xbde   : > { %5364 = vperm.xlu2 %6543, %v4343_v59   ;;  %v11491_v15 = vpop.permute.xlu1 %5298  ;;  %v5406_v23 = vperm.slane %v13263_v38, %v13126_v41  ;;  %v13264_v59 = vld [vmem:[#allocation23_spill] sm:$0xff] }
 0xbdf   : > { %v5470_v18 = vsel %vm2545_vm0, %v5469_v49, %v5468_v25  ;;  %v5481_v25 = vperm.slane %v13272_v43, %v13126_v41 }
 0xbe0   : > { %v5266_v30 = vpop.permute.xlu2 %5265 }
 0xbe1   : > { %v5700_v61 = vperm.slane %v5266_v30, %v13126_v41  ;;  %v5760_v30 = vsel %vm3036_vm7, %v5398_v46, %v5395_v7  ;;  %v5483_v7 = vperm.slane %v13274_v34, %v13128_v47 }
 0xbe2   : > { %v5761_v1 = vsel %vm3038_vm8, %v5401_v57, %v5760_v30  ;;  %v5482_v57 = vsel %vm2545_vm0, %v5481_v25, %v5480_v32 }
 0xbe3   : > { %v5701_v50 = vsel %vm2545_vm0, %v5700_v61, %v5699_v48  ;;  %v13265_v48 = vld [vmem:[#allocation53_spill] sm:$0xff]  ;;  %v5762_v27 = vsel %vm3040_vm9, %v5404_v13, %v5761_v1  ;;  %v5485_v49 = vsel %vm2545_vm0, %v5484_v54, %v5483_v7  ;;  %v13277_v13 = vld [vmem:[#allocation172_spill] sm:$0xff]  ;;  %v13281_v1 = vld [vmem:[#allocation103_spill] sm:$0xff]  ;;  %v5547_v54 = vperm.slane %v13286_v58, %v13126_v41 }
 0xbe4   : > { %v5849_v17 = vsel %vm3046_vm12, %v5701_v50, %v5848_v31  ;;  %v5408_v31 = vperm.slane %v13264_v59, %v13128_v47  ;;  %v5412_v61 = vperm.slane %v13265_v48, %v13126_v41  ;;  %v5474_v50 = vperm.slane %v13266_v19, %v13128_v47  ;;  %v13288_v7 = vld [vmem:[#allocation164_spill] sm:$0xff] }
 0xbe5   : > { %v11484_v52 = vsel %vm3048_vm13, %v5704_v60, %v5849_v17  ;;  %v11493_v16 = vpop.permute.xlu0 %5304  ;;  %v5467_v60 = vsel %vm2545_vm0, %v5466_v0, %v5465_v36  ;;  %v5407_v0 = vsel %vm2545_vm0, %v5406_v23, %v5405_v40  ;;  %v13275_v40 = vld [vmem:[#allocation153_spill] sm:$0xff]  ;;  %v5486_v59 = vperm.slane %v13277_v13, %v13128_v47 }
 0xbe6   : > { %6545 = vset.pattern.permute.xlu2 %v13245_v56  ;;  %v11539_v10 = vpop.permute.xlu1 %5307  ;;  %v13267_v56 = vld [vmem:[#allocation34_spill] sm:$0xff]  ;;  %v5476_v8 = vsel %vm2545_vm0, %v5475_v45, %v5474_v50  ;;  %v5410_v37 = vsel %vm2545_vm0, %v5409_v2, %v5408_v31  ;;  %v5781_v63 = vsel %vm3036_vm7, %v5470_v18, %v5467_v60  ;;  %v5413_v29 = vsel %vm2545_vm0, %v5412_v61, %v5411_v9  ;;  %v13276_v45 = vld [vmem:[#allocation105_spill] sm:$0xff] }
 0xbe7   : > { %v5477_v11 = vperm.slane %v13267_v56, %v13128_v47  ;;  %v5782_v26 = vsel %vm3038_vm8, %v5473_v5, %v5781_v63  ;;  %v5415_v2 = vperm.slane %v13273_v22, %v13126_v41  ;;  %v5763_v44 = vsel %vm3042_vm10, %v5407_v0, %v5762_v27  ;;  %v13278_v31 = vld [vmem:[#allocation66_spill] sm:$0xff]  ;;  %v13280_v56 = vld [vmem:[#allocation81_spill] sm:$0xff]  ;;  %v13282_v27 = vld [vmem:[#allocation71_spill] sm:$0xff] }
 0xbe8   : > { %v11489_v55 = vpop.permute.xlu2 %5274  ;;  %v5783_v6 = vsel %vm3040_vm9, %v5476_v8, %v5782_v26  ;;  %v5764_v24 = vsel %vm3044_vm11, %v5410_v37, %v5763_v44  ;;  %v5414_v36 = vperm.slane %v13275_v40, %v13128_v47  ;;  %v5487_v46 = vperm.slane %v13276_v45, %v13126_v41  ;;  %v13279_v50 = vld [vmem:[#allocation142_spill] sm:$0xff]  ;;  %v13283_v8 = vld [vmem:[#allocation93_spill] sm:$0xff]  ;;  %v13284_v37 = vld [vmem:[#allocation72_spill] sm:$0xff] }
 0xbe9   : > { %v5479_v4 = vsel %vm2545_vm0, %v5478_v14, %v5477_v11  ;;  %v5765_v51 = vsel %vm3046_vm12, %v5413_v29, %v5764_v24  ;;  %v5540_v30 = vperm.slane %v13278_v31, %v13128_v47  ;;  %v5541_v60 = vperm.slane %v13279_v50, %v13126_v41  ;;  %v13285_v14 = vld [vmem:[#allocation26_spill] sm:$0xff] }
 0xbea   : > { %v5784_v23 = vsel %vm3042_vm10, %v5479_v4, %v5783_v6  ;;  %v5416_v61 = vsel %vm2545_vm0, %v5415_v2, %v5414_v36  ;;  %v5538_v11 = vperm.slane %v13280_v56, %v13126_v41  ;;  %v5544_v5 = vperm.slane %v13281_v1, %v13126_v41  ;;  %v13287_v2 = vld [vmem:[#allocation125_spill] sm:$0xff]  ;;  %v13289_v36 = vld [vmem:[#allocation20_spill] sm:$0xff] }
 0xbeb   : > { %v5785_v19 = vsel %vm3044_vm11, %v5482_v57, %v5784_v23  ;;  %v5766_v53 = vsel %vm3048_vm13, %v5416_v61, %v5765_v51  ;;  %v5549_v18 = vperm.slane %v13282_v27, %v13128_v47  ;;  %v5543_v28 = vperm.slane %v13283_v8, %v13128_v47  ;;  %v13292_v27 = vld [vmem:[#allocation147_spill] sm:$0xff] }
 0xbec   : > { %v5786_v9 = vsel %vm3046_vm12, %v5485_v49, %v5785_v19  ;;  %v5553_v33 = vperm.slane %v13284_v37, %v13126_v41  ;;  %v5537_v63 = vperm.slane %v13285_v14, %v13128_v47  ;;  %v5488_v25 = vsel %vm2545_vm0, %v5487_v46, %v5486_v59 }
 0xbed   : > { %v11560_v62 = vpop.permute.xlu0 %5313  ;;  %v5708_v0 = vperm.slane %v11462_v21, %v13128_v47  ;;  %v5705_v29 = vperm.slane %v11489_v55, %v13128_v47  ;;  %v5787_v26 = vsel %vm3048_vm13, %v5488_v25, %v5786_v9  ;;  %v5542_v22 = vsel %vm2545_vm0, %v5541_v60, %v5540_v30  ;;  %v13291_v30 = vld [vmem:[#allocation150_spill] sm:$0xff] }
 0xbee   : > { %v11593_v48 = vpop.permute.xlu1 %5316  ;;  %v5546_v34 = vperm.slane %v13287_v2, %v13128_v47  ;;  %v5550_v6 = vperm.slane %v13288_v7, %v13126_v41  ;;  %v5539_v44 = vsel %vm2545_vm0, %v5538_v11, %v5537_v63  ;;  %v5545_v57 = vsel %vm2545_vm0, %v5544_v5, %v5543_v28  ;;  %v13293_v63 = vld [vmem:[#allocation111_spill] sm:$0xff] }
 0xbef   : > { %v5706_v21 = vperm.slane %v11447_v35, %v13126_v41  ;;  %v5552_v4 = vperm.slane %v13289_v36, %v13128_v47  ;;  %v5712_v49 = vperm.slane %v11478_v12, %v13126_v41  ;;  %v5802_v46 = vsel %vm3036_vm7, %v5542_v22, %v5539_v44  ;;  %v13290_v35 = vld [vmem:[#allocation176_spill] sm:$0xff] }
 0xbf0   : > { %v11495_v20 = vpop.permute.xlu2 %5283  ;;  %v5548_v40 = vsel %vm2545_vm0, %v5547_v54, %v5546_v34  ;;  %v5556_v23 = vperm.slane %v13290_v35, %v13126_v41  ;;  %v5803_v59 = vsel %vm3038_vm8, %v5545_v57, %v5802_v46  ;;  %v5711_v31 = vperm.slane %v11469_v3, %v13128_v47 }
 0xbf1   : > { %v5709_v32 = vperm.slane %v11495_v20, %v13126_v41  ;;  %v5885_v20 = vsel %vm5881_vm15, %v5766_v53, 0.0  ;;  %v5707_v13 = vsel %vm2545_vm0, %v5706_v21, %v5705_v29  ;;  %v5717_v12 = vperm.slane %v11491_v15, %v13128_v47 }
 0xbf2   : > { %v5555_v61 = vperm.slane %v13291_v30, %v13128_v47  ;;  %v5804_v19 = vsel %vm3040_vm9, %v5548_v40, %v5803_v59  ;;  %v5894_v60 = vsel %vm5881_vm15, %v5787_v26, 0.0  ;;  %v5554_v56 = vsel %vm2545_vm0, %v5553_v33, %v5552_v4 }
 0xbf3   : > { %v5710_v55 = vsel %vm2545_vm0, %v5709_v32, %v5708_v0  ;;  %v5713_v3 = vsel %vm2545_vm0, %v5712_v49, %v5711_v31  ;;  %v5551_v53 = vsel %vm2545_vm0, %v5550_v6, %v5549_v18  ;;  %v5721_v1 = vperm.slane %v11539_v10, %v13126_v41  ;;  %v6557_v49 = vld [vmem:[%s11875_s4] ss:$0 sm:$0xff] }
 0xbf4   : > { %v5557_v9 = vsel %vm2545_vm0, %v5556_v23, %v5555_v61  ;;  %v5559_v8 = vperm.slane %v13292_v27, %v13126_v41  ;;  %v5724_v28 = vperm.slane %v11560_v62, %v13126_v41  ;;  %v5805_v33 = vsel %vm3042_vm10, %v5551_v53, %v5804_v19 }
 0xbf5   : > { %v11617_v43 = vpop.permute.xlu0 %5322  ;;  %v5720_v18 = vperm.slane %v11493_v16, %v13128_v47  ;;  %v5806_v10 = vsel %vm3044_vm11, %v5554_v56, %v5805_v33  ;;  %v5558_v58 = vperm.slane %v13293_v63, %v13128_v47  ;;  %v5726_v29 = vperm.slane %v11593_v48, %v13128_v47 }
 0xbf6   : > { %v11659_v50 = vpop.permute.xlu1 %5325  ;;  %v5807_v62 = vsel %vm3046_vm12, %v5557_v9, %v5806_v10  ;;  %v5921_v4 = vsel %vm5881_vm15, %v11484_v52, 0.0 }
 0xbf7   : > { %v5722_v0 = vsel %vm2545_vm0, %v5721_v1, %v5720_v18  ;;  %v5560_v26 = vsel %vm2545_vm0, %v5559_v8, %v5558_v58 }
 0xbf8   : > { %v11547_v17 = vpop.permute.xlu2 %5292  ;;  %v5808_v34 = vsel %vm3048_vm13, %v5560_v26, %v5807_v62  ;;  %v13296_v62 = vld [vmem:[#allocation12_spill] sm:$0xff] }
 0xbf9   : > { %v5714_v24 = vperm.slane %v11547_v17, %v13128_v47  ;;  %v5715_v17 = vperm.slane %v11486_v39, %v13126_v41  ;;  %v5903_v48 = vsel %vm5881_vm15, %v5808_v34, 0.0 }
 0xbfb   : > { %v5716_v39 = vsel %vm2545_vm0, %v5715_v17, %v5714_v24  ;;  %v5730_v17 = vperm.slane %v11659_v50, %v13126_v41 }
 0xbfd   : > { %v5332_v32 = vpop.permute.xlu0 %5331 }
 0xbfe   : > { %v5335_v6 = vpop.permute.xlu1 %5334  ;;  %v5733_v23 = vperm.slane %v5332_v32, %v13126_v41 }
 0xbff   : > { %v5735_v52 = vperm.slane %v5335_v6, %v13128_v47 }
 0xc00   : > { %v5302_v38 = vpop.permute.xlu2 %5301 }
 0xc01   : > { %v5718_v51 = vperm.slane %v5302_v38, %v13126_v41  ;;  %v5851_v38 = vsel %vm3036_vm7, %v5710_v55, %v5707_v13  ;;  %v5912_v55 = vsel %vm5881_vm15, %v11116_v42, 0.0  ;;  %v5729_v13 = vperm.slane %v11617_v43, %v13128_v47 }
 0xc02   : > { %v5852_v5 = vsel %vm3038_vm8, %v5713_v3, %v5851_v38 }
 0xc03   : > { %v5719_v11 = vsel %vm2545_vm0, %v5718_v51, %v5717_v12  ;;  %v5853_v37 = vsel %vm3040_vm9, %v5716_v39, %v5852_v5  ;;  %v5731_v30 = vsel %vm2545_vm0, %v5730_v17, %v5729_v13 }
 0xc04   : > { %v5854_v14 = vsel %vm3042_vm10, %v5719_v11, %v5853_v37 }
 0xc05   : > { %v5341_v57 = vpop.permute.xlu0 %5340 }
 0xc06   : > { %v5344_v24 = vpop.permute.xlu1 %5343  ;;  %v5738_v43 = vperm.slane %v5341_v57, %v13128_v47 }
 0xc07   : > { %5886 = vadd.xlane.f32.xlu2 %v5885_v20  ;;  %v5855_v20 = vsel %vm3044_vm11, %v5722_v0, %v5854_v14  ;;  %v5739_v61 = vperm.slane %v5344_v24, %v13126_v41  ;;  %v13299_v0 = vld [vmem:[#allocation13_spill] sm:$0xff] }
 0xc08   : > { %v5311_v45 = vpop.permute.xlu2 %5310 }
 0xc09   : > { %v5723_v15 = vperm.slane %v5311_v45, %v13128_v47  ;;  %v5740_v53 = vsel %vm2545_vm0, %v5739_v61, %v5738_v43 }
 0xc0b   : > { %v5725_v54 = vsel %vm2545_vm0, %v5724_v28, %v5723_v15 }
 0xc0c   : > { %v5856_v2 = vsel %vm3046_vm12, %v5725_v54, %v5855_v20 }
 0xc0d   : > { %v5350_v36 = vpop.permute.xlu0 %5349 }
 0xc0e   : > { %v5353_v45 = vpop.permute.xlu1 %5352  ;;  %v5742_v50 = vperm.slane %v5350_v36, %v13126_v41 }
 0xc0f   : > { %5895 = vadd.xlane.f32.xlu2 %v5894_v60  ;;  %v13294_v60 = vmov 0   ;;  %v5744_v56 = vperm.slane %v5353_v45, %v13128_v47 }
 0xc10   : > { %v5320_v25 = vpop.permute.xlu2 %5319 }
 0xc11   : > { %v5727_v16 = vperm.slane %v5320_v25, %v13126_v41  ;;  %v13295_v25 = vld [vmem:[#allocation10_spill] sm:$0xff] }
 0xc13   : > { %v5728_v22 = vsel %vm2545_vm0, %v5727_v16, %v5726_v29 }
 0xc14   : > { %v5857_v7 = vsel %vm3048_vm13, %v5728_v22, %v5856_v2 }
 0xc15   : > { %v5924_v44 = vsel %vm5881_vm15, %v5857_v7, 0.0  ;;  %v5359_v35 = vpop.permute.xlu0 %5358 }
 0xc16   : > { %5925 = vadd.xlane.f32.xlu0 %v5924_v44  ;;  %v5362_v3 = vpop.permute.xlu1 %5361  ;;  %v5747_v28 = vperm.slane %v5359_v35, %v13128_v47 }
 0xc17   : > { %5904 = vadd.xlane.f32.xlu2 %v5903_v48  ;;  %v5748_v5 = vperm.slane %v5362_v3, %v13126_v41 }
 0xc18   : > { %v5329_v21 = vpop.permute.xlu2 %5328 }
 0xc19   : > { %v5732_v46 = vperm.slane %v5329_v21, %v13128_v47  ;;  %v5749_v14 = vsel %vm2545_vm0, %v5748_v5, %v5747_v28 }
 0xc1b   : > { %v5734_v59 = vsel %vm2545_vm0, %v5733_v23, %v5732_v46 }
 0xc1c   : > { %v5858_v39 = vsel %vm3036_vm7, %v5734_v59, %v5731_v30 }
 0xc1d   : > { %v5368_v1 = vpop.permute.xlu0 %5367 }
 0xc1e   : > { %v5751_v33 = vperm.slane %v5368_v1, %v13126_v41 }
 0xc1f   : > { %5913 = vadd.xlane.f32.xlu2 %v5912_v55 }
 0xc20   : > { %v5338_v40 = vpop.permute.xlu2 %5337 }
 0xc21   : > { %v5736_v42 = vperm.slane %v5338_v40, %v13126_v41 }
 0xc23   : > { %v5737_v31 = vsel %vm2545_vm0, %v5736_v42, %v5735_v52 }
 0xc24   : > { %v5859_v11 = vsel %vm3038_vm8, %v5737_v31, %v5858_v39 }
 0xc25   : > { %v5860_v27 = vsel %vm3040_vm9, %v5740_v53, %v5859_v11  ;;  %v5890_v29 = vpop.xlane.xlu0 %5889 }
 0xc27   : > { %5922 = vadd.xlane.f32.xlu2 %v5921_v4 }
 0xc28   : > { %v5347_v51 = vpop.permute.xlu2 %5346 }
 0xc29   : > { %v5741_v12 = vperm.slane %v5347_v51, %v13128_v47 }
 0xc2a   : > { %5943 = vperm.xlu0 %6546, %v6557_v49  }
 0xc2b   : > { %v5743_v15 = vsel %vm2545_vm0, %v5742_v50, %v5741_v12 }
 0xc2c   : > { %v5861_v8 = vsel %vm3042_vm10, %v5743_v15, %v5860_v27 }
 0xc2d   : > { %v5899_v16 = vpop.xlane.xlu0 %5898 }
 0xc30   : > { %v5356_v38 = vpop.permute.xlu2 %5355  ;;  %v5884_v7 = vpop.xlane.xlu1 %5883 }
 0xc31   : > { %v5745_v19 = vperm.slane %v5356_v38, %v13126_v41  ;;  %v13298_v41 = vld [vmem:[#allocation14_spill] sm:$0xff] }
 0xc32   : > { %6553 = vset.pattern.permute.xlu0 %v13294_v60 }
 0xc33   : > { %v5746_v9 = vsel %vm2545_vm0, %v5745_v19, %v5744_v56 }
 0xc34   : > { %v5862_v37 = vsel %vm3044_vm11, %v5746_v9, %v5861_v8 }
 0xc35   : > { %v5863_v63 = vsel %vm3046_vm12, %v5749_v14, %v5862_v37  ;;  %v5908_v22 = vpop.xlane.xlu0 %5907 }
 0xc38   : > { %v5365_v32 = vpop.permute.xlu2 %5364  ;;  %v5893_v57 = vpop.xlane.xlu1 %5892 }
 0xc39   : > { %v5750_v18 = vperm.slane %v5365_v32, %v13128_v47  ;;  %v13297_v47 = vld [vmem:[#allocation11_spill] sm:$0xff] }
 0xc3b   : > { %v5752_v10 = vsel %vm2545_vm0, %v5751_v33, %v5750_v18 }
 0xc3c   : > { %v5864_v58 = vsel %vm3048_vm13, %v5752_v10, %v5863_v63 }
 0xc3d   : > { %v5927_v54 = vsel %vm5881_vm15, %v5864_v58, 0.0  ;;  %v5917_v34 = vpop.xlane.xlu0 %5916 }
 0xc3e   : > { %5928 = vadd.xlane.f32.xlu1 %v5927_v54 }
 0xc3f   : > { %5937 = vperm.xlu2 %6545, %v6557_v49  }
 0xc40   : > { %v5902_v51 = vpop.xlane.xlu1 %5901 }
 0xc47   : > { %6548 = vset.pattern.permute.xlu2 %v13295_v25 }
 0xc48   : > { %v5911_v59 = vpop.xlane.xlu1 %5910 }
 0xc4f   : > { %5955 = vperm.xlu2 %6548, %v6557_v49  }
 0xc50   : > { %v11758_v30 = vpop.xlane.xlu1 %5919 }
 0xc57   : > { %6550 = vset.pattern.permute.xlu2 %v13296_v62  ;;  %5949 = vperm.xlu1 %6547, %v6557_v49  }
 0xc5f   : > { %5967 = vperm.xlu2 %6550, %v6557_v49   ;;  %6549 = vset.pattern.permute.xlu1 %v13297_v47 }
 0xc67   : > { %6552 = vset.pattern.permute.xlu2 %v13298_v41  ;;  %5961 = vperm.xlu1 %6549, %v6557_v49  }
 0xc6f   : > { %5979 = vperm.xlu2 %6552, %v6557_v49   ;;  %6551 = vset.pattern.permute.xlu1 %v13299_v0 }
 0xc77   : > { %5973 = vperm.xlu1 %6551, %v6557_v49   ;;  %6555 = vset.pattern.permute.xlu2 %v13294_v60 }
 0xc7a   : > { %v5887_v20 = vpop.xlane.xlu2 %5886 }
 0xc7f   : > { %6554 = vset.pattern.permute.xlu1 %v13294_v60 }
 0xc82   : > { %v11747_v26 = vpop.xlane.xlu2 %5895 }
 0xc89   : > { %v11751_v44 = vpop.xlane.xlu0 %5925 }
 0xc8a   : > { %v5905_v2 = vpop.xlane.xlu2 %5904 }
 0xc92   : > { %v11749_v6 = vpop.xlane.xlu2 %5913 }
 0xc9a   : > { %v11753_v48 = vpop.xlane.xlu2 %5922 }
 0xc9c   : > { %v11755_v21 = vpop.permute.xlu0 %5943 }
 0xc9d   : > { %v5990_v55 = vadd.f32 %v11755_v21, %v5887_v20 }
 0xc9f   : > { %v6006_v24 = vadd.f32 3.0, %v5990_v55 }
 0xca1   : > { %v6022_v40 = vmax.f32 %v6006_v24, 0.0 }
 0xca2   : > { %v5938_v36 = vpop.permute.xlu2 %5937 }
 0xca3   : > { %v6038_v4 = vmin.f32 %v6022_v40, 6.0  ;;  %v5989_v49 = vadd.f32 %v5938_v36, %v5884_v7  ;;  %v5997_v19 = vadd.f32 %v5938_v36, %v5908_v22 }
 0xca5   : > { %v6054_v45 = vmul.f32 0.16666667, %v6038_v4  ;;  %v6005_v46 = vadd.f32 3.0, %v5989_v49  ;;  %v6013_v60 = vadd.f32 3.0, %v5997_v19 }
 0xca7   : > { %v6021_v35 = vmax.f32 %v6005_v46, 0.0  ;;  %6076 = vperm.xlu1 %6554, %v6054_v45   ;;  %v6029_v11 = vmax.f32 %v6013_v60, 0.0 }
 0xca9   : > { %v6037_v42 = vmin.f32 %v6021_v35, 6.0  ;;  %v6045_v9 = vmin.f32 %v6029_v11, 6.0 }
 0xcaa   : > { %v5956_v23 = vpop.permute.xlu2 %5955 }
 0xcab   : > { %v6053_v17 = vmul.f32 0.16666667, %v6037_v42  ;;  %v5992_v52 = vadd.f32 %v5956_v23, %v5893_v57  ;;  %v6000_v15 = vadd.f32 %v5956_v23, %v5917_v34  ;;  %v6061_v27 = vmul.f32 0.16666667, %v6045_v9 }
 0xcad   : > { %v6008_v13 = vadd.f32 3.0, %v5992_v52  ;;  %6071 = vperm.xlu0 %6553, %v6053_v17   ;;  %v6016_v1 = vadd.f32 3.0, %v6000_v15  ;;  %v6561_v15 = vld [vmem:[%s6818_s25 + $0x10] sm:$0xff] }
 0xcaf   : > { %v6024_v31 = vmax.f32 %v6008_v13, 0.0  ;;  %v6032_v8 = vmax.f32 %v6016_v1, 0.0 }
 0xcb1   : > { %v6040_v12 = vmin.f32 %v6024_v31, 6.0  ;;  %v11760_v3 = vpop.xlane.xlu1 %5928  ;;  %v6048_v37 = vmin.f32 %v6032_v8, 6.0  ;;  %v6564_v8 = vld [vmem:[%s6818_s25 + $0x8] sm:$0xff] }
 0xcb3   : > { %v6056_v38 = vmul.f32 0.16666667, %v6040_v12  ;;  %v6064_v14 = vmul.f32 0.16666667, %v6048_v37  ;;  %v6565_v37 = vld [vmem:[%s6818_s25 + $0x30] sm:$0xff] }
 0xcb5   : > { %6086 = vperm.xlu1 %6554, %v6056_v38  }
 0xcb9   : > { %v5968_v61 = vpop.permute.xlu2 %5967 }
 0xcba   : > { %v5994_v50 = vadd.f32 %v5968_v61, %v5899_v16  ;;  %v6002_v7 = vadd.f32 %v5968_v61, %v11753_v48 }
 0xcbc   : > { %v6010_v39 = vadd.f32 3.0, %v5994_v50  ;;  %v6018_v49 = vadd.f32 3.0, %v6002_v7  ;;  %v6572_v7 = vld [vmem:[%s6818_s25 + $0x48] sm:$0xff] }
 0xcbe   : > { %v6026_v43 = vmax.f32 %v6010_v39, 0.0  ;;  %v6034_v17 = vmax.f32 %v6018_v49, 0.0 }
 0xcc0   : > { %v6042_v56 = vmin.f32 %v6026_v43, 6.0 }
 0xcc2   : > { %v6058_v53 = vmul.f32 0.16666667, %v6042_v56 }
 0xcc4   : > { %6096 = vperm.xlu0 %6553, %v6058_v53  }
 0xcc9   : > { %v5950_v5 = vpop.permute.xlu1 %5949  ;;  %v5980_v63 = vpop.permute.xlu2 %5979 }
 0xcca   : > { %v5991_v28 = vadd.f32 %v5950_v5, %v5890_v29  ;;  %v5996_v54 = vadd.f32 %v5980_v63, %v5905_v2  ;;  %v5999_v29 = vadd.f32 %v5950_v5, %v11749_v6  ;;  %v6004_v61 = vadd.f32 %v5980_v63, %v11760_v3  ;;  %v6562_v3 = vld [vmem:[%s6818_s25 + $0x18] sm:$0xff]  ;;  %v6563_v5 = vld [vmem:[%s6818_s25] sm:$0xff] }
 0xccb   : > { %v6567_v63 = vld [vmem:[%s6818_s25 + $0x20] sm:$0xff] }
 0xccc   : > { %v6007_v32 = vadd.f32 3.0, %v5991_v28  ;;  %6111 = vperm.xlu0 %6553, %v6061_v27   ;;  %v6012_v47 = vadd.f32 3.0, %v5996_v54  ;;  %v6015_v34 = vadd.f32 3.0, %v5999_v29  ;;  %v6020_v50 = vadd.f32 3.0, %v6004_v61  ;;  %v6568_v54 = vld [vmem:[%s6818_s25 + $0x28] sm:$0xff] }
 0xcce   : > { %v6023_v33 = vmax.f32 %v6007_v32, 0.0  ;;  %v6028_v16 = vmax.f32 %v6012_v47, 0.0  ;;  %v6031_v24 = vmax.f32 %v6015_v34, 0.0  ;;  %v6569_v47 = vld [vmem:[%s6818_s25 + $0x50] sm:$0xff] }
 0xcd0   : > { %v6039_v18 = vmin.f32 %v6023_v33, 6.0  ;;  %v6044_v22 = vmin.f32 %v6028_v16, 6.0  ;;  %v6047_v45 = vmin.f32 %v6031_v24, 6.0 }
 0xcd2   : > { %v6055_v10 = vmul.f32 0.16666667, %v6039_v18  ;;  %v6060_v55 = vmul.f32 0.16666667, %v6044_v22  ;;  %v6063_v48 = vmul.f32 0.16666667, %v6047_v45 }
 0xcd3   : > { %v6566_v18 = vld [vmem:[%s6818_s25 + $0x38] sm:$0xff]  ;;  %v6571_v22 = vld [vmem:[%s6818_s25 + $0x40] sm:$0xff] }
 0xcd4   : > { %6081 = vperm.xlu2 %6555, %v6055_v10   ;;  %6126 = vperm.xlu0 %6553, %v6064_v14   ;;  %v6576_v45 = vld [vmem:[%s6818_s25 + $0x78] sm:$0xff] }
 0xcd9   : > { %v5962_v58 = vpop.permute.xlu1 %5961 }
 0xcda   : > { %v5993_v25 = vadd.f32 %v5962_v58, %v11747_v26  ;;  %v5998_v26 = vadd.f32 %v11755_v21, %v5911_v59 }
 0xcdc   : > { %v6009_v62 = vadd.f32 3.0, %v5993_v25  ;;  %v6014_v35 = vadd.f32 3.0, %v5998_v26 }
 0xcde   : > { %v6025_v41 = vmax.f32 %v6009_v62, 0.0  ;;  %v6030_v31 = vmax.f32 %v6014_v35, 0.0 }
 0xce0   : > { %v6041_v0 = vmin.f32 %v6025_v41, 6.0  ;;  %v6046_v21 = vmin.f32 %v6030_v31, 6.0 }
 0xce2   : > { %v6057_v20 = vmul.f32 0.16666667, %v6041_v0  ;;  %v6062_v38 = vmul.f32 0.16666667, %v6046_v21  ;;  %v6570_v0 = vld [vmem:[%s6818_s25 + $0x58] sm:$0xff] }
 0xce4   : > { %6091 = vperm.xlu2 %6555, %v6057_v20  }
 0xce9   : > { %v5974_v57 = vpop.permute.xlu1 %5973 }
 0xcea   : > { %v5995_v40 = vadd.f32 %v5974_v57, %v5902_v51  ;;  %v6003_v2 = vadd.f32 %v5974_v57, %v11751_v44  ;;  %v6001_v51 = vadd.f32 %v5962_v58, %v11758_v30  ;;  %v6050_v44 = vmin.f32 %v6034_v17, 6.0 }
 0xceb   : > { %v6036_v30 = vmax.f32 %v6020_v50, 0.0 }
 0xcec   : > { %v6011_v36 = vadd.f32 3.0, %v5995_v40  ;;  %v6019_v4 = vadd.f32 3.0, %v6003_v2  ;;  %6106 = vperm.xlu2 %6555, %v6060_v55   ;;  %v6017_v59 = vadd.f32 3.0, %v6001_v51  ;;  %v6066_v12 = vmul.f32 0.16666667, %v6050_v44  ;;  %v6573_v55 = vld [vmem:[%s6818_s25 + $0x80] sm:$0xff] }
 0xced   : > { %v6052_v43 = vmin.f32 %v6036_v30, 6.0  ;;  %v6574_v40 = vld [vmem:[%s6818_s25 + $0x88] sm:$0xff]  ;;  %v6581_v44 = vld [vmem:[%s6818_s25 + $0xd0] sm:$0xff] }
 0xcee   : > { %v6027_v6 = vmax.f32 %v6011_v36, 0.0  ;;  %v6035_v46 = vmax.f32 %v6019_v4, 0.0  ;;  %v6033_v19 = vmax.f32 %v6017_v59, 0.0  ;;  %v6575_v4 = vld [vmem:[%s6818_s25 + $0x70] sm:$0xff]  ;;  %v6582_v59 = vld [vmem:[%s6818_s25 + $0xd8] sm:$0xff] }
 0xcef   : > { %v6068_v56 = vmul.f32 0.16666667, %v6052_v43 }
 0xcf0   : > { %v6043_v42 = vmin.f32 %v6027_v6, 6.0  ;;  %v6051_v23 = vmin.f32 %v6035_v46, 6.0  ;;  %v6049_v39 = vmin.f32 %v6033_v19, 6.0  ;;  %v6577_v46 = vld [vmem:[%s6818_s25 + $0xb0] sm:$0xff]  ;;  %v6583_v19 = vld [vmem:[%s6818_s25 + $0xe0] sm:$0xff] }
 0xcf2   : > { %v6059_v52 = vmul.f32 0.16666667, %v6043_v42  ;;  %v6067_v13 = vmul.f32 0.16666667, %v6051_v23  ;;  %v6065_v60 = vmul.f32 0.16666667, %v6049_v39 }
 0xcf3   : > { %v6578_v42 = vld [vmem:[%s6818_s25 + $0xb8] sm:$0xff]  ;;  %v6584_v39 = vld [vmem:[%s6818_s25 + $0x60] sm:$0xff] }
 0xcf4   : > { %6121 = vperm.xlu2 %6555, %v6063_v48   ;;  %6141 = vperm.xlu0 %6553, %v6067_v13   ;;  %v6579_v48 = vld [vmem:[%s6818_s25 + $0xa0] sm:$0xff]  ;;  %v6580_v13 = vld [vmem:[%s6818_s25 + $0xa8] sm:$0xff] }
 0xcf5   : > { %6101 = vperm.xlu1 %6554, %v6059_v52  }
 0xcfc   : > { %6136 = vperm.xlu2 %6555, %v6066_v12  }
 0xcfd   : > { %6116 = vperm.xlu1 %6554, %v6062_v38  }
 0xd05   : > { %6131 = vperm.xlu1 %6554, %v6065_v60   ;;  %v6585_v60 = vld [vmem:[%s6818_s25 + $0x68] sm:$0xff] }
 0xd0d   : > { %6146 = vperm.xlu1 %6554, %v6068_v56   ;;  %v6586_v56 = vld [vmem:[%s6818_s25 + $0xe8] sm:$0xff] }
 0xd19   : > { %v6077_v11 = vpop.permute.xlu1 %6076 }
 0xd1a   : > { %v6151_v53 = vmul.f32 %v6561_v15, %v6077_v11  ;;  %v6152_v9 = vmul.f32 %v6562_v3, %v6077_v11 }
 0xd1c   : > { %6183 = vst [vmem:[%s11773_s17 + $0x10] sm:$0xff] %v6151_v53  ;;  %v6587_v53 = vld [vmem:[%s6818_s25 + $0x90] sm:$0xff] }
 0xd1d   : > { %6184 = vst [vmem:[%s11773_s17 + $0x18] sm:$0xff] %v6152_v9  ;;  %v6588_v9 = vld [vmem:[%s6818_s25 + $0x98] sm:$0xff] }
 0xd1f   : > { %v6072_v1 = vpop.permute.xlu0 %6071 }
 0xd20   : > { %v6149_v27 = vmul.f32 %v6563_v5, %v6072_v1  ;;  %v6150_v28 = vmul.f32 %v6564_v8, %v6072_v1 }
 0xd22   : > { %6181 = vst [vmem:[%s11773_s17] sm:$0xff] %v6149_v27  ;;  %v6589_v27 = vld [vmem:[%s6818_s25 + $0xc0] sm:$0xff] }
 0xd23   : > { %6182 = vst [vmem:[%s11773_s17 + $0x8] sm:$0xff] %v6150_v28  ;;  %v6590_v28 = vld [vmem:[%s6818_s25 + $0xc8] sm:$0xff] }
 0xd27   : > { %v6087_v32 = vpop.permute.xlu1 %6086 }
 0xd28   : > { %v6155_v33 = vmul.f32 %v6565_v37, %v6087_v32  ;;  %v6156_v14 = vmul.f32 %v6566_v18, %v6087_v32 }
 0xd2a   : > { %6187 = vst [vmem:[%s11773_s17 + $0x30] sm:$0xff] %v6155_v33  ;;  %v6591_v33 = vld [vmem:[%s6818_s25 + $0xf0] sm:$0xff] }
 0xd2b   : > { %6188 = vst [vmem:[%s11773_s17 + $0x38] sm:$0xff] %v6156_v14  ;;  %v6592_v14 = vld [vmem:[%s6818_s25 + $0xf8] sm:$0xff] }
 0xd2e   : > { %v6082_v10 = vpop.permute.xlu2 %6081 }
 0xd2f   : > { %v6153_v58 = vmul.f32 %v6567_v63, %v6082_v10  ;;  %v6154_v25 = vmul.f32 %v6568_v54, %v6082_v10 }
 0xd31   : > { %6185 = vst [vmem:[%s11773_s17 + $0x20] sm:$0xff] %v6153_v58 }
 0xd32   : > { %6186 = vst [vmem:[%s11773_s17 + $0x28] sm:$0xff] %v6154_v25 }
 0xd36   : > { %v6097_v62 = vpop.permute.xlu0 %6096 }
 0xd37   : > { %v6159_v41 = vmul.f32 %v6569_v47, %v6097_v62  ;;  %v6160_v16 = vmul.f32 %v6570_v0, %v6097_v62 }
 0xd39   : > { %6191 = vst [vmem:[%s11773_s17 + $0x50] sm:$0xff] %v6159_v41 }
 0xd3a   : > { %6192 = vst [vmem:[%s11773_s17 + $0x58] sm:$0xff] %v6160_v16 }
 0xd3e   : > { %v6092_v29 = vpop.permute.xlu2 %6091  ;;  %v6112_v20 = vpop.permute.xlu0 %6111 }
 0xd3f   : > { %v6157_v34 = vmul.f32 %v6571_v22, %v6092_v29  ;;  %v6158_v57 = vmul.f32 %v6572_v7, %v6092_v29  ;;  %v6165_v24 = vmul.f32 %v6573_v55, %v6112_v20  ;;  %v6166_v2 = vmul.f32 %v6574_v40, %v6112_v20 }
 0xd41   : > { %6189 = vst [vmem:[%s11773_s17 + $0x40] sm:$0xff] %v6157_v34 }
 0xd42   : > { %6190 = vst [vmem:[%s11773_s17 + $0x48] sm:$0xff] %v6158_v57 }
 0xd43   : > { %6197 = vst [vmem:[%s11773_s17 + $0x80] sm:$0xff] %v6165_v24 }
 0xd44   : > { %6198 = vst [vmem:[%s11773_s17 + $0x88] sm:$0xff] %v6166_v2 }
 0xd46   : > { %v6107_v26 = vpop.permute.xlu2 %6106  ;;  %v6127_v36 = vpop.permute.xlu0 %6126 }
 0xd47   : > { %v6163_v49 = vmul.f32 %v6575_v4, %v6107_v26  ;;  %v6164_v6 = vmul.f32 %v6576_v45, %v6107_v26  ;;  %v6171_v35 = vmul.f32 %v6577_v46, %v6127_v36  ;;  %v6172_v23 = vmul.f32 %v6578_v42, %v6127_v36 }
 0xd49   : > { %6195 = vst [vmem:[%s11773_s17 + $0x70] sm:$0xff] %v6163_v49 }
 0xd4a   : > { %6196 = vst [vmem:[%s11773_s17 + $0x78] sm:$0xff] %v6164_v6 }
 0xd4b   : > { %6203 = vst [vmem:[%s11773_s17 + $0xb0] sm:$0xff] %v6171_v35 }
 0xd4c   : > { %6204 = vst [vmem:[%s11773_s17 + $0xb8] sm:$0xff] %v6172_v23 }
 0xd4e   : > { %v6122_v17 = vpop.permute.xlu2 %6121 }
 0xd4f   : > { %v6169_v52 = vmul.f32 %v6579_v48, %v6122_v17  ;;  %v6170_v31 = vmul.f32 %v6580_v13, %v6122_v17 }
 0xd51   : > { %6201 = vst [vmem:[%s11773_s17 + $0xa0] sm:$0xff] %v6169_v52 }
 0xd52   : > { %6202 = vst [vmem:[%s11773_s17 + $0xa8] sm:$0xff] %v6170_v31 }
 0xd56   : > { %v6137_v51 = vpop.permute.xlu2 %6136 }
 0xd57   : > { %v6175_v21 = vmul.f32 %v6581_v44, %v6137_v51  ;;  %v6176_v12 = vmul.f32 %v6582_v59, %v6137_v51 }
 0xd59   : > { %6207 = vst [vmem:[%s11773_s17 + $0xd0] sm:$0xff] %v6175_v21 }
 0xd5a   : > { %6208 = vst [vmem:[%s11773_s17 + $0xd8] sm:$0xff] %v6176_v12 }
 0xd66   : > { %v6142_v38 = vpop.permute.xlu0 %6141 }
 0xd67   : > { %v6102_v61 = vpop.permute.xlu1 %6101  ;;  %v6177_v50 = vmul.f32 %v6583_v19, %v6142_v38  ;;  %v6178_v11 = vmul.f32 %v6586_v56, %v6142_v38 }
 0xd68   : > { %v6161_v30 = vmul.f32 %v6584_v39, %v6102_v61  ;;  %v6162_v43 = vmul.f32 %v6585_v60, %v6102_v61 }
 0xd69   : > { %6209 = vst [vmem:[%s11773_s17 + $0xe0] sm:$0xff] %v6177_v50 }
 0xd6a   : > { %6193 = vst [vmem:[%s11773_s17 + $0x60] sm:$0xff] %v6161_v30 }
 0xd6b   : > { %6194 = vst [vmem:[%s11773_s17 + $0x68] sm:$0xff] %v6162_v43 }
 0xd6c   : > { %6210 = vst [vmem:[%s11773_s17 + $0xe8] sm:$0xff] %v6178_v11 }
 0xd6f   : > { %v6117_v15 = vpop.permute.xlu1 %6116 }
 0xd70   : > { %v6167_v3 = vmul.f32 %v6587_v53, %v6117_v15  ;;  %v6168_v1 = vmul.f32 %v6588_v9, %v6117_v15 }
 0xd72   : > { %6199 = vst [vmem:[%s11773_s17 + $0x90] sm:$0xff] %v6167_v3 }
 0xd73   : > { %6200 = vst [vmem:[%s11773_s17 + $0x98] sm:$0xff] %v6168_v1 }
 0xd77   : > { %v6132_v5 = vpop.permute.xlu1 %6131 }
 0xd78   : > { %v6173_v8 = vmul.f32 %v6589_v27, %v6132_v5  ;;  %v6174_v32 = vmul.f32 %v6590_v28, %v6132_v5 }
 0xd7a   : > { %6205 = vst [vmem:[%s11773_s17 + $0xc0] sm:$0xff] %v6173_v8 }
 0xd7b   : > { %6206 = vst [vmem:[%s11773_s17 + $0xc8] sm:$0xff] %v6174_v32 }
 0xd7f   : > { %v6147_v37 = vpop.permute.xlu1 %6146 }
 0xd80   : > { %v6179_v18 = vmul.f32 %v6591_v33, %v6147_v37  ;;  %v6180_v10 = vmul.f32 %v6592_v14, %v6147_v37 }
 0xd82   : > { %6211 = vst [vmem:[%s11773_s17 + $0xf0] sm:$0xff] %v6179_v18 }
 0xd83   : > { %6212 = vst [vmem:[%s11773_s17 + $0xf8] sm:$0xff] %v6180_v10 }
 0xd84   : > { %6650 = shalt.err (!%p6647_p4)
}
 0xd85   : > { %s6694_s12 = smov 256   ;;  %s6695_s25 = smov 16  }
 0xd86   : > { %6325 = dma.vmem_to_hbm [thread:$0]  (%p6776_p11), %s6228_s9, 4096, %s6230_s10, %s6214_s22, %s6694_s12, %s6694_s12, %s6695_s25  }
 0xd87 PF: > { %s6244_s17 = sand.u32 1, %s6677_s18   ;;  %p13300_p7 = scmp.ge.s32.totalorder %s6689_s21, 2 }
 0xd88   : > { %s6245_s14 = scalar_lea.sflag [#allocation4], %s6244_s17 }
 0xd89   : > { %p6332_p5 = pnand %p13300_p7, %p6780_p12 }
 0xd8b   : > { %p6333_p8 = pneg %p6332_p5 }
 0xd8d   : > { %6672 = dma.done.wait (%p6333_p8), %s6245_s14, 4096  }
 0xd8e   : > { %6674 = vsyncadd (%p6333_p8), %s6245_s14, 4294963200  ;;  %p18_p10 = scmp.ge.s32.totalorder %s6751_s24, 4   ;;  %s13301_s18 = smov %s6681_s19 }
 0xd8f   : > { %s13302_s19 = smov %s6685_s20  ;;  %s13303_s20 = smov %s6763_s27 }
 0xd90   : > { %s13304_s21 = smov %s6751_s24  ;;  %20 = sbr.rel (!%p18_p10) target bundleno = 5 (0x5), region = 85 }
 0xd95   :  { %6251 = vsyncpa [#allocation3], 1 }
 0xd96   :  { %6253 = vsyncpa [#allocation3 + $0x1], 1 }
 0xd97   :  { %6254 = vsyncpa [#allocation4], 1 }
 0xd98   :  { %6256 = vsyncpa [#allocation4 + $0x1], 1 }

</bundles_post_ra>
